<compile_context>
chip_gen: v6e
topology: v6e:2x2x1
jax: 0.10.0
libtpu: 0.0.40
codegen_flags: <defaults>
</compile_context>

<pallas_src>
import functools

import jax
import jax.numpy as jnp
import numpy as np
from jax import lax
from jax.experimental import pallas as pl
from jax.experimental.pallas import tpu as pltpu


def _pcb_conv_kernel(w_ref, b_ref, x_ref, m_ref,
                     xd_ref, mout_ref, stats_ref, xm_ref, *, K, p, d):
    """Stage 1: conv_M (box filter), (conv_I(Ms*x)+b)/Ms, partial BN stats.

    Layouts (W on lanes):
      w_ref     : SMEM (Cout, Cin*K*K)      conv_I weights (scalar reads)
      b_ref     : SMEM (1, Cout)            conv_I bias
      x_ref     : VMEM (tn, Cin, H, W)      unpadded input tile
      m_ref     : VMEM (tn, H+2p, W+2p)     mask tile, padded by p
      xd_ref    : VMEM (tn, Cout, H, W)     (conv_I(Ms*x)+b)/Ms
      mout_ref  : VMEM (tn, H, W)           conv_M(M)
      stats_ref : VMEM (1, 2, Cout, W)      per-tile per-channel sum / sumsq
      xm_ref    : VMEM scratch (tn, Cin, H+2p, W+2p)  zero-padded Ms*x
    """
    tn, Cin, H, W = x_ref.shape
    Cout = xd_ref.shape[1]

    # ---- conv_M: separable KxK all-ones filter on the lane-dense mask -----
    m = m_ref[...]                                        # (tn, H+2p, W+2p)
    rows = m[:, 0:H, :]
    for kh in range(1, K):
        rows = rows + m[:, kh * d:kh * d + H, :]          # sublane shifts
    mconv = rows[:, :, 0:W]
    for kw in range(1, K):
        mconv = mconv + rows[:, :, kw * d:kw * d + W]     # lane shifts
    # Mout == conv_M(M): masked_fill(0) where the conv is already 0 is a no-op.
    mout_ref[...] = mconv

    m_safe = jnp.where(mconv == 0.0, 1.0, mconv)  # binary mask -> exact "== 0"
    inv_m = pl.reciprocal(m_safe, approx=True)    # EUP slot, ~1e-4 rel err

    # ---- build zero-padded Ms*x in VMEM (x itself is never padded in HBM) --
    xm_ref[...] = jnp.zeros_like(xm_ref)
    xm_ref[:, :, p:p + H, p:p + W] = m_safe[:, None, :, :] * x_ref[...]

    # ---- conv_I as Cin*K*K broadcast-scalar FMAs on the VPU ----------------
    # (Cin*K*K = 36, Cout = 8: far too small to feed the MXU usefully.)
    accs = [jnp.zeros((tn, H, W), jnp.float32) + b_ref[0, co]
            for co in range(Cout)]
    tap = 0
    for ci in range(Cin):
        for kh in range(K):
            for kw in range(K):
                patch = xm_ref[:, ci, kh * d:kh * d + H, kw * d:kw * d + W]
                for co in range(Cout):
                    accs[co] = accs[co] + w_ref[co, tap] * patch
                tap += 1

    # ---- renormalize by the mask count, emit xd + partial BN statistics ----
    for co in range(Cout):
        xd = accs[co] * inv_m          # bias renormalized too, like the module
        xd_ref[:, co] = xd
        s = jnp.sum(jnp.sum(xd, axis=0), axis=0, keepdims=True)          # (1,W)
        sq = jnp.sum(jnp.sum(xd * xd, axis=0), axis=0, keepdims=True)    # (1,W)
        stats_ref[0, 0, co:co + 1, :] = s
        stats_ref[0, 1, co:co + 1, :] = sq


def _pcb_bn_relu_kernel(ss_ref, xd_ref, y_ref):
    """Stage 2: y = relu(xd * scale[c] + shift[c]), stored directly in NCHW."""
    Cout = xd_ref.shape[1]
    for co in range(Cout):
        y_ref[:, co] = jnp.maximum(
            xd_ref[:, co] * ss_ref[0, co] + ss_ref[1, co], 0.0)


def partial_conv_block(x_nchw, m_n1hw, w_oikk, bias, gamma, beta,
                       *, kernel_size, padding, dilation=1, eps=1e-5,
                       tile_n=1):
    K, p, d = kernel_size, padding, dilation
    assert 2 * p == d * (K - 1), "expects 'same'-shape conv configuration"
    N, Cin, H, W = x_nchw.shape
    Cout = w_oikk.shape[0]
    Hp, Wp = H + 2 * p, W + 2 * p
    assert N % tile_n == 0
    n_tiles = N // tile_n

    x = x_nchw.astype(jnp.float32)
    # Only the tiny 1-channel mask is padded in HBM (review: pad only the mask).
    m_pad = jnp.pad(m_n1hw.astype(jnp.float32)[:, 0],
                    ((0, 0), (p, p), (p, p)))
    # Weight tap order = (ci, kh, kw), matching the kernel's unrolled loop.
    w2 = w_oikk.astype(jnp.float32).reshape(Cout, Cin * K * K)
    b2 = bias.astype(jnp.float32).reshape(1, Cout)

    conv_kernel = functools.partial(_pcb_conv_kernel, K=K, p=p, d=d)
    xd, m_out, stats = pl.pallas_call(
        conv_kernel,
        out_shape=(jax.ShapeDtypeStruct((N, Cout, H, W), jnp.float32),
                   jax.ShapeDtypeStruct((N, H, W), jnp.float32),
                   jax.ShapeDtypeStruct((n_tiles, 2, Cout, W), jnp.float32)),
        grid=(n_tiles,),
        in_specs=[
            pl.BlockSpec(memory_space=pltpu.MemorySpace.SMEM),   # weights
            pl.BlockSpec(memory_space=pltpu.MemorySpace.SMEM),   # bias
            pl.BlockSpec((tile_n, Cin, H, W), lambda i: (i, 0, 0, 0)),
            pl.BlockSpec((tile_n, Hp, Wp), lambda i: (i, 0, 0)),
        ],
        out_specs=(pl.BlockSpec((tile_n, Cout, H, W), lambda i: (i, 0, 0, 0)),
                   pl.BlockSpec((tile_n, H, W), lambda i: (i, 0, 0)),
                   pl.BlockSpec((1, 2, Cout, W), lambda i: (i, 0, 0, 0))),
        scratch_shapes=[pltpu.VMEM((tile_n, Cin, Hp, Wp), jnp.float32)],
        compiler_params=pltpu.CompilerParams(
            dimension_semantics=("parallel",)),
    )(w2, b2, x, m_pad)

    # ---- tiny glue: global BatchNorm statistics -> per-channel scale/shift --
    count = jnp.float32(N * H * W)
    sums = jnp.sum(stats, axis=(0, 3))                    # (2, Cout)
    mean = sums[0] / count
    var = sums[1] / count - mean * mean                   # biased variance
    inv_std = lax.rsqrt(jnp.maximum(var, 0.0) + eps)
    scale = gamma.astype(jnp.float32) * inv_std
    shift = beta.astype(jnp.float32) - mean * scale
    ss = jnp.stack([scale, shift])                        # (2, Cout)

    tile_h = 8 if H % 8 == 0 else H
    y = pl.pallas_call(
        _pcb_bn_relu_kernel,
        out_shape=jax.ShapeDtypeStruct((N, Cout, H, W), jnp.float32),
        grid=(n_tiles, H // tile_h),
        in_specs=[
            pl.BlockSpec(memory_space=pltpu.MemorySpace.SMEM),   # scale/shift
            pl.BlockSpec((tile_n, Cout, tile_h, W), lambda i, j: (i, 0, j, 0)),
        ],
        out_specs=pl.BlockSpec((tile_n, Cout, tile_h, W),
                               lambda i, j: (i, 0, j, 0)),
        compiler_params=pltpu.CompilerParams(
            dimension_semantics=("parallel", "parallel")),
    )(ss, xd)

    # PyTorch conventions: y already NCHW; mask back to (N, 1, H, W).
    return y, m_out[:, None]


def _reference(x, m, w, b, gamma, beta, K, p, d, eps):
    dn = ("NCHW", "OIHW", "NCHW")
    ones_k = jnp.ones((1, 1, K, K), jnp.float32)
    mc = lax.conv_general_dilated(m, ones_k, (1, 1), [(p, p), (p, p)],
                                  rhs_dilation=(d, d), dimension_numbers=dn,
                                  precision=lax.Precision.HIGHEST)
    idx = mc == 0.0
    ms = jnp.where(idx, 1.0, mc)
    conv = lax.conv_general_dilated(ms * x, w, (1, 1), [(p, p), (p, p)],
                                    rhs_dilation=(d, d), dimension_numbers=dn,
                                    precision=lax.Precision.HIGHEST)
    conv = conv + b[None, :, None, None]
    xd = conv / ms
    mean = jnp.mean(xd, axis=(0, 2, 3), keepdims=True)
    var = jnp.mean((xd - mean) ** 2, axis=(0, 2, 3), keepdims=True)
    y = jnp.maximum((xd - mean) / jnp.sqrt(var + eps)
                    * gamma[None, :, None, None] + beta[None, :, None, None],
                    0.0)
    m_out = jnp.where(idx, 0.0, mc)
    return y, m_out


if __name__ == "__main__":
    N, Cin, Cout, H, W = 2, 4, 8, 16, 16
    K, p, d = 3, 1, 1
    eps = 1e-5

    key = jax.random.PRNGKey(0)
    k1, k2, k3, k4 = jax.random.split(key, 4)
    x = jax.random.normal(k1, (N, Cin, H, W), jnp.float32)
    # sparse binary mask so some KxK neighborhoods are entirely zero
    M = (jax.random.uniform(k2, (N, 1, H, W)) > 0.85).astype(jnp.float32)

    # deterministic parameter init (conv_I weight/bias; BN gamma=1, beta=0)
    w = jax.random.normal(k3, (Cout, Cin, K, K), jnp.float32) * 0.1
    b = jax.random.normal(k4, (Cout,), jnp.float32) * 0.1
    gamma = jnp.ones((Cout,), jnp.float32)
    beta = jnp.zeros((Cout,), jnp.float32)

    y, m_out = partial_conv_block(x, M, w, b, gamma, beta,
                                  kernel_size=K, padding=p, dilation=d,
                                  eps=eps)
    jax.block_until_ready((y, m_out))

    y_ref, m_ref = _reference(x, M, w, b, gamma, beta, K, p, d, eps)
    np.testing.assert_allclose(np.asarray(m_out), np.asarray(m_ref),
                               atol=1e-5, rtol=1e-5)
    np.testing.assert_allclose(np.asarray(y), np.asarray(y_ref),
                               atol=1e-2, rtol=1e-2)
    print("KERNEL_OK")
</pallas_src>

<mosaic_0001>
module attributes {stable_mosaic.version = 11 : i64} {
  func.func @_pcb_conv_kernel(%arg0: i32, %arg1: memref<8x36xf32, #tpu.memory_space<smem>>, %arg2: memref<1x8xf32, #tpu.memory_space<smem>>, %arg3: memref<1x4x16x16xf32, #tpu.memory_space<vmem>>, %arg4: memref<1x18x18xf32, #tpu.memory_space<vmem>>, %arg5: memref<1x8x16x16xf32, #tpu.memory_space<vmem>>, %arg6: memref<1x16x16xf32, #tpu.memory_space<vmem>>, %arg7: memref<1x2x8x16xf32, #tpu.memory_space<vmem>>, %arg8: memref<1x4x18x18xf32, #tpu.memory_space<vmem>>) attributes {dimension_semantics = [#tpu.dimension_semantics<parallel>], iteration_bounds = array<i64: 2>, scalar_prefetch = 0 : i64, scratch_operands = 1 : i64, tpu.core_type = #tpu.core_type<tc>, window_params = [{transform_indices = @transform_0, window_bounds = array<i64: 8, 36>}, {transform_indices = @transform_1, window_bounds = array<i64: 1, 8>}, {transform_indices = @transform_2, window_bounds = array<i64: 1, 4, 16, 16>}, {transform_indices = @transform_3, window_bounds = array<i64: 1, 18, 18>}, {transform_indices = @transform_4, window_bounds = array<i64: 1, 8, 16, 16>}, {transform_indices = @transform_5, window_bounds = array<i64: 1, 16, 16>}, {transform_indices = @transform_6, window_bounds = array<i64: 1, 2, 8, 16>}]} {
    %c0 = arith.constant 0 : index
    %c0_0 = arith.constant 0 : index
    %c0_1 = arith.constant 0 : index
    %0 = vector.load %arg4[%c0, %c0_0, %c0_1] : memref<1x18x18xf32, #tpu.memory_space<vmem>>, vector<1x18x18xf32>
    %1 = vector.extract_strided_slice %0 {offsets = [0, 0, 0], sizes = [1, 16, 18], strides = [1, 1, 1]} : vector<1x18x18xf32> to vector<1x16x18xf32>
    %2 = vector.extract_strided_slice %0 {offsets = [0, 1, 0], sizes = [1, 16, 18], strides = [1, 1, 1]} : vector<1x18x18xf32> to vector<1x16x18xf32>
    %3 = arith.addf %1, %2 : vector<1x16x18xf32>
    %4 = vector.extract_strided_slice %0 {offsets = [0, 2, 0], sizes = [1, 16, 18], strides = [1, 1, 1]} : vector<1x18x18xf32> to vector<1x16x18xf32>
    %5 = arith.addf %3, %4 : vector<1x16x18xf32>
    %6 = vector.extract_strided_slice %5 {offsets = [0, 0, 0], sizes = [1, 16, 16], strides = [1, 1, 1]} : vector<1x16x18xf32> to vector<1x16x16xf32>
    %7 = vector.extract_strided_slice %5 {offsets = [0, 0, 1], sizes = [1, 16, 16], strides = [1, 1, 1]} : vector<1x16x18xf32> to vector<1x16x16xf32>
    %8 = arith.addf %6, %7 : vector<1x16x16xf32>
    %9 = vector.extract_strided_slice %5 {offsets = [0, 0, 2], sizes = [1, 16, 16], strides = [1, 1, 1]} : vector<1x16x18xf32> to vector<1x16x16xf32>
    %10 = arith.addf %8, %9 : vector<1x16x16xf32>
    %c0_2 = arith.constant 0 : index
    %c0_3 = arith.constant 0 : index
    %c0_4 = arith.constant 0 : index
    %11 = vector.load %arg6[%c0_2, %c0_3, %c0_4] : memref<1x16x16xf32, #tpu.memory_space<vmem>>, vector<1x16x16xf32>
    tpu.vector_store %arg6[%c0_2, %c0_3, %c0_4], %10 {strides = array<i32>} : memref<1x16x16xf32, #tpu.memory_space<vmem>>, vector<1x16x16xf32>,
    %cst = arith.constant 0.000000e+00 : f32
    %12 = vector.broadcast %cst : f32 to vector<1x16x16xf32>
    %13 = arith.cmpf oeq, %10, %12 : vector<1x16x16xf32>
    %cst_5 = arith.constant 1.000000e+00 : f32
    %14 = vector.broadcast %cst_5 : f32 to vector<1x16x16xf32>
    %15 = arith.select %13, %14, %10 : vector<1x16x16xi1>, vector<1x16x16xf32>
    %16 = tpu.reciprocal %15 {approx = true} : vector<1x16x16xf32> -> vector<1x16x16xf32>
    %cst_6 = arith.constant 0.000000e+00 : f32
    %17 = vector.broadcast %cst_6 : f32 to vector<1x4x18x18xf32>
    %c0_7 = arith.constant 0 : index
    %c0_8 = arith.constant 0 : index
    %c0_9 = arith.constant 0 : index
    %c0_10 = arith.constant 0 : index
    %18 = vector.load %arg8[%c0_7, %c0_8, %c0_9, %c0_10] : memref<1x4x18x18xf32, #tpu.memory_space<vmem>>, vector<1x4x18x18xf32>
    tpu.vector_store %arg8[%c0_7, %c0_8, %c0_9, %c0_10], %17 {strides = array<i32>} : memref<1x4x18x18xf32, #tpu.memory_space<vmem>>, vector<1x4x18x18xf32>,
    %19 = vector.shape_cast %15 : vector<1x16x16xf32> to vector<1x1x16x16xf32>
    %c0_11 = arith.constant 0 : index
    %c0_12 = arith.constant 0 : index
    %c0_13 = arith.constant 0 : index
    %c0_14 = arith.constant 0 : index
    %20 = vector.load %arg3[%c0_11, %c0_12, %c0_13, %c0_14] : memref<1x4x16x16xf32, #tpu.memory_space<vmem>>, vector<1x4x16x16xf32>
    %21 = vector.broadcast %19 : vector<1x1x16x16xf32> to vector<1x4x16x16xf32>
    %22 = arith.mulf %21, %20 : vector<1x4x16x16xf32>
    %c0_15 = arith.constant 0 : index
    %c0_16 = arith.constant 0 : index
    %c1 = arith.constant 1 : index
    %c1_17 = arith.constant 1 : index
    %23 = vector.load %arg8[%c0_15, %c0_16, %c1, %c1_17] : memref<1x4x18x18xf32, #tpu.memory_space<vmem>>, vector<1x4x16x16xf32>
    tpu.vector_store %arg8[%c0_15, %c0_16, %c1, %c1_17], %22 {strides = array<i32>} : memref<1x4x18x18xf32, #tpu.memory_space<vmem>>, vector<1x4x16x16xf32>,
    %cst_18 = arith.constant 0.000000e+00 : f32
    %24 = vector.broadcast %cst_18 : f32 to vector<1x16x16xf32>
    %c0_19 = arith.constant 0 : index
    %c0_20 = arith.constant 0 : index
    %25 = memref.load %arg2[%c0_19, %c0_20] : memref<1x8xf32, #tpu.memory_space<smem>>
    %26 = vector.broadcast %25 : f32 to vector<1x16x16xf32>
    %27 = arith.addf %24, %26 : vector<1x16x16xf32>
    %cst_21 = arith.constant 0.000000e+00 : f32
    %28 = vector.broadcast %cst_21 : f32 to vector<1x16x16xf32>
    %c0_22 = arith.constant 0 : index
    %c1_23 = arith.constant 1 : index
    %29 = memref.load %arg2[%c0_22, %c1_23] : memref<1x8xf32, #tpu.memory_space<smem>>
    %30 = vector.broadcast %29 : f32 to vector<1x16x16xf32>
    %31 = arith.addf %28, %30 : vector<1x16x16xf32>
    %cst_24 = arith.constant 0.000000e+00 : f32
    %32 = vector.broadcast %cst_24 : f32 to vector<1x16x16xf32>
    %c0_25 = arith.constant 0 : index
    %c2 = arith.constant 2 : index
    %33 = memref.load %arg2[%c0_25, %c2] : memref<1x8xf32, #tpu.memory_space<smem>>
    %34 = vector.broadcast %33 : f32 to vector<1x16x16xf32>
    %35 = arith.addf %32, %34 : vector<1x16x16xf32>
    %cst_26 = arith.constant 0.000000e+00 : f32
    %36 = vector.broadcast %cst_26 : f32 to vector<1x16x16xf32>
    %c0_27 = arith.constant 0 : index
    %c3 = arith.constant 3 : index
    %37 = memref.load %arg2[%c0_27, %c3] : memref<1x8xf32, #tpu.memory_space<smem>>
    %38 = vector.broadcast %37 : f32 to vector<1x16x16xf32>
    %39 = arith.addf %36, %38 : vector<1x16x16xf32>
    %cst_28 = arith.constant 0.000000e+00 : f32
    %40 = vector.broadcast %cst_28 : f32 to vector<1x16x16xf32>
    %c0_29 = arith.constant 0 : index
    %c4 = arith.constant 4 : index
    %41 = memref.load %arg2[%c0_29, %c4] : memref<1x8xf32, #tpu.memory_space<smem>>
    %42 = vector.broadcast %41 : f32 to vector<1x16x16xf32>
    %43 = arith.addf %40, %42 : vector<1x16x16xf32>
    %cst_30 = arith.constant 0.000000e+00 : f32
    %44 = vector.broadcast %cst_30 : f32 to vector<1x16x16xf32>
    %c0_31 = arith.constant 0 : index
    %c5 = arith.constant 5 : index
    %45 = memref.load %arg2[%c0_31, %c5] : memref<1x8xf32, #tpu.memory_space<smem>>
    %46 = vector.broadcast %45 : f32 to vector<1x16x16xf32>
    %47 = arith.addf %44, %46 : vector<1x16x16xf32>
    %cst_32 = arith.constant 0.000000e+00 : f32
    %48 = vector.broadcast %cst_32 : f32 to vector<1x16x16xf32>
    %c0_33 = arith.constant 0 : index
    %c6 = arith.constant 6 : index
    %49 = memref.load %arg2[%c0_33, %c6] : memref<1x8xf32, #tpu.memory_space<smem>>
    %50 = vector.broadcast %49 : f32 to vector<1x16x16xf32>
    %51 = arith.addf %48, %50 : vector<1x16x16xf32>
    %cst_34 = arith.constant 0.000000e+00 : f32
    %52 = vector.broadcast %cst_34 : f32 to vector<1x16x16xf32>
    %c0_35 = arith.constant 0 : index
    %c7 = arith.constant 7 : index
    %53 = memref.load %arg2[%c0_35, %c7] : memref<1x8xf32, #tpu.memory_space<smem>>
    %54 = vector.broadcast %53 : f32 to vector<1x16x16xf32>
    %55 = arith.addf %52, %54 : vector<1x16x16xf32>
    %c0_36 = arith.constant 0 : index
    %c0_37 = arith.constant 0 : index
    %c0_38 = arith.constant 0 : index
    %c0_39 = arith.constant 0 : index
    %56 = vector.load %arg8[%c0_36, %c0_37, %c0_38, %c0_39] : memref<1x4x18x18xf32, #tpu.memory_space<vmem>>, vector<1x1x16x16xf32>
    %57 = vector.shape_cast %56 : vector<1x1x16x16xf32> to vector<1x16x16xf32>
    %c0_40 = arith.constant 0 : index
    %c0_41 = arith.constant 0 : index
    %58 = memref.load %arg1[%c0_40, %c0_41] : memref<8x36xf32, #tpu.memory_space<smem>>
    %59 = vector.broadcast %58 : f32 to vector<1x16x16xf32>
    %60 = arith.mulf %59, %57 : vector<1x16x16xf32>
    %61 = arith.addf %27, %60 : vector<1x16x16xf32>
    %c1_42 = arith.constant 1 : index
    %c0_43 = arith.constant 0 : index
    %62 = memref.load %arg1[%c1_42, %c0_43] : memref<8x36xf32, #tpu.memory_space<smem>>
    %63 = vector.broadcast %62 : f32 to vector<1x16x16xf32>
    %64 = arith.mulf %63, %57 : vector<1x16x16xf32>
    %65 = arith.addf %31, %64 : vector<1x16x16xf32>
    %c2_44 = arith.constant 2 : index
    %c0_45 = arith.constant 0 : index
    %66 = memref.load %arg1[%c2_44, %c0_45] : memref<8x36xf32, #tpu.memory_space<smem>>
    %67 = vector.broadcast %66 : f32 to vector<1x16x16xf32>
    %68 = arith.mulf %67, %57 : vector<1x16x16xf32>
    %69 = arith.addf %35, %68 : vector<1x16x16xf32>
    %c3_46 = arith.constant 3 : index
    %c0_47 = arith.constant 0 : index
    %70 = memref.load %arg1[%c3_46, %c0_47] : memref<8x36xf32, #tpu.memory_space<smem>>
    %71 = vector.broadcast %70 : f32 to vector<1x16x16xf32>
    %72 = arith.mulf %71, %57 : vector<1x16x16xf32>
    %73 = arith.addf %39, %72 : vector<1x16x16xf32>
    %c4_48 = arith.constant 4 : index
    %c0_49 = arith.constant 0 : index
    %74 = memref.load %arg1[%c4_48, %c0_49] : memref<8x36xf32, #tpu.memory_space<smem>>
    %75 = vector.broadcast %74 : f32 to vector<1x16x16xf32>
    %76 = arith.mulf %75, %57 : vector<1x16x16xf32>
    %77 = arith.addf %43, %76 : vector<1x16x16xf32>
    %c5_50 = arith.constant 5 : index
    %c0_51 = arith.constant 0 : index
    %78 = memref.load %arg1[%c5_50, %c0_51] : memref<8x36xf32, #tpu.memory_space<smem>>
    %79 = vector.broadcast %78 : f32 to vector<1x16x16xf32>
    %80 = arith.mulf %79, %57 : vector<1x16x16xf32>
    %81 = arith.addf %47, %80 : vector<1x16x16xf32>
    %c6_52 = arith.constant 6 : index
    %c0_53 = arith.constant 0 : index
    %82 = memref.load %arg1[%c6_52, %c0_53] : memref<8x36xf32, #tpu.memory_space<smem>>
    %83 = vector.broadcast %82 : f32 to vector<1x16x16xf32>
    %84 = arith.mulf %83, %57 : vector<1x16x16xf32>
    %85 = arith.addf %51, %84 : vector<1x16x16xf32>
    %c7_54 = arith.constant 7 : index
    %c0_55 = arith.constant 0 : index
    %86 = memref.load %arg1[%c7_54, %c0_55] : memref<8x36xf32, #tpu.memory_space<smem>>
    %87 = vector.broadcast %86 : f32 to vector<1x16x16xf32>
    %88 = arith.mulf %87, %57 : vector<1x16x16xf32>
    %89 = arith.addf %55, %88 : vector<1x16x16xf32>
    %c0_56 = arith.constant 0 : index
    %c0_57 = arith.constant 0 : index
    %c0_58 = arith.constant 0 : index
    %c1_59 = arith.constant 1 : index
    %90 = vector.load %arg8[%c0_56, %c0_57, %c0_58, %c1_59] : memref<1x4x18x18xf32, #tpu.memory_space<vmem>>, vector<1x1x16x16xf32>
    %91 = vector.shape_cast %90 : vector<1x1x16x16xf32> to vector<1x16x16xf32>
    %c0_60 = arith.constant 0 : index
    %c1_61 = arith.constant 1 : index
    %92 = memref.load %arg1[%c0_60, %c1_61] : memref<8x36xf32, #tpu.memory_space<smem>>
    %93 = vector.broadcast %92 : f32 to vector<1x16x16xf32>
    %94 = arith.mulf %93, %91 : vector<1x16x16xf32>
    %95 = arith.addf %61, %94 : vector<1x16x16xf32>
    %c1_62 = arith.constant 1 : index
    %c1_63 = arith.constant 1 : index
    %96 = memref.load %arg1[%c1_62, %c1_63] : memref<8x36xf32, #tpu.memory_space<smem>>
    %97 = vector.broadcast %96 : f32 to vector<1x16x16xf32>
    %98 = arith.mulf %97, %91 : vector<1x16x16xf32>
    %99 = arith.addf %65, %98 : vector<1x16x16xf32>
    %c2_64 = arith.constant 2 : index
    %c1_65 = arith.constant 1 : index
    %100 = memref.load %arg1[%c2_64, %c1_65] : memref<8x36xf32, #tpu.memory_space<smem>>
    %101 = vector.broadcast %100 : f32 to vector<1x16x16xf32>
    %102 = arith.mulf %101, %91 : vector<1x16x16xf32>
    %103 = arith.addf %69, %102 : vector<1x16x16xf32>
    %c3_66 = arith.constant 3 : index
    %c1_67 = arith.constant 1 : index
    %104 = memref.load %arg1[%c3_66, %c1_67] : memref<8x36xf32, #tpu.memory_space<smem>>
    %105 = vector.broadcast %104 : f32 to vector<1x16x16xf32>
    %106 = arith.mulf %105, %91 : vector<1x16x16xf32>
    %107 = arith.addf %73, %106 : vector<1x16x16xf32>
    %c4_68 = arith.constant 4 : index
    %c1_69 = arith.constant 1 : index
    %108 = memref.load %arg1[%c4_68, %c1_69] : memref<8x36xf32, #tpu.memory_space<smem>>
    %109 = vector.broadcast %108 : f32 to vector<1x16x16xf32>
    %110 = arith.mulf %109, %91 : vector<1x16x16xf32>
    %111 = arith.addf %77, %110 : vector<1x16x16xf32>
    %c5_70 = arith.constant 5 : index
    %c1_71 = arith.constant 1 : index
    %112 = memref.load %arg1[%c5_70, %c1_71] : memref<8x36xf32, #tpu.memory_space<smem>>
    %113 = vector.broadcast %112 : f32 to vector<1x16x16xf32>
    %114 = arith.mulf %113, %91 : vector<1x16x16xf32>
    %115 = arith.addf %81, %114 : vector<1x16x16xf32>
    %c6_72 = arith.constant 6 : index
    %c1_73 = arith.constant 1 : index
    %116 = memref.load %arg1[%c6_72, %c1_73] : memref<8x36xf32, #tpu.memory_space<smem>>
    %117 = vector.broadcast %116 : f32 to vector<1x16x16xf32>
    %118 = arith.mulf %117, %91 : vector<1x16x16xf32>
    %119 = arith.addf %85, %118 : vector<1x16x16xf32>
    %c7_74 = arith.constant 7 : index
    %c1_75 = arith.constant 1 : index
    %120 = memref.load %arg1[%c7_74, %c1_75] : memref<8x36xf32, #tpu.memory_space<smem>>
    %121 = vector.broadcast %120 : f32 to vector<1x16x16xf32>
    %122 = arith.mulf %121, %91 : vector<1x16x16xf32>
    %123 = arith.addf %89, %122 : vector<1x16x16xf32>
    %c0_76 = arith.constant 0 : index
    %c0_77 = arith.constant 0 : index
    %c0_78 = arith.constant 0 : index
    %c2_79 = arith.constant 2 : index
    %124 = vector.load %arg8[%c0_76, %c0_77, %c0_78, %c2_79] : memref<1x4x18x18xf32, #tpu.memory_space<vmem>>, vector<1x1x16x16xf32>
    %125 = vector.shape_cast %124 : vector<1x1x16x16xf32> to vector<1x16x16xf32>
    %c0_80 = arith.constant 0 : index
    %c2_81 = arith.constant 2 : index
    %126 = memref.load %arg1[%c0_80, %c2_81] : memref<8x36xf32, #tpu.memory_space<smem>>
    %127 = vector.broadcast %126 : f32 to vector<1x16x16xf32>
    %128 = arith.mulf %127, %125 : vector<1x16x16xf32>
    %129 = arith.addf %95, %128 : vector<1x16x16xf32>
    %c1_82 = arith.constant 1 : index
    %c2_83 = arith.constant 2 : index
    %130 = memref.load %arg1[%c1_82, %c2_83] : memref<8x36xf32, #tpu.memory_space<smem>>
    %131 = vector.broadcast %130 : f32 to vector<1x16x16xf32>
    %132 = arith.mulf %131, %125 : vector<1x16x16xf32>
    %133 = arith.addf %99, %132 : vector<1x16x16xf32>
    %c2_84 = arith.constant 2 : index
    %c2_85 = arith.constant 2 : index
    %134 = memref.load %arg1[%c2_84, %c2_85] : memref<8x36xf32, #tpu.memory_space<smem>>
    %135 = vector.broadcast %134 : f32 to vector<1x16x16xf32>
    %136 = arith.mulf %135, %125 : vector<1x16x16xf32>
    %137 = arith.addf %103, %136 : vector<1x16x16xf32>
    %c3_86 = arith.constant 3 : index
    %c2_87 = arith.constant 2 : index
    %138 = memref.load %arg1[%c3_86, %c2_87] : memref<8x36xf32, #tpu.memory_space<smem>>
    %139 = vector.broadcast %138 : f32 to vector<1x16x16xf32>
    %140 = arith.mulf %139, %125 : vector<1x16x16xf32>
    %141 = arith.addf %107, %140 : vector<1x16x16xf32>
    %c4_88 = arith.constant 4 : index
    %c2_89 = arith.constant 2 : index
    %142 = memref.load %arg1[%c4_88, %c2_89] : memref<8x36xf32, #tpu.memory_space<smem>>
    %143 = vector.broadcast %142 : f32 to vector<1x16x16xf32>
    %144 = arith.mulf %143, %125 : vector<1x16x16xf32>
    %145 = arith.addf %111, %144 : vector<1x16x16xf32>
    %c5_90 = arith.constant 5 : index
    %c2_91 = arith.constant 2 : index
    %146 = memref.load %arg1[%c5_90, %c2_91] : memref<8x36xf32, #tpu.memory_space<smem>>
    %147 = vector.broadcast %146 : f32 to vector<1x16x16xf32>
    %148 = arith.mulf %147, %125 : vector<1x16x16xf32>
    %149 = arith.addf %115, %148 : vector<1x16x16xf32>
    %c6_92 = arith.constant 6 : index
    %c2_93 = arith.constant 2 : index
    %150 = memref.load %arg1[%c6_92, %c2_93] : memref<8x36xf32, #tpu.memory_space<smem>>
    %151 = vector.broadcast %150 : f32 to vector<1x16x16xf32>
    %152 = arith.mulf %151, %125 : vector<1x16x16xf32>
    %153 = arith.addf %119, %152 : vector<1x16x16xf32>
    %c7_94 = arith.constant 7 : index
    %c2_95 = arith.constant 2 : index
    %154 = memref.load %arg1[%c7_94, %c2_95] : memref<8x36xf32, #tpu.memory_space<smem>>
    %155 = vector.broadcast %154 : f32 to vector<1x16x16xf32>
    %156 = arith.mulf %155, %125 : vector<1x16x16xf32>
    %157 = arith.addf %123, %156 : vector<1x16x16xf32>
    %c0_96 = arith.constant 0 : index
    %c0_97 = arith.constant 0 : index
    %c1_98 = arith.constant 1 : index
    %c0_99 = arith.constant 0 : index
    %158 = vector.load %arg8[%c0_96, %c0_97, %c1_98, %c0_99] : memref<1x4x18x18xf32, #tpu.memory_space<vmem>>, vector<1x1x16x16xf32>
    %159 = vector.shape_cast %158 : vector<1x1x16x16xf32> to vector<1x16x16xf32>
    %c0_100 = arith.constant 0 : index
    %c3_101 = arith.constant 3 : index
    %160 = memref.load %arg1[%c0_100, %c3_101] : memref<8x36xf32, #tpu.memory_space<smem>>
    %161 = vector.broadcast %160 : f32 to vector<1x16x16xf32>
    %162 = arith.mulf %161, %159 : vector<1x16x16xf32>
    %163 = arith.addf %129, %162 : vector<1x16x16xf32>
    %c1_102 = arith.constant 1 : index
    %c3_103 = arith.constant 3 : index
    %164 = memref.load %arg1[%c1_102, %c3_103] : memref<8x36xf32, #tpu.memory_space<smem>>
    %165 = vector.broadcast %164 : f32 to vector<1x16x16xf32>
    %166 = arith.mulf %165, %159 : vector<1x16x16xf32>
    %167 = arith.addf %133, %166 : vector<1x16x16xf32>
    %c2_104 = arith.constant 2 : index
    %c3_105 = arith.constant 3 : index
    %168 = memref.load %arg1[%c2_104, %c3_105] : memref<8x36xf32, #tpu.memory_space<smem>>
    %169 = vector.broadcast %168 : f32 to vector<1x16x16xf32>
    %170 = arith.mulf %169, %159 : vector<1x16x16xf32>
    %171 = arith.addf %137, %170 : vector<1x16x16xf32>
    %c3_106 = arith.constant 3 : index
    %c3_107 = arith.constant 3 : index
    %172 = memref.load %arg1[%c3_106, %c3_107] : memref<8x36xf32, #tpu.memory_space<smem>>
    %173 = vector.broadcast %172 : f32 to vector<1x16x16xf32>
    %174 = arith.mulf %173, %159 : vector<1x16x16xf32>
    %175 = arith.addf %141, %174 : vector<1x16x16xf32>
    %c4_108 = arith.constant 4 : index
    %c3_109 = arith.constant 3 : index
    %176 = memref.load %arg1[%c4_108, %c3_109] : memref<8x36xf32, #tpu.memory_space<smem>>
    %177 = vector.broadcast %176 : f32 to vector<1x16x16xf32>
    %178 = arith.mulf %177, %159 : vector<1x16x16xf32>
    %179 = arith.addf %145, %178 : vector<1x16x16xf32>
    %c5_110 = arith.constant 5 : index
    %c3_111 = arith.constant 3 : index
    %180 = memref.load %arg1[%c5_110, %c3_111] : memref<8x36xf32, #tpu.memory_space<smem>>
    %181 = vector.broadcast %180 : f32 to vector<1x16x16xf32>
    %182 = arith.mulf %181, %159 : vector<1x16x16xf32>
    %183 = arith.addf %149, %182 : vector<1x16x16xf32>
    %c6_112 = arith.constant 6 : index
    %c3_113 = arith.constant 3 : index
    %184 = memref.load %arg1[%c6_112, %c3_113] : memref<8x36xf32, #tpu.memory_space<smem>>
    %185 = vector.broadcast %184 : f32 to vector<1x16x16xf32>
    %186 = arith.mulf %185, %159 : vector<1x16x16xf32>
    %187 = arith.addf %153, %186 : vector<1x16x16xf32>
    %c7_114 = arith.constant 7 : index
    %c3_115 = arith.constant 3 : index
    %188 = memref.load %arg1[%c7_114, %c3_115] : memref<8x36xf32, #tpu.memory_space<smem>>
    %189 = vector.broadcast %188 : f32 to vector<1x16x16xf32>
    %190 = arith.mulf %189, %159 : vector<1x16x16xf32>
    %191 = arith.addf %157, %190 : vector<1x16x16xf32>
    %c0_116 = arith.constant 0 : index
    %c0_117 = arith.constant 0 : index
    %c1_118 = arith.constant 1 : index
    %c1_119 = arith.constant 1 : index
    %192 = vector.load %arg8[%c0_116, %c0_117, %c1_118, %c1_119] : memref<1x4x18x18xf32, #tpu.memory_space<vmem>>, vector<1x1x16x16xf32>
    %193 = vector.shape_cast %192 : vector<1x1x16x16xf32> to vector<1x16x16xf32>
    %c0_120 = arith.constant 0 : index
    %c4_121 = arith.constant 4 : index
    %194 = memref.load %arg1[%c0_120, %c4_121] : memref<8x36xf32, #tpu.memory_space<smem>>
    %195 = vector.broadcast %194 : f32 to vector<1x16x16xf32>
    %196 = arith.mulf %195, %193 : vector<1x16x16xf32>
    %197 = arith.addf %163, %196 : vector<1x16x16xf32>
    %c1_122 = arith.constant 1 : index
    %c4_123 = arith.constant 4 : index
    %198 = memref.load %arg1[%c1_122, %c4_123] : memref<8x36xf32, #tpu.memory_space<smem>>
    %199 = vector.broadcast %198 : f32 to vector<1x16x16xf32>
    %200 = arith.mulf %199, %193 : vector<1x16x16xf32>
    %201 = arith.addf %167, %200 : vector<1x16x16xf32>
    %c2_124 = arith.constant 2 : index
    %c4_125 = arith.constant 4 : index
    %202 = memref.load %arg1[%c2_124, %c4_125] : memref<8x36xf32, #tpu.memory_space<smem>>
    %203 = vector.broadcast %202 : f32 to vector<1x16x16xf32>
    %204 = arith.mulf %203, %193 : vector<1x16x16xf32>
    %205 = arith.addf %171, %204 : vector<1x16x16xf32>
    %c3_126 = arith.constant 3 : index
    %c4_127 = arith.constant 4 : index
    %206 = memref.load %arg1[%c3_126, %c4_127] : memref<8x36xf32, #tpu.memory_space<smem>>
    %207 = vector.broadcast %206 : f32 to vector<1x16x16xf32>
    %208 = arith.mulf %207, %193 : vector<1x16x16xf32>
    %209 = arith.addf %175, %208 : vector<1x16x16xf32>
    %c4_128 = arith.constant 4 : index
    %c4_129 = arith.constant 4 : index
    %210 = memref.load %arg1[%c4_128, %c4_129] : memref<8x36xf32, #tpu.memory_space<smem>>
    %211 = vector.broadcast %210 : f32 to vector<1x16x16xf32>
    %212 = arith.mulf %211, %193 : vector<1x16x16xf32>
    %213 = arith.addf %179, %212 : vector<1x16x16xf32>
    %c5_130 = arith.constant 5 : index
    %c4_131 = arith.constant 4 : index
    %214 = memref.load %arg1[%c5_130, %c4_131] : memref<8x36xf32, #tpu.memory_space<smem>>
    %215 = vector.broadcast %214 : f32 to vector<1x16x16xf32>
    %216 = arith.mulf %215, %193 : vector<1x16x16xf32>
    %217 = arith.addf %183, %216 : vector<1x16x16xf32>
    %c6_132 = arith.constant 6 : index
    %c4_133 = arith.constant 4 : index
    %218 = memref.load %arg1[%c6_132, %c4_133] : memref<8x36xf32, #tpu.memory_space<smem>>
    %219 = vector.broadcast %218 : f32 to vector<1x16x16xf32>
    %220 = arith.mulf %219, %193 : vector<1x16x16xf32>
    %221 = arith.addf %187, %220 : vector<1x16x16xf32>
    %c7_134 = arith.constant 7 : index
    %c4_135 = arith.constant 4 : index
    %222 = memref.load %arg1[%c7_134, %c4_135] : memref<8x36xf32, #tpu.memory_space<smem>>
    %223 = vector.broadcast %222 : f32 to vector<1x16x16xf32>
    %224 = arith.mulf %223, %193 : vector<1x16x16xf32>
    %225 = arith.addf %191, %224 : vector<1x16x16xf32>
    %c0_136 = arith.constant 0 : index
    %c0_137 = arith.constant 0 : index
    %c1_138 = arith.constant 1 : index
    %c2_139 = arith.constant 2 : index
    %226 = vector.load %arg8[%c0_136, %c0_137, %c1_138, %c2_139] : memref<1x4x18x18xf32, #tpu.memory_space<vmem>>, vector<1x1x16x16xf32>
    %227 = vector.shape_cast %226 : vector<1x1x16x16xf32> to vector<1x16x16xf32>
    %c0_140 = arith.constant 0 : index
    %c5_141 = arith.constant 5 : index
    %228 = memref.load %arg1[%c0_140, %c5_141] : memref<8x36xf32, #tpu.memory_space<smem>>
    %229 = vector.broadcast %228 : f32 to vector<1x16x16xf32>
    %230 = arith.mulf %229, %227 : vector<1x16x16xf32>
    %231 = arith.addf %197, %230 : vector<1x16x16xf32>
    %c1_142 = arith.constant 1 : index
    %c5_143 = arith.constant 5 : index
    %232 = memref.load %arg1[%c1_142, %c5_143] : memref<8x36xf32, #tpu.memory_space<smem>>
    %233 = vector.broadcast %232 : f32 to vector<1x16x16xf32>
    %234 = arith.mulf %233, %227 : vector<1x16x16xf32>
    %235 = arith.addf %201, %234 : vector<1x16x16xf32>
    %c2_144 = arith.constant 2 : index
    %c5_145 = arith.constant 5 : index
    %236 = memref.load %arg1[%c2_144, %c5_145] : memref<8x36xf32, #tpu.memory_space<smem>>
    %237 = vector.broadcast %236 : f32 to vector<1x16x16xf32>
    %238 = arith.mulf %237, %227 : vector<1x16x16xf32>
    %239 = arith.addf %205, %238 : vector<1x16x16xf32>
    %c3_146 = arith.constant 3 : index
    %c5_147 = arith.constant 5 : index
    %240 = memref.load %arg1[%c3_146, %c5_147] : memref<8x36xf32, #tpu.memory_space<smem>>
    %241 = vector.broadcast %240 : f32 to vector<1x16x16xf32>
    %242 = arith.mulf %241, %227 : vector<1x16x16xf32>
    %243 = arith.addf %209, %242 : vector<1x16x16xf32>
    %c4_148 = arith.constant 4 : index
    %c5_149 = arith.constant 5 : index
    %244 = memref.load %arg1[%c4_148, %c5_149] : memref<8x36xf32, #tpu.memory_space<smem>>
    %245 = vector.broadcast %244 : f32 to vector<1x16x16xf32>
    %246 = arith.mulf %245, %227 : vector<1x16x16xf32>
    %247 = arith.addf %213, %246 : vector<1x16x16xf32>
    %c5_150 = arith.constant 5 : index
    %c5_151 = arith.constant 5 : index
    %248 = memref.load %arg1[%c5_150, %c5_151] : memref<8x36xf32, #tpu.memory_space<smem>>
    %249 = vector.broadcast %248 : f32 to vector<1x16x16xf32>
    %250 = arith.mulf %249, %227 : vector<1x16x16xf32>
    %251 = arith.addf %217, %250 : vector<1x16x16xf32>
    %c6_152 = arith.constant 6 : index
    %c5_153 = arith.constant 5 : index
    %252 = memref.load %arg1[%c6_152, %c5_153] : memref<8x36xf32, #tpu.memory_space<smem>>
    %253 = vector.broadcast %252 : f32 to vector<1x16x16xf32>
    %254 = arith.mulf %253, %227 : vector<1x16x16xf32>
    %255 = arith.addf %221, %254 : vector<1x16x16xf32>
    %c7_154 = arith.constant 7 : index
    %c5_155 = arith.constant 5 : index
    %256 = memref.load %arg1[%c7_154, %c5_155] : memref<8x36xf32, #tpu.memory_space<smem>>
    %257 = vector.broadcast %256 : f32 to vector<1x16x16xf32>
    %258 = arith.mulf %257, %227 : vector<1x16x16xf32>
    %259 = arith.addf %225, %258 : vector<1x16x16xf32>
    %c0_156 = arith.constant 0 : index
    %c0_157 = arith.constant 0 : index
    %c2_158 = arith.constant 2 : index
    %c0_159 = arith.constant 0 : index
    %260 = vector.load %arg8[%c0_156, %c0_157, %c2_158, %c0_159] : memref<1x4x18x18xf32, #tpu.memory_space<vmem>>, vector<1x1x16x16xf32>
    %261 = vector.shape_cast %260 : vector<1x1x16x16xf32> to vector<1x16x16xf32>
    %c0_160 = arith.constant 0 : index
    %c6_161 = arith.constant 6 : index
    %262 = memref.load %arg1[%c0_160, %c6_161] : memref<8x36xf32, #tpu.memory_space<smem>>
    %263 = vector.broadcast %262 : f32 to vector<1x16x16xf32>
    %264 = arith.mulf %263, %261 : vector<1x16x16xf32>
    %265 = arith.addf %231, %264 : vector<1x16x16xf32>
    %c1_162 = arith.constant 1 : index
    %c6_163 = arith.constant 6 : index
    %266 = memref.load %arg1[%c1_162, %c6_163] : memref<8x36xf32, #tpu.memory_space<smem>>
    %267 = vector.broadcast %266 : f32 to vector<1x16x16xf32>
    %268 = arith.mulf %267, %261 : vector<1x16x16xf32>
    %269 = arith.addf %235, %268 : vector<1x16x16xf32>
    %c2_164 = arith.constant 2 : index
    %c6_165 = arith.constant 6 : index
    %270 = memref.load %arg1[%c2_164, %c6_165] : memref<8x36xf32, #tpu.memory_space<smem>>
    %271 = vector.broadcast %270 : f32 to vector<1x16x16xf32>
    %272 = arith.mulf %271, %261 : vector<1x16x16xf32>
    %273 = arith.addf %239, %272 : vector<1x16x16xf32>
    %c3_166 = arith.constant 3 : index
    %c6_167 = arith.constant 6 : index
    %274 = memref.load %arg1[%c3_166, %c6_167] : memref<8x36xf32, #tpu.memory_space<smem>>
    %275 = vector.broadcast %274 : f32 to vector<1x16x16xf32>
    %276 = arith.mulf %275, %261 : vector<1x16x16xf32>
    %277 = arith.addf %243, %276 : vector<1x16x16xf32>
    %c4_168 = arith.constant 4 : index
    %c6_169 = arith.constant 6 : index
    %278 = memref.load %arg1[%c4_168, %c6_169] : memref<8x36xf32, #tpu.memory_space<smem>>
    %279 = vector.broadcast %278 : f32 to vector<1x16x16xf32>
    %280 = arith.mulf %279, %261 : vector<1x16x16xf32>
    %281 = arith.addf %247, %280 : vector<1x16x16xf32>
    %c5_170 = arith.constant 5 : index
    %c6_171 = arith.constant 6 : index
    %282 = memref.load %arg1[%c5_170, %c6_171] : memref<8x36xf32, #tpu.memory_space<smem>>
    %283 = vector.broadcast %282 : f32 to vector<1x16x16xf32>
    %284 = arith.mulf %283, %261 : vector<1x16x16xf32>
    %285 = arith.addf %251, %284 : vector<1x16x16xf32>
    %c6_172 = arith.constant 6 : index
    %c6_173 = arith.constant 6 : index
    %286 = memref.load %arg1[%c6_172, %c6_173] : memref<8x36xf32, #tpu.memory_space<smem>>
    %287 = vector.broadcast %286 : f32 to vector<1x16x16xf32>
    %288 = arith.mulf %287, %261 : vector<1x16x16xf32>
    %289 = arith.addf %255, %288 : vector<1x16x16xf32>
    %c7_174 = arith.constant 7 : index
    %c6_175 = arith.constant 6 : index
    %290 = memref.load %arg1[%c7_174, %c6_175] : memref<8x36xf32, #tpu.memory_space<smem>>
    %291 = vector.broadcast %290 : f32 to vector<1x16x16xf32>
    %292 = arith.mulf %291, %261 : vector<1x16x16xf32>
    %293 = arith.addf %259, %292 : vector<1x16x16xf32>
    %c0_176 = arith.constant 0 : index
    %c0_177 = arith.constant 0 : index
    %c2_178 = arith.constant 2 : index
    %c1_179 = arith.constant 1 : index
    %294 = vector.load %arg8[%c0_176, %c0_177, %c2_178, %c1_179] : memref<1x4x18x18xf32, #tpu.memory_space<vmem>>, vector<1x1x16x16xf32>
    %295 = vector.shape_cast %294 : vector<1x1x16x16xf32> to vector<1x16x16xf32>
    %c0_180 = arith.constant 0 : index
    %c7_181 = arith.constant 7 : index
    %296 = memref.load %arg1[%c0_180, %c7_181] : memref<8x36xf32, #tpu.memory_space<smem>>
    %297 = vector.broadcast %296 : f32 to vector<1x16x16xf32>
    %298 = arith.mulf %297, %295 : vector<1x16x16xf32>
    %299 = arith.addf %265, %298 : vector<1x16x16xf32>
    %c1_182 = arith.constant 1 : index
    %c7_183 = arith.constant 7 : index
    %300 = memref.load %arg1[%c1_182, %c7_183] : memref<8x36xf32, #tpu.memory_space<smem>>
    %301 = vector.broadcast %300 : f32 to vector<1x16x16xf32>
    %302 = arith.mulf %301, %295 : vector<1x16x16xf32>
    %303 = arith.addf %269, %302 : vector<1x16x16xf32>
    %c2_184 = arith.constant 2 : index
    %c7_185 = arith.constant 7 : index
    %304 = memref.load %arg1[%c2_184, %c7_185] : memref<8x36xf32, #tpu.memory_space<smem>>
    %305 = vector.broadcast %304 : f32 to vector<1x16x16xf32>
    %306 = arith.mulf %305, %295 : vector<1x16x16xf32>
    %307 = arith.addf %273, %306 : vector<1x16x16xf32>
    %c3_186 = arith.constant 3 : index
    %c7_187 = arith.constant 7 : index
    %308 = memref.load %arg1[%c3_186, %c7_187] : memref<8x36xf32, #tpu.memory_space<smem>>
    %309 = vector.broadcast %308 : f32 to vector<1x16x16xf32>
    %310 = arith.mulf %309, %295 : vector<1x16x16xf32>
    %311 = arith.addf %277, %310 : vector<1x16x16xf32>
    %c4_188 = arith.constant 4 : index
    %c7_189 = arith.constant 7 : index
    %312 = memref.load %arg1[%c4_188, %c7_189] : memref<8x36xf32, #tpu.memory_space<smem>>
    %313 = vector.broadcast %312 : f32 to vector<1x16x16xf32>
    %314 = arith.mulf %313, %295 : vector<1x16x16xf32>
    %315 = arith.addf %281, %314 : vector<1x16x16xf32>
    %c5_190 = arith.constant 5 : index
    %c7_191 = arith.constant 7 : index
    %316 = memref.load %arg1[%c5_190, %c7_191] : memref<8x36xf32, #tpu.memory_space<smem>>
    %317 = vector.broadcast %316 : f32 to vector<1x16x16xf32>
    %318 = arith.mulf %317, %295 : vector<1x16x16xf32>
    %319 = arith.addf %285, %318 : vector<1x16x16xf32>
    %c6_192 = arith.constant 6 : index
    %c7_193 = arith.constant 7 : index
    %320 = memref.load %arg1[%c6_192, %c7_193] : memref<8x36xf32, #tpu.memory_space<smem>>
    %321 = vector.broadcast %320 : f32 to vector<1x16x16xf32>
    %322 = arith.mulf %321, %295 : vector<1x16x16xf32>
    %323 = arith.addf %289, %322 : vector<1x16x16xf32>
    %c7_194 = arith.constant 7 : index
    %c7_195 = arith.constant 7 : index
    %324 = memref.load %arg1[%c7_194, %c7_195] : memref<8x36xf32, #tpu.memory_space<smem>>
    %325 = vector.broadcast %324 : f32 to vector<1x16x16xf32>
    %326 = arith.mulf %325, %295 : vector<1x16x16xf32>
    %327 = arith.addf %293, %326 : vector<1x16x16xf32>
    %c0_196 = arith.constant 0 : index
    %c0_197 = arith.constant 0 : index
    %c2_198 = arith.constant 2 : index
    %c2_199 = arith.constant 2 : index
    %328 = vector.load %arg8[%c0_196, %c0_197, %c2_198, %c2_199] : memref<1x4x18x18xf32, #tpu.memory_space<vmem>>, vector<1x1x16x16xf32>
    %329 = vector.shape_cast %328 : vector<1x1x16x16xf32> to vector<1x16x16xf32>
    %c0_200 = arith.constant 0 : index
    %c8 = arith.constant 8 : index
    %330 = memref.load %arg1[%c0_200, %c8] : memref<8x36xf32, #tpu.memory_space<smem>>
    %331 = vector.broadcast %330 : f32 to vector<1x16x16xf32>
    %332 = arith.mulf %331, %329 : vector<1x16x16xf32>
    %333 = arith.addf %299, %332 : vector<1x16x16xf32>
    %c1_201 = arith.constant 1 : index
    %c8_202 = arith.constant 8 : index
    %334 = memref.load %arg1[%c1_201, %c8_202] : memref<8x36xf32, #tpu.memory_space<smem>>
    %335 = vector.broadcast %334 : f32 to vector<1x16x16xf32>
    %336 = arith.mulf %335, %329 : vector<1x16x16xf32>
    %337 = arith.addf %303, %336 : vector<1x16x16xf32>
    %c2_203 = arith.constant 2 : index
    %c8_204 = arith.constant 8 : index
    %338 = memref.load %arg1[%c2_203, %c8_204] : memref<8x36xf32, #tpu.memory_space<smem>>
    %339 = vector.broadcast %338 : f32 to vector<1x16x16xf32>
    %340 = arith.mulf %339, %329 : vector<1x16x16xf32>
    %341 = arith.addf %307, %340 : vector<1x16x16xf32>
    %c3_205 = arith.constant 3 : index
    %c8_206 = arith.constant 8 : index
    %342 = memref.load %arg1[%c3_205, %c8_206] : memref<8x36xf32, #tpu.memory_space<smem>>
    %343 = vector.broadcast %342 : f32 to vector<1x16x16xf32>
    %344 = arith.mulf %343, %329 : vector<1x16x16xf32>
    %345 = arith.addf %311, %344 : vector<1x16x16xf32>
    %c4_207 = arith.constant 4 : index
    %c8_208 = arith.constant 8 : index
    %346 = memref.load %arg1[%c4_207, %c8_208] : memref<8x36xf32, #tpu.memory_space<smem>>
    %347 = vector.broadcast %346 : f32 to vector<1x16x16xf32>
    %348 = arith.mulf %347, %329 : vector<1x16x16xf32>
    %349 = arith.addf %315, %348 : vector<1x16x16xf32>
    %c5_209 = arith.constant 5 : index
    %c8_210 = arith.constant 8 : index
    %350 = memref.load %arg1[%c5_209, %c8_210] : memref<8x36xf32, #tpu.memory_space<smem>>
    %351 = vector.broadcast %350 : f32 to vector<1x16x16xf32>
    %352 = arith.mulf %351, %329 : vector<1x16x16xf32>
    %353 = arith.addf %319, %352 : vector<1x16x16xf32>
    %c6_211 = arith.constant 6 : index
    %c8_212 = arith.constant 8 : index
    %354 = memref.load %arg1[%c6_211, %c8_212] : memref<8x36xf32, #tpu.memory_space<smem>>
    %355 = vector.broadcast %354 : f32 to vector<1x16x16xf32>
    %356 = arith.mulf %355, %329 : vector<1x16x16xf32>
    %357 = arith.addf %323, %356 : vector<1x16x16xf32>
    %c7_213 = arith.constant 7 : index
    %c8_214 = arith.constant 8 : index
    %358 = memref.load %arg1[%c7_213, %c8_214] : memref<8x36xf32, #tpu.memory_space<smem>>
    %359 = vector.broadcast %358 : f32 to vector<1x16x16xf32>
    %360 = arith.mulf %359, %329 : vector<1x16x16xf32>
    %361 = arith.addf %327, %360 : vector<1x16x16xf32>
    %c0_215 = arith.constant 0 : index
    %c1_216 = arith.constant 1 : index
    %c0_217 = arith.constant 0 : index
    %c0_218 = arith.constant 0 : index
    %362 = vector.load %arg8[%c0_215, %c1_216, %c0_217, %c0_218] : memref<1x4x18x18xf32, #tpu.memory_space<vmem>>, vector<1x1x16x16xf32>
    %363 = vector.shape_cast %362 : vector<1x1x16x16xf32> to vector<1x16x16xf32>
    %c0_219 = arith.constant 0 : index
    %c9 = arith.constant 9 : index
    %364 = memref.load %arg1[%c0_219, %c9] : memref<8x36xf32, #tpu.memory_space<smem>>
    %365 = vector.broadcast %364 : f32 to vector<1x16x16xf32>
    %366 = arith.mulf %365, %363 : vector<1x16x16xf32>
    %367 = arith.addf %333, %366 : vector<1x16x16xf32>
    %c1_220 = arith.constant 1 : index
    %c9_221 = arith.constant 9 : index
    %368 = memref.load %arg1[%c1_220, %c9_221] : memref<8x36xf32, #tpu.memory_space<smem>>
    %369 = vector.broadcast %368 : f32 to vector<1x16x16xf32>
    %370 = arith.mulf %369, %363 : vector<1x16x16xf32>
    %371 = arith.addf %337, %370 : vector<1x16x16xf32>
    %c2_222 = arith.constant 2 : index
    %c9_223 = arith.constant 9 : index
    %372 = memref.load %arg1[%c2_222, %c9_223] : memref<8x36xf32, #tpu.memory_space<smem>>
    %373 = vector.broadcast %372 : f32 to vector<1x16x16xf32>
    %374 = arith.mulf %373, %363 : vector<1x16x16xf32>
    %375 = arith.addf %341, %374 : vector<1x16x16xf32>
    %c3_224 = arith.constant 3 : index
    %c9_225 = arith.constant 9 : index
    %376 = memref.load %arg1[%c3_224, %c9_225] : memref<8x36xf32, #tpu.memory_space<smem>>
    %377 = vector.broadcast %376 : f32 to vector<1x16x16xf32>
    %378 = arith.mulf %377, %363 : vector<1x16x16xf32>
    %379 = arith.addf %345, %378 : vector<1x16x16xf32>
    %c4_226 = arith.constant 4 : index
    %c9_227 = arith.constant 9 : index
    %380 = memref.load %arg1[%c4_226, %c9_227] : memref<8x36xf32, #tpu.memory_space<smem>>
    %381 = vector.broadcast %380 : f32 to vector<1x16x16xf32>
    %382 = arith.mulf %381, %363 : vector<1x16x16xf32>
    %383 = arith.addf %349, %382 : vector<1x16x16xf32>
    %c5_228 = arith.constant 5 : index
    %c9_229 = arith.constant 9 : index
    %384 = memref.load %arg1[%c5_228, %c9_229] : memref<8x36xf32, #tpu.memory_space<smem>>
    %385 = vector.broadcast %384 : f32 to vector<1x16x16xf32>
    %386 = arith.mulf %385, %363 : vector<1x16x16xf32>
    %387 = arith.addf %353, %386 : vector<1x16x16xf32>
    %c6_230 = arith.constant 6 : index
    %c9_231 = arith.constant 9 : index
    %388 = memref.load %arg1[%c6_230, %c9_231] : memref<8x36xf32, #tpu.memory_space<smem>>
    %389 = vector.broadcast %388 : f32 to vector<1x16x16xf32>
    %390 = arith.mulf %389, %363 : vector<1x16x16xf32>
    %391 = arith.addf %357, %390 : vector<1x16x16xf32>
    %c7_232 = arith.constant 7 : index
    %c9_233 = arith.constant 9 : index
    %392 = memref.load %arg1[%c7_232, %c9_233] : memref<8x36xf32, #tpu.memory_space<smem>>
    %393 = vector.broadcast %392 : f32 to vector<1x16x16xf32>
    %394 = arith.mulf %393, %363 : vector<1x16x16xf32>
    %395 = arith.addf %361, %394 : vector<1x16x16xf32>
    %c0_234 = arith.constant 0 : index
    %c1_235 = arith.constant 1 : index
    %c0_236 = arith.constant 0 : index
    %c1_237 = arith.constant 1 : index
    %396 = vector.load %arg8[%c0_234, %c1_235, %c0_236, %c1_237] : memref<1x4x18x18xf32, #tpu.memory_space<vmem>>, vector<1x1x16x16xf32>
    %397 = vector.shape_cast %396 : vector<1x1x16x16xf32> to vector<1x16x16xf32>
    %c0_238 = arith.constant 0 : index
    %c10 = arith.constant 10 : index
    %398 = memref.load %arg1[%c0_238, %c10] : memref<8x36xf32, #tpu.memory_space<smem>>
    %399 = vector.broadcast %398 : f32 to vector<1x16x16xf32>
    %400 = arith.mulf %399, %397 : vector<1x16x16xf32>
    %401 = arith.addf %367, %400 : vector<1x16x16xf32>
    %c1_239 = arith.constant 1 : index
    %c10_240 = arith.constant 10 : index
    %402 = memref.load %arg1[%c1_239, %c10_240] : memref<8x36xf32, #tpu.memory_space<smem>>
    %403 = vector.broadcast %402 : f32 to vector<1x16x16xf32>
    %404 = arith.mulf %403, %397 : vector<1x16x16xf32>
    %405 = arith.addf %371, %404 : vector<1x16x16xf32>
    %c2_241 = arith.constant 2 : index
    %c10_242 = arith.constant 10 : index
    %406 = memref.load %arg1[%c2_241, %c10_242] : memref<8x36xf32, #tpu.memory_space<smem>>
    %407 = vector.broadcast %406 : f32 to vector<1x16x16xf32>
    %408 = arith.mulf %407, %397 : vector<1x16x16xf32>
    %409 = arith.addf %375, %408 : vector<1x16x16xf32>
    %c3_243 = arith.constant 3 : index
    %c10_244 = arith.constant 10 : index
    %410 = memref.load %arg1[%c3_243, %c10_244] : memref<8x36xf32, #tpu.memory_space<smem>>
    %411 = vector.broadcast %410 : f32 to vector<1x16x16xf32>
    %412 = arith.mulf %411, %397 : vector<1x16x16xf32>
    %413 = arith.addf %379, %412 : vector<1x16x16xf32>
    %c4_245 = arith.constant 4 : index
    %c10_246 = arith.constant 10 : index
    %414 = memref.load %arg1[%c4_245, %c10_246] : memref<8x36xf32, #tpu.memory_space<smem>>
    %415 = vector.broadcast %414 : f32 to vector<1x16x16xf32>
    %416 = arith.mulf %415, %397 : vector<1x16x16xf32>
    %417 = arith.addf %383, %416 : vector<1x16x16xf32>
    %c5_247 = arith.constant 5 : index
    %c10_248 = arith.constant 10 : index
    %418 = memref.load %arg1[%c5_247, %c10_248] : memref<8x36xf32, #tpu.memory_space<smem>>
    %419 = vector.broadcast %418 : f32 to vector<1x16x16xf32>
    %420 = arith.mulf %419, %397 : vector<1x16x16xf32>
    %421 = arith.addf %387, %420 : vector<1x16x16xf32>
    %c6_249 = arith.constant 6 : index
    %c10_250 = arith.constant 10 : index
    %422 = memref.load %arg1[%c6_249, %c10_250] : memref<8x36xf32, #tpu.memory_space<smem>>
    %423 = vector.broadcast %422 : f32 to vector<1x16x16xf32>
    %424 = arith.mulf %423, %397 : vector<1x16x16xf32>
    %425 = arith.addf %391, %424 : vector<1x16x16xf32>
    %c7_251 = arith.constant 7 : index
    %c10_252 = arith.constant 10 : index
    %426 = memref.load %arg1[%c7_251, %c10_252] : memref<8x36xf32, #tpu.memory_space<smem>>
    %427 = vector.broadcast %426 : f32 to vector<1x16x16xf32>
    %428 = arith.mulf %427, %397 : vector<1x16x16xf32>
    %429 = arith.addf %395, %428 : vector<1x16x16xf32>
    %c0_253 = arith.constant 0 : index
    %c1_254 = arith.constant 1 : index
    %c0_255 = arith.constant 0 : index
    %c2_256 = arith.constant 2 : index
    %430 = vector.load %arg8[%c0_253, %c1_254, %c0_255, %c2_256] : memref<1x4x18x18xf32, #tpu.memory_space<vmem>>, vector<1x1x16x16xf32>
    %431 = vector.shape_cast %430 : vector<1x1x16x16xf32> to vector<1x16x16xf32>
    %c0_257 = arith.constant 0 : index
    %c11 = arith.constant 11 : index
    %432 = memref.load %arg1[%c0_257, %c11] : memref<8x36xf32, #tpu.memory_space<smem>>
    %433 = vector.broadcast %432 : f32 to vector<1x16x16xf32>
    %434 = arith.mulf %433, %431 : vector<1x16x16xf32>
    %435 = arith.addf %401, %434 : vector<1x16x16xf32>
    %c1_258 = arith.constant 1 : index
    %c11_259 = arith.constant 11 : index
    %436 = memref.load %arg1[%c1_258, %c11_259] : memref<8x36xf32, #tpu.memory_space<smem>>
    %437 = vector.broadcast %436 : f32 to vector<1x16x16xf32>
    %438 = arith.mulf %437, %431 : vector<1x16x16xf32>
    %439 = arith.addf %405, %438 : vector<1x16x16xf32>
    %c2_260 = arith.constant 2 : index
    %c11_261 = arith.constant 11 : index
    %440 = memref.load %arg1[%c2_260, %c11_261] : memref<8x36xf32, #tpu.memory_space<smem>>
    %441 = vector.broadcast %440 : f32 to vector<1x16x16xf32>
    %442 = arith.mulf %441, %431 : vector<1x16x16xf32>
    %443 = arith.addf %409, %442 : vector<1x16x16xf32>
    %c3_262 = arith.constant 3 : index
    %c11_263 = arith.constant 11 : index
    %444 = memref.load %arg1[%c3_262, %c11_263] : memref<8x36xf32, #tpu.memory_space<smem>>
    %445 = vector.broadcast %444 : f32 to vector<1x16x16xf32>
    %446 = arith.mulf %445, %431 : vector<1x16x16xf32>
    %447 = arith.addf %413, %446 : vector<1x16x16xf32>
    %c4_264 = arith.constant 4 : index
    %c11_265 = arith.constant 11 : index
    %448 = memref.load %arg1[%c4_264, %c11_265] : memref<8x36xf32, #tpu.memory_space<smem>>
    %449 = vector.broadcast %448 : f32 to vector<1x16x16xf32>
    %450 = arith.mulf %449, %431 : vector<1x16x16xf32>
    %451 = arith.addf %417, %450 : vector<1x16x16xf32>
    %c5_266 = arith.constant 5 : index
    %c11_267 = arith.constant 11 : index
    %452 = memref.load %arg1[%c5_266, %c11_267] : memref<8x36xf32, #tpu.memory_space<smem>>
    %453 = vector.broadcast %452 : f32 to vector<1x16x16xf32>
    %454 = arith.mulf %453, %431 : vector<1x16x16xf32>
    %455 = arith.addf %421, %454 : vector<1x16x16xf32>
    %c6_268 = arith.constant 6 : index
    %c11_269 = arith.constant 11 : index
    %456 = memref.load %arg1[%c6_268, %c11_269] : memref<8x36xf32, #tpu.memory_space<smem>>
    %457 = vector.broadcast %456 : f32 to vector<1x16x16xf32>
    %458 = arith.mulf %457, %431 : vector<1x16x16xf32>
    %459 = arith.addf %425, %458 : vector<1x16x16xf32>
    %c7_270 = arith.constant 7 : index
    %c11_271 = arith.constant 11 : index
    %460 = memref.load %arg1[%c7_270, %c11_271] : memref<8x36xf32, #tpu.memory_space<smem>>
    %461 = vector.broadcast %460 : f32 to vector<1x16x16xf32>
    %462 = arith.mulf %461, %431 : vector<1x16x16xf32>
    %463 = arith.addf %429, %462 : vector<1x16x16xf32>
    %c0_272 = arith.constant 0 : index
    %c1_273 = arith.constant 1 : index
    %c1_274 = arith.constant 1 : index
    %c0_275 = arith.constant 0 : index
    %464 = vector.load %arg8[%c0_272, %c1_273, %c1_274, %c0_275] : memref<1x4x18x18xf32, #tpu.memory_space<vmem>>, vector<1x1x16x16xf32>
    %465 = vector.shape_cast %464 : vector<1x1x16x16xf32> to vector<1x16x16xf32>
    %c0_276 = arith.constant 0 : index
    %c12 = arith.constant 12 : index
    %466 = memref.load %arg1[%c0_276, %c12] : memref<8x36xf32, #tpu.memory_space<smem>>
    %467 = vector.broadcast %466 : f32 to vector<1x16x16xf32>
    %468 = arith.mulf %467, %465 : vector<1x16x16xf32>
    %469 = arith.addf %435, %468 : vector<1x16x16xf32>
    %c1_277 = arith.constant 1 : index
    %c12_278 = arith.constant 12 : index
    %470 = memref.load %arg1[%c1_277, %c12_278] : memref<8x36xf32, #tpu.memory_space<smem>>
    %471 = vector.broadcast %470 : f32 to vector<1x16x16xf32>
    %472 = arith.mulf %471, %465 : vector<1x16x16xf32>
    %473 = arith.addf %439, %472 : vector<1x16x16xf32>
    %c2_279 = arith.constant 2 : index
    %c12_280 = arith.constant 12 : index
    %474 = memref.load %arg1[%c2_279, %c12_280] : memref<8x36xf32, #tpu.memory_space<smem>>
    %475 = vector.broadcast %474 : f32 to vector<1x16x16xf32>
    %476 = arith.mulf %475, %465 : vector<1x16x16xf32>
    %477 = arith.addf %443, %476 : vector<1x16x16xf32>
    %c3_281 = arith.constant 3 : index
    %c12_282 = arith.constant 12 : index
    %478 = memref.load %arg1[%c3_281, %c12_282] : memref<8x36xf32, #tpu.memory_space<smem>>
    %479 = vector.broadcast %478 : f32 to vector<1x16x16xf32>
    %480 = arith.mulf %479, %465 : vector<1x16x16xf32>
    %481 = arith.addf %447, %480 : vector<1x16x16xf32>
    %c4_283 = arith.constant 4 : index
    %c12_284 = arith.constant 12 : index
    %482 = memref.load %arg1[%c4_283, %c12_284] : memref<8x36xf32, #tpu.memory_space<smem>>
    %483 = vector.broadcast %482 : f32 to vector<1x16x16xf32>
    %484 = arith.mulf %483, %465 : vector<1x16x16xf32>
    %485 = arith.addf %451, %484 : vector<1x16x16xf32>
    %c5_285 = arith.constant 5 : index
    %c12_286 = arith.constant 12 : index
    %486 = memref.load %arg1[%c5_285, %c12_286] : memref<8x36xf32, #tpu.memory_space<smem>>
    %487 = vector.broadcast %486 : f32 to vector<1x16x16xf32>
    %488 = arith.mulf %487, %465 : vector<1x16x16xf32>
    %489 = arith.addf %455, %488 : vector<1x16x16xf32>
    %c6_287 = arith.constant 6 : index
    %c12_288 = arith.constant 12 : index
    %490 = memref.load %arg1[%c6_287, %c12_288] : memref<8x36xf32, #tpu.memory_space<smem>>
    %491 = vector.broadcast %490 : f32 to vector<1x16x16xf32>
    %492 = arith.mulf %491, %465 : vector<1x16x16xf32>
    %493 = arith.addf %459, %492 : vector<1x16x16xf32>
    %c7_289 = arith.constant 7 : index
    %c12_290 = arith.constant 12 : index
    %494 = memref.load %arg1[%c7_289, %c12_290] : memref<8x36xf32, #tpu.memory_space<smem>>
    %495 = vector.broadcast %494 : f32 to vector<1x16x16xf32>
    %496 = arith.mulf %495, %465 : vector<1x16x16xf32>
    %497 = arith.addf %463, %496 : vector<1x16x16xf32>
    %c0_291 = arith.constant 0 : index
    %c1_292 = arith.constant 1 : index
    %c1_293 = arith.constant 1 : index
    %c1_294 = arith.constant 1 : index
    %498 = vector.load %arg8[%c0_291, %c1_292, %c1_293, %c1_294] : memref<1x4x18x18xf32, #tpu.memory_space<vmem>>, vector<1x1x16x16xf32>
    %499 = vector.shape_cast %498 : vector<1x1x16x16xf32> to vector<1x16x16xf32>
    %c0_295 = arith.constant 0 : index
    %c13 = arith.constant 13 : index
    %500 = memref.load %arg1[%c0_295, %c13] : memref<8x36xf32, #tpu.memory_space<smem>>
    %501 = vector.broadcast %500 : f32 to vector<1x16x16xf32>
    %502 = arith.mulf %501, %499 : vector<1x16x16xf32>
    %503 = arith.addf %469, %502 : vector<1x16x16xf32>
    %c1_296 = arith.constant 1 : index
    %c13_297 = arith.constant 13 : index
    %504 = memref.load %arg1[%c1_296, %c13_297] : memref<8x36xf32, #tpu.memory_space<smem>>
    %505 = vector.broadcast %504 : f32 to vector<1x16x16xf32>
    %506 = arith.mulf %505, %499 : vector<1x16x16xf32>
    %507 = arith.addf %473, %506 : vector<1x16x16xf32>
    %c2_298 = arith.constant 2 : index
    %c13_299 = arith.constant 13 : index
    %508 = memref.load %arg1[%c2_298, %c13_299] : memref<8x36xf32, #tpu.memory_space<smem>>
    %509 = vector.broadcast %508 : f32 to vector<1x16x16xf32>
    %510 = arith.mulf %509, %499 : vector<1x16x16xf32>
    %511 = arith.addf %477, %510 : vector<1x16x16xf32>
    %c3_300 = arith.constant 3 : index
    %c13_301 = arith.constant 13 : index
    %512 = memref.load %arg1[%c3_300, %c13_301] : memref<8x36xf32, #tpu.memory_space<smem>>
    %513 = vector.broadcast %512 : f32 to vector<1x16x16xf32>
    %514 = arith.mulf %513, %499 : vector<1x16x16xf32>
    %515 = arith.addf %481, %514 : vector<1x16x16xf32>
    %c4_302 = arith.constant 4 : index
    %c13_303 = arith.constant 13 : index
    %516 = memref.load %arg1[%c4_302, %c13_303] : memref<8x36xf32, #tpu.memory_space<smem>>
    %517 = vector.broadcast %516 : f32 to vector<1x16x16xf32>
    %518 = arith.mulf %517, %499 : vector<1x16x16xf32>
    %519 = arith.addf %485, %518 : vector<1x16x16xf32>
    %c5_304 = arith.constant 5 : index
    %c13_305 = arith.constant 13 : index
    %520 = memref.load %arg1[%c5_304, %c13_305] : memref<8x36xf32, #tpu.memory_space<smem>>
    %521 = vector.broadcast %520 : f32 to vector<1x16x16xf32>
    %522 = arith.mulf %521, %499 : vector<1x16x16xf32>
    %523 = arith.addf %489, %522 : vector<1x16x16xf32>
    %c6_306 = arith.constant 6 : index
    %c13_307 = arith.constant 13 : index
    %524 = memref.load %arg1[%c6_306, %c13_307] : memref<8x36xf32, #tpu.memory_space<smem>>
    %525 = vector.broadcast %524 : f32 to vector<1x16x16xf32>
    %526 = arith.mulf %525, %499 : vector<1x16x16xf32>
    %527 = arith.addf %493, %526 : vector<1x16x16xf32>
    %c7_308 = arith.constant 7 : index
    %c13_309 = arith.constant 13 : index
    %528 = memref.load %arg1[%c7_308, %c13_309] : memref<8x36xf32, #tpu.memory_space<smem>>
    %529 = vector.broadcast %528 : f32 to vector<1x16x16xf32>
    %530 = arith.mulf %529, %499 : vector<1x16x16xf32>
    %531 = arith.addf %497, %530 : vector<1x16x16xf32>
    %c0_310 = arith.constant 0 : index
    %c1_311 = arith.constant 1 : index
    %c1_312 = arith.constant 1 : index
    %c2_313 = arith.constant 2 : index
    %532 = vector.load %arg8[%c0_310, %c1_311, %c1_312, %c2_313] : memref<1x4x18x18xf32, #tpu.memory_space<vmem>>, vector<1x1x16x16xf32>
    %533 = vector.shape_cast %532 : vector<1x1x16x16xf32> to vector<1x16x16xf32>
    %c0_314 = arith.constant 0 : index
    %c14 = arith.constant 14 : index
    %534 = memref.load %arg1[%c0_314, %c14] : memref<8x36xf32, #tpu.memory_space<smem>>
    %535 = vector.broadcast %534 : f32 to vector<1x16x16xf32>
    %536 = arith.mulf %535, %533 : vector<1x16x16xf32>
    %537 = arith.addf %503, %536 : vector<1x16x16xf32>
    %c1_315 = arith.constant 1 : index
    %c14_316 = arith.constant 14 : index
    %538 = memref.load %arg1[%c1_315, %c14_316] : memref<8x36xf32, #tpu.memory_space<smem>>
    %539 = vector.broadcast %538 : f32 to vector<1x16x16xf32>
    %540 = arith.mulf %539, %533 : vector<1x16x16xf32>
    %541 = arith.addf %507, %540 : vector<1x16x16xf32>
    %c2_317 = arith.constant 2 : index
    %c14_318 = arith.constant 14 : index
    %542 = memref.load %arg1[%c2_317, %c14_318] : memref<8x36xf32, #tpu.memory_space<smem>>
    %543 = vector.broadcast %542 : f32 to vector<1x16x16xf32>
    %544 = arith.mulf %543, %533 : vector<1x16x16xf32>
    %545 = arith.addf %511, %544 : vector<1x16x16xf32>
    %c3_319 = arith.constant 3 : index
    %c14_320 = arith.constant 14 : index
    %546 = memref.load %arg1[%c3_319, %c14_320] : memref<8x36xf32, #tpu.memory_space<smem>>
    %547 = vector.broadcast %546 : f32 to vector<1x16x16xf32>
    %548 = arith.mulf %547, %533 : vector<1x16x16xf32>
    %549 = arith.addf %515, %548 : vector<1x16x16xf32>
    %c4_321 = arith.constant 4 : index
    %c14_322 = arith.constant 14 : index
    %550 = memref.load %arg1[%c4_321, %c14_322] : memref<8x36xf32, #tpu.memory_space<smem>>
    %551 = vector.broadcast %550 : f32 to vector<1x16x16xf32>
    %552 = arith.mulf %551, %533 : vector<1x16x16xf32>
    %553 = arith.addf %519, %552 : vector<1x16x16xf32>
    %c5_323 = arith.constant 5 : index
    %c14_324 = arith.constant 14 : index
    %554 = memref.load %arg1[%c5_323, %c14_324] : memref<8x36xf32, #tpu.memory_space<smem>>
    %555 = vector.broadcast %554 : f32 to vector<1x16x16xf32>
    %556 = arith.mulf %555, %533 : vector<1x16x16xf32>
    %557 = arith.addf %523, %556 : vector<1x16x16xf32>
    %c6_325 = arith.constant 6 : index
    %c14_326 = arith.constant 14 : index
    %558 = memref.load %arg1[%c6_325, %c14_326] : memref<8x36xf32, #tpu.memory_space<smem>>
    %559 = vector.broadcast %558 : f32 to vector<1x16x16xf32>
    %560 = arith.mulf %559, %533 : vector<1x16x16xf32>
    %561 = arith.addf %527, %560 : vector<1x16x16xf32>
    %c7_327 = arith.constant 7 : index
    %c14_328 = arith.constant 14 : index
    %562 = memref.load %arg1[%c7_327, %c14_328] : memref<8x36xf32, #tpu.memory_space<smem>>
    %563 = vector.broadcast %562 : f32 to vector<1x16x16xf32>
    %564 = arith.mulf %563, %533 : vector<1x16x16xf32>
    %565 = arith.addf %531, %564 : vector<1x16x16xf32>
    %c0_329 = arith.constant 0 : index
    %c1_330 = arith.constant 1 : index
    %c2_331 = arith.constant 2 : index
    %c0_332 = arith.constant 0 : index
    %566 = vector.load %arg8[%c0_329, %c1_330, %c2_331, %c0_332] : memref<1x4x18x18xf32, #tpu.memory_space<vmem>>, vector<1x1x16x16xf32>
    %567 = vector.shape_cast %566 : vector<1x1x16x16xf32> to vector<1x16x16xf32>
    %c0_333 = arith.constant 0 : index
    %c15 = arith.constant 15 : index
    %568 = memref.load %arg1[%c0_333, %c15] : memref<8x36xf32, #tpu.memory_space<smem>>
    %569 = vector.broadcast %568 : f32 to vector<1x16x16xf32>
    %570 = arith.mulf %569, %567 : vector<1x16x16xf32>
    %571 = arith.addf %537, %570 : vector<1x16x16xf32>
    %c1_334 = arith.constant 1 : index
    %c15_335 = arith.constant 15 : index
    %572 = memref.load %arg1[%c1_334, %c15_335] : memref<8x36xf32, #tpu.memory_space<smem>>
    %573 = vector.broadcast %572 : f32 to vector<1x16x16xf32>
    %574 = arith.mulf %573, %567 : vector<1x16x16xf32>
    %575 = arith.addf %541, %574 : vector<1x16x16xf32>
    %c2_336 = arith.constant 2 : index
    %c15_337 = arith.constant 15 : index
    %576 = memref.load %arg1[%c2_336, %c15_337] : memref<8x36xf32, #tpu.memory_space<smem>>
    %577 = vector.broadcast %576 : f32 to vector<1x16x16xf32>
    %578 = arith.mulf %577, %567 : vector<1x16x16xf32>
    %579 = arith.addf %545, %578 : vector<1x16x16xf32>
    %c3_338 = arith.constant 3 : index
    %c15_339 = arith.constant 15 : index
    %580 = memref.load %arg1[%c3_338, %c15_339] : memref<8x36xf32, #tpu.memory_space<smem>>
    %581 = vector.broadcast %580 : f32 to vector<1x16x16xf32>
    %582 = arith.mulf %581, %567 : vector<1x16x16xf32>
    %583 = arith.addf %549, %582 : vector<1x16x16xf32>
    %c4_340 = arith.constant 4 : index
    %c15_341 = arith.constant 15 : index
    %584 = memref.load %arg1[%c4_340, %c15_341] : memref<8x36xf32, #tpu.memory_space<smem>>
    %585 = vector.broadcast %584 : f32 to vector<1x16x16xf32>
    %586 = arith.mulf %585, %567 : vector<1x16x16xf32>
    %587 = arith.addf %553, %586 : vector<1x16x16xf32>
    %c5_342 = arith.constant 5 : index
    %c15_343 = arith.constant 15 : index
    %588 = memref.load %arg1[%c5_342, %c15_343] : memref<8x36xf32, #tpu.memory_space<smem>>
    %589 = vector.broadcast %588 : f32 to vector<1x16x16xf32>
    %590 = arith.mulf %589, %567 : vector<1x16x16xf32>
    %591 = arith.addf %557, %590 : vector<1x16x16xf32>
    %c6_344 = arith.constant 6 : index
    %c15_345 = arith.constant 15 : index
    %592 = memref.load %arg1[%c6_344, %c15_345] : memref<8x36xf32, #tpu.memory_space<smem>>
    %593 = vector.broadcast %592 : f32 to vector<1x16x16xf32>
    %594 = arith.mulf %593, %567 : vector<1x16x16xf32>
    %595 = arith.addf %561, %594 : vector<1x16x16xf32>
    %c7_346 = arith.constant 7 : index
    %c15_347 = arith.constant 15 : index
    %596 = memref.load %arg1[%c7_346, %c15_347] : memref<8x36xf32, #tpu.memory_space<smem>>
    %597 = vector.broadcast %596 : f32 to vector<1x16x16xf32>
    %598 = arith.mulf %597, %567 : vector<1x16x16xf32>
    %599 = arith.addf %565, %598 : vector<1x16x16xf32>
    %c0_348 = arith.constant 0 : index
    %c1_349 = arith.constant 1 : index
    %c2_350 = arith.constant 2 : index
    %c1_351 = arith.constant 1 : index
    %600 = vector.load %arg8[%c0_348, %c1_349, %c2_350, %c1_351] : memref<1x4x18x18xf32, #tpu.memory_space<vmem>>, vector<1x1x16x16xf32>
    %601 = vector.shape_cast %600 : vector<1x1x16x16xf32> to vector<1x16x16xf32>
    %c0_352 = arith.constant 0 : index
    %c16 = arith.constant 16 : index
    %602 = memref.load %arg1[%c0_352, %c16] : memref<8x36xf32, #tpu.memory_space<smem>>
    %603 = vector.broadcast %602 : f32 to vector<1x16x16xf32>
    %604 = arith.mulf %603, %601 : vector<1x16x16xf32>
    %605 = arith.addf %571, %604 : vector<1x16x16xf32>
    %c1_353 = arith.constant 1 : index
    %c16_354 = arith.constant 16 : index
    %606 = memref.load %arg1[%c1_353, %c16_354] : memref<8x36xf32, #tpu.memory_space<smem>>
    %607 = vector.broadcast %606 : f32 to vector<1x16x16xf32>
    %608 = arith.mulf %607, %601 : vector<1x16x16xf32>
    %609 = arith.addf %575, %608 : vector<1x16x16xf32>
    %c2_355 = arith.constant 2 : index
    %c16_356 = arith.constant 16 : index
    %610 = memref.load %arg1[%c2_355, %c16_356] : memref<8x36xf32, #tpu.memory_space<smem>>
    %611 = vector.broadcast %610 : f32 to vector<1x16x16xf32>
    %612 = arith.mulf %611, %601 : vector<1x16x16xf32>
    %613 = arith.addf %579, %612 : vector<1x16x16xf32>
    %c3_357 = arith.constant 3 : index
    %c16_358 = arith.constant 16 : index
    %614 = memref.load %arg1[%c3_357, %c16_358] : memref<8x36xf32, #tpu.memory_space<smem>>
    %615 = vector.broadcast %614 : f32 to vector<1x16x16xf32>
    %616 = arith.mulf %615, %601 : vector<1x16x16xf32>
    %617 = arith.addf %583, %616 : vector<1x16x16xf32>
    %c4_359 = arith.constant 4 : index
    %c16_360 = arith.constant 16 : index
    %618 = memref.load %arg1[%c4_359, %c16_360] : memref<8x36xf32, #tpu.memory_space<smem>>
    %619 = vector.broadcast %618 : f32 to vector<1x16x16xf32>
    %620 = arith.mulf %619, %601 : vector<1x16x16xf32>
    %621 = arith.addf %587, %620 : vector<1x16x16xf32>
    %c5_361 = arith.constant 5 : index
    %c16_362 = arith.constant 16 : index
    %622 = memref.load %arg1[%c5_361, %c16_362] : memref<8x36xf32, #tpu.memory_space<smem>>
    %623 = vector.broadcast %622 : f32 to vector<1x16x16xf32>
    %624 = arith.mulf %623, %601 : vector<1x16x16xf32>
    %625 = arith.addf %591, %624 : vector<1x16x16xf32>
    %c6_363 = arith.constant 6 : index
    %c16_364 = arith.constant 16 : index
    %626 = memref.load %arg1[%c6_363, %c16_364] : memref<8x36xf32, #tpu.memory_space<smem>>
    %627 = vector.broadcast %626 : f32 to vector<1x16x16xf32>
    %628 = arith.mulf %627, %601 : vector<1x16x16xf32>
    %629 = arith.addf %595, %628 : vector<1x16x16xf32>
    %c7_365 = arith.constant 7 : index
    %c16_366 = arith.constant 16 : index
    %630 = memref.load %arg1[%c7_365, %c16_366] : memref<8x36xf32, #tpu.memory_space<smem>>
    %631 = vector.broadcast %630 : f32 to vector<1x16x16xf32>
    %632 = arith.mulf %631, %601 : vector<1x16x16xf32>
    %633 = arith.addf %599, %632 : vector<1x16x16xf32>
    %c0_367 = arith.constant 0 : index
    %c1_368 = arith.constant 1 : index
    %c2_369 = arith.constant 2 : index
    %c2_370 = arith.constant 2 : index
    %634 = vector.load %arg8[%c0_367, %c1_368, %c2_369, %c2_370] : memref<1x4x18x18xf32, #tpu.memory_space<vmem>>, vector<1x1x16x16xf32>
    %635 = vector.shape_cast %634 : vector<1x1x16x16xf32> to vector<1x16x16xf32>
    %c0_371 = arith.constant 0 : index
    %c17 = arith.constant 17 : index
    %636 = memref.load %arg1[%c0_371, %c17] : memref<8x36xf32, #tpu.memory_space<smem>>
    %637 = vector.broadcast %636 : f32 to vector<1x16x16xf32>
    %638 = arith.mulf %637, %635 : vector<1x16x16xf32>
    %639 = arith.addf %605, %638 : vector<1x16x16xf32>
    %c1_372 = arith.constant 1 : index
    %c17_373 = arith.constant 17 : index
    %640 = memref.load %arg1[%c1_372, %c17_373] : memref<8x36xf32, #tpu.memory_space<smem>>
    %641 = vector.broadcast %640 : f32 to vector<1x16x16xf32>
    %642 = arith.mulf %641, %635 : vector<1x16x16xf32>
    %643 = arith.addf %609, %642 : vector<1x16x16xf32>
    %c2_374 = arith.constant 2 : index
    %c17_375 = arith.constant 17 : index
    %644 = memref.load %arg1[%c2_374, %c17_375] : memref<8x36xf32, #tpu.memory_space<smem>>
    %645 = vector.broadcast %644 : f32 to vector<1x16x16xf32>
    %646 = arith.mulf %645, %635 : vector<1x16x16xf32>
    %647 = arith.addf %613, %646 : vector<1x16x16xf32>
    %c3_376 = arith.constant 3 : index
    %c17_377 = arith.constant 17 : index
    %648 = memref.load %arg1[%c3_376, %c17_377] : memref<8x36xf32, #tpu.memory_space<smem>>
    %649 = vector.broadcast %648 : f32 to vector<1x16x16xf32>
    %650 = arith.mulf %649, %635 : vector<1x16x16xf32>
    %651 = arith.addf %617, %650 : vector<1x16x16xf32>
    %c4_378 = arith.constant 4 : index
    %c17_379 = arith.constant 17 : index
    %652 = memref.load %arg1[%c4_378, %c17_379] : memref<8x36xf32, #tpu.memory_space<smem>>
    %653 = vector.broadcast %652 : f32 to vector<1x16x16xf32>
    %654 = arith.mulf %653, %635 : vector<1x16x16xf32>
    %655 = arith.addf %621, %654 : vector<1x16x16xf32>
    %c5_380 = arith.constant 5 : index
    %c17_381 = arith.constant 17 : index
    %656 = memref.load %arg1[%c5_380, %c17_381] : memref<8x36xf32, #tpu.memory_space<smem>>
    %657 = vector.broadcast %656 : f32 to vector<1x16x16xf32>
    %658 = arith.mulf %657, %635 : vector<1x16x16xf32>
    %659 = arith.addf %625, %658 : vector<1x16x16xf32>
    %c6_382 = arith.constant 6 : index
    %c17_383 = arith.constant 17 : index
    %660 = memref.load %arg1[%c6_382, %c17_383] : memref<8x36xf32, #tpu.memory_space<smem>>
    %661 = vector.broadcast %660 : f32 to vector<1x16x16xf32>
    %662 = arith.mulf %661, %635 : vector<1x16x16xf32>
    %663 = arith.addf %629, %662 : vector<1x16x16xf32>
    %c7_384 = arith.constant 7 : index
    %c17_385 = arith.constant 17 : index
    %664 = memref.load %arg1[%c7_384, %c17_385] : memref<8x36xf32, #tpu.memory_space<smem>>
    %665 = vector.broadcast %664 : f32 to vector<1x16x16xf32>
    %666 = arith.mulf %665, %635 : vector<1x16x16xf32>
    %667 = arith.addf %633, %666 : vector<1x16x16xf32>
    %c0_386 = arith.constant 0 : index
    %c2_387 = arith.constant 2 : index
    %c0_388 = arith.constant 0 : index
    %c0_389 = arith.constant 0 : index
    %668 = vector.load %arg8[%c0_386, %c2_387, %c0_388, %c0_389] : memref<1x4x18x18xf32, #tpu.memory_space<vmem>>, vector<1x1x16x16xf32>
    %669 = vector.shape_cast %668 : vector<1x1x16x16xf32> to vector<1x16x16xf32>
    %c0_390 = arith.constant 0 : index
    %c18 = arith.constant 18 : index
    %670 = memref.load %arg1[%c0_390, %c18] : memref<8x36xf32, #tpu.memory_space<smem>>
    %671 = vector.broadcast %670 : f32 to vector<1x16x16xf32>
    %672 = arith.mulf %671, %669 : vector<1x16x16xf32>
    %673 = arith.addf %639, %672 : vector<1x16x16xf32>
    %c1_391 = arith.constant 1 : index
    %c18_392 = arith.constant 18 : index
    %674 = memref.load %arg1[%c1_391, %c18_392] : memref<8x36xf32, #tpu.memory_space<smem>>
    %675 = vector.broadcast %674 : f32 to vector<1x16x16xf32>
    %676 = arith.mulf %675, %669 : vector<1x16x16xf32>
    %677 = arith.addf %643, %676 : vector<1x16x16xf32>
    %c2_393 = arith.constant 2 : index
    %c18_394 = arith.constant 18 : index
    %678 = memref.load %arg1[%c2_393, %c18_394] : memref<8x36xf32, #tpu.memory_space<smem>>
    %679 = vector.broadcast %678 : f32 to vector<1x16x16xf32>
    %680 = arith.mulf %679, %669 : vector<1x16x16xf32>
    %681 = arith.addf %647, %680 : vector<1x16x16xf32>
    %c3_395 = arith.constant 3 : index
    %c18_396 = arith.constant 18 : index
    %682 = memref.load %arg1[%c3_395, %c18_396] : memref<8x36xf32, #tpu.memory_space<smem>>
    %683 = vector.broadcast %682 : f32 to vector<1x16x16xf32>
    %684 = arith.mulf %683, %669 : vector<1x16x16xf32>
    %685 = arith.addf %651, %684 : vector<1x16x16xf32>
    %c4_397 = arith.constant 4 : index
    %c18_398 = arith.constant 18 : index
    %686 = memref.load %arg1[%c4_397, %c18_398] : memref<8x36xf32, #tpu.memory_space<smem>>
    %687 = vector.broadcast %686 : f32 to vector<1x16x16xf32>
    %688 = arith.mulf %687, %669 : vector<1x16x16xf32>
    %689 = arith.addf %655, %688 : vector<1x16x16xf32>
    %c5_399 = arith.constant 5 : index
    %c18_400 = arith.constant 18 : index
    %690 = memref.load %arg1[%c5_399, %c18_400] : memref<8x36xf32, #tpu.memory_space<smem>>
    %691 = vector.broadcast %690 : f32 to vector<1x16x16xf32>
    %692 = arith.mulf %691, %669 : vector<1x16x16xf32>
    %693 = arith.addf %659, %692 : vector<1x16x16xf32>
    %c6_401 = arith.constant 6 : index
    %c18_402 = arith.constant 18 : index
    %694 = memref.load %arg1[%c6_401, %c18_402] : memref<8x36xf32, #tpu.memory_space<smem>>
    %695 = vector.broadcast %694 : f32 to vector<1x16x16xf32>
    %696 = arith.mulf %695, %669 : vector<1x16x16xf32>
    %697 = arith.addf %663, %696 : vector<1x16x16xf32>
    %c7_403 = arith.constant 7 : index
    %c18_404 = arith.constant 18 : index
    %698 = memref.load %arg1[%c7_403, %c18_404] : memref<8x36xf32, #tpu.memory_space<smem>>
    %699 = vector.broadcast %698 : f32 to vector<1x16x16xf32>
    %700 = arith.mulf %699, %669 : vector<1x16x16xf32>
    %701 = arith.addf %667, %700 : vector<1x16x16xf32>
    %c0_405 = arith.constant 0 : index
    %c2_406 = arith.constant 2 : index
    %c0_407 = arith.constant 0 : index
    %c1_408 = arith.constant 1 : index
    %702 = vector.load %arg8[%c0_405, %c2_406, %c0_407, %c1_408] : memref<1x4x18x18xf32, #tpu.memory_space<vmem>>, vector<1x1x16x16xf32>
    %703 = vector.shape_cast %702 : vector<1x1x16x16xf32> to vector<1x16x16xf32>
    %c0_409 = arith.constant 0 : index
    %c19 = arith.constant 19 : index
    %704 = memref.load %arg1[%c0_409, %c19] : memref<8x36xf32, #tpu.memory_space<smem>>
    %705 = vector.broadcast %704 : f32 to vector<1x16x16xf32>
    %706 = arith.mulf %705, %703 : vector<1x16x16xf32>
    %707 = arith.addf %673, %706 : vector<1x16x16xf32>
    %c1_410 = arith.constant 1 : index
    %c19_411 = arith.constant 19 : index
    %708 = memref.load %arg1[%c1_410, %c19_411] : memref<8x36xf32, #tpu.memory_space<smem>>
    %709 = vector.broadcast %708 : f32 to vector<1x16x16xf32>
    %710 = arith.mulf %709, %703 : vector<1x16x16xf32>
    %711 = arith.addf %677, %710 : vector<1x16x16xf32>
    %c2_412 = arith.constant 2 : index
    %c19_413 = arith.constant 19 : index
    %712 = memref.load %arg1[%c2_412, %c19_413] : memref<8x36xf32, #tpu.memory_space<smem>>
    %713 = vector.broadcast %712 : f32 to vector<1x16x16xf32>
    %714 = arith.mulf %713, %703 : vector<1x16x16xf32>
    %715 = arith.addf %681, %714 : vector<1x16x16xf32>
    %c3_414 = arith.constant 3 : index
    %c19_415 = arith.constant 19 : index
    %716 = memref.load %arg1[%c3_414, %c19_415] : memref<8x36xf32, #tpu.memory_space<smem>>
    %717 = vector.broadcast %716 : f32 to vector<1x16x16xf32>
    %718 = arith.mulf %717, %703 : vector<1x16x16xf32>
    %719 = arith.addf %685, %718 : vector<1x16x16xf32>
    %c4_416 = arith.constant 4 : index
    %c19_417 = arith.constant 19 : index
    %720 = memref.load %arg1[%c4_416, %c19_417] : memref<8x36xf32, #tpu.memory_space<smem>>
    %721 = vector.broadcast %720 : f32 to vector<1x16x16xf32>
    %722 = arith.mulf %721, %703 : vector<1x16x16xf32>
    %723 = arith.addf %689, %722 : vector<1x16x16xf32>
    %c5_418 = arith.constant 5 : index
    %c19_419 = arith.constant 19 : index
    %724 = memref.load %arg1[%c5_418, %c19_419] : memref<8x36xf32, #tpu.memory_space<smem>>
    %725 = vector.broadcast %724 : f32 to vector<1x16x16xf32>
    %726 = arith.mulf %725, %703 : vector<1x16x16xf32>
    %727 = arith.addf %693, %726 : vector<1x16x16xf32>
    %c6_420 = arith.constant 6 : index
    %c19_421 = arith.constant 19 : index
    %728 = memref.load %arg1[%c6_420, %c19_421] : memref<8x36xf32, #tpu.memory_space<smem>>
    %729 = vector.broadcast %728 : f32 to vector<1x16x16xf32>
    %730 = arith.mulf %729, %703 : vector<1x16x16xf32>
    %731 = arith.addf %697, %730 : vector<1x16x16xf32>
    %c7_422 = arith.constant 7 : index
    %c19_423 = arith.constant 19 : index
    %732 = memref.load %arg1[%c7_422, %c19_423] : memref<8x36xf32, #tpu.memory_space<smem>>
    %733 = vector.broadcast %732 : f32 to vector<1x16x16xf32>
    %734 = arith.mulf %733, %703 : vector<1x16x16xf32>
    %735 = arith.addf %701, %734 : vector<1x16x16xf32>
    %c0_424 = arith.constant 0 : index
    %c2_425 = arith.constant 2 : index
    %c0_426 = arith.constant 0 : index
    %c2_427 = arith.constant 2 : index
    %736 = vector.load %arg8[%c0_424, %c2_425, %c0_426, %c2_427] : memref<1x4x18x18xf32, #tpu.memory_space<vmem>>, vector<1x1x16x16xf32>
    %737 = vector.shape_cast %736 : vector<1x1x16x16xf32> to vector<1x16x16xf32>
    %c0_428 = arith.constant 0 : index
    %c20 = arith.constant 20 : index
    %738 = memref.load %arg1[%c0_428, %c20] : memref<8x36xf32, #tpu.memory_space<smem>>
    %739 = vector.broadcast %738 : f32 to vector<1x16x16xf32>
    %740 = arith.mulf %739, %737 : vector<1x16x16xf32>
    %741 = arith.addf %707, %740 : vector<1x16x16xf32>
    %c1_429 = arith.constant 1 : index
    %c20_430 = arith.constant 20 : index
    %742 = memref.load %arg1[%c1_429, %c20_430] : memref<8x36xf32, #tpu.memory_space<smem>>
    %743 = vector.broadcast %742 : f32 to vector<1x16x16xf32>
    %744 = arith.mulf %743, %737 : vector<1x16x16xf32>
    %745 = arith.addf %711, %744 : vector<1x16x16xf32>
    %c2_431 = arith.constant 2 : index
    %c20_432 = arith.constant 20 : index
    %746 = memref.load %arg1[%c2_431, %c20_432] : memref<8x36xf32, #tpu.memory_space<smem>>
    %747 = vector.broadcast %746 : f32 to vector<1x16x16xf32>
    %748 = arith.mulf %747, %737 : vector<1x16x16xf32>
    %749 = arith.addf %715, %748 : vector<1x16x16xf32>
    %c3_433 = arith.constant 3 : index
    %c20_434 = arith.constant 20 : index
    %750 = memref.load %arg1[%c3_433, %c20_434] : memref<8x36xf32, #tpu.memory_space<smem>>
    %751 = vector.broadcast %750 : f32 to vector<1x16x16xf32>
    %752 = arith.mulf %751, %737 : vector<1x16x16xf32>
    %753 = arith.addf %719, %752 : vector<1x16x16xf32>
    %c4_435 = arith.constant 4 : index
    %c20_436 = arith.constant 20 : index
    %754 = memref.load %arg1[%c4_435, %c20_436] : memref<8x36xf32, #tpu.memory_space<smem>>
    %755 = vector.broadcast %754 : f32 to vector<1x16x16xf32>
    %756 = arith.mulf %755, %737 : vector<1x16x16xf32>
    %757 = arith.addf %723, %756 : vector<1x16x16xf32>
    %c5_437 = arith.constant 5 : index
    %c20_438 = arith.constant 20 : index
    %758 = memref.load %arg1[%c5_437, %c20_438] : memref<8x36xf32, #tpu.memory_space<smem>>
    %759 = vector.broadcast %758 : f32 to vector<1x16x16xf32>
    %760 = arith.mulf %759, %737 : vector<1x16x16xf32>
    %761 = arith.addf %727, %760 : vector<1x16x16xf32>
    %c6_439 = arith.constant 6 : index
    %c20_440 = arith.constant 20 : index
    %762 = memref.load %arg1[%c6_439, %c20_440] : memref<8x36xf32, #tpu.memory_space<smem>>
    %763 = vector.broadcast %762 : f32 to vector<1x16x16xf32>
    %764 = arith.mulf %763, %737 : vector<1x16x16xf32>
    %765 = arith.addf %731, %764 : vector<1x16x16xf32>
    %c7_441 = arith.constant 7 : index
    %c20_442 = arith.constant 20 : index
    %766 = memref.load %arg1[%c7_441, %c20_442] : memref<8x36xf32, #tpu.memory_space<smem>>
    %767 = vector.broadcast %766 : f32 to vector<1x16x16xf32>
    %768 = arith.mulf %767, %737 : vector<1x16x16xf32>
    %769 = arith.addf %735, %768 : vector<1x16x16xf32>
    %c0_443 = arith.constant 0 : index
    %c2_444 = arith.constant 2 : index
    %c1_445 = arith.constant 1 : index
    %c0_446 = arith.constant 0 : index
    %770 = vector.load %arg8[%c0_443, %c2_444, %c1_445, %c0_446] : memref<1x4x18x18xf32, #tpu.memory_space<vmem>>, vector<1x1x16x16xf32>
    %771 = vector.shape_cast %770 : vector<1x1x16x16xf32> to vector<1x16x16xf32>
    %c0_447 = arith.constant 0 : index
    %c21 = arith.constant 21 : index
    %772 = memref.load %arg1[%c0_447, %c21] : memref<8x36xf32, #tpu.memory_space<smem>>
    %773 = vector.broadcast %772 : f32 to vector<1x16x16xf32>
    %774 = arith.mulf %773, %771 : vector<1x16x16xf32>
    %775 = arith.addf %741, %774 : vector<1x16x16xf32>
    %c1_448 = arith.constant 1 : index
    %c21_449 = arith.constant 21 : index
    %776 = memref.load %arg1[%c1_448, %c21_449] : memref<8x36xf32, #tpu.memory_space<smem>>
    %777 = vector.broadcast %776 : f32 to vector<1x16x16xf32>
    %778 = arith.mulf %777, %771 : vector<1x16x16xf32>
    %779 = arith.addf %745, %778 : vector<1x16x16xf32>
    %c2_450 = arith.constant 2 : index
    %c21_451 = arith.constant 21 : index
    %780 = memref.load %arg1[%c2_450, %c21_451] : memref<8x36xf32, #tpu.memory_space<smem>>
    %781 = vector.broadcast %780 : f32 to vector<1x16x16xf32>
    %782 = arith.mulf %781, %771 : vector<1x16x16xf32>
    %783 = arith.addf %749, %782 : vector<1x16x16xf32>
    %c3_452 = arith.constant 3 : index
    %c21_453 = arith.constant 21 : index
    %784 = memref.load %arg1[%c3_452, %c21_453] : memref<8x36xf32, #tpu.memory_space<smem>>
    %785 = vector.broadcast %784 : f32 to vector<1x16x16xf32>
    %786 = arith.mulf %785, %771 : vector<1x16x16xf32>
    %787 = arith.addf %753, %786 : vector<1x16x16xf32>
    %c4_454 = arith.constant 4 : index
    %c21_455 = arith.constant 21 : index
    %788 = memref.load %arg1[%c4_454, %c21_455] : memref<8x36xf32, #tpu.memory_space<smem>>
    %789 = vector.broadcast %788 : f32 to vector<1x16x16xf32>
    %790 = arith.mulf %789, %771 : vector<1x16x16xf32>
    %791 = arith.addf %757, %790 : vector<1x16x16xf32>
    %c5_456 = arith.constant 5 : index
    %c21_457 = arith.constant 21 : index
    %792 = memref.load %arg1[%c5_456, %c21_457] : memref<8x36xf32, #tpu.memory_space<smem>>
    %793 = vector.broadcast %792 : f32 to vector<1x16x16xf32>
    %794 = arith.mulf %793, %771 : vector<1x16x16xf32>
    %795 = arith.addf %761, %794 : vector<1x16x16xf32>
    %c6_458 = arith.constant 6 : index
    %c21_459 = arith.constant 21 : index
    %796 = memref.load %arg1[%c6_458, %c21_459] : memref<8x36xf32, #tpu.memory_space<smem>>
    %797 = vector.broadcast %796 : f32 to vector<1x16x16xf32>
    %798 = arith.mulf %797, %771 : vector<1x16x16xf32>
    %799 = arith.addf %765, %798 : vector<1x16x16xf32>
    %c7_460 = arith.constant 7 : index
    %c21_461 = arith.constant 21 : index
    %800 = memref.load %arg1[%c7_460, %c21_461] : memref<8x36xf32, #tpu.memory_space<smem>>
    %801 = vector.broadcast %800 : f32 to vector<1x16x16xf32>
    %802 = arith.mulf %801, %771 : vector<1x16x16xf32>
    %803 = arith.addf %769, %802 : vector<1x16x16xf32>
    %c0_462 = arith.constant 0 : index
    %c2_463 = arith.constant 2 : index
    %c1_464 = arith.constant 1 : index
    %c1_465 = arith.constant 1 : index
    %804 = vector.load %arg8[%c0_462, %c2_463, %c1_464, %c1_465] : memref<1x4x18x18xf32, #tpu.memory_space<vmem>>, vector<1x1x16x16xf32>
    %805 = vector.shape_cast %804 : vector<1x1x16x16xf32> to vector<1x16x16xf32>
    %c0_466 = arith.constant 0 : index
    %c22 = arith.constant 22 : index
    %806 = memref.load %arg1[%c0_466, %c22] : memref<8x36xf32, #tpu.memory_space<smem>>
    %807 = vector.broadcast %806 : f32 to vector<1x16x16xf32>
    %808 = arith.mulf %807, %805 : vector<1x16x16xf32>
    %809 = arith.addf %775, %808 : vector<1x16x16xf32>
    %c1_467 = arith.constant 1 : index
    %c22_468 = arith.constant 22 : index
    %810 = memref.load %arg1[%c1_467, %c22_468] : memref<8x36xf32, #tpu.memory_space<smem>>
    %811 = vector.broadcast %810 : f32 to vector<1x16x16xf32>
    %812 = arith.mulf %811, %805 : vector<1x16x16xf32>
    %813 = arith.addf %779, %812 : vector<1x16x16xf32>
    %c2_469 = arith.constant 2 : index
    %c22_470 = arith.constant 22 : index
    %814 = memref.load %arg1[%c2_469, %c22_470] : memref<8x36xf32, #tpu.memory_space<smem>>
    %815 = vector.broadcast %814 : f32 to vector<1x16x16xf32>
    %816 = arith.mulf %815, %805 : vector<1x16x16xf32>
    %817 = arith.addf %783, %816 : vector<1x16x16xf32>
    %c3_471 = arith.constant 3 : index
    %c22_472 = arith.constant 22 : index
    %818 = memref.load %arg1[%c3_471, %c22_472] : memref<8x36xf32, #tpu.memory_space<smem>>
    %819 = vector.broadcast %818 : f32 to vector<1x16x16xf32>
    %820 = arith.mulf %819, %805 : vector<1x16x16xf32>
    %821 = arith.addf %787, %820 : vector<1x16x16xf32>
    %c4_473 = arith.constant 4 : index
    %c22_474 = arith.constant 22 : index
    %822 = memref.load %arg1[%c4_473, %c22_474] : memref<8x36xf32, #tpu.memory_space<smem>>
    %823 = vector.broadcast %822 : f32 to vector<1x16x16xf32>
    %824 = arith.mulf %823, %805 : vector<1x16x16xf32>
    %825 = arith.addf %791, %824 : vector<1x16x16xf32>
    %c5_475 = arith.constant 5 : index
    %c22_476 = arith.constant 22 : index
    %826 = memref.load %arg1[%c5_475, %c22_476] : memref<8x36xf32, #tpu.memory_space<smem>>
    %827 = vector.broadcast %826 : f32 to vector<1x16x16xf32>
    %828 = arith.mulf %827, %805 : vector<1x16x16xf32>
    %829 = arith.addf %795, %828 : vector<1x16x16xf32>
    %c6_477 = arith.constant 6 : index
    %c22_478 = arith.constant 22 : index
    %830 = memref.load %arg1[%c6_477, %c22_478] : memref<8x36xf32, #tpu.memory_space<smem>>
    %831 = vector.broadcast %830 : f32 to vector<1x16x16xf32>
    %832 = arith.mulf %831, %805 : vector<1x16x16xf32>
    %833 = arith.addf %799, %832 : vector<1x16x16xf32>
    %c7_479 = arith.constant 7 : index
    %c22_480 = arith.constant 22 : index
    %834 = memref.load %arg1[%c7_479, %c22_480] : memref<8x36xf32, #tpu.memory_space<smem>>
    %835 = vector.broadcast %834 : f32 to vector<1x16x16xf32>
    %836 = arith.mulf %835, %805 : vector<1x16x16xf32>
    %837 = arith.addf %803, %836 : vector<1x16x16xf32>
    %c0_481 = arith.constant 0 : index
    %c2_482 = arith.constant 2 : index
    %c1_483 = arith.constant 1 : index
    %c2_484 = arith.constant 2 : index
    %838 = vector.load %arg8[%c0_481, %c2_482, %c1_483, %c2_484] : memref<1x4x18x18xf32, #tpu.memory_space<vmem>>, vector<1x1x16x16xf32>
    %839 = vector.shape_cast %838 : vector<1x1x16x16xf32> to vector<1x16x16xf32>
    %c0_485 = arith.constant 0 : index
    %c23 = arith.constant 23 : index
    %840 = memref.load %arg1[%c0_485, %c23] : memref<8x36xf32, #tpu.memory_space<smem>>
    %841 = vector.broadcast %840 : f32 to vector<1x16x16xf32>
    %842 = arith.mulf %841, %839 : vector<1x16x16xf32>
    %843 = arith.addf %809, %842 : vector<1x16x16xf32>
    %c1_486 = arith.constant 1 : index
    %c23_487 = arith.constant 23 : index
    %844 = memref.load %arg1[%c1_486, %c23_487] : memref<8x36xf32, #tpu.memory_space<smem>>
    %845 = vector.broadcast %844 : f32 to vector<1x16x16xf32>
    %846 = arith.mulf %845, %839 : vector<1x16x16xf32>
    %847 = arith.addf %813, %846 : vector<1x16x16xf32>
    %c2_488 = arith.constant 2 : index
    %c23_489 = arith.constant 23 : index
    %848 = memref.load %arg1[%c2_488, %c23_489] : memref<8x36xf32, #tpu.memory_space<smem>>
    %849 = vector.broadcast %848 : f32 to vector<1x16x16xf32>
    %850 = arith.mulf %849, %839 : vector<1x16x16xf32>
    %851 = arith.addf %817, %850 : vector<1x16x16xf32>
    %c3_490 = arith.constant 3 : index
    %c23_491 = arith.constant 23 : index
    %852 = memref.load %arg1[%c3_490, %c23_491] : memref<8x36xf32, #tpu.memory_space<smem>>
    %853 = vector.broadcast %852 : f32 to vector<1x16x16xf32>
    %854 = arith.mulf %853, %839 : vector<1x16x16xf32>
    %855 = arith.addf %821, %854 : vector<1x16x16xf32>
    %c4_492 = arith.constant 4 : index
    %c23_493 = arith.constant 23 : index
    %856 = memref.load %arg1[%c4_492, %c23_493] : memref<8x36xf32, #tpu.memory_space<smem>>
    %857 = vector.broadcast %856 : f32 to vector<1x16x16xf32>
    %858 = arith.mulf %857, %839 : vector<1x16x16xf32>
    %859 = arith.addf %825, %858 : vector<1x16x16xf32>
    %c5_494 = arith.constant 5 : index
    %c23_495 = arith.constant 23 : index
    %860 = memref.load %arg1[%c5_494, %c23_495] : memref<8x36xf32, #tpu.memory_space<smem>>
    %861 = vector.broadcast %860 : f32 to vector<1x16x16xf32>
    %862 = arith.mulf %861, %839 : vector<1x16x16xf32>
    %863 = arith.addf %829, %862 : vector<1x16x16xf32>
    %c6_496 = arith.constant 6 : index
    %c23_497 = arith.constant 23 : index
    %864 = memref.load %arg1[%c6_496, %c23_497] : memref<8x36xf32, #tpu.memory_space<smem>>
    %865 = vector.broadcast %864 : f32 to vector<1x16x16xf32>
    %866 = arith.mulf %865, %839 : vector<1x16x16xf32>
    %867 = arith.addf %833, %866 : vector<1x16x16xf32>
    %c7_498 = arith.constant 7 : index
    %c23_499 = arith.constant 23 : index
    %868 = memref.load %arg1[%c7_498, %c23_499] : memref<8x36xf32, #tpu.memory_space<smem>>
    %869 = vector.broadcast %868 : f32 to vector<1x16x16xf32>
    %870 = arith.mulf %869, %839 : vector<1x16x16xf32>
    %871 = arith.addf %837, %870 : vector<1x16x16xf32>
    %c0_500 = arith.constant 0 : index
    %c2_501 = arith.constant 2 : index
    %c2_502 = arith.constant 2 : index
    %c0_503 = arith.constant 0 : index
    %872 = vector.load %arg8[%c0_500, %c2_501, %c2_502, %c0_503] : memref<1x4x18x18xf32, #tpu.memory_space<vmem>>, vector<1x1x16x16xf32>
    %873 = vector.shape_cast %872 : vector<1x1x16x16xf32> to vector<1x16x16xf32>
    %c0_504 = arith.constant 0 : index
    %c24 = arith.constant 24 : index
    %874 = memref.load %arg1[%c0_504, %c24] : memref<8x36xf32, #tpu.memory_space<smem>>
    %875 = vector.broadcast %874 : f32 to vector<1x16x16xf32>
    %876 = arith.mulf %875, %873 : vector<1x16x16xf32>
    %877 = arith.addf %843, %876 : vector<1x16x16xf32>
    %c1_505 = arith.constant 1 : index
    %c24_506 = arith.constant 24 : index
    %878 = memref.load %arg1[%c1_505, %c24_506] : memref<8x36xf32, #tpu.memory_space<smem>>
    %879 = vector.broadcast %878 : f32 to vector<1x16x16xf32>
    %880 = arith.mulf %879, %873 : vector<1x16x16xf32>
    %881 = arith.addf %847, %880 : vector<1x16x16xf32>
    %c2_507 = arith.constant 2 : index
    %c24_508 = arith.constant 24 : index
    %882 = memref.load %arg1[%c2_507, %c24_508] : memref<8x36xf32, #tpu.memory_space<smem>>
    %883 = vector.broadcast %882 : f32 to vector<1x16x16xf32>
    %884 = arith.mulf %883, %873 : vector<1x16x16xf32>
    %885 = arith.addf %851, %884 : vector<1x16x16xf32>
    %c3_509 = arith.constant 3 : index
    %c24_510 = arith.constant 24 : index
    %886 = memref.load %arg1[%c3_509, %c24_510] : memref<8x36xf32, #tpu.memory_space<smem>>
    %887 = vector.broadcast %886 : f32 to vector<1x16x16xf32>
    %888 = arith.mulf %887, %873 : vector<1x16x16xf32>
    %889 = arith.addf %855, %888 : vector<1x16x16xf32>
    %c4_511 = arith.constant 4 : index
    %c24_512 = arith.constant 24 : index
    %890 = memref.load %arg1[%c4_511, %c24_512] : memref<8x36xf32, #tpu.memory_space<smem>>
    %891 = vector.broadcast %890 : f32 to vector<1x16x16xf32>
    %892 = arith.mulf %891, %873 : vector<1x16x16xf32>
    %893 = arith.addf %859, %892 : vector<1x16x16xf32>
    %c5_513 = arith.constant 5 : index
    %c24_514 = arith.constant 24 : index
    %894 = memref.load %arg1[%c5_513, %c24_514] : memref<8x36xf32, #tpu.memory_space<smem>>
    %895 = vector.broadcast %894 : f32 to vector<1x16x16xf32>
    %896 = arith.mulf %895, %873 : vector<1x16x16xf32>
    %897 = arith.addf %863, %896 : vector<1x16x16xf32>
    %c6_515 = arith.constant 6 : index
    %c24_516 = arith.constant 24 : index
    %898 = memref.load %arg1[%c6_515, %c24_516] : memref<8x36xf32, #tpu.memory_space<smem>>
    %899 = vector.broadcast %898 : f32 to vector<1x16x16xf32>
    %900 = arith.mulf %899, %873 : vector<1x16x16xf32>
    %901 = arith.addf %867, %900 : vector<1x16x16xf32>
    %c7_517 = arith.constant 7 : index
    %c24_518 = arith.constant 24 : index
    %902 = memref.load %arg1[%c7_517, %c24_518] : memref<8x36xf32, #tpu.memory_space<smem>>
    %903 = vector.broadcast %902 : f32 to vector<1x16x16xf32>
    %904 = arith.mulf %903, %873 : vector<1x16x16xf32>
    %905 = arith.addf %871, %904 : vector<1x16x16xf32>
    %c0_519 = arith.constant 0 : index
    %c2_520 = arith.constant 2 : index
    %c2_521 = arith.constant 2 : index
    %c1_522 = arith.constant 1 : index
    %906 = vector.load %arg8[%c0_519, %c2_520, %c2_521, %c1_522] : memref<1x4x18x18xf32, #tpu.memory_space<vmem>>, vector<1x1x16x16xf32>
    %907 = vector.shape_cast %906 : vector<1x1x16x16xf32> to vector<1x16x16xf32>
    %c0_523 = arith.constant 0 : index
    %c25 = arith.constant 25 : index
    %908 = memref.load %arg1[%c0_523, %c25] : memref<8x36xf32, #tpu.memory_space<smem>>
    %909 = vector.broadcast %908 : f32 to vector<1x16x16xf32>
    %910 = arith.mulf %909, %907 : vector<1x16x16xf32>
    %911 = arith.addf %877, %910 : vector<1x16x16xf32>
    %c1_524 = arith.constant 1 : index
    %c25_525 = arith.constant 25 : index
    %912 = memref.load %arg1[%c1_524, %c25_525] : memref<8x36xf32, #tpu.memory_space<smem>>
    %913 = vector.broadcast %912 : f32 to vector<1x16x16xf32>
    %914 = arith.mulf %913, %907 : vector<1x16x16xf32>
    %915 = arith.addf %881, %914 : vector<1x16x16xf32>
    %c2_526 = arith.constant 2 : index
    %c25_527 = arith.constant 25 : index
    %916 = memref.load %arg1[%c2_526, %c25_527] : memref<8x36xf32, #tpu.memory_space<smem>>
    %917 = vector.broadcast %916 : f32 to vector<1x16x16xf32>
    %918 = arith.mulf %917, %907 : vector<1x16x16xf32>
    %919 = arith.addf %885, %918 : vector<1x16x16xf32>
    %c3_528 = arith.constant 3 : index
    %c25_529 = arith.constant 25 : index
    %920 = memref.load %arg1[%c3_528, %c25_529] : memref<8x36xf32, #tpu.memory_space<smem>>
    %921 = vector.broadcast %920 : f32 to vector<1x16x16xf32>
    %922 = arith.mulf %921, %907 : vector<1x16x16xf32>
    %923 = arith.addf %889, %922 : vector<1x16x16xf32>
    %c4_530 = arith.constant 4 : index
    %c25_531 = arith.constant 25 : index
    %924 = memref.load %arg1[%c4_530, %c25_531] : memref<8x36xf32, #tpu.memory_space<smem>>
    %925 = vector.broadcast %924 : f32 to vector<1x16x16xf32>
    %926 = arith.mulf %925, %907 : vector<1x16x16xf32>
    %927 = arith.addf %893, %926 : vector<1x16x16xf32>
    %c5_532 = arith.constant 5 : index
    %c25_533 = arith.constant 25 : index
    %928 = memref.load %arg1[%c5_532, %c25_533] : memref<8x36xf32, #tpu.memory_space<smem>>
    %929 = vector.broadcast %928 : f32 to vector<1x16x16xf32>
    %930 = arith.mulf %929, %907 : vector<1x16x16xf32>
    %931 = arith.addf %897, %930 : vector<1x16x16xf32>
    %c6_534 = arith.constant 6 : index
    %c25_535 = arith.constant 25 : index
    %932 = memref.load %arg1[%c6_534, %c25_535] : memref<8x36xf32, #tpu.memory_space<smem>>
    %933 = vector.broadcast %932 : f32 to vector<1x16x16xf32>
    %934 = arith.mulf %933, %907 : vector<1x16x16xf32>
    %935 = arith.addf %901, %934 : vector<1x16x16xf32>
    %c7_536 = arith.constant 7 : index
    %c25_537 = arith.constant 25 : index
    %936 = memref.load %arg1[%c7_536, %c25_537] : memref<8x36xf32, #tpu.memory_space<smem>>
    %937 = vector.broadcast %936 : f32 to vector<1x16x16xf32>
    %938 = arith.mulf %937, %907 : vector<1x16x16xf32>
    %939 = arith.addf %905, %938 : vector<1x16x16xf32>
    %c0_538 = arith.constant 0 : index
    %c2_539 = arith.constant 2 : index
    %c2_540 = arith.constant 2 : index
    %c2_541 = arith.constant 2 : index
    %940 = vector.load %arg8[%c0_538, %c2_539, %c2_540, %c2_541] : memref<1x4x18x18xf32, #tpu.memory_space<vmem>>, vector<1x1x16x16xf32>
    %941 = vector.shape_cast %940 : vector<1x1x16x16xf32> to vector<1x16x16xf32>
    %c0_542 = arith.constant 0 : index
    %c26 = arith.constant 26 : index
    %942 = memref.load %arg1[%c0_542, %c26] : memref<8x36xf32, #tpu.memory_space<smem>>
    %943 = vector.broadcast %942 : f32 to vector<1x16x16xf32>
    %944 = arith.mulf %943, %941 : vector<1x16x16xf32>
    %945 = arith.addf %911, %944 : vector<1x16x16xf32>
    %c1_543 = arith.constant 1 : index
    %c26_544 = arith.constant 26 : index
    %946 = memref.load %arg1[%c1_543, %c26_544] : memref<8x36xf32, #tpu.memory_space<smem>>
    %947 = vector.broadcast %946 : f32 to vector<1x16x16xf32>
    %948 = arith.mulf %947, %941 : vector<1x16x16xf32>
    %949 = arith.addf %915, %948 : vector<1x16x16xf32>
    %c2_545 = arith.constant 2 : index
    %c26_546 = arith.constant 26 : index
    %950 = memref.load %arg1[%c2_545, %c26_546] : memref<8x36xf32, #tpu.memory_space<smem>>
    %951 = vector.broadcast %950 : f32 to vector<1x16x16xf32>
    %952 = arith.mulf %951, %941 : vector<1x16x16xf32>
    %953 = arith.addf %919, %952 : vector<1x16x16xf32>
    %c3_547 = arith.constant 3 : index
    %c26_548 = arith.constant 26 : index
    %954 = memref.load %arg1[%c3_547, %c26_548] : memref<8x36xf32, #tpu.memory_space<smem>>
    %955 = vector.broadcast %954 : f32 to vector<1x16x16xf32>
    %956 = arith.mulf %955, %941 : vector<1x16x16xf32>
    %957 = arith.addf %923, %956 : vector<1x16x16xf32>
    %c4_549 = arith.constant 4 : index
    %c26_550 = arith.constant 26 : index
    %958 = memref.load %arg1[%c4_549, %c26_550] : memref<8x36xf32, #tpu.memory_space<smem>>
    %959 = vector.broadcast %958 : f32 to vector<1x16x16xf32>
    %960 = arith.mulf %959, %941 : vector<1x16x16xf32>
    %961 = arith.addf %927, %960 : vector<1x16x16xf32>
    %c5_551 = arith.constant 5 : index
    %c26_552 = arith.constant 26 : index
    %962 = memref.load %arg1[%c5_551, %c26_552] : memref<8x36xf32, #tpu.memory_space<smem>>
    %963 = vector.broadcast %962 : f32 to vector<1x16x16xf32>
    %964 = arith.mulf %963, %941 : vector<1x16x16xf32>
    %965 = arith.addf %931, %964 : vector<1x16x16xf32>
    %c6_553 = arith.constant 6 : index
    %c26_554 = arith.constant 26 : index
    %966 = memref.load %arg1[%c6_553, %c26_554] : memref<8x36xf32, #tpu.memory_space<smem>>
    %967 = vector.broadcast %966 : f32 to vector<1x16x16xf32>
    %968 = arith.mulf %967, %941 : vector<1x16x16xf32>
    %969 = arith.addf %935, %968 : vector<1x16x16xf32>
    %c7_555 = arith.constant 7 : index
    %c26_556 = arith.constant 26 : index
    %970 = memref.load %arg1[%c7_555, %c26_556] : memref<8x36xf32, #tpu.memory_space<smem>>
    %971 = vector.broadcast %970 : f32 to vector<1x16x16xf32>
    %972 = arith.mulf %971, %941 : vector<1x16x16xf32>
    %973 = arith.addf %939, %972 : vector<1x16x16xf32>
    %c0_557 = arith.constant 0 : index
    %c3_558 = arith.constant 3 : index
    %c0_559 = arith.constant 0 : index
    %c0_560 = arith.constant 0 : index
    %974 = vector.load %arg8[%c0_557, %c3_558, %c0_559, %c0_560] : memref<1x4x18x18xf32, #tpu.memory_space<vmem>>, vector<1x1x16x16xf32>
    %975 = vector.shape_cast %974 : vector<1x1x16x16xf32> to vector<1x16x16xf32>
    %c0_561 = arith.constant 0 : index
    %c27 = arith.constant 27 : index
    %976 = memref.load %arg1[%c0_561, %c27] : memref<8x36xf32, #tpu.memory_space<smem>>
    %977 = vector.broadcast %976 : f32 to vector<1x16x16xf32>
    %978 = arith.mulf %977, %975 : vector<1x16x16xf32>
    %979 = arith.addf %945, %978 : vector<1x16x16xf32>
    %c1_562 = arith.constant 1 : index
    %c27_563 = arith.constant 27 : index
    %980 = memref.load %arg1[%c1_562, %c27_563] : memref<8x36xf32, #tpu.memory_space<smem>>
    %981 = vector.broadcast %980 : f32 to vector<1x16x16xf32>
    %982 = arith.mulf %981, %975 : vector<1x16x16xf32>
    %983 = arith.addf %949, %982 : vector<1x16x16xf32>
    %c2_564 = arith.constant 2 : index
    %c27_565 = arith.constant 27 : index
    %984 = memref.load %arg1[%c2_564, %c27_565] : memref<8x36xf32, #tpu.memory_space<smem>>
    %985 = vector.broadcast %984 : f32 to vector<1x16x16xf32>
    %986 = arith.mulf %985, %975 : vector<1x16x16xf32>
    %987 = arith.addf %953, %986 : vector<1x16x16xf32>
    %c3_566 = arith.constant 3 : index
    %c27_567 = arith.constant 27 : index
    %988 = memref.load %arg1[%c3_566, %c27_567] : memref<8x36xf32, #tpu.memory_space<smem>>
    %989 = vector.broadcast %988 : f32 to vector<1x16x16xf32>
    %990 = arith.mulf %989, %975 : vector<1x16x16xf32>
    %991 = arith.addf %957, %990 : vector<1x16x16xf32>
    %c4_568 = arith.constant 4 : index
    %c27_569 = arith.constant 27 : index
    %992 = memref.load %arg1[%c4_568, %c27_569] : memref<8x36xf32, #tpu.memory_space<smem>>
    %993 = vector.broadcast %992 : f32 to vector<1x16x16xf32>
    %994 = arith.mulf %993, %975 : vector<1x16x16xf32>
    %995 = arith.addf %961, %994 : vector<1x16x16xf32>
    %c5_570 = arith.constant 5 : index
    %c27_571 = arith.constant 27 : index
    %996 = memref.load %arg1[%c5_570, %c27_571] : memref<8x36xf32, #tpu.memory_space<smem>>
    %997 = vector.broadcast %996 : f32 to vector<1x16x16xf32>
    %998 = arith.mulf %997, %975 : vector<1x16x16xf32>
    %999 = arith.addf %965, %998 : vector<1x16x16xf32>
    %c6_572 = arith.constant 6 : index
    %c27_573 = arith.constant 27 : index
    %1000 = memref.load %arg1[%c6_572, %c27_573] : memref<8x36xf32, #tpu.memory_space<smem>>
    %1001 = vector.broadcast %1000 : f32 to vector<1x16x16xf32>
    %1002 = arith.mulf %1001, %975 : vector<1x16x16xf32>
    %1003 = arith.addf %969, %1002 : vector<1x16x16xf32>
    %c7_574 = arith.constant 7 : index
    %c27_575 = arith.constant 27 : index
    %1004 = memref.load %arg1[%c7_574, %c27_575] : memref<8x36xf32, #tpu.memory_space<smem>>
    %1005 = vector.broadcast %1004 : f32 to vector<1x16x16xf32>
    %1006 = arith.mulf %1005, %975 : vector<1x16x16xf32>
    %1007 = arith.addf %973, %1006 : vector<1x16x16xf32>
    %c0_576 = arith.constant 0 : index
    %c3_577 = arith.constant 3 : index
    %c0_578 = arith.constant 0 : index
    %c1_579 = arith.constant 1 : index
    %1008 = vector.load %arg8[%c0_576, %c3_577, %c0_578, %c1_579] : memref<1x4x18x18xf32, #tpu.memory_space<vmem>>, vector<1x1x16x16xf32>
    %1009 = vector.shape_cast %1008 : vector<1x1x16x16xf32> to vector<1x16x16xf32>
    %c0_580 = arith.constant 0 : index
    %c28 = arith.constant 28 : index
    %1010 = memref.load %arg1[%c0_580, %c28] : memref<8x36xf32, #tpu.memory_space<smem>>
    %1011 = vector.broadcast %1010 : f32 to vector<1x16x16xf32>
    %1012 = arith.mulf %1011, %1009 : vector<1x16x16xf32>
    %1013 = arith.addf %979, %1012 : vector<1x16x16xf32>
    %c1_581 = arith.constant 1 : index
    %c28_582 = arith.constant 28 : index
    %1014 = memref.load %arg1[%c1_581, %c28_582] : memref<8x36xf32, #tpu.memory_space<smem>>
    %1015 = vector.broadcast %1014 : f32 to vector<1x16x16xf32>
    %1016 = arith.mulf %1015, %1009 : vector<1x16x16xf32>
    %1017 = arith.addf %983, %1016 : vector<1x16x16xf32>
    %c2_583 = arith.constant 2 : index
    %c28_584 = arith.constant 28 : index
    %1018 = memref.load %arg1[%c2_583, %c28_584] : memref<8x36xf32, #tpu.memory_space<smem>>
    %1019 = vector.broadcast %1018 : f32 to vector<1x16x16xf32>
    %1020 = arith.mulf %1019, %1009 : vector<1x16x16xf32>
    %1021 = arith.addf %987, %1020 : vector<1x16x16xf32>
    %c3_585 = arith.constant 3 : index
    %c28_586 = arith.constant 28 : index
    %1022 = memref.load %arg1[%c3_585, %c28_586] : memref<8x36xf32, #tpu.memory_space<smem>>
    %1023 = vector.broadcast %1022 : f32 to vector<1x16x16xf32>
    %1024 = arith.mulf %1023, %1009 : vector<1x16x16xf32>
    %1025 = arith.addf %991, %1024 : vector<1x16x16xf32>
    %c4_587 = arith.constant 4 : index
    %c28_588 = arith.constant 28 : index
    %1026 = memref.load %arg1[%c4_587, %c28_588] : memref<8x36xf32, #tpu.memory_space<smem>>
    %1027 = vector.broadcast %1026 : f32 to vector<1x16x16xf32>
    %1028 = arith.mulf %1027, %1009 : vector<1x16x16xf32>
    %1029 = arith.addf %995, %1028 : vector<1x16x16xf32>
    %c5_589 = arith.constant 5 : index
    %c28_590 = arith.constant 28 : index
    %1030 = memref.load %arg1[%c5_589, %c28_590] : memref<8x36xf32, #tpu.memory_space<smem>>
    %1031 = vector.broadcast %1030 : f32 to vector<1x16x16xf32>
    %1032 = arith.mulf %1031, %1009 : vector<1x16x16xf32>
    %1033 = arith.addf %999, %1032 : vector<1x16x16xf32>
    %c6_591 = arith.constant 6 : index
    %c28_592 = arith.constant 28 : index
    %1034 = memref.load %arg1[%c6_591, %c28_592] : memref<8x36xf32, #tpu.memory_space<smem>>
    %1035 = vector.broadcast %1034 : f32 to vector<1x16x16xf32>
    %1036 = arith.mulf %1035, %1009 : vector<1x16x16xf32>
    %1037 = arith.addf %1003, %1036 : vector<1x16x16xf32>
    %c7_593 = arith.constant 7 : index
    %c28_594 = arith.constant 28 : index
    %1038 = memref.load %arg1[%c7_593, %c28_594] : memref<8x36xf32, #tpu.memory_space<smem>>
    %1039 = vector.broadcast %1038 : f32 to vector<1x16x16xf32>
    %1040 = arith.mulf %1039, %1009 : vector<1x16x16xf32>
    %1041 = arith.addf %1007, %1040 : vector<1x16x16xf32>
    %c0_595 = arith.constant 0 : index
    %c3_596 = arith.constant 3 : index
    %c0_597 = arith.constant 0 : index
    %c2_598 = arith.constant 2 : index
    %1042 = vector.load %arg8[%c0_595, %c3_596, %c0_597, %c2_598] : memref<1x4x18x18xf32, #tpu.memory_space<vmem>>, vector<1x1x16x16xf32>
    %1043 = vector.shape_cast %1042 : vector<1x1x16x16xf32> to vector<1x16x16xf32>
    %c0_599 = arith.constant 0 : index
    %c29 = arith.constant 29 : index
    %1044 = memref.load %arg1[%c0_599, %c29] : memref<8x36xf32, #tpu.memory_space<smem>>
    %1045 = vector.broadcast %1044 : f32 to vector<1x16x16xf32>
    %1046 = arith.mulf %1045, %1043 : vector<1x16x16xf32>
    %1047 = arith.addf %1013, %1046 : vector<1x16x16xf32>
    %c1_600 = arith.constant 1 : index
    %c29_601 = arith.constant 29 : index
    %1048 = memref.load %arg1[%c1_600, %c29_601] : memref<8x36xf32, #tpu.memory_space<smem>>
    %1049 = vector.broadcast %1048 : f32 to vector<1x16x16xf32>
    %1050 = arith.mulf %1049, %1043 : vector<1x16x16xf32>
    %1051 = arith.addf %1017, %1050 : vector<1x16x16xf32>
    %c2_602 = arith.constant 2 : index
    %c29_603 = arith.constant 29 : index
    %1052 = memref.load %arg1[%c2_602, %c29_603] : memref<8x36xf32, #tpu.memory_space<smem>>
    %1053 = vector.broadcast %1052 : f32 to vector<1x16x16xf32>
    %1054 = arith.mulf %1053, %1043 : vector<1x16x16xf32>
    %1055 = arith.addf %1021, %1054 : vector<1x16x16xf32>
    %c3_604 = arith.constant 3 : index
    %c29_605 = arith.constant 29 : index
    %1056 = memref.load %arg1[%c3_604, %c29_605] : memref<8x36xf32, #tpu.memory_space<smem>>
    %1057 = vector.broadcast %1056 : f32 to vector<1x16x16xf32>
    %1058 = arith.mulf %1057, %1043 : vector<1x16x16xf32>
    %1059 = arith.addf %1025, %1058 : vector<1x16x16xf32>
    %c4_606 = arith.constant 4 : index
    %c29_607 = arith.constant 29 : index
    %1060 = memref.load %arg1[%c4_606, %c29_607] : memref<8x36xf32, #tpu.memory_space<smem>>
    %1061 = vector.broadcast %1060 : f32 to vector<1x16x16xf32>
    %1062 = arith.mulf %1061, %1043 : vector<1x16x16xf32>
    %1063 = arith.addf %1029, %1062 : vector<1x16x16xf32>
    %c5_608 = arith.constant 5 : index
    %c29_609 = arith.constant 29 : index
    %1064 = memref.load %arg1[%c5_608, %c29_609] : memref<8x36xf32, #tpu.memory_space<smem>>
    %1065 = vector.broadcast %1064 : f32 to vector<1x16x16xf32>
    %1066 = arith.mulf %1065, %1043 : vector<1x16x16xf32>
    %1067 = arith.addf %1033, %1066 : vector<1x16x16xf32>
    %c6_610 = arith.constant 6 : index
    %c29_611 = arith.constant 29 : index
    %1068 = memref.load %arg1[%c6_610, %c29_611] : memref<8x36xf32, #tpu.memory_space<smem>>
    %1069 = vector.broadcast %1068 : f32 to vector<1x16x16xf32>
    %1070 = arith.mulf %1069, %1043 : vector<1x16x16xf32>
    %1071 = arith.addf %1037, %1070 : vector<1x16x16xf32>
    %c7_612 = arith.constant 7 : index
    %c29_613 = arith.constant 29 : index
    %1072 = memref.load %arg1[%c7_612, %c29_613] : memref<8x36xf32, #tpu.memory_space<smem>>
    %1073 = vector.broadcast %1072 : f32 to vector<1x16x16xf32>
    %1074 = arith.mulf %1073, %1043 : vector<1x16x16xf32>
    %1075 = arith.addf %1041, %1074 : vector<1x16x16xf32>
    %c0_614 = arith.constant 0 : index
    %c3_615 = arith.constant 3 : index
    %c1_616 = arith.constant 1 : index
    %c0_617 = arith.constant 0 : index
    %1076 = vector.load %arg8[%c0_614, %c3_615, %c1_616, %c0_617] : memref<1x4x18x18xf32, #tpu.memory_space<vmem>>, vector<1x1x16x16xf32>
    %1077 = vector.shape_cast %1076 : vector<1x1x16x16xf32> to vector<1x16x16xf32>
    %c0_618 = arith.constant 0 : index
    %c30 = arith.constant 30 : index
    %1078 = memref.load %arg1[%c0_618, %c30] : memref<8x36xf32, #tpu.memory_space<smem>>
    %1079 = vector.broadcast %1078 : f32 to vector<1x16x16xf32>
    %1080 = arith.mulf %1079, %1077 : vector<1x16x16xf32>
    %1081 = arith.addf %1047, %1080 : vector<1x16x16xf32>
    %c1_619 = arith.constant 1 : index
    %c30_620 = arith.constant 30 : index
    %1082 = memref.load %arg1[%c1_619, %c30_620] : memref<8x36xf32, #tpu.memory_space<smem>>
    %1083 = vector.broadcast %1082 : f32 to vector<1x16x16xf32>
    %1084 = arith.mulf %1083, %1077 : vector<1x16x16xf32>
    %1085 = arith.addf %1051, %1084 : vector<1x16x16xf32>
    %c2_621 = arith.constant 2 : index
    %c30_622 = arith.constant 30 : index
    %1086 = memref.load %arg1[%c2_621, %c30_622] : memref<8x36xf32, #tpu.memory_space<smem>>
    %1087 = vector.broadcast %1086 : f32 to vector<1x16x16xf32>
    %1088 = arith.mulf %1087, %1077 : vector<1x16x16xf32>
    %1089 = arith.addf %1055, %1088 : vector<1x16x16xf32>
    %c3_623 = arith.constant 3 : index
    %c30_624 = arith.constant 30 : index
    %1090 = memref.load %arg1[%c3_623, %c30_624] : memref<8x36xf32, #tpu.memory_space<smem>>
    %1091 = vector.broadcast %1090 : f32 to vector<1x16x16xf32>
    %1092 = arith.mulf %1091, %1077 : vector<1x16x16xf32>
    %1093 = arith.addf %1059, %1092 : vector<1x16x16xf32>
    %c4_625 = arith.constant 4 : index
    %c30_626 = arith.constant 30 : index
    %1094 = memref.load %arg1[%c4_625, %c30_626] : memref<8x36xf32, #tpu.memory_space<smem>>
    %1095 = vector.broadcast %1094 : f32 to vector<1x16x16xf32>
    %1096 = arith.mulf %1095, %1077 : vector<1x16x16xf32>
    %1097 = arith.addf %1063, %1096 : vector<1x16x16xf32>
    %c5_627 = arith.constant 5 : index
    %c30_628 = arith.constant 30 : index
    %1098 = memref.load %arg1[%c5_627, %c30_628] : memref<8x36xf32, #tpu.memory_space<smem>>
    %1099 = vector.broadcast %1098 : f32 to vector<1x16x16xf32>
    %1100 = arith.mulf %1099, %1077 : vector<1x16x16xf32>
    %1101 = arith.addf %1067, %1100 : vector<1x16x16xf32>
    %c6_629 = arith.constant 6 : index
    %c30_630 = arith.constant 30 : index
    %1102 = memref.load %arg1[%c6_629, %c30_630] : memref<8x36xf32, #tpu.memory_space<smem>>
    %1103 = vector.broadcast %1102 : f32 to vector<1x16x16xf32>
    %1104 = arith.mulf %1103, %1077 : vector<1x16x16xf32>
    %1105 = arith.addf %1071, %1104 : vector<1x16x16xf32>
    %c7_631 = arith.constant 7 : index
    %c30_632 = arith.constant 30 : index
    %1106 = memref.load %arg1[%c7_631, %c30_632] : memref<8x36xf32, #tpu.memory_space<smem>>
    %1107 = vector.broadcast %1106 : f32 to vector<1x16x16xf32>
    %1108 = arith.mulf %1107, %1077 : vector<1x16x16xf32>
    %1109 = arith.addf %1075, %1108 : vector<1x16x16xf32>
    %c0_633 = arith.constant 0 : index
    %c3_634 = arith.constant 3 : index
    %c1_635 = arith.constant 1 : index
    %c1_636 = arith.constant 1 : index
    %1110 = vector.load %arg8[%c0_633, %c3_634, %c1_635, %c1_636] : memref<1x4x18x18xf32, #tpu.memory_space<vmem>>, vector<1x1x16x16xf32>
    %1111 = vector.shape_cast %1110 : vector<1x1x16x16xf32> to vector<1x16x16xf32>
    %c0_637 = arith.constant 0 : index
    %c31 = arith.constant 31 : index
    %1112 = memref.load %arg1[%c0_637, %c31] : memref<8x36xf32, #tpu.memory_space<smem>>
    %1113 = vector.broadcast %1112 : f32 to vector<1x16x16xf32>
    %1114 = arith.mulf %1113, %1111 : vector<1x16x16xf32>
    %1115 = arith.addf %1081, %1114 : vector<1x16x16xf32>
    %c1_638 = arith.constant 1 : index
    %c31_639 = arith.constant 31 : index
    %1116 = memref.load %arg1[%c1_638, %c31_639] : memref<8x36xf32, #tpu.memory_space<smem>>
    %1117 = vector.broadcast %1116 : f32 to vector<1x16x16xf32>
    %1118 = arith.mulf %1117, %1111 : vector<1x16x16xf32>
    %1119 = arith.addf %1085, %1118 : vector<1x16x16xf32>
    %c2_640 = arith.constant 2 : index
    %c31_641 = arith.constant 31 : index
    %1120 = memref.load %arg1[%c2_640, %c31_641] : memref<8x36xf32, #tpu.memory_space<smem>>
    %1121 = vector.broadcast %1120 : f32 to vector<1x16x16xf32>
    %1122 = arith.mulf %1121, %1111 : vector<1x16x16xf32>
    %1123 = arith.addf %1089, %1122 : vector<1x16x16xf32>
    %c3_642 = arith.constant 3 : index
    %c31_643 = arith.constant 31 : index
    %1124 = memref.load %arg1[%c3_642, %c31_643] : memref<8x36xf32, #tpu.memory_space<smem>>
    %1125 = vector.broadcast %1124 : f32 to vector<1x16x16xf32>
    %1126 = arith.mulf %1125, %1111 : vector<1x16x16xf32>
    %1127 = arith.addf %1093, %1126 : vector<1x16x16xf32>
    %c4_644 = arith.constant 4 : index
    %c31_645 = arith.constant 31 : index
    %1128 = memref.load %arg1[%c4_644, %c31_645] : memref<8x36xf32, #tpu.memory_space<smem>>
    %1129 = vector.broadcast %1128 : f32 to vector<1x16x16xf32>
    %1130 = arith.mulf %1129, %1111 : vector<1x16x16xf32>
    %1131 = arith.addf %1097, %1130 : vector<1x16x16xf32>
    %c5_646 = arith.constant 5 : index
    %c31_647 = arith.constant 31 : index
    %1132 = memref.load %arg1[%c5_646, %c31_647] : memref<8x36xf32, #tpu.memory_space<smem>>
    %1133 = vector.broadcast %1132 : f32 to vector<1x16x16xf32>
    %1134 = arith.mulf %1133, %1111 : vector<1x16x16xf32>
    %1135 = arith.addf %1101, %1134 : vector<1x16x16xf32>
    %c6_648 = arith.constant 6 : index
    %c31_649 = arith.constant 31 : index
    %1136 = memref.load %arg1[%c6_648, %c31_649] : memref<8x36xf32, #tpu.memory_space<smem>>
    %1137 = vector.broadcast %1136 : f32 to vector<1x16x16xf32>
    %1138 = arith.mulf %1137, %1111 : vector<1x16x16xf32>
    %1139 = arith.addf %1105, %1138 : vector<1x16x16xf32>
    %c7_650 = arith.constant 7 : index
    %c31_651 = arith.constant 31 : index
    %1140 = memref.load %arg1[%c7_650, %c31_651] : memref<8x36xf32, #tpu.memory_space<smem>>
    %1141 = vector.broadcast %1140 : f32 to vector<1x16x16xf32>
    %1142 = arith.mulf %1141, %1111 : vector<1x16x16xf32>
    %1143 = arith.addf %1109, %1142 : vector<1x16x16xf32>
    %c0_652 = arith.constant 0 : index
    %c3_653 = arith.constant 3 : index
    %c1_654 = arith.constant 1 : index
    %c2_655 = arith.constant 2 : index
    %1144 = vector.load %arg8[%c0_652, %c3_653, %c1_654, %c2_655] : memref<1x4x18x18xf32, #tpu.memory_space<vmem>>, vector<1x1x16x16xf32>
    %1145 = vector.shape_cast %1144 : vector<1x1x16x16xf32> to vector<1x16x16xf32>
    %c0_656 = arith.constant 0 : index
    %c32 = arith.constant 32 : index
    %1146 = memref.load %arg1[%c0_656, %c32] : memref<8x36xf32, #tpu.memory_space<smem>>
    %1147 = vector.broadcast %1146 : f32 to vector<1x16x16xf32>
    %1148 = arith.mulf %1147, %1145 : vector<1x16x16xf32>
    %1149 = arith.addf %1115, %1148 : vector<1x16x16xf32>
    %c1_657 = arith.constant 1 : index
    %c32_658 = arith.constant 32 : index
    %1150 = memref.load %arg1[%c1_657, %c32_658] : memref<8x36xf32, #tpu.memory_space<smem>>
    %1151 = vector.broadcast %1150 : f32 to vector<1x16x16xf32>
    %1152 = arith.mulf %1151, %1145 : vector<1x16x16xf32>
    %1153 = arith.addf %1119, %1152 : vector<1x16x16xf32>
    %c2_659 = arith.constant 2 : index
    %c32_660 = arith.constant 32 : index
    %1154 = memref.load %arg1[%c2_659, %c32_660] : memref<8x36xf32, #tpu.memory_space<smem>>
    %1155 = vector.broadcast %1154 : f32 to vector<1x16x16xf32>
    %1156 = arith.mulf %1155, %1145 : vector<1x16x16xf32>
    %1157 = arith.addf %1123, %1156 : vector<1x16x16xf32>
    %c3_661 = arith.constant 3 : index
    %c32_662 = arith.constant 32 : index
    %1158 = memref.load %arg1[%c3_661, %c32_662] : memref<8x36xf32, #tpu.memory_space<smem>>
    %1159 = vector.broadcast %1158 : f32 to vector<1x16x16xf32>
    %1160 = arith.mulf %1159, %1145 : vector<1x16x16xf32>
    %1161 = arith.addf %1127, %1160 : vector<1x16x16xf32>
    %c4_663 = arith.constant 4 : index
    %c32_664 = arith.constant 32 : index
    %1162 = memref.load %arg1[%c4_663, %c32_664] : memref<8x36xf32, #tpu.memory_space<smem>>
    %1163 = vector.broadcast %1162 : f32 to vector<1x16x16xf32>
    %1164 = arith.mulf %1163, %1145 : vector<1x16x16xf32>
    %1165 = arith.addf %1131, %1164 : vector<1x16x16xf32>
    %c5_665 = arith.constant 5 : index
    %c32_666 = arith.constant 32 : index
    %1166 = memref.load %arg1[%c5_665, %c32_666] : memref<8x36xf32, #tpu.memory_space<smem>>
    %1167 = vector.broadcast %1166 : f32 to vector<1x16x16xf32>
    %1168 = arith.mulf %1167, %1145 : vector<1x16x16xf32>
    %1169 = arith.addf %1135, %1168 : vector<1x16x16xf32>
    %c6_667 = arith.constant 6 : index
    %c32_668 = arith.constant 32 : index
    %1170 = memref.load %arg1[%c6_667, %c32_668] : memref<8x36xf32, #tpu.memory_space<smem>>
    %1171 = vector.broadcast %1170 : f32 to vector<1x16x16xf32>
    %1172 = arith.mulf %1171, %1145 : vector<1x16x16xf32>
    %1173 = arith.addf %1139, %1172 : vector<1x16x16xf32>
    %c7_669 = arith.constant 7 : index
    %c32_670 = arith.constant 32 : index
    %1174 = memref.load %arg1[%c7_669, %c32_670] : memref<8x36xf32, #tpu.memory_space<smem>>
    %1175 = vector.broadcast %1174 : f32 to vector<1x16x16xf32>
    %1176 = arith.mulf %1175, %1145 : vector<1x16x16xf32>
    %1177 = arith.addf %1143, %1176 : vector<1x16x16xf32>
    %c0_671 = arith.constant 0 : index
    %c3_672 = arith.constant 3 : index
    %c2_673 = arith.constant 2 : index
    %c0_674 = arith.constant 0 : index
    %1178 = vector.load %arg8[%c0_671, %c3_672, %c2_673, %c0_674] : memref<1x4x18x18xf32, #tpu.memory_space<vmem>>, vector<1x1x16x16xf32>
    %1179 = vector.shape_cast %1178 : vector<1x1x16x16xf32> to vector<1x16x16xf32>
    %c0_675 = arith.constant 0 : index
    %c33 = arith.constant 33 : index
    %1180 = memref.load %arg1[%c0_675, %c33] : memref<8x36xf32, #tpu.memory_space<smem>>
    %1181 = vector.broadcast %1180 : f32 to vector<1x16x16xf32>
    %1182 = arith.mulf %1181, %1179 : vector<1x16x16xf32>
    %1183 = arith.addf %1149, %1182 : vector<1x16x16xf32>
    %c1_676 = arith.constant 1 : index
    %c33_677 = arith.constant 33 : index
    %1184 = memref.load %arg1[%c1_676, %c33_677] : memref<8x36xf32, #tpu.memory_space<smem>>
    %1185 = vector.broadcast %1184 : f32 to vector<1x16x16xf32>
    %1186 = arith.mulf %1185, %1179 : vector<1x16x16xf32>
    %1187 = arith.addf %1153, %1186 : vector<1x16x16xf32>
    %c2_678 = arith.constant 2 : index
    %c33_679 = arith.constant 33 : index
    %1188 = memref.load %arg1[%c2_678, %c33_679] : memref<8x36xf32, #tpu.memory_space<smem>>
    %1189 = vector.broadcast %1188 : f32 to vector<1x16x16xf32>
    %1190 = arith.mulf %1189, %1179 : vector<1x16x16xf32>
    %1191 = arith.addf %1157, %1190 : vector<1x16x16xf32>
    %c3_680 = arith.constant 3 : index
    %c33_681 = arith.constant 33 : index
    %1192 = memref.load %arg1[%c3_680, %c33_681] : memref<8x36xf32, #tpu.memory_space<smem>>
    %1193 = vector.broadcast %1192 : f32 to vector<1x16x16xf32>
    %1194 = arith.mulf %1193, %1179 : vector<1x16x16xf32>
    %1195 = arith.addf %1161, %1194 : vector<1x16x16xf32>
    %c4_682 = arith.constant 4 : index
    %c33_683 = arith.constant 33 : index
    %1196 = memref.load %arg1[%c4_682, %c33_683] : memref<8x36xf32, #tpu.memory_space<smem>>
    %1197 = vector.broadcast %1196 : f32 to vector<1x16x16xf32>
    %1198 = arith.mulf %1197, %1179 : vector<1x16x16xf32>
    %1199 = arith.addf %1165, %1198 : vector<1x16x16xf32>
    %c5_684 = arith.constant 5 : index
    %c33_685 = arith.constant 33 : index
    %1200 = memref.load %arg1[%c5_684, %c33_685] : memref<8x36xf32, #tpu.memory_space<smem>>
    %1201 = vector.broadcast %1200 : f32 to vector<1x16x16xf32>
    %1202 = arith.mulf %1201, %1179 : vector<1x16x16xf32>
    %1203 = arith.addf %1169, %1202 : vector<1x16x16xf32>
    %c6_686 = arith.constant 6 : index
    %c33_687 = arith.constant 33 : index
    %1204 = memref.load %arg1[%c6_686, %c33_687] : memref<8x36xf32, #tpu.memory_space<smem>>
    %1205 = vector.broadcast %1204 : f32 to vector<1x16x16xf32>
    %1206 = arith.mulf %1205, %1179 : vector<1x16x16xf32>
    %1207 = arith.addf %1173, %1206 : vector<1x16x16xf32>
    %c7_688 = arith.constant 7 : index
    %c33_689 = arith.constant 33 : index
    %1208 = memref.load %arg1[%c7_688, %c33_689] : memref<8x36xf32, #tpu.memory_space<smem>>
    %1209 = vector.broadcast %1208 : f32 to vector<1x16x16xf32>
    %1210 = arith.mulf %1209, %1179 : vector<1x16x16xf32>
    %1211 = arith.addf %1177, %1210 : vector<1x16x16xf32>
    %c0_690 = arith.constant 0 : index
    %c3_691 = arith.constant 3 : index
    %c2_692 = arith.constant 2 : index
    %c1_693 = arith.constant 1 : index
    %1212 = vector.load %arg8[%c0_690, %c3_691, %c2_692, %c1_693] : memref<1x4x18x18xf32, #tpu.memory_space<vmem>>, vector<1x1x16x16xf32>
    %1213 = vector.shape_cast %1212 : vector<1x1x16x16xf32> to vector<1x16x16xf32>
    %c0_694 = arith.constant 0 : index
    %c34 = arith.constant 34 : index
    %1214 = memref.load %arg1[%c0_694, %c34] : memref<8x36xf32, #tpu.memory_space<smem>>
    %1215 = vector.broadcast %1214 : f32 to vector<1x16x16xf32>
    %1216 = arith.mulf %1215, %1213 : vector<1x16x16xf32>
    %1217 = arith.addf %1183, %1216 : vector<1x16x16xf32>
    %c1_695 = arith.constant 1 : index
    %c34_696 = arith.constant 34 : index
    %1218 = memref.load %arg1[%c1_695, %c34_696] : memref<8x36xf32, #tpu.memory_space<smem>>
    %1219 = vector.broadcast %1218 : f32 to vector<1x16x16xf32>
    %1220 = arith.mulf %1219, %1213 : vector<1x16x16xf32>
    %1221 = arith.addf %1187, %1220 : vector<1x16x16xf32>
    %c2_697 = arith.constant 2 : index
    %c34_698 = arith.constant 34 : index
    %1222 = memref.load %arg1[%c2_697, %c34_698] : memref<8x36xf32, #tpu.memory_space<smem>>
    %1223 = vector.broadcast %1222 : f32 to vector<1x16x16xf32>
    %1224 = arith.mulf %1223, %1213 : vector<1x16x16xf32>
    %1225 = arith.addf %1191, %1224 : vector<1x16x16xf32>
    %c3_699 = arith.constant 3 : index
    %c34_700 = arith.constant 34 : index
    %1226 = memref.load %arg1[%c3_699, %c34_700] : memref<8x36xf32, #tpu.memory_space<smem>>
    %1227 = vector.broadcast %1226 : f32 to vector<1x16x16xf32>
    %1228 = arith.mulf %1227, %1213 : vector<1x16x16xf32>
    %1229 = arith.addf %1195, %1228 : vector<1x16x16xf32>
    %c4_701 = arith.constant 4 : index
    %c34_702 = arith.constant 34 : index
    %1230 = memref.load %arg1[%c4_701, %c34_702] : memref<8x36xf32, #tpu.memory_space<smem>>
    %1231 = vector.broadcast %1230 : f32 to vector<1x16x16xf32>
    %1232 = arith.mulf %1231, %1213 : vector<1x16x16xf32>
    %1233 = arith.addf %1199, %1232 : vector<1x16x16xf32>
    %c5_703 = arith.constant 5 : index
    %c34_704 = arith.constant 34 : index
    %1234 = memref.load %arg1[%c5_703, %c34_704] : memref<8x36xf32, #tpu.memory_space<smem>>
    %1235 = vector.broadcast %1234 : f32 to vector<1x16x16xf32>
    %1236 = arith.mulf %1235, %1213 : vector<1x16x16xf32>
    %1237 = arith.addf %1203, %1236 : vector<1x16x16xf32>
    %c6_705 = arith.constant 6 : index
    %c34_706 = arith.constant 34 : index
    %1238 = memref.load %arg1[%c6_705, %c34_706] : memref<8x36xf32, #tpu.memory_space<smem>>
    %1239 = vector.broadcast %1238 : f32 to vector<1x16x16xf32>
    %1240 = arith.mulf %1239, %1213 : vector<1x16x16xf32>
    %1241 = arith.addf %1207, %1240 : vector<1x16x16xf32>
    %c7_707 = arith.constant 7 : index
    %c34_708 = arith.constant 34 : index
    %1242 = memref.load %arg1[%c7_707, %c34_708] : memref<8x36xf32, #tpu.memory_space<smem>>
    %1243 = vector.broadcast %1242 : f32 to vector<1x16x16xf32>
    %1244 = arith.mulf %1243, %1213 : vector<1x16x16xf32>
    %1245 = arith.addf %1211, %1244 : vector<1x16x16xf32>
    %c0_709 = arith.constant 0 : index
    %c3_710 = arith.constant 3 : index
    %c2_711 = arith.constant 2 : index
    %c2_712 = arith.constant 2 : index
    %1246 = vector.load %arg8[%c0_709, %c3_710, %c2_711, %c2_712] : memref<1x4x18x18xf32, #tpu.memory_space<vmem>>, vector<1x1x16x16xf32>
    %1247 = vector.shape_cast %1246 : vector<1x1x16x16xf32> to vector<1x16x16xf32>
    %c0_713 = arith.constant 0 : index
    %c35 = arith.constant 35 : index
    %1248 = memref.load %arg1[%c0_713, %c35] : memref<8x36xf32, #tpu.memory_space<smem>>
    %1249 = vector.broadcast %1248 : f32 to vector<1x16x16xf32>
    %1250 = arith.mulf %1249, %1247 : vector<1x16x16xf32>
    %1251 = arith.addf %1217, %1250 : vector<1x16x16xf32>
    %c1_714 = arith.constant 1 : index
    %c35_715 = arith.constant 35 : index
    %1252 = memref.load %arg1[%c1_714, %c35_715] : memref<8x36xf32, #tpu.memory_space<smem>>
    %1253 = vector.broadcast %1252 : f32 to vector<1x16x16xf32>
    %1254 = arith.mulf %1253, %1247 : vector<1x16x16xf32>
    %1255 = arith.addf %1221, %1254 : vector<1x16x16xf32>
    %c2_716 = arith.constant 2 : index
    %c35_717 = arith.constant 35 : index
    %1256 = memref.load %arg1[%c2_716, %c35_717] : memref<8x36xf32, #tpu.memory_space<smem>>
    %1257 = vector.broadcast %1256 : f32 to vector<1x16x16xf32>
    %1258 = arith.mulf %1257, %1247 : vector<1x16x16xf32>
    %1259 = arith.addf %1225, %1258 : vector<1x16x16xf32>
    %c3_718 = arith.constant 3 : index
    %c35_719 = arith.constant 35 : index
    %1260 = memref.load %arg1[%c3_718, %c35_719] : memref<8x36xf32, #tpu.memory_space<smem>>
    %1261 = vector.broadcast %1260 : f32 to vector<1x16x16xf32>
    %1262 = arith.mulf %1261, %1247 : vector<1x16x16xf32>
    %1263 = arith.addf %1229, %1262 : vector<1x16x16xf32>
    %c4_720 = arith.constant 4 : index
    %c35_721 = arith.constant 35 : index
    %1264 = memref.load %arg1[%c4_720, %c35_721] : memref<8x36xf32, #tpu.memory_space<smem>>
    %1265 = vector.broadcast %1264 : f32 to vector<1x16x16xf32>
    %1266 = arith.mulf %1265, %1247 : vector<1x16x16xf32>
    %1267 = arith.addf %1233, %1266 : vector<1x16x16xf32>
    %c5_722 = arith.constant 5 : index
    %c35_723 = arith.constant 35 : index
    %1268 = memref.load %arg1[%c5_722, %c35_723] : memref<8x36xf32, #tpu.memory_space<smem>>
    %1269 = vector.broadcast %1268 : f32 to vector<1x16x16xf32>
    %1270 = arith.mulf %1269, %1247 : vector<1x16x16xf32>
    %1271 = arith.addf %1237, %1270 : vector<1x16x16xf32>
    %c6_724 = arith.constant 6 : index
    %c35_725 = arith.constant 35 : index
    %1272 = memref.load %arg1[%c6_724, %c35_725] : memref<8x36xf32, #tpu.memory_space<smem>>
    %1273 = vector.broadcast %1272 : f32 to vector<1x16x16xf32>
    %1274 = arith.mulf %1273, %1247 : vector<1x16x16xf32>
    %1275 = arith.addf %1241, %1274 : vector<1x16x16xf32>
    %c7_726 = arith.constant 7 : index
    %c35_727 = arith.constant 35 : index
    %1276 = memref.load %arg1[%c7_726, %c35_727] : memref<8x36xf32, #tpu.memory_space<smem>>
    %1277 = vector.broadcast %1276 : f32 to vector<1x16x16xf32>
    %1278 = arith.mulf %1277, %1247 : vector<1x16x16xf32>
    %1279 = arith.addf %1245, %1278 : vector<1x16x16xf32>
    %1280 = arith.mulf %1251, %16 : vector<1x16x16xf32>
    %c0_728 = arith.constant 0 : index
    %c0_729 = arith.constant 0 : index
    %c0_730 = arith.constant 0 : index
    %c0_731 = arith.constant 0 : index
    %1281 = vector.load %arg5[%c0_728, %c0_729, %c0_730, %c0_731] : memref<1x8x16x16xf32, #tpu.memory_space<vmem>>, vector<1x1x16x16xf32>
    %1282 = vector.shape_cast %1281 : vector<1x1x16x16xf32> to vector<1x16x16xf32>
    %1283 = vector.shape_cast %1280 : vector<1x16x16xf32> to vector<1x1x16x16xf32>
    tpu.vector_store %arg5[%c0_728, %c0_729, %c0_730, %c0_731], %1283 {strides = array<i32>} : memref<1x8x16x16xf32, #tpu.memory_space<vmem>>, vector<1x1x16x16xf32>,
    %cst_732 = arith.constant dense<0.000000e+00> : vector<16x16xf32>
    %1284 = vector.multi_reduction <add>, %1280, %cst_732 [0] : vector<1x16x16xf32> to vector<16x16xf32>
    %cst_733 = arith.constant dense<0.000000e+00> : vector<16xf32>
    %1285 = vector.multi_reduction <add>, %1284, %cst_733 [0] : vector<16x16xf32> to vector<16xf32>
    %1286 = vector.shape_cast %1285 : vector<16xf32> to vector<1x16xf32>
    %1287 = arith.mulf %1280, %1280 : vector<1x16x16xf32>
    %cst_734 = arith.constant dense<0.000000e+00> : vector<16x16xf32>
    %1288 = vector.multi_reduction <add>, %1287, %cst_734 [0] : vector<1x16x16xf32> to vector<16x16xf32>
    %cst_735 = arith.constant dense<0.000000e+00> : vector<16xf32>
    %1289 = vector.multi_reduction <add>, %1288, %cst_735 [0] : vector<16x16xf32> to vector<16xf32>
    %1290 = vector.shape_cast %1289 : vector<16xf32> to vector<1x16xf32>
    %c0_736 = arith.constant 0 : index
    %c0_737 = arith.constant 0 : index
    %c0_738 = arith.constant 0 : index
    %c0_739 = arith.constant 0 : index
    %1291 = vector.load %arg7[%c0_736, %c0_737, %c0_738, %c0_739] : memref<1x2x8x16xf32, #tpu.memory_space<vmem>>, vector<1x1x1x16xf32>
    %1292 = vector.shape_cast %1291 : vector<1x1x1x16xf32> to vector<1x16xf32>
    %1293 = vector.shape_cast %1286 : vector<1x16xf32> to vector<1x1x1x16xf32>
    tpu.vector_store %arg7[%c0_736, %c0_737, %c0_738, %c0_739], %1293 {strides = array<i32>} : memref<1x2x8x16xf32, #tpu.memory_space<vmem>>, vector<1x1x1x16xf32>,
    %c0_740 = arith.constant 0 : index
    %c1_741 = arith.constant 1 : index
    %c0_742 = arith.constant 0 : index
    %c0_743 = arith.constant 0 : index
    %1294 = vector.load %arg7[%c0_740, %c1_741, %c0_742, %c0_743] : memref<1x2x8x16xf32, #tpu.memory_space<vmem>>, vector<1x1x1x16xf32>
    %1295 = vector.shape_cast %1294 : vector<1x1x1x16xf32> to vector<1x16xf32>
    %1296 = vector.shape_cast %1290 : vector<1x16xf32> to vector<1x1x1x16xf32>
    tpu.vector_store %arg7[%c0_740, %c1_741, %c0_742, %c0_743], %1296 {strides = array<i32>} : memref<1x2x8x16xf32, #tpu.memory_space<vmem>>, vector<1x1x1x16xf32>,
    %1297 = arith.mulf %1255, %16 : vector<1x16x16xf32>
    %c0_744 = arith.constant 0 : index
    %c1_745 = arith.constant 1 : index
    %c0_746 = arith.constant 0 : index
    %c0_747 = arith.constant 0 : index
    %1298 = vector.load %arg5[%c0_744, %c1_745, %c0_746, %c0_747] : memref<1x8x16x16xf32, #tpu.memory_space<vmem>>, vector<1x1x16x16xf32>
    %1299 = vector.shape_cast %1298 : vector<1x1x16x16xf32> to vector<1x16x16xf32>
    %1300 = vector.shape_cast %1297 : vector<1x16x16xf32> to vector<1x1x16x16xf32>
    tpu.vector_store %arg5[%c0_744, %c1_745, %c0_746, %c0_747], %1300 {strides = array<i32>} : memref<1x8x16x16xf32, #tpu.memory_space<vmem>>, vector<1x1x16x16xf32>,
    %cst_748 = arith.constant dense<0.000000e+00> : vector<16x16xf32>
    %1301 = vector.multi_reduction <add>, %1297, %cst_748 [0] : vector<1x16x16xf32> to vector<16x16xf32>
    %cst_749 = arith.constant dense<0.000000e+00> : vector<16xf32>
    %1302 = vector.multi_reduction <add>, %1301, %cst_749 [0] : vector<16x16xf32> to vector<16xf32>
    %1303 = vector.shape_cast %1302 : vector<16xf32> to vector<1x16xf32>
    %1304 = arith.mulf %1297, %1297 : vector<1x16x16xf32>
    %cst_750 = arith.constant dense<0.000000e+00> : vector<16x16xf32>
    %1305 = vector.multi_reduction <add>, %1304, %cst_750 [0] : vector<1x16x16xf32> to vector<16x16xf32>
    %cst_751 = arith.constant dense<0.000000e+00> : vector<16xf32>
    %1306 = vector.multi_reduction <add>, %1305, %cst_751 [0] : vector<16x16xf32> to vector<16xf32>
    %1307 = vector.shape_cast %1306 : vector<16xf32> to vector<1x16xf32>
    %c0_752 = arith.constant 0 : index
    %c0_753 = arith.constant 0 : index
    %c1_754 = arith.constant 1 : index
    %c0_755 = arith.constant 0 : index
    %1308 = vector.load %arg7[%c0_752, %c0_753, %c1_754, %c0_755] : memref<1x2x8x16xf32, #tpu.memory_space<vmem>>, vector<1x1x1x16xf32>
    %1309 = vector.shape_cast %1308 : vector<1x1x1x16xf32> to vector<1x16xf32>
    %1310 = vector.shape_cast %1303 : vector<1x16xf32> to vector<1x1x1x16xf32>
    tpu.vector_store %arg7[%c0_752, %c0_753, %c1_754, %c0_755], %1310 {strides = array<i32>} : memref<1x2x8x16xf32, #tpu.memory_space<vmem>>, vector<1x1x1x16xf32>,
    %c0_756 = arith.constant 0 : index
    %c1_757 = arith.constant 1 : index
    %c1_758 = arith.constant 1 : index
    %c0_759 = arith.constant 0 : index
    %1311 = vector.load %arg7[%c0_756, %c1_757, %c1_758, %c0_759] : memref<1x2x8x16xf32, #tpu.memory_space<vmem>>, vector<1x1x1x16xf32>
    %1312 = vector.shape_cast %1311 : vector<1x1x1x16xf32> to vector<1x16xf32>
    %1313 = vector.shape_cast %1307 : vector<1x16xf32> to vector<1x1x1x16xf32>
    tpu.vector_store %arg7[%c0_756, %c1_757, %c1_758, %c0_759], %1313 {strides = array<i32>} : memref<1x2x8x16xf32, #tpu.memory_space<vmem>>, vector<1x1x1x16xf32>,
    %1314 = arith.mulf %1259, %16 : vector<1x16x16xf32>
    %c0_760 = arith.constant 0 : index
    %c2_761 = arith.constant 2 : index
    %c0_762 = arith.constant 0 : index
    %c0_763 = arith.constant 0 : index
    %1315 = vector.load %arg5[%c0_760, %c2_761, %c0_762, %c0_763] : memref<1x8x16x16xf32, #tpu.memory_space<vmem>>, vector<1x1x16x16xf32>
    %1316 = vector.shape_cast %1315 : vector<1x1x16x16xf32> to vector<1x16x16xf32>
    %1317 = vector.shape_cast %1314 : vector<1x16x16xf32> to vector<1x1x16x16xf32>
    tpu.vector_store %arg5[%c0_760, %c2_761, %c0_762, %c0_763], %1317 {strides = array<i32>} : memref<1x8x16x16xf32, #tpu.memory_space<vmem>>, vector<1x1x16x16xf32>,
    %cst_764 = arith.constant dense<0.000000e+00> : vector<16x16xf32>
    %1318 = vector.multi_reduction <add>, %1314, %cst_764 [0] : vector<1x16x16xf32> to vector<16x16xf32>
    %cst_765 = arith.constant dense<0.000000e+00> : vector<16xf32>
    %1319 = vector.multi_reduction <add>, %1318, %cst_765 [0] : vector<16x16xf32> to vector<16xf32>
    %1320 = vector.shape_cast %1319 : vector<16xf32> to vector<1x16xf32>
    %1321 = arith.mulf %1314, %1314 : vector<1x16x16xf32>
    %cst_766 = arith.constant dense<0.000000e+00> : vector<16x16xf32>
    %1322 = vector.multi_reduction <add>, %1321, %cst_766 [0] : vector<1x16x16xf32> to vector<16x16xf32>
    %cst_767 = arith.constant dense<0.000000e+00> : vector<16xf32>
    %1323 = vector.multi_reduction <add>, %1322, %cst_767 [0] : vector<16x16xf32> to vector<16xf32>
    %1324 = vector.shape_cast %1323 : vector<16xf32> to vector<1x16xf32>
    %c0_768 = arith.constant 0 : index
    %c0_769 = arith.constant 0 : index
    %c2_770 = arith.constant 2 : index
    %c0_771 = arith.constant 0 : index
    %1325 = vector.load %arg7[%c0_768, %c0_769, %c2_770, %c0_771] : memref<1x2x8x16xf32, #tpu.memory_space<vmem>>, vector<1x1x1x16xf32>
    %1326 = vector.shape_cast %1325 : vector<1x1x1x16xf32> to vector<1x16xf32>
    %1327 = vector.shape_cast %1320 : vector<1x16xf32> to vector<1x1x1x16xf32>
    tpu.vector_store %arg7[%c0_768, %c0_769, %c2_770, %c0_771], %1327 {strides = array<i32>} : memref<1x2x8x16xf32, #tpu.memory_space<vmem>>, vector<1x1x1x16xf32>,
    %c0_772 = arith.constant 0 : index
    %c1_773 = arith.constant 1 : index
    %c2_774 = arith.constant 2 : index
    %c0_775 = arith.constant 0 : index
    %1328 = vector.load %arg7[%c0_772, %c1_773, %c2_774, %c0_775] : memref<1x2x8x16xf32, #tpu.memory_space<vmem>>, vector<1x1x1x16xf32>
    %1329 = vector.shape_cast %1328 : vector<1x1x1x16xf32> to vector<1x16xf32>
    %1330 = vector.shape_cast %1324 : vector<1x16xf32> to vector<1x1x1x16xf32>
    tpu.vector_store %arg7[%c0_772, %c1_773, %c2_774, %c0_775], %1330 {strides = array<i32>} : memref<1x2x8x16xf32, #tpu.memory_space<vmem>>, vector<1x1x1x16xf32>,
    %1331 = arith.mulf %1263, %16 : vector<1x16x16xf32>
    %c0_776 = arith.constant 0 : index
    %c3_777 = arith.constant 3 : index
    %c0_778 = arith.constant 0 : index
    %c0_779 = arith.constant 0 : index
    %1332 = vector.load %arg5[%c0_776, %c3_777, %c0_778, %c0_779] : memref<1x8x16x16xf32, #tpu.memory_space<vmem>>, vector<1x1x16x16xf32>
    %1333 = vector.shape_cast %1332 : vector<1x1x16x16xf32> to vector<1x16x16xf32>
    %1334 = vector.shape_cast %1331 : vector<1x16x16xf32> to vector<1x1x16x16xf32>
    tpu.vector_store %arg5[%c0_776, %c3_777, %c0_778, %c0_779], %1334 {strides = array<i32>} : memref<1x8x16x16xf32, #tpu.memory_space<vmem>>, vector<1x1x16x16xf32>,
    %cst_780 = arith.constant dense<0.000000e+00> : vector<16x16xf32>
    %1335 = vector.multi_reduction <add>, %1331, %cst_780 [0] : vector<1x16x16xf32> to vector<16x16xf32>
    %cst_781 = arith.constant dense<0.000000e+00> : vector<16xf32>
    %1336 = vector.multi_reduction <add>, %1335, %cst_781 [0] : vector<16x16xf32> to vector<16xf32>
    %1337 = vector.shape_cast %1336 : vector<16xf32> to vector<1x16xf32>
    %1338 = arith.mulf %1331, %1331 : vector<1x16x16xf32>
    %cst_782 = arith.constant dense<0.000000e+00> : vector<16x16xf32>
    %1339 = vector.multi_reduction <add>, %1338, %cst_782 [0] : vector<1x16x16xf32> to vector<16x16xf32>
    %cst_783 = arith.constant dense<0.000000e+00> : vector<16xf32>
    %1340 = vector.multi_reduction <add>, %1339, %cst_783 [0] : vector<16x16xf32> to vector<16xf32>
    %1341 = vector.shape_cast %1340 : vector<16xf32> to vector<1x16xf32>
    %c0_784 = arith.constant 0 : index
    %c0_785 = arith.constant 0 : index
    %c3_786 = arith.constant 3 : index
    %c0_787 = arith.constant 0 : index
    %1342 = vector.load %arg7[%c0_784, %c0_785, %c3_786, %c0_787] : memref<1x2x8x16xf32, #tpu.memory_space<vmem>>, vector<1x1x1x16xf32>
    %1343 = vector.shape_cast %1342 : vector<1x1x1x16xf32> to vector<1x16xf32>
    %1344 = vector.shape_cast %1337 : vector<1x16xf32> to vector<1x1x1x16xf32>
    tpu.vector_store %arg7[%c0_784, %c0_785, %c3_786, %c0_787], %1344 {strides = array<i32>} : memref<1x2x8x16xf32, #tpu.memory_space<vmem>>, vector<1x1x1x16xf32>,
    %c0_788 = arith.constant 0 : index
    %c1_789 = arith.constant 1 : index
    %c3_790 = arith.constant 3 : index
    %c0_791 = arith.constant 0 : index
    %1345 = vector.load %arg7[%c0_788, %c1_789, %c3_790, %c0_791] : memref<1x2x8x16xf32, #tpu.memory_space<vmem>>, vector<1x1x1x16xf32>
    %1346 = vector.shape_cast %1345 : vector<1x1x1x16xf32> to vector<1x16xf32>
    %1347 = vector.shape_cast %1341 : vector<1x16xf32> to vector<1x1x1x16xf32>
    tpu.vector_store %arg7[%c0_788, %c1_789, %c3_790, %c0_791], %1347 {strides = array<i32>} : memref<1x2x8x16xf32, #tpu.memory_space<vmem>>, vector<1x1x1x16xf32>,
    %1348 = arith.mulf %1267, %16 : vector<1x16x16xf32>
    %c0_792 = arith.constant 0 : index
    %c4_793 = arith.constant 4 : index
    %c0_794 = arith.constant 0 : index
    %c0_795 = arith.constant 0 : index
    %1349 = vector.load %arg5[%c0_792, %c4_793, %c0_794, %c0_795] : memref<1x8x16x16xf32, #tpu.memory_space<vmem>>, vector<1x1x16x16xf32>
    %1350 = vector.shape_cast %1349 : vector<1x1x16x16xf32> to vector<1x16x16xf32>
    %1351 = vector.shape_cast %1348 : vector<1x16x16xf32> to vector<1x1x16x16xf32>
    tpu.vector_store %arg5[%c0_792, %c4_793, %c0_794, %c0_795], %1351 {strides = array<i32>} : memref<1x8x16x16xf32, #tpu.memory_space<vmem>>, vector<1x1x16x16xf32>,
    %cst_796 = arith.constant dense<0.000000e+00> : vector<16x16xf32>
    %1352 = vector.multi_reduction <add>, %1348, %cst_796 [0] : vector<1x16x16xf32> to vector<16x16xf32>
    %cst_797 = arith.constant dense<0.000000e+00> : vector<16xf32>
    %1353 = vector.multi_reduction <add>, %1352, %cst_797 [0] : vector<16x16xf32> to vector<16xf32>
    %1354 = vector.shape_cast %1353 : vector<16xf32> to vector<1x16xf32>
    %1355 = arith.mulf %1348, %1348 : vector<1x16x16xf32>
    %cst_798 = arith.constant dense<0.000000e+00> : vector<16x16xf32>
    %1356 = vector.multi_reduction <add>, %1355, %cst_798 [0] : vector<1x16x16xf32> to vector<16x16xf32>
    %cst_799 = arith.constant dense<0.000000e+00> : vector<16xf32>
    %1357 = vector.multi_reduction <add>, %1356, %cst_799 [0] : vector<16x16xf32> to vector<16xf32>
    %1358 = vector.shape_cast %1357 : vector<16xf32> to vector<1x16xf32>
    %c0_800 = arith.constant 0 : index
    %c0_801 = arith.constant 0 : index
    %c4_802 = arith.constant 4 : index
    %c0_803 = arith.constant 0 : index
    %1359 = vector.load %arg7[%c0_800, %c0_801, %c4_802, %c0_803] : memref<1x2x8x16xf32, #tpu.memory_space<vmem>>, vector<1x1x1x16xf32>
    %1360 = vector.shape_cast %1359 : vector<1x1x1x16xf32> to vector<1x16xf32>
    %1361 = vector.shape_cast %1354 : vector<1x16xf32> to vector<1x1x1x16xf32>
    tpu.vector_store %arg7[%c0_800, %c0_801, %c4_802, %c0_803], %1361 {strides = array<i32>} : memref<1x2x8x16xf32, #tpu.memory_space<vmem>>, vector<1x1x1x16xf32>,
    %c0_804 = arith.constant 0 : index
    %c1_805 = arith.constant 1 : index
    %c4_806 = arith.constant 4 : index
    %c0_807 = arith.constant 0 : index
    %1362 = vector.load %arg7[%c0_804, %c1_805, %c4_806, %c0_807] : memref<1x2x8x16xf32, #tpu.memory_space<vmem>>, vector<1x1x1x16xf32>
    %1363 = vector.shape_cast %1362 : vector<1x1x1x16xf32> to vector<1x16xf32>
    %1364 = vector.shape_cast %1358 : vector<1x16xf32> to vector<1x1x1x16xf32>
    tpu.vector_store %arg7[%c0_804, %c1_805, %c4_806, %c0_807], %1364 {strides = array<i32>} : memref<1x2x8x16xf32, #tpu.memory_space<vmem>>, vector<1x1x1x16xf32>,
    %1365 = arith.mulf %1271, %16 : vector<1x16x16xf32>
    %c0_808 = arith.constant 0 : index
    %c5_809 = arith.constant 5 : index
    %c0_810 = arith.constant 0 : index
    %c0_811 = arith.constant 0 : index
    %1366 = vector.load %arg5[%c0_808, %c5_809, %c0_810, %c0_811] : memref<1x8x16x16xf32, #tpu.memory_space<vmem>>, vector<1x1x16x16xf32>
    %1367 = vector.shape_cast %1366 : vector<1x1x16x16xf32> to vector<1x16x16xf32>
    %1368 = vector.shape_cast %1365 : vector<1x16x16xf32> to vector<1x1x16x16xf32>
    tpu.vector_store %arg5[%c0_808, %c5_809, %c0_810, %c0_811], %1368 {strides = array<i32>} : memref<1x8x16x16xf32, #tpu.memory_space<vmem>>, vector<1x1x16x16xf32>,
    %cst_812 = arith.constant dense<0.000000e+00> : vector<16x16xf32>
    %1369 = vector.multi_reduction <add>, %1365, %cst_812 [0] : vector<1x16x16xf32> to vector<16x16xf32>
    %cst_813 = arith.constant dense<0.000000e+00> : vector<16xf32>
    %1370 = vector.multi_reduction <add>, %1369, %cst_813 [0] : vector<16x16xf32> to vector<16xf32>
    %1371 = vector.shape_cast %1370 : vector<16xf32> to vector<1x16xf32>
    %1372 = arith.mulf %1365, %1365 : vector<1x16x16xf32>
    %cst_814 = arith.constant dense<0.000000e+00> : vector<16x16xf32>
    %1373 = vector.multi_reduction <add>, %1372, %cst_814 [0] : vector<1x16x16xf32> to vector<16x16xf32>
    %cst_815 = arith.constant dense<0.000000e+00> : vector<16xf32>
    %1374 = vector.multi_reduction <add>, %1373, %cst_815 [0] : vector<16x16xf32> to vector<16xf32>
    %1375 = vector.shape_cast %1374 : vector<16xf32> to vector<1x16xf32>
    %c0_816 = arith.constant 0 : index
    %c0_817 = arith.constant 0 : index
    %c5_818 = arith.constant 5 : index
    %c0_819 = arith.constant 0 : index
    %1376 = vector.load %arg7[%c0_816, %c0_817, %c5_818, %c0_819] : memref<1x2x8x16xf32, #tpu.memory_space<vmem>>, vector<1x1x1x16xf32>
    %1377 = vector.shape_cast %1376 : vector<1x1x1x16xf32> to vector<1x16xf32>
    %1378 = vector.shape_cast %1371 : vector<1x16xf32> to vector<1x1x1x16xf32>
    tpu.vector_store %arg7[%c0_816, %c0_817, %c5_818, %c0_819], %1378 {strides = array<i32>} : memref<1x2x8x16xf32, #tpu.memory_space<vmem>>, vector<1x1x1x16xf32>,
    %c0_820 = arith.constant 0 : index
    %c1_821 = arith.constant 1 : index
    %c5_822 = arith.constant 5 : index
    %c0_823 = arith.constant 0 : index
    %1379 = vector.load %arg7[%c0_820, %c1_821, %c5_822, %c0_823] : memref<1x2x8x16xf32, #tpu.memory_space<vmem>>, vector<1x1x1x16xf32>
    %1380 = vector.shape_cast %1379 : vector<1x1x1x16xf32> to vector<1x16xf32>
    %1381 = vector.shape_cast %1375 : vector<1x16xf32> to vector<1x1x1x16xf32>
    tpu.vector_store %arg7[%c0_820, %c1_821, %c5_822, %c0_823], %1381 {strides = array<i32>} : memref<1x2x8x16xf32, #tpu.memory_space<vmem>>, vector<1x1x1x16xf32>,
    %1382 = arith.mulf %1275, %16 : vector<1x16x16xf32>
    %c0_824 = arith.constant 0 : index
    %c6_825 = arith.constant 6 : index
    %c0_826 = arith.constant 0 : index
    %c0_827 = arith.constant 0 : index
    %1383 = vector.load %arg5[%c0_824, %c6_825, %c0_826, %c0_827] : memref<1x8x16x16xf32, #tpu.memory_space<vmem>>, vector<1x1x16x16xf32>
    %1384 = vector.shape_cast %1383 : vector<1x1x16x16xf32> to vector<1x16x16xf32>
    %1385 = vector.shape_cast %1382 : vector<1x16x16xf32> to vector<1x1x16x16xf32>
    tpu.vector_store %arg5[%c0_824, %c6_825, %c0_826, %c0_827], %1385 {strides = array<i32>} : memref<1x8x16x16xf32, #tpu.memory_space<vmem>>, vector<1x1x16x16xf32>,
    %cst_828 = arith.constant dense<0.000000e+00> : vector<16x16xf32>
    %1386 = vector.multi_reduction <add>, %1382, %cst_828 [0] : vector<1x16x16xf32> to vector<16x16xf32>
    %cst_829 = arith.constant dense<0.000000e+00> : vector<16xf32>
    %1387 = vector.multi_reduction <add>, %1386, %cst_829 [0] : vector<16x16xf32> to vector<16xf32>
    %1388 = vector.shape_cast %1387 : vector<16xf32> to vector<1x16xf32>
    %1389 = arith.mulf %1382, %1382 : vector<1x16x16xf32>
    %cst_830 = arith.constant dense<0.000000e+00> : vector<16x16xf32>
    %1390 = vector.multi_reduction <add>, %1389, %cst_830 [0] : vector<1x16x16xf32> to vector<16x16xf32>
    %cst_831 = arith.constant dense<0.000000e+00> : vector<16xf32>
    %1391 = vector.multi_reduction <add>, %1390, %cst_831 [0] : vector<16x16xf32> to vector<16xf32>
    %1392 = vector.shape_cast %1391 : vector<16xf32> to vector<1x16xf32>
    %c0_832 = arith.constant 0 : index
    %c0_833 = arith.constant 0 : index
    %c6_834 = arith.constant 6 : index
    %c0_835 = arith.constant 0 : index
    %1393 = vector.load %arg7[%c0_832, %c0_833, %c6_834, %c0_835] : memref<1x2x8x16xf32, #tpu.memory_space<vmem>>, vector<1x1x1x16xf32>
    %1394 = vector.shape_cast %1393 : vector<1x1x1x16xf32> to vector<1x16xf32>
    %1395 = vector.shape_cast %1388 : vector<1x16xf32> to vector<1x1x1x16xf32>
    tpu.vector_store %arg7[%c0_832, %c0_833, %c6_834, %c0_835], %1395 {strides = array<i32>} : memref<1x2x8x16xf32, #tpu.memory_space<vmem>>, vector<1x1x1x16xf32>,
    %c0_836 = arith.constant 0 : index
    %c1_837 = arith.constant 1 : index
    %c6_838 = arith.constant 6 : index
    %c0_839 = arith.constant 0 : index
    %1396 = vector.load %arg7[%c0_836, %c1_837, %c6_838, %c0_839] : memref<1x2x8x16xf32, #tpu.memory_space<vmem>>, vector<1x1x1x16xf32>
    %1397 = vector.shape_cast %1396 : vector<1x1x1x16xf32> to vector<1x16xf32>
    %1398 = vector.shape_cast %1392 : vector<1x16xf32> to vector<1x1x1x16xf32>
    tpu.vector_store %arg7[%c0_836, %c1_837, %c6_838, %c0_839], %1398 {strides = array<i32>} : memref<1x2x8x16xf32, #tpu.memory_space<vmem>>, vector<1x1x1x16xf32>,
    %1399 = arith.mulf %1279, %16 : vector<1x16x16xf32>
    %c0_840 = arith.constant 0 : index
    %c7_841 = arith.constant 7 : index
    %c0_842 = arith.constant 0 : index
    %c0_843 = arith.constant 0 : index
    %1400 = vector.load %arg5[%c0_840, %c7_841, %c0_842, %c0_843] : memref<1x8x16x16xf32, #tpu.memory_space<vmem>>, vector<1x1x16x16xf32>
    %1401 = vector.shape_cast %1400 : vector<1x1x16x16xf32> to vector<1x16x16xf32>
    %1402 = vector.shape_cast %1399 : vector<1x16x16xf32> to vector<1x1x16x16xf32>
    tpu.vector_store %arg5[%c0_840, %c7_841, %c0_842, %c0_843], %1402 {strides = array<i32>} : memref<1x8x16x16xf32, #tpu.memory_space<vmem>>, vector<1x1x16x16xf32>,
    %cst_844 = arith.constant dense<0.000000e+00> : vector<16x16xf32>
    %1403 = vector.multi_reduction <add>, %1399, %cst_844 [0] : vector<1x16x16xf32> to vector<16x16xf32>
    %cst_845 = arith.constant dense<0.000000e+00> : vector<16xf32>
    %1404 = vector.multi_reduction <add>, %1403, %cst_845 [0] : vector<16x16xf32> to vector<16xf32>
    %1405 = vector.shape_cast %1404 : vector<16xf32> to vector<1x16xf32>
    %1406 = arith.mulf %1399, %1399 : vector<1x16x16xf32>
    %cst_846 = arith.constant dense<0.000000e+00> : vector<16x16xf32>
    %1407 = vector.multi_reduction <add>, %1406, %cst_846 [0] : vector<1x16x16xf32> to vector<16x16xf32>
    %cst_847 = arith.constant dense<0.000000e+00> : vector<16xf32>
    %1408 = vector.multi_reduction <add>, %1407, %cst_847 [0] : vector<16x16xf32> to vector<16xf32>
    %1409 = vector.shape_cast %1408 : vector<16xf32> to vector<1x16xf32>
    %c0_848 = arith.constant 0 : index
    %c0_849 = arith.constant 0 : index
    %c7_850 = arith.constant 7 : index
    %c0_851 = arith.constant 0 : index
    %1410 = vector.load %arg7[%c0_848, %c0_849, %c7_850, %c0_851] : memref<1x2x8x16xf32, #tpu.memory_space<vmem>>, vector<1x1x1x16xf32>
    %1411 = vector.shape_cast %1410 : vector<1x1x1x16xf32> to vector<1x16xf32>
    %1412 = vector.shape_cast %1405 : vector<1x16xf32> to vector<1x1x1x16xf32>
    tpu.vector_store %arg7[%c0_848, %c0_849, %c7_850, %c0_851], %1412 {strides = array<i32>} : memref<1x2x8x16xf32, #tpu.memory_space<vmem>>, vector<1x1x1x16xf32>,
    %c0_852 = arith.constant 0 : index
    %c1_853 = arith.constant 1 : index
    %c7_854 = arith.constant 7 : index
    %c0_855 = arith.constant 0 : index
    %1413 = vector.load %arg7[%c0_852, %c1_853, %c7_854, %c0_855] : memref<1x2x8x16xf32, #tpu.memory_space<vmem>>, vector<1x1x1x16xf32>
    %1414 = vector.shape_cast %1413 : vector<1x1x1x16xf32> to vector<1x16xf32>
    %1415 = vector.shape_cast %1409 : vector<1x16xf32> to vector<1x1x1x16xf32>
    tpu.vector_store %arg7[%c0_852, %c1_853, %c7_854, %c0_855], %1415 {strides = array<i32>} : memref<1x2x8x16xf32, #tpu.memory_space<vmem>>, vector<1x1x1x16xf32>,
    return
  }
  func.func @transform_0(%arg0: i32) -> (i32, i32) {
    %c0_i32 = arith.constant 0 : i32
    %c0_i32_0 = arith.constant 0 : i32
    %c0_i32_1 = arith.constant 0 : i32
    return %c0_i32, %c0_i32_0 : i32, i32
  }
  func.func @transform_1(%arg0: i32) -> (i32, i32) {
    %c0_i32 = arith.constant 0 : i32
    %c0_i32_0 = arith.constant 0 : i32
    %c0_i32_1 = arith.constant 0 : i32
    return %c0_i32, %c0_i32_0 : i32, i32
  }
  func.func @transform_2(%arg0: i32) -> (i32, i32, i32, i32) {
    %c0_i32 = arith.constant 0 : i32
    %c0_i32_0 = arith.constant 0 : i32
    %c0_i32_1 = arith.constant 0 : i32
    %c0_i32_2 = arith.constant 0 : i32
    return %arg0, %c0_i32, %c0_i32_0, %c0_i32_1 : i32, i32, i32, i32
  }
  func.func @transform_3(%arg0: i32) -> (i32, i32, i32) {
    %c0_i32 = arith.constant 0 : i32
    %c0_i32_0 = arith.constant 0 : i32
    %c0_i32_1 = arith.constant 0 : i32
    return %arg0, %c0_i32, %c0_i32_0 : i32, i32, i32
  }
  func.func @transform_4(%arg0: i32) -> (i32, i32, i32, i32) {
    %c0_i32 = arith.constant 0 : i32
    %c0_i32_0 = arith.constant 0 : i32
    %c0_i32_1 = arith.constant 0 : i32
    %c0_i32_2 = arith.constant 0 : i32
    return %arg0, %c0_i32, %c0_i32_0, %c0_i32_1 : i32, i32, i32, i32
  }
  func.func @transform_5(%arg0: i32) -> (i32, i32, i32) {
    %c0_i32 = arith.constant 0 : i32
    %c0_i32_0 = arith.constant 0 : i32
    %c0_i32_1 = arith.constant 0 : i32
    return %arg0, %c0_i32, %c0_i32_0 : i32, i32, i32
  }
  func.func @transform_6(%arg0: i32) -> (i32, i32, i32, i32) {
    %c0_i32 = arith.constant 0 : i32
    %c0_i32_0 = arith.constant 0 : i32
    %c0_i32_1 = arith.constant 0 : i32
    %c0_i32_2 = arith.constant 0 : i32
    return %arg0, %c0_i32, %c0_i32_0, %c0_i32_1 : i32, i32, i32, i32
  }
}

</mosaic_0001>

<bundles_post_ra>
// kernel: tpu_custom_call.1
= control target key start
LH: loop header
LB: loop body
LE: loop exit
PB: predicated region body
PF: predicated region fallthrough
CT: control target
= control target key end

     0   :  { %s8258_s0 = inlined_call_operand.vmem [shape: f32[8,36], index: 0, kind: input, shape index: {}]   ;;  %s8259_s1 = inlined_call_operand.vmem [shape: f32[1,8], index: 1, kind: input, shape index: {}]   ;;  %s8260_s2 = inlined_call_operand.hbm [shape: f32[2,4,16,16], index: 2, kind: input, shape index: {}]   ;;  %s8261_s3 = inlined_call_operand.vmem [shape: f32[2,18,18], index: 3, kind: input, shape index: {}]   ;;  %s8262_s4 = inlined_call_operand.hbm [shape: f32[2,8,16,16], index: 4, kind: output, shape index: {0}]   ;;  %s8263_s5 = inlined_call_operand.hbm [shape: f32[2,16,16], index: 5, kind: output, shape index: {1}]   ;;  %s8264_s6 = inlined_call_operand.hbm [shape: f32[2,2,8,16], index: 6, kind: output, shape index: {2}]  }
   0x1   :  { %8280 = sst [smem:[#allocation23_spill]] %s8258_s0 }
   0x2   :  { %8281 = sst [smem:[#allocation24_spill]] %s8259_s1 }
   0x3   :  { %8282 = sst [smem:[#allocation25_spill]] %s8260_s2 }
   0x4   :  { %8283 = sst [smem:[#allocation26_spill]] %s8261_s3 }
   0x5   :  { %12 = vsyncpa [#allocation6], 0 }
   0x6   :  { %13 = vsyncpa [#allocation8], 0 }
   0x7   :  { %14 = vsyncpa [#allocation4], 0 }
   0x8   :  { %16 = vsyncpa [#allocation4 + $0x1], 0 }
   0x9   :  { %17 = vsyncpa [#allocation5], 0 }
   0xa   :  { %19 = vsyncpa [#allocation5 + $0x1], 0 }
   0xb   :  { %20 = vsyncpa [#allocation12], 0 }
   0xc   :  { %22 = vsyncpa [#allocation12 + $0x1], 0  ;;  %s4921_s21 = smov 0   ;;  %s4923_s22 = smov 0  }
   0xd   :  { %s4925_s23 = smov 0   ;;  %s4927_s24 = smov 0  }
   0xe LB: > { %8284 = sst [smem:[#allocation19_spill]] %s4862_s22  ;;  %s4942_s25 = sadd.s32 4294967295, %s4870_s24   ;;  %s4870_s24 = sphi %s4927_s24, %s8313_s24   ;;  %s4866_s23 = sphi %s4925_s23, %s8316_s23   ;;  %s4862_s22 = sphi %s4923_s22, %s8315_s22   ;;  %s4858_s21 = sphi %s4921_s21, %s8314_s21  }
   0xf   : > { %8285 = sst [smem:[#allocation20_spill]] %s4866_s23  ;;  %s8270_s26 = sadd.s32 4294967294, %s4870_s24  }
  0x10   : > { %s4946_s27 = sadd.s32 1, %s4870_s24   ;;  %s77_s28 = sadd.s32 1, %s4866_s23 }
  0x11   : > { %8286 = sst [smem:[#allocation21_spill]] %s4946_s27  ;;  %s74_s29 = ssub.s32 %s4870_s24, %s4946_s27 }
  0x12   : > { %p84_p0 = scmp.ne.s32.totalorder %s4866_s23, %s4862_s22  ;;  %p75_p1 = scmp.eq.s32.totalorder %s74_s29, 0 }
  0x13   : > { %p85_p2 = scmp.eq.s32.totalorder %s4870_s24, 0  ;;  %p90_p3 = scmp.ne.s32.totalorder %s4862_s22, %s4858_s21 }
  0x14   : > { %p8265_p4 = scmp.eq.s32.totalorder %s4942_s25, 0  ;;  %p140_p7 = scmp.eq.s32.totalorder %s4942_s25, 1 }
  0x15   : > { %s4958_s30 = scalar_select %p75_p1, %s4866_s23, %s77_s28  }
  0x16   : > { %p4960_p5 = por %p85_p2, %p84_p0  ;;  %p4966_p6 = por %p8265_p4, %p90_p3 }
  0x17   : > { %8287 = sst [smem:[#allocation22_spill]] %s4958_s30  ;;  %p146_p8 = scmp.eq.s32.totalorder %s8270_s26, 1 }
  0x18   : > { %s8289_s8 = scalar_select %p4966_p6, 1, 0 }
  0x19   : > { %p4248_p9 = scmp.ge.s32.totalorder %s4870_s24, 1  ;;  %p205_p10 = scmp.lt.s32.totalorder %s4870_s24, 3 }
  0x1a   : > { %p4975_p11 = por %p140_p7, %p84_p0  ;;  %p4979_p12 = por %p146_p8, %p90_p3 }
  0x1b   : > { %p4983_p13 = pnand %p4248_p9, %p205_p10  ;;  %s8293_s0 = sld [smem:[#allocation23_spill]] }
  0x1c   : > { %s8290_s9 = scalar_select %p4975_p11, 1, 0 }
  0x1d   : > { %s8291_s10 = scalar_select %p4979_p12, 1, 0 }
  0x1e   : > { %s8292_s11 = scalar_select %p4983_p13, 1, 0 }
  0x1f   : > { %p4611_p1 = pneg %p4983_p13  ;;  %p4634_p2 = scmp.lt.s32.totalorder %s4870_s24, 2 }
  0x20   : > { %s8295_s1 = sld [smem:[#allocation24_spill]] }
  0x21   : > { %s218_s14 = sshll.u32 %s8293_s0, 4  ;;  %p4996_p7 = pnand %p4611_p1, %p8265_p4  ;;  %s219_s14 = int_to_ptr.vmem [resolvable:$true] %s218_s14 }
  0x22   : > { %p5005_p3 = pnand %p4634_p2, %p4960_p5  ;;  %s4684_s20 = scalar_lea.vmem %s219_s14, 128 }
  0x23   : > { %p4685_p8 = scmp.ne.s32.totalorder %s219_s14, %s4684_s20  ;;  %p4686_p9 = pneg %p4996_p7 }
  0x24   : > { %s8296_s19 = scalar_select %p5005_p3, 1, 0 }
  0x25   : > { %p4687_p10 = pnand %p4686_p9, %p4685_p8  ;;  %p4692_p0 = scmp.lt.s32.totalorder %s219_s14, %s219_s14 }
  0x26   : > { %s229_s18 = sshll.u32 %s8295_s1, 4  ;;  %p4693_p4 = scmp.lt.s32.totalorder %s4684_s20, %s4684_s20  ;;  %s230_s18 = int_to_ptr.vmem [resolvable:$true] %s229_s18 }
  0x27   : > { %p4688_p1 = pneg %p4687_p10 }
  0x28   : > { %p4694_p12 = por %p4693_p4, %p4692_p0 }
  0x2a   : > { %p4695_p11 = pnand %p4694_p12, %p4688_p1 }
  0x2c   : > { %4698 = shalt.err (!%p4695_p11)
}
  0x2d   : > { %s4872_s28 = smov [#allocation3]   ;;  %s240_s29 = sand.u32 1, %s4866_s23  }
  0x2e   : > { %4614 = dma.vmem_to_smem (!%p4996_p7), %s219_s14, 128, %s4872_s28, [#allocation6]  }
  0x2f   : > { %s4699_s7 = scalar_lea.vmem %s230_s18, 16  ;;  %p4707_p8 = scmp.lt.s32.totalorder %s230_s18, %s230_s18 }
  0x30   : > { %p4700_p5 = scmp.ne.s32.totalorder %s230_s18, %s4699_s7  ;;  %p4708_p10 = scmp.lt.s32.totalorder %s4699_s7, %s4699_s7 }
  0x32   : > { %p4702_p2 = pnand %p4700_p5, %p4686_p9  ;;  %p4709_p13 = por %p4708_p10, %p4707_p8 }
  0x34   : > { %p4703_p6 = pneg %p4702_p2 }
  0x36   : > { %p4710_p3 = pnand %p4709_p13, %p4703_p6 }
  0x38   : > { %4713 = shalt.err (!%p4710_p3)
}
  0x39   : > { %s4873_s12 = smov [#allocation7]   ;;  %s4252_s13 = sshll.u32 %s240_s29, 6 }
  0x3a   : > { %4617 = dma.vmem_to_smem (!%p4996_p7), %s230_s18, 16, %s4873_s12, [#allocation8]  }
  0x3b   : > { %s4590_s14 = sshll.u32 %s4870_s24, 10  ;;  %s8297_s2 = sld [smem:[#allocation25_spill]] }
  0x3c   : > { %s244_s28 = scalar_lea.vmem [#allocation9], %s4252_s13  ;;  %s5030_s26 = scalar_lea.sflag [#allocation4], %s240_s29 }
  0x3d   : > { %s251_s7 = sshll.u32 %s244_s28, 4  ;;  %p8298_p6 = scmp.ne.s32.totalorder %s8296_s19, 0  ;;  %s5028_s7 = int_to_ptr.vmem [resolvable:$true] %s251_s7 }
  0x3f   : > { %p4716_p11 = pneg %p8298_p6 }
  0x41   : > { %s5026_s20 = scalar_lea.hbm %s8297_s2, %s4590_s14  ;;  %s4719_s14 = scalar_lea.hbm %s8297_s2, 2048 }
  0x42   : > { %s4714_s15 = scalar_lea.hbm %s5026_s20, 1024  ;;  %p4720_p0 = scmp.lt.s32.totalorder %s5026_s20, %s8297_s2 }
  0x43   : > { %p4715_p4 = scmp.ne.s32.totalorder %s5026_s20, %s4714_s15  ;;  %p4721_p7 = scmp.lt.s32.totalorder %s4719_s14, %s4714_s15 }
  0x45   : > { %p4717_p12 = pnand %p4716_p11, %p4715_p4  ;;  %p4722_p3 = por %p4721_p7, %p4720_p0 }
  0x47   : > { %p4718_p13 = pneg %p4717_p12 }
  0x49   : > { %p4723_p9 = pnand %p4722_p3, %p4718_p13 }
  0x4b   : > { %4726 = shalt.err (!%p4723_p9)
}
  0x4c   : > { %s4727_s29 = scalar_lea.vmem %s5028_s7, 1024  ;;  %s4874_s13 = smov [#allocation9]  }
  0x4d   : > { %p4728_p1 = scmp.ne.s32.totalorder %s5028_s7, %s4727_s29  ;;  %s4732_s28 = sshll.u32 %s4874_s13, 4  ;;  %s4733_s28 = int_to_ptr.vmem [resolvable:$false] %s4732_s28 }
  0x4e   : > { %s4734_s18 = scalar_lea.vmem %s4733_s28, 2048  ;;  %p4735_p8 = scmp.lt.s32.totalorder %s5028_s7, %s4733_s28 }
  0x4f   : > { %p4730_p5 = pnand %p4728_p1, %p4716_p11  ;;  %p4736_p10 = scmp.lt.s32.totalorder %s4734_s18, %s4727_s29 }
  0x51   : > { %p4731_p2 = pneg %p4730_p5  ;;  %p4737_p4 = por %p4736_p10, %p4735_p8 }
  0x53   : > { %p4738_p12 = pnand %p4737_p4, %p4731_p2 }
  0x55   : > { %4741 = shalt.err (!%p4738_p12)
}
  0x56   : > { %s4875_s15 = smov 128   ;;  %s4876_s12 = smov 8  }
  0x57   : > { %4621 = dma.hbm_to_vmem [thread:$0]  (!%p8298_p6), %s5026_s20, 1024, %s5028_s7, %s5030_s26, %s4875_s15, %s4875_s15, %s4876_s12  }
  0x58   : > { %p8299_p11 = scmp.ne.s32.totalorder %s8292_s11, 0 }
  0x59   : > { %p8300_p13 = scmp.eq.s32.totalorder (!%p8299_p11), %s4942_s25, 0 }
  0x5a   : > { %271 = sbr.rel (%p8299_p11) target bundleno = 1317 (0x525), region = 36 }
  0x5f   : > { %4837 = dma.done.wait (%p8300_p13), [#allocation6], 128   ;;  %p8301_p0 = pmov %p8300_p13 }
  0x61   : > { %4839 = vsyncadd (%p8301_p0), [#allocation6], 4294967168  ;;  %p8302_p7 = pmov %p8301_p0 }
  0x62   : > { %p8303_p3 = pmov %p8301_p0 }
  0x63   : > { %4841 = dma.done.wait (%p8302_p7), [#allocation8], 16  }
  0x64   : > { %4843 = vsyncadd (%p8303_p3), [#allocation8], 4294967280  ;;  %s5062_s14 = sand.u32 1, %s4862_s22   ;;  %p8304_p6 = scmp.ne.s32.totalorder %s8289_s8, 0 }
  0x65   : > { %s4258_s26 = sshll.u32 %s5062_s14, 6  ;;  %s282_s11 = scalar_lea.sflag [#allocation4], %s5062_s14 }
  0x66   : > { %s5066_s19 = scalar_lea.vmem [#allocation9], %s4258_s26 }
  0x67   : > { %4845 = dma.done.wait (%p8304_p6), %s282_s11, 1024  }
  0x68   : > { %4847 = vsyncadd (%p8304_p6), %s282_s11, 4294966272 }
  0x69   : > { %290 = sfence }
  0x6a   : > { %p330_p9 = scmp.lt.s32.totalorder %s4942_s25, 1  ;;  %s8305_s3 = sld [smem:[#allocation26_spill]]  ;;  %vm341_vm0 = vcmask 1046528   ;;  %vm351_vm1 = vcmask 1045504   ;;  %vm388_vm2 = vcmask 146432   ;;  %v4879_v17 = vmov 0.0  }
  0x6b   : > { %s8272_s8 = smov 127   ;;  %s8274_s13 = smov 126   ;;  %389 = vst.msk [vmem:[#allocation2] sm:$0xff] %vm388_vm2, %v4879_v17  ;;  %390 = vst.msk [vmem:[#allocation2 + $0x8] sm:$0xff] %vm388_vm2, %v4879_v17  ;;  %vm391_vm3 = vcmask 140288   ;;  %vm379_vm4 = vcmask 130048  }
  0x6c   : > { %s331_s20 = scalar_select %p330_p9, %s4942_s25, 1  ;;  %393 = vst.msk [vmem:[#allocation2 + $0x18] sm:$0xff] %vm388_vm2, %v4879_v17  ;;  %394 = vst.msk [vmem:[#allocation2 + $0x20] sm:$0xff] %vm388_vm2, %v4879_v17  ;;  %v402_v24 = vld [vmem:[%s5066_s19] sm:$0xff]  ;;  %v404_v29 = vld [vmem:[%s5066_s19 + $0x10] sm:$0xff]  ;;  %vm450_vm7 = vcmask 138248  }
  0x6d   : > { %396 = vst.msk [vmem:[#allocation2 + $0x30] sm:$0xff] %vm388_vm2, %v4879_v17  ;;  %397 = vst.msk [vmem:[#allocation2 + $0x38] sm:$0xff] %vm388_vm2, %v4879_v17  ;;  %s8271_s28 = sshll.u32 %s5062_s14, 4  ;;  %v403_v30 = vld [vmem:[%s5066_s19 + $0x8] sm:$0xff]  ;;  %s4880_s15 = smov 1   ;;  %v406_v34 = vld [vmem:[%s5066_s19 + $0x20] sm:$0xff] }
  0x6e   : > { %s4594_s7 = smul.u32 24, %s331_s20  ;;  %399 = vst.msk [vmem:[#allocation2 + $0x48] sm:$0xff] %vm388_vm2, %v4879_v17  ;;  %400 = vst.msk [vmem:[#allocation2 + $0x50] sm:$0xff] %vm388_vm2, %v4879_v17  ;;  %s5085_s18 = scalar_lea.vmem [#allocation11], %s8271_s28  ;;  %v405_v35 = vld [vmem:[%s5066_s19 + $0x18] sm:$0xff]  ;;  %v408_v38 = vld [vmem:[%s5066_s19 + $0x30] sm:$0xff] }
  0x6f   : > { %392 = vst.msk [vmem:[#allocation2 + $0x10] sm:$0x3] %vm391_vm3, %v4879_v17  ;;  %395 = vst.msk [vmem:[#allocation2 + $0x28] sm:$0x3] %vm391_vm3, %v4879_v17  ;;  %v407_v39 = vld [vmem:[%s5066_s19 + $0x28] sm:$0xff]  ;;  %v409_v42 = vld [vmem:[%s5066_s19 + $0x38] sm:$0xff] }
  0x70   : > { %s334_s29 = scalar_lea.vmem %s8305_s3, %s4594_s7  ;;  %398 = vst.msk [vmem:[#allocation2 + $0x40] sm:$0x3] %vm391_vm3, %v4879_v17  ;;  %401 = vst.msk [vmem:[#allocation2 + $0x58] sm:$0x3] %vm391_vm3, %v4879_v17  ;;  %s4277_s12 = sld [smem:[#allocation3 + $0x1]] }
  0x71   : > { %v335_v0 = vld [vmem:[%s334_s29] sm:$0xff]  ;;  %v336_v1 = vld [vmem:[%s334_s29 + $0x8] sm:$0xff]  ;;  %v337_v2 = vld [vmem:[%s334_s29 + $0x10] sm:$0x3]  ;;  %s4278_s26 = sld [smem:[#allocation3 + $0x81]]  ;;  %s8306_s0 = smov 127  }
  0x72   : > { %v342_v3 = vrot.slane %v335_v0, 1  ;;  %v343_v4 = vrot.slane %v336_v1, 1  ;;  %v352_v5 = vrot.slane %v335_v0, 2  ;;  %v353_v6 = vrot.slane %v336_v1, 2  ;;  %s4279_s11 = sld [smem:[#allocation3 + $0x101]]  ;;  %p8308_p5 = scmp.ne.s32.totalorder %s8290_s9, 0 }
  0x73   : > { %v345_v7 = vrot.slane %v337_v2, 1  ;;  %v355_v8 = vrot.slane %v337_v2, 2  ;;  %s4280_s19 = sld [smem:[#allocation3 + $0x181]] }
  0x74   : > { %v344_v9 = vsel %vm341_vm0, %v342_v3, %v343_v4  ;;  %v354_v10 = vsel %vm351_vm1, %v352_v5, %v353_v6  ;;  %s4281_s20 = sld [smem:[#allocation3 + $0x201]] }
  0x75   : > { %v349_v11 = vadd.f32 %v344_v9, %v335_v0  ;;  %v346_v12 = vsel %vm341_vm0, %v343_v4, %v345_v7  ;;  %v356_v14 = vsel %vm351_vm1, %v353_v6, %v355_v8  ;;  %s4282_s7 = sld [smem:[#allocation3 + $0x281]] }
  0x76   : > { %v350_v13 = vadd.f32 %v346_v12, %v336_v1  ;;  %v534_v47 = vstv %s4277_s12  ;;  %s4283_s16 = sld [smem:[#allocation3 + $0x301]] }
  0x77   : > { %v359_v15 = vadd.f32 %v354_v10, %v349_v11  ;;  %v548_v52 = vstv %s4278_s26  ;;  %s4284_s17 = sld [smem:[#allocation3 + $0x381]] }
  0x78   : > { %v360_v16 = vadd.f32 %v356_v14, %v350_v13  ;;  %v562_v58 = vstv %s4279_s11  ;;  %s4285_s29 = sld [smem:[#allocation3 + $0x2]] }
  0x79   : > { %363 = vrot.lane.b32.xlu0 %v359_v15, %s8272_s8  ;;  %371 = vrot.lane.b32.xlu1 %v359_v15, %s8274_s13  ;;  %v576_v62 = vstv %s4280_s19  ;;  %s4287_s12 = sld [smem:[#allocation3 + $0x102]] }
  0x7a   : > { %v590_v1 = vstv %s4281_s20  ;;  %s4288_s26 = sld [smem:[#allocation3 + $0x182]] }
  0x7b   : > { %v604_v4 = vstv %s4282_s7  ;;  %s4289_s11 = sld [smem:[#allocation3 + $0x202]] }
  0x7c   : > { %v618_v7 = vstv %s4283_s16  ;;  %s4290_s19 = sld [smem:[#allocation3 + $0x282]] }
  0x7d   : > { %365 = vrot.lane.b32.xlu0 %v360_v16, %s8272_s8  ;;  %373 = vrot.lane.b32.xlu1 %v360_v16, %s8274_s13  ;;  %v632_v10 = vstv %s4284_s17  ;;  %s4291_s20 = sld [smem:[#allocation3 + $0x302]] }
  0x7e   : > { %v646_v13 = vstv %s4285_s29  ;;  %s4292_s7 = sld [smem:[#allocation3 + $0x382]] }
  0x7f   : > { %s4301_s16 = sld [smem:[#allocation3 + $0x4]] }
  0x80   : > { %s4302_s17 = sld [smem:[#allocation3 + $0x84]] }
  0x81   : > { %s4303_s29 = sld [smem:[#allocation3 + $0x104]] }
  0x82   : > { %s5291_s28 = sld [smem:[#allocation3 + $0x180]] }
  0x83   : > { %s5308_s1 = sld [smem:[#allocation3 + $0x200]] }
  0x84   : > { %s5310_s2 = sld [smem:[#allocation7 + $0x5]] }
  0x85   : > { %s5325_s3 = sld [smem:[#allocation7 + $0x6]] }
  0x86   : > { %s5327_s30 = sld [smem:[#allocation3 + $0x300]] }
  0x87   : > { %s5338_s23 = sld [smem:[#allocation3 + $0x287]] }
  0x88   : > { %s5343_s22 = sld [smem:[#allocation3 + $0x3]] }
  0x89   : > { %s5345_s27 = sld [smem:[#allocation3 + $0x380]] }
  0xeb   : > { %v364_v18 = vpop.permute.xlu0 %363  ;;  %v372_v19 = vpop.permute.xlu1 %371 }
  0xec   : > { %v369_v20 = vadd.f32 %v364_v18, %v359_v15 }
  0xee   : > { %v377_v21 = vadd.f32 %v372_v19, %v369_v20  ;;  %v674_v19 = vstv %s4287_s12  ;;  %s4305_s12 = sld [smem:[#allocation3 + $0x204]] }
  0xef   : > { %v366_v22 = vpop.permute.xlu0 %365  ;;  %v374_v23 = vpop.permute.xlu1 %373 }
  0xf0   : > { %380 = vst.msk [vmem:[%s5085_s18] sm:$0xff] %vm379_vm4, %v377_v21  ;;  %vm382_vm5 = vcmp.eq.f32.partialorder %v377_v21, 0.0  ;;  %v370_v25 = vadd.f32 %v366_v22, %v360_v16  ;;  %v688_v22 = vstv %s4288_s26  ;;  %s4306_s26 = sld [smem:[#allocation3 + $0x284]] }
  0xf1   : > { %v5089_v26 = vsel %vm382_vm5, 1.0, %v377_v21 }
  0xf2   : > { %v378_v27 = vadd.f32 %v374_v23, %v370_v25  ;;  %v410_v28 = vmul.f32 %v402_v24, %v5089_v26  ;;  %v412_v32 = vmul.f32 %v404_v29, %v5089_v26  ;;  %v414_v36 = vmul.f32 %v406_v34, %v5089_v26 }
  0xf3   : > { %v416_v40 = vmul.f32 %v408_v38, %v5089_v26  ;;  %v702_v25 = vstv %s4289_s11  ;;  %v716_v29 = vstv %s4290_s19  ;;  %s4307_s11 = sld [smem:[#allocation3 + $0x304]] }
  0xf4   : > { %381 = vst.msk [vmem:[%s5085_s18 + $0x8] sm:$0xff] %vm379_vm4, %v378_v27  ;;  %vm383_vm6 = vcmp.eq.f32.partialorder %v378_v27, 0.0  ;;  %426 = vrot.lane.b32.xlu0 %v410_v28, %s4880_s15  ;;  %s4308_s19 = sld [smem:[#allocation3 + $0x384]] }
  0xf5   : > { %v5096_v31 = vsel %vm383_vm6, 1.0, %v378_v27 }
  0xf6   : > { %v411_v33 = vmul.f32 %v403_v30, %v5096_v31  ;;  %v413_v37 = vmul.f32 %v405_v35, %v5096_v31  ;;  %v415_v41 = vmul.f32 %v407_v39, %v5096_v31  ;;  %v417_v43 = vmul.f32 %v409_v42, %v5096_v31 }
  0xf8   : > { %430 = vrot.lane.b32.xlu0 %v412_v32, %s4880_s15  ;;  %428 = vrot.lane.b32.xlu1 %v411_v33, %s4880_s15  ;;  %v730_v33 = vstv %s4291_s20  ;;  %s4309_s20 = sld [smem:[#allocation3 + $0x5]] }
  0xfc   : > { %434 = vrot.lane.b32.xlu0 %v414_v36, %s4880_s15  ;;  %432 = vrot.lane.b32.xlu1 %v413_v37, %s4880_s15  ;;  %v744_v36 = vstv %s4292_s7  ;;  %s4310_s7 = sld [smem:[#allocation3 + $0x85]] }
 0x100   : > { %438 = vrot.lane.b32.xlu0 %v416_v40, %s4880_s15  ;;  %436 = vrot.lane.b32.xlu1 %v415_v41, %s4880_s15  ;;  %v808_v40 = vstv %s4301_s16  ;;  %s4311_s16 = sld [smem:[#allocation3 + $0x105]] }
 0x104   : > { %440 = vrot.lane.b32.xlu1 %v417_v43, %s4880_s15  ;;  %s4286_s15 = sld [smem:[#allocation3 + $0x82]] }
 0x10a   : > { %v660_v16 = vstv %s4286_s15  ;;  %s4304_s15 = sld [smem:[#allocation3 + $0x184]] }
 0x166   : > { %v427_v44 = vpop.permute.xlu0 %426 }
 0x167   : > { %451 = vst.msk [vmem:[#allocation2 + $0x1] sm:$0xff] %vm450_vm7, %v427_v44  ;;  %v822_v44 = vstv %s4302_s17  ;;  %s4312_s17 = sld [smem:[#allocation3 + $0x185]] }
 0x16a   : > { %v429_v45 = vpop.permute.xlu1 %428  ;;  %v431_v46 = vpop.permute.xlu0 %430 }
 0x16b   : > { %452 = vst.msk [vmem:[#allocation2 + $0x9] sm:$0xff] %vm450_vm7, %v429_v45  ;;  %453 = vst.msk [vmem:[#allocation2 + $0x19] sm:$0xff] %vm450_vm7, %v431_v46 }
 0x16e   : > { %v5113_v48 = vld [vmem:[#allocation2] sm:$0xff]  ;;  %v433_v49 = vpop.permute.xlu1 %432  ;;  %v435_v50 = vpop.permute.xlu0 %434 }
 0x16f   : > { %454 = vst.msk [vmem:[#allocation2 + $0x21] sm:$0xff] %vm450_vm7, %v433_v49  ;;  %455 = vst.msk [vmem:[#allocation2 + $0x31] sm:$0xff] %vm450_vm7, %v435_v50  ;;  %v535_v51 = vmul.f32 %v534_v47, %v5113_v48  ;;  %v549_v57 = vmul.f32 %v548_v52, %v5113_v48  ;;  %v563_v61 = vmul.f32 %v562_v58, %v5113_v48  ;;  %v5182_v39 = vld [vmem:[#allocation2 + $0x1] sm:$0xff] }
 0x170   : > { %v577_v0 = vmul.f32 %v576_v62, %v5113_v48  ;;  %v591_v3 = vmul.f32 %v590_v1, %v5113_v48  ;;  %v605_v6 = vmul.f32 %v604_v4, %v5113_v48  ;;  %v619_v9 = vmul.f32 %v618_v7, %v5113_v48 }
 0x171   : > { %539 = vrot.lane.b32.xlu0 %v535_v51, %s8272_s8  ;;  %v633_v12 = vmul.f32 %v632_v10, %v5113_v48  ;;  %v647_v15 = vmul.f32 %v646_v13, %v5113_v48  ;;  %v661_v18 = vmul.f32 %v660_v16, %v5113_v48  ;;  %v675_v21 = vmul.f32 %v674_v19, %v5113_v48 }
 0x172   : > { %v5119_v53 = vld [vmem:[#allocation2 + $0x8] sm:$0xff]  ;;  %v437_v54 = vpop.permute.xlu1 %436  ;;  %v439_v55 = vpop.permute.xlu0 %438  ;;  %v689_v24 = vmul.f32 %v688_v22, %v5113_v48  ;;  %v703_v28 = vmul.f32 %v702_v25, %v5113_v48  ;;  %v717_v32 = vmul.f32 %v716_v29, %v5113_v48  ;;  %v731_v35 = vmul.f32 %v730_v33, %v5113_v48 }
 0x173   : > { %456 = vst.msk [vmem:[#allocation2 + $0x39] sm:$0xff] %vm450_vm7, %v437_v54  ;;  %457 = vst.msk [vmem:[#allocation2 + $0x49] sm:$0xff] %vm450_vm7, %v439_v55  ;;  %v536_v56 = vmul.f32 %v534_v47, %v5119_v53  ;;  %v550_v60 = vmul.f32 %v548_v52, %v5119_v53  ;;  %v564_v63 = vmul.f32 %v562_v58, %v5119_v53  ;;  %v5188_v43 = vld [vmem:[#allocation2 + $0x9] sm:$0xff]  ;;  %v836_v47 = vstv %s4303_s29  ;;  %s4313_s29 = sld [smem:[#allocation3 + $0x205]] }
 0x174   : > { %v578_v2 = vmul.f32 %v576_v62, %v5119_v53  ;;  %v592_v5 = vmul.f32 %v590_v1, %v5119_v53  ;;  %v606_v8 = vmul.f32 %v604_v4, %v5119_v53  ;;  %v620_v11 = vmul.f32 %v618_v7, %v5119_v53 }
 0x175   : > { %541 = vrot.lane.b32.xlu1 %v536_v56, %s8272_s8  ;;  %553 = vrot.lane.b32.xlu0 %v549_v57, %s8272_s8  ;;  %v634_v14 = vmul.f32 %v632_v10, %v5119_v53  ;;  %v648_v17 = vmul.f32 %v646_v13, %v5119_v53  ;;  %v662_v20 = vmul.f32 %v660_v16, %v5119_v53  ;;  %v850_v51 = vstv %s4304_s15  ;;  %s4314_s15 = sld [smem:[#allocation3 + $0x285]] }
 0x176   : > { %v441_v59 = vpop.permute.xlu1 %440  ;;  %v676_v23 = vmul.f32 %v674_v19, %v5119_v53  ;;  %v690_v27 = vmul.f32 %v688_v22, %v5119_v53  ;;  %v704_v30 = vmul.f32 %v702_v25, %v5119_v53  ;;  %v718_v34 = vmul.f32 %v716_v29, %v5119_v53 }
 0x177   : > { %458 = vst.msk [vmem:[#allocation2 + $0x51] sm:$0xff] %vm450_vm7, %v441_v59  ;;  %v732_v37 = vmul.f32 %v730_v33, %v5119_v53  ;;  %v745_v38 = vmul.f32 %v744_v36, %v5113_v48  ;;  %v746_v41 = vmul.f32 %v744_v36, %v5119_v53  ;;  %v809_v42 = vmul.f32 %v808_v40, %v5182_v39 }
 0x178   : > { %v810_v45 = vmul.f32 %v808_v40, %v5188_v43  ;;  %v823_v46 = vmul.f32 %v822_v44, %v5182_v39  ;;  %v824_v49 = vmul.f32 %v822_v44, %v5188_v43  ;;  %v837_v50 = vmul.f32 %v836_v47, %v5182_v39 }
 0x179   : > { %555 = vrot.lane.b32.xlu1 %v550_v60, %s8272_s8  ;;  %567 = vrot.lane.b32.xlu0 %v563_v61, %s8272_s8  ;;  %v838_v52 = vmul.f32 %v836_v47, %v5188_v43  ;;  %v851_v54 = vmul.f32 %v850_v51, %v5182_v39  ;;  %v864_v55 = vstv %s4305_s12  ;;  %v852_v56 = vmul.f32 %v850_v51, %v5188_v43  ;;  %s5234_s12 = sld [smem:[#allocation3 + $0x305]] }
 0x17a   : > { %v865_v57 = vmul.f32 %v864_v55, %v5182_v39  ;;  %v878_v58 = vstv %s4306_s26  ;;  %v866_v59 = vmul.f32 %v864_v55, %v5188_v43  ;;  %v892_v61 = vstv %s4307_s11  ;;  %s5240_s26 = sld [smem:[#allocation3 + $0x385]] }
 0x17b   : > { %v879_v60 = vmul.f32 %v878_v58, %v5182_v39  ;;  %v880_v62 = vmul.f32 %v878_v58, %v5188_v43  ;;  %v894_v1 = vmul.f32 %v892_v61, %v5188_v43  ;;  %s5249_s11 = sld [smem:[#allocation3 + $0x7]] }
 0x17d   : > { %569 = vrot.lane.b32.xlu1 %v564_v63, %s8272_s8  ;;  %581 = vrot.lane.b32.xlu0 %v577_v0, %s8272_s8  ;;  %v893_v63 = vmul.f32 %v892_v61, %v5182_v39  ;;  %v906_v0 = vstv %s4308_s19  ;;  %s5251_s19 = sld [smem:[#allocation7]] }
 0x17e   : > { %v908_v4 = vmul.f32 %v906_v0, %v5188_v43 }
 0x17f   : > { %v1004_v22 = vstv %s5234_s12  ;;  %s5285_s12 = sld [smem:[#allocation3 + $0x107]] }
 0x181   : > { %583 = vrot.lane.b32.xlu1 %v578_v2, %s8272_s8  ;;  %595 = vrot.lane.b32.xlu0 %v591_v3, %s8272_s8  ;;  %v907_v2 = vmul.f32 %v906_v0, %v5182_v39  ;;  %v920_v3 = vstv %s4309_s20  ;;  %s5255_s20 = sld [smem:[#allocation3]] }
 0x182   : > { %v922_v7 = vmul.f32 %v920_v3, %v5188_v43 }
 0x185   : > { %597 = vrot.lane.b32.xlu1 %v592_v5, %s8272_s8  ;;  %609 = vrot.lane.b32.xlu0 %v605_v6, %s8272_s8  ;;  %v921_v5 = vmul.f32 %v920_v3, %v5182_v39  ;;  %v934_v6 = vstv %s4310_s7  ;;  %s5259_s7 = sld [smem:[#allocation7 + $0x1]] }
 0x186   : > { %v936_v10 = vmul.f32 %v934_v6, %v5188_v43 }
 0x189   : > { %611 = vrot.lane.b32.xlu1 %v606_v8, %s8272_s8  ;;  %623 = vrot.lane.b32.xlu0 %v619_v9, %s8272_s8  ;;  %v935_v8 = vmul.f32 %v934_v6, %v5182_v39  ;;  %v948_v9 = vstv %s4311_s16  ;;  %s5266_s16 = sld [smem:[#allocation3 + $0x87]] }
 0x18a   : > { %v950_v13 = vmul.f32 %v948_v9, %v5188_v43 }
 0x18d   : > { %625 = vrot.lane.b32.xlu1 %v620_v11, %s8272_s8  ;;  %637 = vrot.lane.b32.xlu0 %v633_v12, %s8272_s8  ;;  %v949_v11 = vmul.f32 %v948_v9, %v5182_v39  ;;  %v962_v12 = vstv %s4312_s17  ;;  %s5268_s17 = sld [smem:[#allocation3 + $0x80]] }
 0x18e   : > { %v964_v16 = vmul.f32 %v962_v12, %v5188_v43 }
 0x191   : > { %639 = vrot.lane.b32.xlu1 %v634_v14, %s8272_s8  ;;  %651 = vrot.lane.b32.xlu0 %v647_v15, %s8274_s13  ;;  %v963_v14 = vmul.f32 %v962_v12, %v5182_v39  ;;  %v976_v15 = vstv %s4313_s29  ;;  %s5272_s29 = sld [smem:[#allocation7 + $0x2]] }
 0x193   : > { %v492_v0 = vstv %s5268_s17  ;;  %s5433_s17 = sld [smem:[#allocation3 + $0x203]] }
 0x195   : > { %653 = vrot.lane.b32.xlu1 %v648_v17, %s8274_s13  ;;  %665 = vrot.lane.b32.xlu0 %v661_v18, %s8274_s13  ;;  %v977_v17 = vmul.f32 %v976_v15, %v5182_v39  ;;  %v990_v18 = vstv %s4314_s15  ;;  %s5276_s15 = sld [smem:[#allocation3 + $0x100]] }
 0x196   : > { %v992_v25 = vmul.f32 %v990_v18, %v5188_v43 }
 0x199   : > { %667 = vrot.lane.b32.xlu1 %v662_v20, %s8274_s13  ;;  %679 = vrot.lane.b32.xlu0 %v675_v21, %s8274_s13  ;;  %v978_v20 = vmul.f32 %v976_v15, %v5188_v43  ;;  %v991_v21 = vmul.f32 %v990_v18, %v5182_v39  ;;  %v494_v18 = vmul.f32 %v492_v0, %v5119_v53 }
 0x19b   : > { %v498_v3 = vstv %s5276_s15  ;;  %s5447_s15 = sld [smem:[#allocation3 + $0x188]] }
 0x19d   : > { %681 = vrot.lane.b32.xlu1 %v676_v23, %s8274_s13  ;;  %693 = vrot.lane.b32.xlu0 %v689_v24, %s8274_s13 }
 0x1a1   : > { %695 = vrot.lane.b32.xlu1 %v690_v27, %s8274_s13  ;;  %707 = vrot.lane.b32.xlu0 %v703_v28, %s8274_s13  ;;  %v1005_v27 = vmul.f32 %v1004_v22, %v5182_v39  ;;  %v1018_v28 = vstv %s5240_s26  ;;  %s5289_s26 = sld [smem:[#allocation7 + $0x3]] }
 0x1a2   : > { %v1019_v33 = vmul.f32 %v1018_v28, %v5182_v39 }
 0x1a5   : > { %709 = vrot.lane.b32.xlu1 %v704_v30, %s8274_s13  ;;  %721 = vrot.lane.b32.xlu0 %v717_v32, %s8274_s13  ;;  %v1006_v32 = vmul.f32 %v1004_v22, %v5188_v43 }
 0x1a9   : > { %723 = vrot.lane.b32.xlu1 %v718_v34, %s8274_s13  ;;  %735 = vrot.lane.b32.xlu0 %v731_v35, %s8274_s13  ;;  %v5282_v34 = vld [vmem:[#allocation2 + $0x2] sm:$0xff]  ;;  %v1082_v35 = vstv %s5249_s11  ;;  %s5299_s11 = sld [smem:[#allocation7 + $0x4]] }
 0x1aa   : > { %v1083_v40 = vmul.f32 %v1082_v35, %v5282_v34 }
 0x1ad   : > { %737 = vrot.lane.b32.xlu1 %v732_v37, %s8274_s13  ;;  %749 = vrot.lane.b32.xlu0 %v745_v38, %s8274_s13  ;;  %v1020_v38 = vmul.f32 %v1018_v28, %v5188_v43 }
 0x1af   : > { %v472_v6 = vstv %s5299_s11  ;;  %s5514_s11 = sld [smem:[#allocation3 + $0x383]] }
 0x1b1   : > { %751 = vrot.lane.b32.xlu1 %v746_v41, %s8274_s13  ;;  %813 = vrot.lane.b32.xlu0 %v809_v42, %s8272_s8  ;;  %v5301_v41 = vld [vmem:[#allocation2 + $0xa] sm:$0xff]  ;;  %v1096_v42 = vstv %s5266_s16  ;;  %s5318_s16 = sld [smem:[#allocation3 + $0x280]] }
 0x1b2   : > { %v1097_v47 = vmul.f32 %v1096_v42, %v5282_v34 }
 0x1b5   : > { %815 = vrot.lane.b32.xlu1 %v810_v45, %s8272_s8  ;;  %827 = vrot.lane.b32.xlu0 %v823_v46, %s8272_s8  ;;  %v1084_v46 = vmul.f32 %v1082_v35, %v5301_v41 }
 0x1b7   : > { %v516_v9 = vstv %s5318_s16  ;;  %s5600_s16 = sld [smem:[#allocation3 + $0x8a]] }
 0x1b9   : > { %829 = vrot.lane.b32.xlu1 %v824_v49, %s8272_s8  ;;  %841 = vrot.lane.b32.xlu0 %v837_v50, %s8272_s8  ;;  %v1110_v49 = vstv %s5285_s12  ;;  %s5335_s12 = sld [smem:[#allocation7 + $0x7]] }
 0x1bd   : > { %843 = vrot.lane.b32.xlu1 %v838_v52, %s8272_s8  ;;  %855 = vrot.lane.b32.xlu0 %v851_v54, %s8272_s8  ;;  %v1098_v52 = vmul.f32 %v1096_v42, %v5301_v41  ;;  %v1111_v54 = vmul.f32 %v1110_v49, %v5282_v34 }
 0x1bf   : > { %v481_v28 = vstv %s5335_s12  ;;  %s5613_s12 = sld [smem:[#allocation3 + $0x10a]] }
 0x1c1   : > { %857 = vrot.lane.b32.xlu1 %v852_v56, %s8272_s8  ;;  %869 = vrot.lane.b32.xlu0 %v865_v57, %s8272_s8  ;;  %v486_v56 = vstv %s5255_s20  ;;  %v460_v57 = vstv %s5251_s19  ;;  %s5360_s19 = sld [smem:[#allocation3 + $0x387]] }
 0x1c2   : > { %s5366_s20 = sld [smem:[#allocation3 + $0x83]]  ;;  %v488_v15 = vmul.f32 %v486_v56, %v5119_v53 }
 0x1c5   : > { %871 = vrot.lane.b32.xlu1 %v866_v59, %s8272_s8  ;;  %883 = vrot.lane.b32.xlu0 %v879_v60, %s8272_s8  ;;  %v1112_v60 = vmul.f32 %v1110_v49, %v5301_v41 }
 0x1c9   : > { %885 = vrot.lane.b32.xlu1 %v880_v62, %s8272_s8  ;;  %897 = vrot.lane.b32.xlu0 %v893_v63, %s8272_s8  ;;  %v487_v62 = vmul.f32 %v486_v56, %v5113_v48  ;;  %v463_v63 = vstv %s5259_s7  ;;  %s5421_s7 = sld [smem:[#allocation3 + $0x108]] }
 0x1cd   : > { %899 = vrot.lane.b32.xlu1 %v894_v1, %s8272_s8  ;;  %911 = vrot.lane.b32.xlu0 %v907_v2, %s8272_s8  ;;  %v466_v2 = vstv %s5272_s29  ;;  %s5460_s29 = sld [smem:[#allocation3 + $0x283]] }
 0x1d1   : > { %913 = vrot.lane.b32.xlu1 %v908_v4, %s8272_s8  ;;  %925 = vrot.lane.b32.xlu0 %v921_v5, %s8274_s13  ;;  %s5304_s8 = sld [smem:[#allocation3 + $0x187]]  ;;  %v469_v4 = vstv %s5289_s26  ;;  %v504_v5 = vstv %s5291_s28  ;;  %s8307_s26 = smov 126  }
 0x1d2   : > { %s5390_s28 = sld [smem:[#allocation3 + $0x103]] }
 0x1d5   : > { %927 = vrot.lane.b32.xlu1 %v922_v7, %s8274_s13  ;;  %939 = vrot.lane.b32.xlu0 %v935_v8, %s8274_s13  ;;  %v510_v7 = vstv %s5308_s1  ;;  %v475_v8 = vstv %s5310_s2  ;;  %s5475_s1 = sld [smem:[#allocation3 + $0x208]] }
 0x1d6   : > { %s5529_s2 = sld [smem:[#allocation3 + $0x288]] }
 0x1d7   : > { %v1124_v55 = vstv %s5304_s8  ;;  %s5354_s8 = sld [smem:[#allocation3 + $0x307]] }
 0x1d8   : > { %v1125_v61 = vmul.f32 %v1124_v55, %v5282_v34  ;;  %v1126_v12 = vmul.f32 %v1124_v55, %v5301_v41  ;;  %v766_v55 = vstv %s5366_s20  ;;  %s5637_s20 = sld [smem:[#allocation3 + $0x20a]] }
 0x1d9   : > { %941 = vrot.lane.b32.xlu1 %v936_v10, %s8274_s13  ;;  %953 = vrot.lane.b32.xlu0 %v949_v11, %s8274_s13 }
 0x1dd   : > { %955 = vrot.lane.b32.xlu1 %v950_v13, %s8274_s13  ;;  %967 = vrot.lane.b32.xlu0 %v963_v14, %s8274_s13  ;;  %v489_v14 = vadd.f32 %v487_v62, %v460_v57  ;;  %v1166_v42 = vstv %s5354_s8  ;;  %v500_v62 = vmul.f32 %v498_v3, %v5119_v53  ;;  %s5488_s8 = sld [smem:[#allocation3 + $0x303]] }
 0x1e1   : > { %969 = vrot.lane.b32.xlu1 %v964_v16, %s8274_s13  ;;  %981 = vrot.lane.b32.xlu0 %v977_v17, %s8274_s13  ;;  %v493_v16 = vmul.f32 %v492_v0, %v5113_v48  ;;  %v1152_v17 = vstv %s5338_s23  ;;  %s5409_s23 = sld [smem:[#allocation3 + $0x183]] }
 0x1e3   : > { %v5244_v19 = vpop.permute.xlu0 %539 }
 0x1e4   : > { %v545_v22 = vadd.f32 %v5244_v19, %v489_v14 }
 0x1e5   : > { %983 = vrot.lane.b32.xlu1 %v978_v20, %s8274_s13  ;;  %995 = vrot.lane.b32.xlu0 %v991_v21, %s8274_s13  ;;  %v478_v20 = vstv %s5325_s3  ;;  %v760_v21 = vstv %s5343_s22  ;;  %s5402_s22 = sld [smem:[#allocation3 + $0x88]] }
 0x1e6   : > { %v761_v19 = vmul.f32 %v760_v21, %v5182_v39  ;;  %s5570_s3 = sld [smem:[#allocation3 + $0x388]] }
 0x1e7   : > { %v5257_v23 = vpop.permute.xlu1 %541  ;;  %v5261_v24 = vpop.permute.xlu0 %553 }
 0x1e9   : > { %997 = vrot.lane.b32.xlu1 %v992_v25, %s8274_s13  ;;  %1009 = vrot.lane.b32.xlu0 %v1005_v27, %s8274_s13  ;;  %v499_v25 = vmul.f32 %v498_v3, %v5113_v48  ;;  %v522_v27 = vstv %s5327_s30  ;;  %v506_v3 = vmul.f32 %v504_v5, %v5119_v53  ;;  %s5586_s30 = sld [smem:[#allocation3 + $0xa]] }
 0x1eb   : > { %v5274_v29 = vpop.permute.xlu1 %555  ;;  %v5278_v30 = vpop.permute.xlu0 %567 }
 0x1ed   : > { %1011 = vrot.lane.b32.xlu1 %v1006_v32, %s8274_s13  ;;  %1023 = vrot.lane.b32.xlu0 %v1019_v33, %s8274_s13  ;;  %v528_v32 = vstv %s5345_s27  ;;  %s5552_s27 = sld [smem:[#allocation3 + $0x308]] }
 0x1ef   : > { %v5293_v36 = vpop.permute.xlu1 %569  ;;  %v5295_v37 = vpop.permute.xlu0 %581 }
 0x1f1   : > { %1025 = vrot.lane.b32.xlu1 %v1020_v38, %s8274_s13  ;;  %1087 = vrot.lane.b32.xlu0 %v1083_v40, %s8306_s0  ;;  %s5321_s13 = sld [smem:[#allocation3 + $0x207]]  ;;  %v1153_v40 = vmul.f32 %v1152_v17, %v5282_v34 }
 0x1f3   : > { %v5312_v44 = vpop.permute.xlu1 %583  ;;  %v5314_v45 = vpop.permute.xlu0 %595 }
 0x1f5   : > { %1089 = vrot.lane.b32.xlu1 %v1084_v46, %s8306_s0  ;;  %1101 = vrot.lane.b32.xlu0 %v1097_v47, %s8306_s0  ;;  %v490_v46 = vadd.f32 %v488_v15, %v460_v57  ;;  %v495_v47 = vadd.f32 %v493_v16, %v463_v63  ;;  %v767_v15 = vmul.f32 %v766_v55, %v5182_v39 }
 0x1f6   : > { %v511_v16 = vmul.f32 %v510_v7, %v5113_v48 }
 0x1f7   : > { %v5329_v50 = vpop.permute.xlu1 %597  ;;  %v5331_v51 = vpop.permute.xlu0 %609  ;;  %v1138_v1 = vstv %s5321_s13  ;;  %s5383_s13 = sld [smem:[#allocation3 + $0x8]]  ;;  %v546_v56 = vadd.f32 %v5257_v23, %v490_v46  ;;  %v559_v57 = vadd.f32 %v5261_v24, %v495_v47  ;;  %v762_v24 = vmul.f32 %v760_v21, %v5188_v43 }
 0x1f8   : > { %v1139_v13 = vmul.f32 %v1138_v1, %v5282_v34  ;;  %v1140_v38 = vmul.f32 %v1138_v1, %v5301_v41  ;;  %v1168_v47 = vmul.f32 %v1166_v42, %v5301_v41 }
 0x1f9   : > { %1103 = vrot.lane.b32.xlu1 %v1098_v52, %s8306_s0  ;;  %1115 = vrot.lane.b32.xlu0 %v1111_v54, %s8306_s0  ;;  %v496_v52 = vadd.f32 %v494_v18, %v463_v63  ;;  %v1180_v54 = vstv %s5360_s19  ;;  %v505_v63 = vmul.f32 %v504_v5, %v5113_v48  ;;  %v772_v18 = vstv %s5390_s28  ;;  %s5626_s19 = sld [smem:[#allocation3 + $0x18a]] }
 0x1fa   : > { %s5652_s28 = sld [smem:[#allocation3 + $0x6]] }
 0x1fb   : > { %v5348_v58 = vpop.permute.xlu1 %611  ;;  %v5350_v59 = vpop.permute.xlu0 %623 }
 0x1fd   : > { %1117 = vrot.lane.b32.xlu1 %v1112_v60, %s8306_s0  ;;  %1129 = vrot.lane.b32.xlu0 %v1125_v61, %s8306_s0  ;;  %v501_v60 = vadd.f32 %v499_v25, %v466_v2 }
 0x1ff   : > { %v5374_v10 = vpop.permute.xlu1 %625  ;;  %v5376_v11 = vpop.permute.xlu0 %637  ;;  %v573_v21 = vadd.f32 %v5278_v30, %v501_v60  ;;  %v768_v30 = vmul.f32 %v766_v55, %v5188_v43 }
 0x201   : > { %1131 = vrot.lane.b32.xlu1 %v1126_v12, %s8306_s0  ;;  %1143 = vrot.lane.b32.xlu0 %v1139_v13, %s8306_s0  ;;  %v1154_v12 = vmul.f32 %v1152_v17, %v5301_v41  ;;  %v1167_v13 = vmul.f32 %v1166_v42, %v5282_v34  ;;  %v1194_v17 = vstv %s5383_s13  ;;  %v1208_v42 = vstv %s5402_s22  ;;  %s5648_s13 = sld [smem:[#allocation3 + $0x28a]] }
 0x202   : > { %s5661_s22 = sld [smem:[#allocation3 + $0x30a]] }
 0x203   : > { %v5397_v33 = vpop.permute.xlu1 %639  ;;  %v652_v35 = vpop.permute.xlu0 %651 }
 0x204   : > { %v657_v49 = vadd.f32 %v652_v35, %v545_v22  ;;  %v560_v22 = vadd.f32 %v5274_v29, %v496_v52  ;;  %v502_v35 = vadd.f32 %v500_v62, %v466_v2  ;;  %v773_v52 = vmul.f32 %v772_v18, %v5182_v39 }
 0x205   : > { %1145 = vrot.lane.b32.xlu1 %v1140_v38, %s8306_s0  ;;  %1157 = vrot.lane.b32.xlu0 %v1153_v40, %s8306_s0  ;;  %v507_v38 = vadd.f32 %v505_v63, %v469_v4  ;;  %v508_v2 = vadd.f32 %v506_v3, %v469_v4  ;;  %v517_v63 = vmul.f32 %v516_v9, %v5113_v48  ;;  %v784_v3 = vstv %s5433_s17  ;;  %s5679_s17 = sld [smem:[#allocation3 + $0x106]] }
 0x206   : > { %v5415_v61 = vadd.f32 %v761_v19, %v657_v49  ;;  %v1181_v49 = vmul.f32 %v1180_v54, %v5282_v34  ;;  %v574_v60 = vadd.f32 %v5293_v36, %v502_v35  ;;  %v1195_v36 = vmul.f32 %v1194_v17, %v5282_v34 }
 0x207   : > { %v654_v0 = vpop.permute.xlu1 %653  ;;  %v666_v1 = vpop.permute.xlu0 %665  ;;  %v587_v55 = vadd.f32 %v5295_v37, %v507_v38 }
 0x208   : > { %v658_v23 = vadd.f32 %v654_v0, %v546_v56  ;;  %v671_v14 = vadd.f32 %v666_v1, %v559_v57  ;;  %v512_v56 = vmul.f32 %v510_v7, %v5119_v53  ;;  %v778_v57 = vstv %s5409_s23  ;;  %s5665_s23 = sld [smem:[#allocation3 + $0x86]] }
 0x209   : > { %1159 = vrot.lane.b32.xlu1 %v1154_v12, %s8306_s0  ;;  %1171 = vrot.lane.b32.xlu0 %v1167_v13, %s8306_s0  ;;  %v513_v7 = vadd.f32 %v511_v16, %v472_v6  ;;  %v1182_v12 = vmul.f32 %v1180_v54, %v5301_v41  ;;  %v1222_v54 = vstv %s5421_s7  ;;  %v588_v16 = vadd.f32 %v5312_v44, %v508_v2  ;;  %s5673_s7 = sld [smem:[#allocation3 + $0x38a]] }
 0x20a   : > { %v5437_v25 = vadd.f32 %v762_v24, %v658_v23  ;;  %v5439_v5 = vadd.f32 %v767_v15, %v671_v14  ;;  %v774_v23 = vmul.f32 %v772_v18, %v5188_v43  ;;  %v779_v14 = vmul.f32 %v778_v57, %v5182_v39 }
 0x20b   : > { %v668_v40 = vpop.permute.xlu1 %667  ;;  %v680_v46 = vpop.permute.xlu0 %679  ;;  %v514_v24 = vadd.f32 %v512_v56, %v472_v6  ;;  %v518_v15 = vmul.f32 %v516_v9, %v5119_v53  ;;  %v601_v18 = vadd.f32 %v5314_v45, %v513_v7  ;;  %v519_v9 = vadd.f32 %v517_v63, %v475_v8 }
 0x20c   : > { %v672_v29 = vadd.f32 %v668_v40, %v560_v22  ;;  %v685_v19 = vadd.f32 %v680_v46, %v573_v21  ;;  %v523_v21 = vmul.f32 %v522_v27, %v5113_v48  ;;  %v1196_v40 = vmul.f32 %v1194_v17, %v5301_v41 }
 0x20d   : > { %1173 = vrot.lane.b32.xlu1 %v1168_v47, %s8306_s0  ;;  %1185 = vrot.lane.b32.xlu0 %v1181_v49, %s8306_s0  ;;  %v1209_v46 = vmul.f32 %v1208_v42, %v5282_v34  ;;  %v780_v47 = vmul.f32 %v778_v57, %v5188_v43  ;;  %v785_v49 = vmul.f32 %v784_v3, %v5182_v39  ;;  %v1236_v17 = vstv %s5447_s15  ;;  %s5687_s15 = sld [smem:[#allocation3 + $0xb]] }
 0x20e   : > { %v5464_v62 = vadd.f32 %v768_v30, %v672_v29  ;;  %v5466_v4 = vadd.f32 %v773_v52, %v685_v19  ;;  %v520_v29 = vadd.f32 %v518_v15, %v475_v8  ;;  %v524_v19 = vmul.f32 %v522_v27, %v5119_v53 }
 0x20f   : > { %v682_v0 = vpop.permute.xlu1 %681  ;;  %v694_v1 = vpop.permute.xlu0 %693  ;;  %v790_v30 = vstv %s5460_s29  ;;  %v602_v52 = vadd.f32 %v5329_v50, %v514_v24  ;;  %v615_v2 = vadd.f32 %v5331_v51, %v519_v9  ;;  %v525_v27 = vadd.f32 %v523_v21, %v478_v20  ;;  %s5694_s29 = sld [smem:[#allocation3 + $0x186]] }
 0x210   : > { %v686_v13 = vadd.f32 %v682_v0, %v574_v60  ;;  %v699_v37 = vadd.f32 %v694_v1, %v587_v55  ;;  %v529_v57 = vmul.f32 %v528_v32, %v5113_v48  ;;  %v1210_v7 = vmul.f32 %v1208_v42, %v5301_v41 }
 0x211   : > { %1187 = vrot.lane.b32.xlu1 %v1182_v12, %s8306_s0  ;;  %1199 = vrot.lane.b32.xlu0 %v1195_v36, %s8307_s26  ;;  %v1223_v50 = vmul.f32 %v1222_v54, %v5282_v34  ;;  %v786_v0 = vmul.f32 %v784_v3, %v5188_v43  ;;  %v791_v1 = vmul.f32 %v790_v30, %v5182_v39  ;;  %v1250_v48 = vstv %s5475_s1  ;;  %s5705_s1 = sld [smem:[#allocation3 + $0x8b]] }
 0x212   : > { %v5492_v22 = vadd.f32 %v774_v23, %v686_v13  ;;  %v5494_v6 = vadd.f32 %v779_v14, %v699_v37  ;;  %v530_v12 = vmul.f32 %v528_v32, %v5119_v53  ;;  %v796_v42 = vstv %s5488_s8  ;;  %s5712_s8 = sld [smem:[#allocation3 + $0x206]] }
 0x213   : > { %v696_v35 = vpop.permute.xlu1 %695  ;;  %v708_v38 = vpop.permute.xlu0 %707  ;;  %v616_v36 = vadd.f32 %v5348_v58, %v520_v29  ;;  %v629_v13 = vadd.f32 %v5350_v59, %v525_v27  ;;  %v526_v14 = vadd.f32 %v524_v19, %v478_v20  ;;  %v531_v24 = vadd.f32 %v529_v57, %v481_v28 }
 0x214   : > { %v700_v44 = vadd.f32 %v696_v35, %v588_v16  ;;  %v713_v45 = vadd.f32 %v708_v38, %v601_v18  ;;  %v1224_v15 = vmul.f32 %v1222_v54, %v5301_v41  ;;  %v1237_v3 = vmul.f32 %v1236_v17, %v5282_v34 }
 0x215   : > { %1201 = vrot.lane.b32.xlu1 %v1196_v40, %s8307_s26  ;;  %1213 = vrot.lane.b32.xlu0 %v1209_v46, %s8307_s26  ;;  %v792_v59 = vmul.f32 %v790_v30, %v5188_v43  ;;  %v797_v18 = vmul.f32 %v796_v42, %v5182_v39  ;;  %v802_v20 = vstv %s5514_s11  ;;  %v630_v9 = vadd.f32 %v5374_v10, %v526_v14  ;;  %s5725_s11 = sld [smem:[#allocation3 + $0x10b]] }
 0x216   : > { %v5518_v56 = vadd.f32 %v780_v47, %v700_v44  ;;  %v5520_v8 = vadd.f32 %v785_v49, %v713_v45  ;;  %v643_v54 = vadd.f32 %v5376_v11, %v531_v24  ;;  %v532_v38 = vadd.f32 %v530_v12, %v481_v28 }
 0x217   : > { %v710_v60 = vpop.permute.xlu1 %709  ;;  %v722_v55 = vpop.permute.xlu0 %721  ;;  %v1238_v44 = vmul.f32 %v1236_v17, %v5301_v41  ;;  %v1251_v45 = vmul.f32 %v1250_v48, %v5282_v34  ;;  %v1264_v47 = vstv %s5529_s2  ;;  %v798_v10 = vmul.f32 %v796_v42, %v5188_v43  ;;  %s5732_s2 = sld [smem:[#allocation3 + $0x286]] }
 0x218   : > { %v714_v51 = vadd.f32 %v710_v60, %v602_v52  ;;  %v727_v63 = vadd.f32 %v722_v55, %v615_v2  ;;  %v803_v11 = vmul.f32 %v802_v20, %v5182_v39  ;;  %v644_v28 = vadd.f32 %v5397_v33, %v532_v38 }
 0x219   : > { %1215 = vrot.lane.b32.xlu1 %v1210_v7, %s8307_s26  ;;  %1227 = vrot.lane.b32.xlu0 %v1223_v50, %s8307_s26  ;;  %v1252_v2 = vmul.f32 %v1250_v48, %v5301_v41  ;;  %v1265_v27 = vmul.f32 %v1264_v47, %v5282_v34  ;;  %v1278_v39 = vstv %s5552_s27  ;;  %v804_v60 = vmul.f32 %v802_v20, %v5188_v43  ;;  %v5610_v48 = vld [vmem:[#allocation2 + $0x18] sm:$0xff]  ;;  %s5745_s27 = sld [smem:[#allocation3 + $0x18b]] }
 0x21a   : > { %v5542_v37 = vadd.f32 %v786_v0, %v714_v51  ;;  %v5544_v23 = vadd.f32 %v791_v1, %v727_v63  ;;  %v1266_v50 = vmul.f32 %v1264_v47, %v5301_v41  ;;  %v1279_v51 = vmul.f32 %v1278_v39, %v5282_v34 }
 0x21b   : > { %v724_v53 = vpop.permute.xlu1 %723  ;;  %v736_v32 = vpop.permute.xlu0 %735  ;;  %v1292_v63 = vstv %s5570_s3  ;;  %v1280_v1 = vmul.f32 %v1278_v39, %v5301_v41  ;;  %v1357_v42 = vstv %s5586_s30  ;;  %v1399_v38 = vstv %s5626_s19  ;;  %s5752_s3 = sld [smem:[#allocation3 + $0x306]] }
 0x21c   : > { %v728_v16 = vadd.f32 %v724_v53, %v616_v36  ;;  %v741_v58 = vadd.f32 %v736_v32, %v629_v13  ;;  %v1293_v12 = vmul.f32 %v1292_v63, %v5282_v34  ;;  %v1294_v14 = vmul.f32 %v1292_v63, %v5301_v41  ;;  %v5623_v53 = vld [vmem:[#allocation2 + $0x20] sm:$0xff]  ;;  %s5765_s30 = sld [smem:[#allocation3 + $0x20b]] }
 0x21d   : > { %1229 = vrot.lane.b32.xlu1 %v1224_v15, %s8307_s26  ;;  %1241 = vrot.lane.b32.xlu0 %v1237_v3, %s8307_s26  ;;  %v1358_v24 = vmul.f32 %v1357_v42, %v5610_v48  ;;  %v1371_v32 = vstv %s5600_s16  ;;  %v1413_v47 = vstv %s5637_s20  ;;  %s5772_s16 = sld [smem:[#allocation3 + $0x386]] }
 0x21e   : > { %v5561_v21 = vadd.f32 %v792_v59, %v728_v16  ;;  %v5563_v35 = vadd.f32 %v797_v18, %v741_v58  ;;  %v1359_v16 = vmul.f32 %v1357_v42, %v5623_v53  ;;  %v1372_v58 = vmul.f32 %v1371_v32, %v5610_v48  ;;  %s5803_s19 = sld [smem:[#allocation3 + $0x30b]] }
 0x21f   : > { %v738_v40 = vpop.permute.xlu1 %737  ;;  %v750_v46 = vpop.permute.xlu0 %749  ;;  %v1385_v59 = vstv %s5613_s12  ;;  %v1415_v39 = vmul.f32 %v1413_v47, %v5623_v53  ;;  %s5785_s12 = sld [smem:[#allocation3 + $0x28b]] }
 0x220   : > { %v742_v49 = vadd.f32 %v738_v40, %v630_v9  ;;  %v755_v29 = vadd.f32 %v750_v46, %v643_v54  ;;  %v1373_v9 = vmul.f32 %v1371_v32, %v5623_v53  ;;  %v1386_v54 = vmul.f32 %v1385_v59, %v5610_v48  ;;  %s5821_s20 = sld [smem:[#allocation3 + $0x38b]] }
 0x221   : > { %1243 = vrot.lane.b32.xlu1 %v1238_v44, %s8307_s26  ;;  %1255 = vrot.lane.b32.xlu0 %v1251_v45, %s8307_s26  ;;  %v1387_v44 = vmul.f32 %v1385_v59, %v5623_v53  ;;  %v1400_v45 = vmul.f32 %v1399_v38, %v5610_v48 }
 0x222   : > { %v5577_v19 = vadd.f32 %v798_v10, %v742_v49  ;;  %v5579_v17 = vadd.f32 %v803_v11, %v755_v29  ;;  %v1401_v10 = vmul.f32 %v1399_v38, %v5623_v53  ;;  %v1414_v11 = vmul.f32 %v1413_v47, %v5610_v48 }
 0x223   : > { %v752_v30 = vpop.permute.xlu1 %751  ;;  %v5581_v52 = vpop.permute.xlu0 %813 }
 0x224   : > { %v756_v57 = vadd.f32 %v752_v30, %v644_v28  ;;  %v1427_v28 = vstv %s5648_s13  ;;  %v1034_v30 = vstv %s5652_s28  ;;  %s5838_s13 = sld [smem:[#allocation3 + $0xd]] }
 0x225   : > { %1257 = vrot.lane.b32.xlu1 %v1252_v2, %s8307_s26  ;;  %1269 = vrot.lane.b32.xlu0 %v1265_v27, %s8307_s26  ;;  %v819_v2 = vadd.f32 %v5581_v52, %v5415_v61  ;;  %v1035_v63 = vmul.f32 %v1034_v30, %v5282_v34  ;;  %s5852_s28 = sld [smem:[#allocation3 + $0x8d]] }
 0x226   : > { %v5591_v33 = vadd.f32 %v804_v60, %v756_v57  ;;  %v1428_v60 = vmul.f32 %v1427_v28, %v5610_v48 }
 0x227   : > { %v5593_v55 = vpop.permute.xlu1 %815  ;;  %v5595_v7 = vpop.permute.xlu0 %827 }
 0x228   : > { %v820_v61 = vadd.f32 %v5593_v55, %v5437_v25  ;;  %v833_v52 = vadd.f32 %v5595_v7, %v5439_v5  ;;  %v1046_v5 = vstv %s5679_s17  ;;  %s5900_s17 = sld [smem:[#allocation3 + $0x28d]] }
 0x229   : > { %1271 = vrot.lane.b32.xlu1 %v1266_v50, %s8307_s26  ;;  %1283 = vrot.lane.b32.xlu0 %v1279_v51, %s8307_s26  ;;  %v1441_v51 = vstv %s5661_s22  ;;  %s5865_s22 = sld [smem:[#allocation3 + $0x10d]] }
 0x22a   : > { %v1442_v32 = vmul.f32 %v1441_v51, %v5610_v48  ;;  %v1443_v47 = vmul.f32 %v1441_v51, %v5623_v53 }
 0x22b   : > { %v5604_v43 = vpop.permute.xlu1 %829  ;;  %v5606_v0 = vpop.permute.xlu0 %841 }
 0x22c   : > { %v834_v55 = vadd.f32 %v5604_v43, %v5464_v62  ;;  %v847_v7 = vadd.f32 %v5606_v0, %v5466_v4  ;;  %v1047_v4 = vmul.f32 %v1046_v5, %v5282_v34  ;;  %v1052_v0 = vstv %s5694_s29  ;;  %s5913_s29 = sld [smem:[#allocation3 + $0x30d]] }
 0x22d   : > { %1285 = vrot.lane.b32.xlu1 %v1280_v1, %s8307_s26  ;;  %1297 = vrot.lane.b32.xlu0 %v1293_v12, %s8307_s26  ;;  %v1040_v1 = vstv %s5665_s23  ;;  %s5878_s23 = sld [smem:[#allocation3 + $0x18d]] }
 0x22e   : > { %v1041_v25 = vmul.f32 %v1040_v1, %v5282_v34  ;;  %v1042_v43 = vmul.f32 %v1040_v1, %v5301_v41  ;;  %v1483_v1 = vstv %s5705_s1  ;;  %s5917_s1 = sld [smem:[#allocation3 + $0x89]] }
 0x22f   : > { %v5617_v36 = vpop.permute.xlu1 %843  ;;  %v5619_v13 = vpop.permute.xlu0 %855 }
 0x231   : > { %1299 = vrot.lane.b32.xlu1 %v1294_v14, %s8307_s26  ;;  %1362 = vrot.lane.b32.xlu0 %v1358_v24, %s8306_s0  ;;  %v1429_v24 = vmul.f32 %v1427_v28, %v5623_v53 }
 0x233   : > { %v5630_v15 = vpop.permute.xlu1 %857  ;;  %v5632_v3 = vpop.permute.xlu0 %869 }
 0x235   : > { %1364 = vrot.lane.b32.xlu1 %v1359_v16, %s8306_s0  ;;  %1376 = vrot.lane.b32.xlu0 %v1372_v58, %s8306_s0  ;;  %v1455_v16 = vstv %s5673_s7  ;;  %s5889_s7 = sld [smem:[#allocation3 + $0x20d]] }
 0x236   : > { %v1457_v51 = vmul.f32 %v1455_v16, %v5623_v53 }
 0x237   : > { %v5641_v18 = vpop.permute.xlu1 %871  ;;  %v5643_v20 = vpop.permute.xlu0 %883 }
 0x239   : > { %1378 = vrot.lane.b32.xlu1 %v1373_v9, %s8306_s0  ;;  %1390 = vrot.lane.b32.xlu0 %v1386_v54, %s8306_s0  ;;  %v1036_v9 = vmul.f32 %v1034_v30, %v5301_v41  ;;  %v848_v30 = vadd.f32 %v5617_v36, %v5492_v22  ;;  %v1048_v36 = vmul.f32 %v1046_v5, %v5301_v41 }
 0x23a   : > { %v876_v5 = vadd.f32 %v5641_v18, %v5542_v37 }
 0x23b   : > { %v5654_v40 = vpop.permute.xlu1 %885  ;;  %v5656_v46 = vpop.permute.xlu0 %897 }
 0x23d   : > { %1392 = vrot.lane.b32.xlu1 %v1387_v44, %s8306_s0  ;;  %1404 = vrot.lane.b32.xlu0 %v1400_v45, %s8306_s0 }
 0x23f   : > { %v5667_v49 = vpop.permute.xlu1 %899  ;;  %v5669_v29 = vpop.permute.xlu0 %911 }
 0x241   : > { %1406 = vrot.lane.b32.xlu1 %v1401_v10, %s8306_s0  ;;  %1418 = vrot.lane.b32.xlu0 %v1414_v11, %s8306_s0  ;;  %v1456_v10 = vmul.f32 %v1455_v16, %v5610_v48  ;;  %v1469_v11 = vstv %s5687_s15  ;;  %s5904_s15 = sld [smem:[#allocation3 + $0x9]] }
 0x243   : > { %v5683_v27 = vpop.permute.xlu1 %913  ;;  %v926_v57 = vpop.permute.xlu0 %925 }
 0x244   : > { %v931_v50 = vadd.f32 %v926_v57, %v819_v2  ;;  %v861_v2 = vadd.f32 %v5619_v13, %v5494_v6  ;;  %v1053_v6 = vmul.f32 %v1052_v0, %v5282_v34  ;;  %v1058_v13 = vstv %s5712_s8  ;;  %s5925_s8 = sld [smem:[#allocation3 + $0x38d]] }
 0x245   : > { %1420 = vrot.lane.b32.xlu1 %v1415_v39, %s8306_s0  ;;  %1432 = vrot.lane.b32.xlu0 %v1428_v60, %s8306_s0  ;;  %v1060_v18 = vmul.f32 %v1058_v13, %v5301_v41 }
 0x246   : > { %v5700_v12 = vadd.f32 %v1035_v63, %v931_v50  ;;  %v1470_v63 = vmul.f32 %v1469_v11, %v5610_v48 }
 0x247   : > { %v928_v42 = vpop.permute.xlu1 %927  ;;  %v940_v14 = vpop.permute.xlu0 %939 }
 0x248   : > { %v932_v58 = vadd.f32 %v928_v42, %v820_v61  ;;  %v945_v59 = vadd.f32 %v940_v14, %v833_v52  ;;  %v862_v52 = vadd.f32 %v5630_v15, %v5518_v56  ;;  %v875_v42 = vadd.f32 %v5632_v3, %v5520_v8 }
 0x249   : > { %1434 = vrot.lane.b32.xlu1 %v1429_v24, %s8306_s0  ;;  %1446 = vrot.lane.b32.xlu0 %v1442_v32, %s8306_s0  ;;  %v1054_v15 = vmul.f32 %v1052_v0, %v5301_v41  ;;  %v1059_v8 = vmul.f32 %v1058_v13, %v5282_v34  ;;  %v1064_v3 = vstv %s5732_s2  ;;  %s5939_s2 = sld [smem:[#allocation3 + $0xe]] }
 0x24a   : > { %v5718_v54 = vadd.f32 %v1036_v9, %v932_v58  ;;  %v5720_v38 = vadd.f32 %v1041_v25, %v945_v59  ;;  %v1471_v58 = vmul.f32 %v1469_v11, %v5623_v53  ;;  %v1484_v59 = vmul.f32 %v1483_v1, %v5610_v48 }
 0x24b   : > { %v942_v44 = vpop.permute.xlu1 %941  ;;  %v954_v45 = vpop.permute.xlu0 %953  ;;  %v1497_v9 = vstv %s5725_s11  ;;  %s5931_s11 = sld [smem:[#allocation3 + $0x109]] }
 0x24c   : > { %v946_v28 = vadd.f32 %v942_v44, %v834_v55  ;;  %v959_v62 = vadd.f32 %v954_v45, %v847_v7  ;;  %v889_v55 = vadd.f32 %v5643_v20, %v5544_v23  ;;  %v1498_v11 = vmul.f32 %v1497_v9, %v5610_v48 }
 0x24d   : > { %1448 = vrot.lane.b32.xlu1 %v1443_v47, %s8306_s0  ;;  %1460 = vrot.lane.b32.xlu0 %v1456_v10, %s8306_s0  ;;  %v1485_v10 = vmul.f32 %v1483_v1, %v5623_v53  ;;  %v1065_v23 = vmul.f32 %v1064_v3, %v5282_v34  ;;  %v1070_v20 = vstv %s5752_s3  ;;  %s5957_s3 = sld [smem:[#allocation3 + $0x8e]] }
 0x24e   : > { %v5738_v57 = vadd.f32 %v1042_v43, %v946_v28  ;;  %v5740_v39 = vadd.f32 %v1047_v4, %v959_v62  ;;  %v1511_v28 = vstv %s5745_s27  ;;  %v890_v43 = vadd.f32 %v5654_v40, %v5561_v21  ;;  %s5946_s27 = sld [smem:[#allocation3 + $0x189]] }
 0x24f   : > { %v956_v60 = vpop.permute.xlu1 %955  ;;  %v968_v50 = vpop.permute.xlu0 %967  ;;  %v903_v4 = vadd.f32 %v5656_v46, %v5563_v35  ;;  %v1066_v21 = vmul.f32 %v1064_v3, %v5301_v41  ;;  %v1071_v35 = vmul.f32 %v1070_v20, %v5282_v34  ;;  %v1076_v40 = vstv %s5772_s16  ;;  %s5977_s16 = sld [smem:[#allocation3 + $0x10e]] }
 0x250   : > { %v960_v61 = vadd.f32 %v956_v60, %v848_v30  ;;  %v973_v22 = vadd.f32 %v968_v50, %v861_v2  ;;  %v1499_v50 = vmul.f32 %v1497_v9, %v5623_v53  ;;  %v904_v46 = vadd.f32 %v5667_v49, %v5577_v19 }
 0x251   : > { %1462 = vrot.lane.b32.xlu1 %v1457_v51, %s8306_s0  ;;  %1474 = vrot.lane.b32.xlu0 %v1470_v63, %s8307_s26  ;;  %v1512_v51 = vmul.f32 %v1511_v28, %v5610_v48  ;;  %v1525_v63 = vstv %s5765_s30  ;;  %v1072_v19 = vmul.f32 %v1070_v20, %v5301_v41  ;;  %v918_v49 = vadd.f32 %v5683_v27, %v5591_v33  ;;  %s5964_s30 = sld [smem:[#allocation3 + $0x209]] }
 0x252   : > { %v5758_v14 = vadd.f32 %v1048_v36, %v960_v61  ;;  %v5760_v24 = vadd.f32 %v1053_v6, %v973_v22  ;;  %v917_v22 = vadd.f32 %v5669_v29, %v5579_v17  ;;  %v1077_v17 = vmul.f32 %v1076_v40, %v5282_v34 }
 0x253   : > { %v970_v32 = vpop.permute.xlu1 %969  ;;  %v982_v16 = vpop.permute.xlu0 %981  ;;  %v1553_v3 = vstv %s5803_s19  ;;  %s5997_s19 = sld [smem:[#allocation3 + $0x18e]] }
 0x254   : > { %v974_v25 = vadd.f32 %v970_v32, %v862_v52  ;;  %v987_v56 = vadd.f32 %v982_v16, %v875_v42  ;;  %v1513_v42 = vmul.f32 %v1511_v28, %v5623_v53  ;;  %v1526_v32 = vmul.f32 %v1525_v63, %v5610_v48 }
 0x255   : > { %1476 = vrot.lane.b32.xlu1 %v1471_v58, %s8307_s26  ;;  %1488 = vrot.lane.b32.xlu0 %v1484_v59, %s8307_s26  ;;  %v1539_v16 = vstv %s5785_s12  ;;  %v1555_v28 = vmul.f32 %v1553_v3, %v5623_v53  ;;  %s5984_s12 = sld [smem:[#allocation3 + $0x289]] }
 0x256   : > { %v5778_v7 = vadd.f32 %v1054_v15, %v974_v25  ;;  %v5780_v44 = vadd.f32 %v1059_v8, %v987_v56  ;;  %v1527_v15 = vmul.f32 %v1525_v63, %v5623_v53  ;;  %v1540_v8 = vmul.f32 %v1539_v16, %v5610_v48 }
 0x257   : > { %v984_v45 = vpop.permute.xlu1 %983  ;;  %v996_v47 = vpop.permute.xlu0 %995 }
 0x258   : > { %v988_v62 = vadd.f32 %v984_v45, %v876_v5  ;;  %v1001_v37 = vadd.f32 %v996_v47, %v889_v55  ;;  %v1078_v5 = vmul.f32 %v1076_v40, %v5301_v41  ;;  %v1541_v45 = vmul.f32 %v1539_v16, %v5623_v53 }
 0x259   : > { %1490 = vrot.lane.b32.xlu1 %v1485_v10, %s8307_s26  ;;  %1502 = vrot.lane.b32.xlu0 %v1498_v11, %s8307_s26  ;;  %v1554_v47 = vmul.f32 %v1553_v3, %v5610_v48  ;;  %v1567_v10 = vstv %s5821_s20  ;;  %v1687_v16 = vstv %s5889_s7  ;;  %s6004_s20 = sld [smem:[#allocation3 + $0x309]] }
 0x25a   : > { %v5796_v0 = vadd.f32 %v1060_v18, %v988_v62  ;;  %v5798_v30 = vadd.f32 %v1065_v23, %v1001_v37  ;;  %v1568_v62 = vmul.f32 %v1567_v10, %v5610_v48  ;;  %v5862_v37 = vld [vmem:[#allocation2 + $0x19] sm:$0xff]  ;;  %v1631_v18 = vstv %s5838_s13  ;;  %s6017_s13 = sld [smem:[#allocation3 + $0x20e]] }
 0x25b   : > { %v998_v2 = vpop.permute.xlu1 %997  ;;  %v1010_v60 = vpop.permute.xlu0 %1009  ;;  %s6073_s7 = sld [smem:[#allocation3 + $0x38e]] }
 0x25c   : > { %v1002_v1 = vadd.f32 %v998_v2, %v890_v43  ;;  %v1015_v61 = vadd.f32 %v1010_v60, %v903_v4  ;;  %v1569_v43 = vmul.f32 %v1567_v10, %v5623_v53  ;;  %v1632_v4 = vmul.f32 %v1631_v18, %v5862_v37  ;;  %v5875_v2 = vld [vmem:[#allocation2 + $0x21] sm:$0xff] }
 0x25d   : > { %1504 = vrot.lane.b32.xlu1 %v1499_v50, %s8307_s26  ;;  %1516 = vrot.lane.b32.xlu0 %v1512_v51, %s8307_s26  ;;  %v1645_v60 = vstv %s5852_s28  ;;  %v1633_v63 = vmul.f32 %v1631_v18, %v5875_v2  ;;  %v1689_v3 = vmul.f32 %v1687_v16, %v5875_v2  ;;  %s6024_s28 = sld [smem:[#allocation3 + $0x389]] }
 0x25e   : > { %v5814_v36 = vadd.f32 %v1066_v21, %v1002_v1  ;;  %v5816_v6 = vadd.f32 %v1071_v35, %v1015_v61  ;;  %v1646_v1 = vmul.f32 %v1645_v60, %v5862_v37  ;;  %v1659_v61 = vstv %s5865_s22  ;;  %s6037_s22 = sld [smem:[#allocation3 + $0x28e]] }
 0x25f   : > { %v1012_v13 = vpop.permute.xlu1 %1011  ;;  %v1024_v52 = vpop.permute.xlu0 %1023  ;;  %v1647_v40 = vmul.f32 %v1645_v60, %v5875_v2 }
 0x260   : > { %v1016_v58 = vadd.f32 %v1012_v13, %v904_v46  ;;  %v1029_v59 = vadd.f32 %v1024_v52, %v917_v22  ;;  %v1660_v46 = vmul.f32 %v1659_v61, %v5862_v37  ;;  %v1673_v22 = vstv %s5878_s23  ;;  %s6055_s23 = sld [smem:[#allocation3 + $0x30e]] }
 0x261   : > { %1518 = vrot.lane.b32.xlu1 %v1513_v42, %s8307_s26  ;;  %1530 = vrot.lane.b32.xlu0 %v1526_v32, %s8307_s26  ;;  %v1661_v42 = vmul.f32 %v1659_v61, %v5875_v2  ;;  %v1674_v32 = vmul.f32 %v1673_v22, %v5862_v37 }
 0x262   : > { %v5829_v29 = vadd.f32 %v1072_v19, %v1016_v58  ;;  %v5831_v9 = vadd.f32 %v1077_v17, %v1029_v59  ;;  %v1675_v19 = vmul.f32 %v1673_v22, %v5875_v2  ;;  %v1688_v17 = vmul.f32 %v1687_v16, %v5862_v37 }
 0x263   : > { %v1026_v25 = vpop.permute.xlu1 %1025  ;;  %v5833_v56 = vpop.permute.xlu0 %1087 }
 0x264   : > { %v1030_v34 = vadd.f32 %v1026_v25, %v918_v49  ;;  %v1701_v49 = vstv %s5900_s17  ;;  %v1309_v25 = vstv %s5904_s15  ;;  %s6090_s17 = sld [smem:[#allocation3 + $0x10]] }
 0x265   : > { %1532 = vrot.lane.b32.xlu1 %v1527_v15, %s8307_s26  ;;  %1544 = vrot.lane.b32.xlu0 %v1540_v8, %s8307_s26  ;;  %v1093_v15 = vadd.f32 %v5833_v56, %v5700_v12  ;;  %v1310_v10 = vmul.f32 %v1309_v25, %v5610_v48  ;;  %s6104_s15 = sld [smem:[#allocation3 + $0x90]] }
 0x266   : > { %v5843_v33 = vadd.f32 %v1078_v5, %v1030_v34  ;;  %v1702_v5 = vmul.f32 %v1701_v49, %v5862_v37 }
 0x267   : > { %v5845_v27 = vpop.permute.xlu1 %1089  ;;  %v5847_v55 = vpop.permute.xlu0 %1101 }
 0x268   : > { %v1094_v12 = vadd.f32 %v5845_v27, %v5718_v54  ;;  %v1107_v56 = vadd.f32 %v5847_v55, %v5720_v38  ;;  %v1321_v38 = vstv %s5931_s11  ;;  %s6152_s11 = sld [smem:[#allocation3 + $0x290]] }
 0x269   : > { %1546 = vrot.lane.b32.xlu1 %v1541_v45, %s8307_s26  ;;  %1558 = vrot.lane.b32.xlu0 %v1554_v47, %s8307_s26  ;;  %v1715_v47 = vstv %s5913_s29  ;;  %s6117_s29 = sld [smem:[#allocation3 + $0x110]] }
 0x26a   : > { %v1716_v60 = vmul.f32 %v1715_v47, %v5862_v37  ;;  %v1717_v16 = vmul.f32 %v1715_v47, %v5875_v2 }
 0x26b   : > { %v5856_v41 = vpop.permute.xlu1 %1103  ;;  %v5858_v11 = vpop.permute.xlu0 %1115 }
 0x26c   : > { %v1108_v27 = vadd.f32 %v5856_v41, %v5738_v57  ;;  %v1121_v55 = vadd.f32 %v5858_v11, %v5740_v39  ;;  %v1322_v39 = vmul.f32 %v1321_v38, %v5610_v48  ;;  %v1327_v11 = vstv %s5946_s27  ;;  %s6165_s27 = sld [smem:[#allocation3 + $0x310]] }
 0x26d   : > { %1560 = vrot.lane.b32.xlu1 %v1555_v28, %s8307_s26  ;;  %1572 = vrot.lane.b32.xlu0 %v1568_v62, %s8307_s26  ;;  %v1315_v28 = vstv %s5917_s1  ;;  %s6130_s1 = sld [smem:[#allocation3 + $0x190]] }
 0x26e   : > { %v1316_v54 = vmul.f32 %v1315_v28, %v5610_v48  ;;  %v1317_v41 = vmul.f32 %v1315_v28, %v5623_v53  ;;  %v1757_v28 = vstv %s5957_s3  ;;  %s6169_s3 = sld [smem:[#allocation3 + $0x8c]] }
 0x26f   : > { %v5869_v23 = vpop.permute.xlu1 %1117  ;;  %v5871_v20 = vpop.permute.xlu0 %1129 }
 0x271   : > { %1574 = vrot.lane.b32.xlu1 %v1569_v43, %s8307_s26  ;;  %1636 = vrot.lane.b32.xlu0 %v1632_v4, %s8306_s0  ;;  %v1703_v4 = vmul.f32 %v1701_v49, %v5875_v2 }
 0x273   : > { %v5882_v50 = vpop.permute.xlu1 %1131  ;;  %v5884_v51 = vpop.permute.xlu0 %1143 }
 0x275   : > { %1638 = vrot.lane.b32.xlu1 %v1633_v63, %s8306_s0  ;;  %1650 = vrot.lane.b32.xlu0 %v1646_v1, %s8306_s0  ;;  %v1729_v63 = vstv %s5925_s8  ;;  %s6141_s8 = sld [smem:[#allocation3 + $0x210]] }
 0x276   : > { %v1731_v47 = vmul.f32 %v1729_v63, %v5875_v2 }
 0x277   : > { %v5893_v21 = vpop.permute.xlu1 %1145  ;;  %v5895_v35 = vpop.permute.xlu0 %1157 }
 0x279   : > { %1652 = vrot.lane.b32.xlu1 %v1647_v40, %s8306_s0  ;;  %1664 = vrot.lane.b32.xlu0 %v1660_v46, %s8306_s0  ;;  %v1311_v40 = vmul.f32 %v1309_v25, %v5623_v53  ;;  %v1122_v25 = vadd.f32 %v5869_v23, %v5758_v14  ;;  %v1323_v23 = vmul.f32 %v1321_v38, %v5623_v53 }
 0x27a   : > { %v1150_v38 = vadd.f32 %v5893_v21, %v5796_v0 }
 0x27b   : > { %v5906_v13 = vpop.permute.xlu1 %1159  ;;  %v5908_v52 = vpop.permute.xlu0 %1171 }
 0x27d   : > { %1666 = vrot.lane.b32.xlu1 %v1661_v42, %s8306_s0  ;;  %1678 = vrot.lane.b32.xlu0 %v1674_v32, %s8306_s0 }
 0x27f   : > { %v5919_v58 = vpop.permute.xlu1 %1173  ;;  %v5921_v59 = vpop.permute.xlu0 %1185 }
 0x281   : > { %1680 = vrot.lane.b32.xlu1 %v1675_v19, %s8306_s0  ;;  %1692 = vrot.lane.b32.xlu0 %v1688_v17, %s8306_s0  ;;  %v1730_v19 = vmul.f32 %v1729_v63, %v5862_v37  ;;  %v1743_v17 = vstv %s5939_s2  ;;  %s6156_s2 = sld [smem:[#allocation3 + $0xc]] }
 0x283   : > { %v5935_v8 = vpop.permute.xlu1 %1187  ;;  %v1200_v34 = vpop.permute.xlu0 %1199 }
 0x284   : > { %v1205_v45 = vadd.f32 %v1200_v34, %v1093_v15  ;;  %v1135_v15 = vadd.f32 %v5871_v20, %v5760_v24  ;;  %v1328_v24 = vmul.f32 %v1327_v11, %v5610_v48  ;;  %v1333_v20 = vstv %s5964_s30  ;;  %s6177_s30 = sld [smem:[#allocation3 + $0x390]] }
 0x285   : > { %1694 = vrot.lane.b32.xlu1 %v1689_v3, %s8306_s0  ;;  %1706 = vrot.lane.b32.xlu0 %v1702_v5, %s8306_s0  ;;  %v1335_v21 = vmul.f32 %v1333_v20, %v5623_v53 }
 0x286   : > { %v5952_v62 = vadd.f32 %v1310_v10, %v1205_v45  ;;  %v1744_v10 = vmul.f32 %v1743_v17, %v5862_v37 }
 0x287   : > { %v1202_v18 = vpop.permute.xlu1 %1201  ;;  %v1214_v43 = vpop.permute.xlu0 %1213 }
 0x288   : > { %v1206_v1 = vadd.f32 %v1202_v18, %v1094_v12  ;;  %v1219_v61 = vadd.f32 %v1214_v43, %v1107_v56  ;;  %v1136_v56 = vadd.f32 %v5882_v50, %v5778_v7  ;;  %v1149_v18 = vadd.f32 %v5884_v51, %v5780_v44 }
 0x289   : > { %1708 = vrot.lane.b32.xlu1 %v1703_v4, %s8306_s0  ;;  %1720 = vrot.lane.b32.xlu0 %v1716_v60, %s8306_s0  ;;  %v1329_v50 = vmul.f32 %v1327_v11, %v5623_v53  ;;  %v1334_v44 = vmul.f32 %v1333_v20, %v5610_v48  ;;  %v1339_v51 = vstv %s5984_s12  ;;  %s6191_s12 = sld [smem:[#allocation3 + $0x11]] }
 0x28a   : > { %v5970_v46 = vadd.f32 %v1311_v40, %v1206_v1  ;;  %v5972_v22 = vadd.f32 %v1316_v54, %v1219_v61  ;;  %v1745_v1 = vmul.f32 %v1743_v17, %v5875_v2  ;;  %v1758_v61 = vmul.f32 %v1757_v28, %v5862_v37 }
 0x28b   : > { %v1216_v42 = vpop.permute.xlu1 %1215  ;;  %v1228_v32 = vpop.permute.xlu0 %1227  ;;  %v1771_v40 = vstv %s5977_s16  ;;  %s6183_s16 = sld [smem:[#allocation3 + $0x10c]] }
 0x28c   : > { %v1220_v49 = vadd.f32 %v1216_v42, %v1108_v27  ;;  %v1233_v57 = vadd.f32 %v1228_v32, %v1121_v55  ;;  %v1163_v27 = vadd.f32 %v5895_v35, %v5798_v30  ;;  %v1772_v17 = vmul.f32 %v1771_v40, %v5862_v37 }
 0x28d   : > { %1722 = vrot.lane.b32.xlu1 %v1717_v16, %s8306_s0  ;;  %1734 = vrot.lane.b32.xlu0 %v1730_v19, %s8306_s0  ;;  %v1759_v19 = vmul.f32 %v1757_v28, %v5875_v2  ;;  %v1340_v30 = vmul.f32 %v1339_v51, %v5610_v48  ;;  %v1345_v35 = vstv %s6004_s20  ;;  %s6209_s20 = sld [smem:[#allocation3 + $0x91]] }
 0x28e   : > { %v5990_v34 = vadd.f32 %v1317_v41, %v1220_v49  ;;  %v5992_v3 = vadd.f32 %v1322_v39, %v1233_v57  ;;  %v1785_v49 = vstv %s5997_s19  ;;  %v1164_v41 = vadd.f32 %v5906_v13, %v5814_v36  ;;  %s6198_s19 = sld [smem:[#allocation3 + $0x18c]] }
 0x28f   : > { %v1230_v5 = vpop.permute.xlu1 %1229  ;;  %v1242_v45 = vpop.permute.xlu0 %1241  ;;  %v1177_v39 = vadd.f32 %v5908_v52, %v5816_v6  ;;  %v1341_v36 = vmul.f32 %v1339_v51, %v5623_v53  ;;  %v1346_v6 = vmul.f32 %v1345_v35, %v5610_v48  ;;  %v1351_v13 = vstv %s6024_s28  ;;  %s6229_s28 = sld [smem:[#allocation3 + $0x111]] }
 0x290   : > { %v1234_v12 = vadd.f32 %v1230_v5, %v1122_v25  ;;  %v1247_v14 = vadd.f32 %v1242_v45, %v1135_v15  ;;  %v1773_v45 = vmul.f32 %v1771_v40, %v5875_v2  ;;  %v1178_v52 = vadd.f32 %v5919_v58, %v5829_v29 }
 0x291   : > { %1736 = vrot.lane.b32.xlu1 %v1731_v47, %s8306_s0  ;;  %1748 = vrot.lane.b32.xlu0 %v1744_v10, %s8307_s26  ;;  %v1786_v47 = vmul.f32 %v1785_v49, %v5862_v37  ;;  %v1799_v10 = vstv %s6017_s13  ;;  %v1347_v29 = vmul.f32 %v1345_v35, %v5623_v53  ;;  %v1192_v58 = vadd.f32 %v5935_v8, %v5843_v33  ;;  %s6216_s13 = sld [smem:[#allocation3 + $0x20c]] }
 0x292   : > { %v6010_v43 = vadd.f32 %v1323_v23, %v1234_v12  ;;  %v6012_v4 = vadd.f32 %v1328_v24, %v1247_v14  ;;  %v1191_v14 = vadd.f32 %v5921_v59, %v5831_v9  ;;  %v1352_v9 = vmul.f32 %v1351_v13, %v5610_v48 }
 0x293   : > { %v1244_v60 = vpop.permute.xlu1 %1243  ;;  %v1256_v63 = vpop.permute.xlu0 %1255  ;;  %v1827_v51 = vstv %s6055_s23  ;;  %s6249_s23 = sld [smem:[#allocation3 + $0x191]] }
 0x294   : > { %v1248_v54 = vadd.f32 %v1244_v60, %v1136_v56  ;;  %v1261_v7 = vadd.f32 %v1256_v63, %v1149_v18  ;;  %v1787_v18 = vmul.f32 %v1785_v49, %v5875_v2  ;;  %v1800_v60 = vmul.f32 %v1799_v10, %v5862_v37 }
 0x295   : > { %1750 = vrot.lane.b32.xlu1 %v1745_v1, %s8307_s26  ;;  %1762 = vrot.lane.b32.xlu0 %v1758_v61, %s8307_s26  ;;  %v1813_v63 = vstv %s6037_s22  ;;  %v1829_v49 = vmul.f32 %v1827_v51, %v5875_v2  ;;  %s6236_s22 = sld [smem:[#allocation3 + $0x28c]] }
 0x296   : > { %v6030_v55 = vadd.f32 %v1329_v50, %v1248_v54  ;;  %v6032_v42 = vadd.f32 %v1334_v44, %v1261_v7  ;;  %v1801_v50 = vmul.f32 %v1799_v10, %v5875_v2  ;;  %v1814_v44 = vmul.f32 %v1813_v63, %v5862_v37 }
 0x297   : > { %v1258_v32 = vpop.permute.xlu1 %1257  ;;  %v1270_v16 = vpop.permute.xlu0 %1269 }
 0x298   : > { %v1262_v57 = vadd.f32 %v1258_v32, %v1150_v38  ;;  %v1275_v0 = vadd.f32 %v1270_v16, %v1163_v27  ;;  %v1353_v38 = vmul.f32 %v1351_v13, %v5623_v53  ;;  %v1815_v32 = vmul.f32 %v1813_v63, %v5875_v2 }
 0x299   : > { %1764 = vrot.lane.b32.xlu1 %v1759_v19, %s8307_s26  ;;  %1776 = vrot.lane.b32.xlu0 %v1772_v17, %s8307_s26  ;;  %v1828_v16 = vmul.f32 %v1827_v51, %v5862_v37  ;;  %v1841_v19 = vstv %s6073_s7  ;;  %v1961_v63 = vstv %s6141_s8  ;;  %s6256_s7 = sld [smem:[#allocation3 + $0x30c]] }
 0x29a   : > { %v6048_v11 = vadd.f32 %v1335_v21, %v1262_v57  ;;  %v6050_v25 = vadd.f32 %v1340_v30, %v1275_v0  ;;  %v1842_v57 = vmul.f32 %v1841_v19, %v5862_v37  ;;  %v6114_v0 = vld [vmem:[#allocation2 + $0x1a] sm:$0xff]  ;;  %v1905_v21 = vstv %s6090_s17  ;;  %s6269_s17 = sld [smem:[#allocation3 + $0x211]] }
 0x29b   : > { %v1272_v15 = vpop.permute.xlu1 %1271  ;;  %v1284_v5 = vpop.permute.xlu0 %1283  ;;  %s6325_s8 = sld [smem:[#allocation3 + $0x391]] }
 0x29c   : > { %v1276_v28 = vadd.f32 %v1272_v15, %v1164_v41  ;;  %v1289_v12 = vadd.f32 %v1284_v5, %v1177_v39  ;;  %v1843_v41 = vmul.f32 %v1841_v19, %v5875_v2  ;;  %v1906_v39 = vmul.f32 %v1905_v21, %v6114_v0  ;;  %v6127_v15 = vld [vmem:[#allocation2 + $0x22] sm:$0xff] }
 0x29d   : > { %1778 = vrot.lane.b32.xlu1 %v1773_v45, %s8307_s26  ;;  %1790 = vrot.lane.b32.xlu0 %v1786_v47, %s8307_s26  ;;  %v1919_v5 = vstv %s6104_s15  ;;  %v1907_v10 = vmul.f32 %v1905_v21, %v6127_v15  ;;  %v1963_v51 = vmul.f32 %v1961_v63, %v6127_v15  ;;  %s6276_s15 = sld [smem:[#allocation3 + $0x38c]] }
 0x29e   : > { %v6066_v23 = vadd.f32 %v1341_v36, %v1276_v28  ;;  %v6068_v24 = vadd.f32 %v1346_v6, %v1289_v12  ;;  %v1920_v28 = vmul.f32 %v1919_v5, %v6114_v0  ;;  %v1933_v12 = vstv %s6117_s29  ;;  %s6289_s29 = sld [smem:[#allocation3 + $0x291]] }
 0x29f   : > { %v1286_v20 = vpop.permute.xlu1 %1285  ;;  %v1298_v56 = vpop.permute.xlu0 %1297  ;;  %v1921_v13 = vmul.f32 %v1919_v5, %v6127_v15 }
 0x2a0   : > { %v1290_v1 = vadd.f32 %v1286_v20, %v1178_v52  ;;  %v1303_v61 = vadd.f32 %v1298_v56, %v1191_v14  ;;  %v1934_v52 = vmul.f32 %v1933_v12, %v6114_v0  ;;  %v1947_v14 = vstv %s6130_s1  ;;  %s6307_s1 = sld [smem:[#allocation3 + $0x311]] }
 0x2a1   : > { %1792 = vrot.lane.b32.xlu1 %v1787_v18, %s8307_s26  ;;  %1804 = vrot.lane.b32.xlu0 %v1800_v60, %s8307_s26  ;;  %v1935_v18 = vmul.f32 %v1933_v12, %v6127_v15  ;;  %v1948_v60 = vmul.f32 %v1947_v14, %v6114_v0 }
 0x2a2   : > { %v6081_v59 = vadd.f32 %v1347_v29, %v1290_v1  ;;  %v6083_v40 = vadd.f32 %v1352_v9, %v1303_v61  ;;  %v1949_v29 = vmul.f32 %v1947_v14, %v6127_v15  ;;  %v1962_v9 = vmul.f32 %v1961_v63, %v6114_v0 }
 0x2a3   : > { %v1300_v54 = vpop.permute.xlu1 %1299  ;;  %v6085_v7 = vpop.permute.xlu0 %1362 }
 0x2a4   : > { %v1304_v48 = vadd.f32 %v1300_v54, %v1192_v58  ;;  %v1975_v58 = vstv %s6152_s11  ;;  %v1583_v54 = vstv %s6156_s2  ;;  %s6342_s11 = sld [smem:[#allocation3 + $0x13]] }
 0x2a5   : > { %1806 = vrot.lane.b32.xlu1 %v1801_v50, %s8307_s26  ;;  %1818 = vrot.lane.b32.xlu0 %v1814_v44, %s8307_s26  ;;  %v1368_v50 = vadd.f32 %v6085_v7, %v5952_v62  ;;  %v1584_v19 = vmul.f32 %v1583_v54, %v5862_v37  ;;  %s6356_s2 = sld [smem:[#allocation3 + $0x93]] }
 0x2a6   : > { %v6095_v33 = vadd.f32 %v1353_v38, %v1304_v48  ;;  %v1976_v38 = vmul.f32 %v1975_v58, %v6114_v0 }
 0x2a7   : > { %v6097_v8 = vpop.permute.xlu1 %1364  ;;  %v6099_v27 = vpop.permute.xlu0 %1376 }
 0x2a8   : > { %v1369_v62 = vadd.f32 %v6097_v8, %v5970_v46  ;;  %v1382_v7 = vadd.f32 %v6099_v27, %v5972_v22  ;;  %v1595_v22 = vstv %s6183_s16  ;;  %s6404_s16 = sld [smem:[#allocation3 + $0x293]] }
 0x2a9   : > { %1820 = vrot.lane.b32.xlu1 %v1815_v32, %s8307_s26  ;;  %1832 = vrot.lane.b32.xlu0 %v1828_v16, %s8307_s26  ;;  %v1989_v16 = vstv %s6165_s27  ;;  %s6369_s27 = sld [smem:[#allocation3 + $0x113]] }
 0x2aa   : > { %v1990_v5 = vmul.f32 %v1989_v16, %v6114_v0  ;;  %v1991_v63 = vmul.f32 %v1989_v16, %v6127_v15 }
 0x2ab   : > { %v6108_v53 = vpop.permute.xlu1 %1378  ;;  %v6110_v17 = vpop.permute.xlu0 %1390 }
 0x2ac   : > { %v1383_v8 = vadd.f32 %v6108_v53, %v5990_v34  ;;  %v1396_v27 = vadd.f32 %v6110_v17, %v5992_v3  ;;  %v1596_v3 = vmul.f32 %v1595_v22, %v5862_v37  ;;  %v1601_v17 = vstv %s6198_s19  ;;  %s6417_s19 = sld [smem:[#allocation3 + $0x313]] }
 0x2ad   : > { %1834 = vrot.lane.b32.xlu1 %v1829_v49, %s8307_s26  ;;  %1846 = vrot.lane.b32.xlu0 %v1842_v57, %s8307_s26  ;;  %v1589_v49 = vstv %s6169_s3  ;;  %s6382_s3 = sld [smem:[#allocation3 + $0x193]] }
 0x2ae   : > { %v1590_v46 = vmul.f32 %v1589_v49, %v5862_v37  ;;  %v1591_v53 = vmul.f32 %v1589_v49, %v5875_v2  ;;  %v2031_v49 = vstv %s6209_s20  ;;  %s6421_s20 = sld [smem:[#allocation3 + $0x8f]] }
 0x2af   : > { %v6121_v30 = vpop.permute.xlu1 %1392  ;;  %v6123_v35 = vpop.permute.xlu0 %1404 }
 0x2b1   : > { %1848 = vrot.lane.b32.xlu1 %v1843_v41, %s8307_s26  ;;  %1910 = vrot.lane.b32.xlu0 %v1906_v39, %s8306_s0  ;;  %v1977_v39 = vmul.f32 %v1975_v58, %v6127_v15 }
 0x2b3   : > { %v6134_v45 = vpop.permute.xlu1 %1406  ;;  %v6136_v47 = vpop.permute.xlu0 %1418 }
 0x2b5   : > { %1912 = vrot.lane.b32.xlu1 %v1907_v10, %s8306_s0  ;;  %1924 = vrot.lane.b32.xlu0 %v1920_v28, %s8306_s0  ;;  %v2003_v10 = vstv %s6177_s30  ;;  %s6393_s30 = sld [smem:[#allocation3 + $0x213]] }
 0x2b6   : > { %v2005_v16 = vmul.f32 %v2003_v10, %v6127_v15 }
 0x2b7   : > { %v6145_v36 = vpop.permute.xlu1 %1420  ;;  %v6147_v6 = vpop.permute.xlu0 %1432 }
 0x2b9   : > { %1926 = vrot.lane.b32.xlu1 %v1921_v13, %s8306_s0  ;;  %1938 = vrot.lane.b32.xlu0 %v1934_v52, %s8306_s0  ;;  %v1585_v13 = vmul.f32 %v1583_v54, %v5875_v2  ;;  %v1397_v54 = vadd.f32 %v6121_v30, %v6010_v43  ;;  %v1597_v30 = vmul.f32 %v1595_v22, %v5875_v2 }
 0x2ba   : > { %v1425_v22 = vadd.f32 %v6145_v36, %v6048_v11 }
 0x2bb   : > { %v6158_v20 = vpop.permute.xlu1 %1434  ;;  %v6160_v56 = vpop.permute.xlu0 %1446 }
 0x2bd   : > { %1940 = vrot.lane.b32.xlu1 %v1935_v18, %s8306_s0  ;;  %1952 = vrot.lane.b32.xlu0 %v1948_v60, %s8306_s0 }
 0x2bf   : > { %v6171_v1 = vpop.permute.xlu1 %1448  ;;  %v6173_v61 = vpop.permute.xlu0 %1460 }
 0x2c1   : > { %1954 = vrot.lane.b32.xlu1 %v1949_v29, %s8306_s0  ;;  %1966 = vrot.lane.b32.xlu0 %v1962_v9, %s8306_s0  ;;  %v2004_v29 = vmul.f32 %v2003_v10, %v6114_v0  ;;  %v2017_v9 = vstv %s6191_s12  ;;  %s6408_s12 = sld [smem:[#allocation3 + $0xf]] }
 0x2c3   : > { %v6187_v44 = vpop.permute.xlu1 %1462  ;;  %v1475_v48 = vpop.permute.xlu0 %1474 }
 0x2c4   : > { %v1480_v32 = vadd.f32 %v1475_v48, %v1368_v50  ;;  %v1410_v50 = vadd.f32 %v6123_v35, %v6012_v4  ;;  %v1602_v4 = vmul.f32 %v1601_v17, %v5862_v37  ;;  %v1607_v35 = vstv %s6216_s13  ;;  %s6429_s13 = sld [smem:[#allocation3 + $0x393]] }
 0x2c5   : > { %1968 = vrot.lane.b32.xlu1 %v1963_v51, %s8306_s0  ;;  %1980 = vrot.lane.b32.xlu0 %v1976_v38, %s8306_s0  ;;  %v1609_v36 = vmul.f32 %v1607_v35, %v5875_v2 }
 0x2c6   : > { %v6204_v57 = vadd.f32 %v1584_v19, %v1480_v32  ;;  %v2018_v19 = vmul.f32 %v2017_v9, %v6114_v0 }
 0x2c7   : > { %v1477_v21 = vpop.permute.xlu1 %1476  ;;  %v1489_v41 = vpop.permute.xlu0 %1488 }
 0x2c8   : > { %v1481_v28 = vadd.f32 %v1477_v21, %v1369_v62  ;;  %v1494_v12 = vadd.f32 %v1489_v41, %v1382_v7  ;;  %v1411_v7 = vadd.f32 %v6134_v45, %v6030_v55  ;;  %v1424_v21 = vadd.f32 %v6136_v47, %v6032_v42 }
 0x2c9   : > { %1982 = vrot.lane.b32.xlu1 %v1977_v39, %s8306_s0  ;;  %1994 = vrot.lane.b32.xlu0 %v1990_v5, %s8306_s0  ;;  %v1603_v45 = vmul.f32 %v1601_v17, %v5875_v2  ;;  %v1608_v42 = vmul.f32 %v1607_v35, %v5862_v37  ;;  %v1613_v47 = vstv %s6236_s22  ;;  %s6443_s22 = sld [smem:[#allocation3 + $0x14]] }
 0x2ca   : > { %v6222_v52 = vadd.f32 %v1585_v13, %v1481_v28  ;;  %v6224_v14 = vadd.f32 %v1590_v46, %v1494_v12  ;;  %v2019_v28 = vmul.f32 %v2017_v9, %v6127_v15  ;;  %v2032_v12 = vmul.f32 %v2031_v49, %v6114_v0 }
 0x2cb   : > { %v1491_v18 = vpop.permute.xlu1 %1490  ;;  %v1503_v60 = vpop.permute.xlu0 %1502  ;;  %v2045_v13 = vstv %s6229_s28  ;;  %s6435_s28 = sld [smem:[#allocation3 + $0x10f]] }
 0x2cc   : > { %v1495_v58 = vadd.f32 %v1491_v18, %v1383_v8  ;;  %v1508_v34 = vadd.f32 %v1503_v60, %v1396_v27  ;;  %v1438_v8 = vadd.f32 %v6147_v6, %v6050_v25  ;;  %v2046_v9 = vmul.f32 %v2045_v13, %v6114_v0 }
 0x2cd   : > { %1996 = vrot.lane.b32.xlu1 %v1991_v63, %s8306_s0  ;;  %2008 = vrot.lane.b32.xlu0 %v2004_v29, %s8306_s0  ;;  %v2033_v29 = vmul.f32 %v2031_v49, %v6127_v15  ;;  %v1614_v25 = vmul.f32 %v1613_v47, %v5862_v37  ;;  %v1619_v6 = vstv %s6256_s7  ;;  %s6461_s7 = sld [smem:[#allocation3 + $0x94]] }
 0x2ce   : > { %v6242_v48 = vadd.f32 %v1591_v53, %v1495_v58  ;;  %v6244_v51 = vadd.f32 %v1596_v3, %v1508_v34  ;;  %v2059_v58 = vstv %s6249_s23  ;;  %v1439_v53 = vadd.f32 %v6158_v20, %v6066_v23  ;;  %s6450_s23 = sld [smem:[#allocation3 + $0x18f]] }
 0x2cf   : > { %v1505_v38 = vpop.permute.xlu1 %1504  ;;  %v1517_v32 = vpop.permute.xlu0 %1516  ;;  %v1452_v3 = vadd.f32 %v6160_v56, %v6068_v24  ;;  %v1615_v23 = vmul.f32 %v1613_v47, %v5875_v2  ;;  %v1620_v24 = vmul.f32 %v1619_v6, %v5862_v37  ;;  %v1625_v20 = vstv %s6276_s15  ;;  %s6481_s15 = sld [smem:[#allocation3 + $0x114]] }
 0x2d0   : > { %v1509_v62 = vadd.f32 %v1505_v38, %v1397_v54  ;;  %v1522_v43 = vadd.f32 %v1517_v32, %v1410_v50  ;;  %v2047_v32 = vmul.f32 %v2045_v13, %v6127_v15  ;;  %v1453_v56 = vadd.f32 %v6171_v1, %v6081_v59 }
 0x2d1   : > { %2010 = vrot.lane.b32.xlu1 %v2005_v16, %s8306_s0  ;;  %2022 = vrot.lane.b32.xlu0 %v2018_v19, %s8307_s26  ;;  %v2060_v16 = vmul.f32 %v2059_v58, %v6114_v0  ;;  %v2073_v19 = vstv %s6269_s17  ;;  %v1621_v59 = vmul.f32 %v1619_v6, %v5875_v2  ;;  %v1467_v1 = vadd.f32 %v6187_v44, %v6095_v33  ;;  %s6468_s17 = sld [smem:[#allocation3 + $0x20f]] }
 0x2d2   : > { %v6262_v41 = vadd.f32 %v1597_v30, %v1509_v62  ;;  %v6264_v39 = vadd.f32 %v1602_v4, %v1522_v43  ;;  %v1466_v43 = vadd.f32 %v6173_v61, %v6083_v40  ;;  %v1626_v40 = vmul.f32 %v1625_v20, %v5862_v37 }
 0x2d3   : > { %v1519_v5 = vpop.permute.xlu1 %1518  ;;  %v1531_v10 = vpop.permute.xlu0 %1530  ;;  %v2101_v47 = vstv %s6307_s1  ;;  %s6501_s1 = sld [smem:[#allocation3 + $0x194]] }
 0x2d4   : > { %v1523_v46 = vadd.f32 %v1519_v5, %v1411_v7  ;;  %v1536_v55 = vadd.f32 %v1531_v10, %v1424_v21  ;;  %v2061_v21 = vmul.f32 %v2059_v58, %v6127_v15  ;;  %v2074_v5 = vmul.f32 %v2073_v19, %v6114_v0 }
 0x2d5   : > { %2024 = vrot.lane.b32.xlu1 %v2019_v28, %s8307_s26  ;;  %2036 = vrot.lane.b32.xlu0 %v2032_v12, %s8307_s26  ;;  %v2087_v10 = vstv %s6289_s29  ;;  %v2103_v58 = vmul.f32 %v2101_v47, %v6127_v15  ;;  %s6488_s29 = sld [smem:[#allocation3 + $0x28f]] }
 0x2d6   : > { %v6282_v27 = vadd.f32 %v1603_v45, %v1523_v46  ;;  %v6284_v18 = vadd.f32 %v1608_v42, %v1536_v55  ;;  %v2075_v45 = vmul.f32 %v2073_v19, %v6127_v15  ;;  %v2088_v42 = vmul.f32 %v2087_v10, %v6114_v0 }
 0x2d7   : > { %v1533_v60 = vpop.permute.xlu1 %1532  ;;  %v1545_v63 = vpop.permute.xlu0 %1544 }
 0x2d8   : > { %v1537_v34 = vadd.f32 %v1533_v60, %v1425_v22  ;;  %v1550_v11 = vadd.f32 %v1545_v63, %v1438_v8  ;;  %v1627_v22 = vmul.f32 %v1625_v20, %v5875_v2  ;;  %v2089_v60 = vmul.f32 %v2087_v10, %v6127_v15 }
 0x2d9   : > { %2038 = vrot.lane.b32.xlu1 %v2033_v29, %s8307_s26  ;;  %2050 = vrot.lane.b32.xlu0 %v2046_v9, %s8307_s26  ;;  %v2102_v63 = vmul.f32 %v2101_v47, %v6114_v0  ;;  %v2115_v29 = vstv %s6325_s8  ;;  %v2236_v10 = vstv %s6393_s30  ;;  %s6508_s8 = sld [smem:[#allocation3 + $0x30f]] }
 0x2da   : > { %v6300_v17 = vadd.f32 %v1609_v36, %v1537_v34  ;;  %v6302_v54 = vadd.f32 %v1614_v25, %v1550_v11  ;;  %v2116_v34 = vmul.f32 %v2115_v29, %v6114_v0  ;;  %v6366_v11 = vld [vmem:[#allocation2 + $0x30] sm:$0xff]  ;;  %v2180_v36 = vstv %s6342_s11  ;;  %s6521_s11 = sld [smem:[#allocation3 + $0x214]] }
 0x2db   : > { %v1547_v50 = vpop.permute.xlu1 %1546  ;;  %v1559_v38 = vpop.permute.xlu0 %1558  ;;  %s6577_s30 = sld [smem:[#allocation3 + $0x394]] }
 0x2dc   : > { %v1551_v49 = vadd.f32 %v1547_v50, %v1439_v53  ;;  %v1564_v62 = vadd.f32 %v1559_v38, %v1452_v3  ;;  %v2117_v53 = vmul.f32 %v2115_v29, %v6127_v15  ;;  %v2181_v3 = vmul.f32 %v2180_v36, %v6366_v11  ;;  %v6379_v50 = vld [vmem:[#allocation2 + $0x38] sm:$0xff] }
 0x2dd   : > { %2052 = vrot.lane.b32.xlu1 %v2047_v32, %s8307_s26  ;;  %2064 = vrot.lane.b32.xlu0 %v2060_v16, %s8307_s26  ;;  %v2194_v38 = vstv %s6356_s2  ;;  %v2182_v19 = vmul.f32 %v2180_v36, %v6379_v50  ;;  %v2238_v47 = vmul.f32 %v2236_v10, %v6379_v50  ;;  %s6528_s2 = sld [smem:[#allocation3 + $0x38f]] }
 0x2de   : > { %v6318_v30 = vadd.f32 %v1615_v23, %v1551_v49  ;;  %v6320_v4 = vadd.f32 %v1620_v24, %v1564_v62  ;;  %v2195_v49 = vmul.f32 %v2194_v38, %v6366_v11  ;;  %v2208_v62 = vstv %s6369_s27  ;;  %s6541_s27 = sld [smem:[#allocation3 + $0x294]] }
 0x2df   : > { %v1561_v35 = vpop.permute.xlu1 %1560  ;;  %v1573_v7 = vpop.permute.xlu0 %1572  ;;  %v2196_v20 = vmul.f32 %v2194_v38, %v6379_v50 }
 0x2e0   : > { %v1565_v28 = vadd.f32 %v1561_v35, %v1453_v56  ;;  %v1578_v12 = vadd.f32 %v1573_v7, %v1466_v43  ;;  %v2209_v56 = vmul.f32 %v2208_v62, %v6366_v11  ;;  %v2222_v43 = vstv %s6382_s3  ;;  %s6559_s3 = sld [smem:[#allocation3 + $0x314]] }
 0x2e1   : > { %2066 = vrot.lane.b32.xlu1 %v2061_v21, %s8307_s26  ;;  %2078 = vrot.lane.b32.xlu0 %v2074_v5, %s8307_s26  ;;  %v2210_v21 = vmul.f32 %v2208_v62, %v6379_v50  ;;  %v2223_v5 = vmul.f32 %v2222_v43, %v6366_v11 }
 0x2e2   : > { %v6333_v61 = vadd.f32 %v1621_v59, %v1565_v28  ;;  %v6335_v13 = vadd.f32 %v1626_v40, %v1578_v12  ;;  %v2224_v59 = vmul.f32 %v2222_v43, %v6379_v50  ;;  %v2237_v40 = vmul.f32 %v2236_v10, %v6366_v11 }
 0x2e3   : > { %v1575_v46 = vpop.permute.xlu1 %1574  ;;  %v6337_v55 = vpop.permute.xlu0 %1636 }
 0x2e4   : > { %v1579_v37 = vadd.f32 %v1575_v46, %v1467_v1  ;;  %v2250_v1 = vstv %s6404_s16  ;;  %v1857_v46 = vstv %s6408_s12  ;;  %s6594_s16 = sld [smem:[#allocation3 + $0x16]] }
 0x2e5   : > { %2080 = vrot.lane.b32.xlu1 %v2075_v45, %s8307_s26  ;;  %2092 = vrot.lane.b32.xlu0 %v2088_v42, %s8307_s26  ;;  %v1642_v45 = vadd.f32 %v6337_v55, %v6204_v57  ;;  %v1858_v29 = vmul.f32 %v1857_v46, %v6114_v0  ;;  %s6608_s12 = sld [smem:[#allocation3 + $0x96]] }
 0x2e6   : > { %v6347_v33 = vadd.f32 %v1627_v22, %v1579_v37  ;;  %v2251_v22 = vmul.f32 %v2250_v1, %v6366_v11 }
 0x2e7   : > { %v6349_v44 = vpop.permute.xlu1 %1638  ;;  %v6351_v8 = vpop.permute.xlu0 %1650 }
 0x2e8   : > { %v1643_v57 = vadd.f32 %v6349_v44, %v6222_v52  ;;  %v1656_v55 = vadd.f32 %v6351_v8, %v6224_v14  ;;  %v1869_v14 = vstv %s6435_s28  ;;  %s6656_s28 = sld [smem:[#allocation3 + $0x296]] }
 0x2e9   : > { %2094 = vrot.lane.b32.xlu1 %v2089_v60, %s8307_s26  ;;  %2106 = vrot.lane.b32.xlu0 %v2102_v63, %s8307_s26  ;;  %v2264_v63 = vstv %s6417_s19  ;;  %s6621_s19 = sld [smem:[#allocation3 + $0x116]] }
 0x2ea   : > { %v2265_v38 = vmul.f32 %v2264_v63, %v6366_v11  ;;  %v2266_v10 = vmul.f32 %v2264_v63, %v6379_v50 }
 0x2eb   : > { %v6360_v2 = vpop.permute.xlu1 %1652  ;;  %v6362_v9 = vpop.permute.xlu0 %1664 }
 0x2ec   : > { %v1657_v44 = vadd.f32 %v6360_v2, %v6242_v48  ;;  %v1670_v8 = vadd.f32 %v6362_v9, %v6244_v51  ;;  %v1870_v51 = vmul.f32 %v1869_v14, %v6114_v0  ;;  %v1875_v9 = vstv %s6450_s23  ;;  %s6669_s23 = sld [smem:[#allocation3 + $0x316]] }
 0x2ed   : > { %2108 = vrot.lane.b32.xlu1 %v2103_v58, %s8307_s26  ;;  %2120 = vrot.lane.b32.xlu0 %v2116_v34, %s8307_s26  ;;  %v1863_v58 = vstv %s6421_s20  ;;  %s6634_s20 = sld [smem:[#allocation3 + $0x196]] }
 0x2ee   : > { %v1864_v52 = vmul.f32 %v1863_v58, %v6114_v0  ;;  %v1865_v2 = vmul.f32 %v1863_v58, %v6127_v15  ;;  %v2306_v58 = vstv %s6461_s7  ;;  %s6673_s7 = sld [smem:[#allocation3 + $0x92]] }
 0x2ef   : > { %v6373_v25 = vpop.permute.xlu1 %1666  ;;  %v6375_v6 = vpop.permute.xlu0 %1678 }
 0x2f1   : > { %2122 = vrot.lane.b32.xlu1 %v2117_v53, %s8307_s26  ;;  %2185 = vrot.lane.b32.xlu0 %v2181_v3, %s8306_s0  ;;  %v2252_v3 = vmul.f32 %v2250_v1, %v6379_v50 }
 0x2f3   : > { %v6386_v32 = vpop.permute.xlu1 %1680  ;;  %v6388_v16 = vpop.permute.xlu0 %1692 }
 0x2f5   : > { %2187 = vrot.lane.b32.xlu1 %v2182_v19, %s8306_s0  ;;  %2199 = vrot.lane.b32.xlu0 %v2195_v49, %s8306_s0  ;;  %v2278_v19 = vstv %s6429_s13  ;;  %s6645_s13 = sld [smem:[#allocation3 + $0x216]] }
 0x2f6   : > { %v2280_v63 = vmul.f32 %v2278_v19, %v6379_v50 }
 0x2f7   : > { %v6397_v23 = vpop.permute.xlu1 %1694  ;;  %v6399_v24 = vpop.permute.xlu0 %1706 }
 0x2f9   : > { %2201 = vrot.lane.b32.xlu1 %v2196_v20, %s8306_s0  ;;  %2213 = vrot.lane.b32.xlu0 %v2209_v56, %s8306_s0  ;;  %v1859_v20 = vmul.f32 %v1857_v46, %v6127_v15  ;;  %v1671_v46 = vadd.f32 %v6373_v25, %v6262_v41  ;;  %v1871_v25 = vmul.f32 %v1869_v14, %v6127_v15 }
 0x2fa   : > { %v1699_v14 = vadd.f32 %v6397_v23, %v6300_v17 }
 0x2fb   : > { %v6410_v35 = vpop.permute.xlu1 %1708  ;;  %v6412_v7 = vpop.permute.xlu0 %1720 }
 0x2fd   : > { %2215 = vrot.lane.b32.xlu1 %v2210_v21, %s8306_s0  ;;  %2227 = vrot.lane.b32.xlu0 %v2223_v5, %s8306_s0 }
 0x2ff   : > { %v6423_v28 = vpop.permute.xlu1 %1722  ;;  %v6425_v12 = vpop.permute.xlu0 %1734 }
 0x301   : > { %2229 = vrot.lane.b32.xlu1 %v2224_v59, %s8306_s0  ;;  %2241 = vrot.lane.b32.xlu0 %v2237_v40, %s8306_s0  ;;  %v2279_v59 = vmul.f32 %v2278_v19, %v6366_v11  ;;  %v2292_v40 = vstv %s6443_s22  ;;  %s6660_s22 = sld [smem:[#allocation3 + $0x12]] }
 0x303   : > { %v6439_v42 = vpop.permute.xlu1 %1736  ;;  %v1749_v37 = vpop.permute.xlu0 %1748 }
 0x304   : > { %v1754_v60 = vadd.f32 %v1749_v37, %v1642_v45  ;;  %v1684_v45 = vadd.f32 %v6375_v6, %v6264_v39  ;;  %v1876_v39 = vmul.f32 %v1875_v9, %v6114_v0  ;;  %v1881_v6 = vstv %s6468_s17  ;;  %s6681_s17 = sld [smem:[#allocation3 + $0x396]] }
 0x305   : > { %2243 = vrot.lane.b32.xlu1 %v2238_v47, %s8306_s0  ;;  %2255 = vrot.lane.b32.xlu0 %v2251_v22, %s8306_s0  ;;  %v1883_v23 = vmul.f32 %v1881_v6, %v6127_v15 }
 0x306   : > { %v6456_v34 = vadd.f32 %v1858_v29, %v1754_v60  ;;  %v2293_v29 = vmul.f32 %v2292_v40, %v6366_v11 }
 0x307   : > { %v1751_v36 = vpop.permute.xlu1 %1750  ;;  %v1763_v53 = vpop.permute.xlu0 %1762 }
 0x308   : > { %v1755_v49 = vadd.f32 %v1751_v36, %v1643_v57  ;;  %v1768_v62 = vadd.f32 %v1763_v53, %v1656_v55  ;;  %v1685_v55 = vadd.f32 %v6386_v32, %v6282_v27  ;;  %v1698_v36 = vadd.f32 %v6388_v16, %v6284_v18 }
 0x309   : > { %2257 = vrot.lane.b32.xlu1 %v2252_v3, %s8306_s0  ;;  %2269 = vrot.lane.b32.xlu0 %v2265_v38, %s8306_s0  ;;  %v1877_v32 = vmul.f32 %v1875_v9, %v6127_v15  ;;  %v1882_v18 = vmul.f32 %v1881_v6, %v6114_v0  ;;  %v1887_v16 = vstv %s6488_s29  ;;  %s6695_s29 = sld [smem:[#allocation3 + $0x17]] }
 0x30a   : > { %v6474_v56 = vadd.f32 %v1859_v20, %v1755_v49  ;;  %v6476_v43 = vadd.f32 %v1864_v52, %v1768_v62  ;;  %v2294_v49 = vmul.f32 %v2292_v40, %v6379_v50  ;;  %v2307_v62 = vmul.f32 %v2306_v58, %v6366_v11 }
 0x30b   : > { %v1765_v21 = vpop.permute.xlu1 %1764  ;;  %v1777_v5 = vpop.permute.xlu0 %1776  ;;  %v2320_v20 = vstv %s6481_s15  ;;  %s6687_s15 = sld [smem:[#allocation3 + $0x112]] }
 0x30c   : > { %v1769_v1 = vadd.f32 %v1765_v21, %v1657_v44  ;;  %v1782_v48 = vadd.f32 %v1777_v5, %v1670_v8  ;;  %v1712_v44 = vadd.f32 %v6399_v24, %v6302_v54  ;;  %v2321_v40 = vmul.f32 %v2320_v20, %v6366_v11 }
 0x30d   : > { %2271 = vrot.lane.b32.xlu1 %v2266_v10, %s8306_s0  ;;  %2283 = vrot.lane.b32.xlu0 %v2279_v59, %s8306_s0  ;;  %v2308_v59 = vmul.f32 %v2306_v58, %v6379_v50  ;;  %v1888_v54 = vmul.f32 %v1887_v16, %v6114_v0  ;;  %v1893_v24 = vstv %s6508_s8  ;;  %s6713_s8 = sld [smem:[#allocation3 + $0x97]] }
 0x30e   : > { %v6494_v37 = vadd.f32 %v1865_v2, %v1769_v1  ;;  %v6496_v47 = vadd.f32 %v1870_v51, %v1782_v48  ;;  %v2334_v1 = vstv %s6501_s1  ;;  %v1713_v2 = vadd.f32 %v6410_v35, %v6318_v30  ;;  %s6702_s1 = sld [smem:[#allocation3 + $0x192]] }
 0x30f   : > { %v1779_v22 = vpop.permute.xlu1 %1778  ;;  %v1791_v60 = vpop.permute.xlu0 %1790  ;;  %v1726_v51 = vadd.f32 %v6412_v7, %v6320_v4  ;;  %v1889_v30 = vmul.f32 %v1887_v16, %v6127_v15  ;;  %v1894_v4 = vmul.f32 %v1893_v24, %v6114_v0  ;;  %v1899_v35 = vstv %s6528_s2  ;;  %s6733_s2 = sld [smem:[#allocation3 + $0x117]] }
 0x310   : > { %v1783_v57 = vadd.f32 %v1779_v22, %v1671_v46  ;;  %v1796_v41 = vadd.f32 %v1791_v60, %v1684_v45  ;;  %v2322_v60 = vmul.f32 %v2320_v20, %v6379_v50  ;;  %v1727_v7 = vadd.f32 %v6423_v28, %v6333_v61 }
 0x311   : > { %2285 = vrot.lane.b32.xlu1 %v2280_v63, %s8306_s0  ;;  %2297 = vrot.lane.b32.xlu0 %v2293_v29, %s8307_s26  ;;  %v2335_v63 = vmul.f32 %v2334_v1, %v6366_v11  ;;  %v2348_v29 = vstv %s6521_s11  ;;  %v1895_v61 = vmul.f32 %v1893_v24, %v6127_v15  ;;  %v1741_v28 = vadd.f32 %v6439_v42, %v6347_v33  ;;  %s6720_s11 = sld [smem:[#allocation3 + $0x212]] }
 0x312   : > { %v6514_v53 = vadd.f32 %v1871_v25, %v1783_v57  ;;  %v6516_v3 = vadd.f32 %v1876_v39, %v1796_v41  ;;  %v1740_v41 = vadd.f32 %v6425_v12, %v6335_v13  ;;  %v1900_v13 = vmul.f32 %v1899_v35, %v6114_v0 }
 0x313   : > { %v1793_v38 = vpop.permute.xlu1 %1792  ;;  %v1805_v19 = vpop.permute.xlu0 %1804  ;;  %v2376_v16 = vstv %s6559_s3  ;;  %s6753_s3 = sld [smem:[#allocation3 + $0x197]] }
 0x314   : > { %v1797_v52 = vadd.f32 %v1793_v38, %v1685_v55  ;;  %v1810_v27 = vadd.f32 %v1805_v19, %v1698_v36  ;;  %v2336_v36 = vmul.f32 %v2334_v1, %v6379_v50  ;;  %v2349_v38 = vmul.f32 %v2348_v29, %v6366_v11 }
 0x315   : > { %2299 = vrot.lane.b32.xlu1 %v2294_v49, %s8307_s26  ;;  %2311 = vrot.lane.b32.xlu0 %v2307_v62, %s8307_s26  ;;  %v2362_v19 = vstv %s6541_s27  ;;  %v2378_v1 = vmul.f32 %v2376_v16, %v6379_v50  ;;  %s6740_s27 = sld [smem:[#allocation3 + $0x292]] }
 0x316   : > { %v6534_v8 = vadd.f32 %v1877_v32, %v1797_v52  ;;  %v6536_v21 = vadd.f32 %v1882_v18, %v1810_v27  ;;  %v2350_v32 = vmul.f32 %v2348_v29, %v6379_v50  ;;  %v2363_v18 = vmul.f32 %v2362_v19, %v6366_v11 }
 0x317   : > { %v1807_v5 = vpop.permute.xlu1 %1806  ;;  %v1819_v10 = vpop.permute.xlu0 %1818 }
 0x318   : > { %v1811_v48 = vadd.f32 %v1807_v5, %v1699_v14  ;;  %v1824_v17 = vadd.f32 %v1819_v10, %v1712_v44  ;;  %v1901_v14 = vmul.f32 %v1899_v35, %v6127_v15  ;;  %v2364_v5 = vmul.f32 %v2362_v19, %v6379_v50 }
 0x319   : > { %2313 = vrot.lane.b32.xlu1 %v2308_v59, %s8307_s26  ;;  %2325 = vrot.lane.b32.xlu0 %v2321_v40, %s8307_s26  ;;  %v2377_v10 = vmul.f32 %v2376_v16, %v6366_v11  ;;  %v2390_v59 = vstv %s6577_s30  ;;  %v2510_v19 = vstv %s6645_s13  ;;  %s6760_s30 = sld [smem:[#allocation3 + $0x312]] }
 0x31a   : > { %v6552_v9 = vadd.f32 %v1883_v23, %v1811_v48  ;;  %v6554_v46 = vadd.f32 %v1888_v54, %v1824_v17  ;;  %v2391_v48 = vmul.f32 %v2390_v59, %v6366_v11  ;;  %v6618_v17 = vld [vmem:[#allocation2 + $0x31] sm:$0xff]  ;;  %v2454_v23 = vstv %s6594_s16  ;;  %s6773_s16 = sld [smem:[#allocation3 + $0x217]] }
 0x31b   : > { %v1821_v45 = vpop.permute.xlu1 %1820  ;;  %v1833_v22 = vpop.permute.xlu0 %1832  ;;  %s6829_s13 = sld [smem:[#allocation3 + $0x397]] }
 0x31c   : > { %v1825_v58 = vadd.f32 %v1821_v45, %v1713_v2  ;;  %v1838_v57 = vadd.f32 %v1833_v22, %v1726_v51  ;;  %v2392_v2 = vmul.f32 %v2390_v59, %v6379_v50  ;;  %v2455_v51 = vmul.f32 %v2454_v23, %v6618_v17  ;;  %v6631_v45 = vld [vmem:[#allocation2 + $0x39] sm:$0xff] }
 0x31d   : > { %2327 = vrot.lane.b32.xlu1 %v2322_v60, %s8307_s26  ;;  %2339 = vrot.lane.b32.xlu0 %v2335_v63, %s8307_s26  ;;  %v2468_v22 = vstv %s6608_s12  ;;  %v2456_v29 = vmul.f32 %v2454_v23, %v6631_v45  ;;  %v2512_v16 = vmul.f32 %v2510_v19, %v6631_v45  ;;  %s6780_s12 = sld [smem:[#allocation3 + $0x392]] }
 0x31e   : > { %v6570_v25 = vadd.f32 %v1889_v30, %v1825_v58  ;;  %v6572_v39 = vadd.f32 %v1894_v4, %v1838_v57  ;;  %v2469_v58 = vmul.f32 %v2468_v22, %v6618_v17  ;;  %v2482_v57 = vstv %s6621_s19  ;;  %s6793_s19 = sld [smem:[#allocation3 + $0x297]] }
 0x31f   : > { %v1835_v6 = vpop.permute.xlu1 %1834  ;;  %v1847_v55 = vpop.permute.xlu0 %1846  ;;  %v2470_v35 = vmul.f32 %v2468_v22, %v6631_v45 }
 0x320   : > { %v1839_v49 = vadd.f32 %v1835_v6, %v1727_v7  ;;  %v1852_v62 = vadd.f32 %v1847_v55, %v1740_v41  ;;  %v2483_v7 = vmul.f32 %v2482_v57, %v6618_v17  ;;  %v2496_v41 = vstv %s6634_s20  ;;  %s6811_s20 = sld [smem:[#allocation3 + $0x317]] }
 0x321   : > { %2341 = vrot.lane.b32.xlu1 %v2336_v36, %s8307_s26  ;;  %2353 = vrot.lane.b32.xlu0 %v2349_v38, %s8307_s26  ;;  %v2484_v36 = vmul.f32 %v2482_v57, %v6631_v45  ;;  %v2497_v38 = vmul.f32 %v2496_v41, %v6618_v17 }
 0x322   : > { %v6585_v12 = vadd.f32 %v1895_v61, %v1839_v49  ;;  %v6587_v20 = vadd.f32 %v1900_v13, %v1852_v62  ;;  %v2498_v61 = vmul.f32 %v2496_v41, %v6631_v45  ;;  %v2511_v13 = vmul.f32 %v2510_v19, %v6618_v17 }
 0x323   : > { %v1849_v52 = vpop.permute.xlu1 %1848  ;;  %v6589_v27 = vpop.permute.xlu0 %1910 }
 0x324   : > { %v1853_v0 = vadd.f32 %v1849_v52, %v1741_v28  ;;  %v2524_v28 = vstv %s6656_s28  ;;  %v2132_v52 = vstv %s6660_s22  ;;  %s6846_s28 = sld [smem:[#allocation3 + $0x19]] }
 0x325   : > { %2355 = vrot.lane.b32.xlu1 %v2350_v32, %s8307_s26  ;;  %2367 = vrot.lane.b32.xlu0 %v2363_v18, %s8307_s26  ;;  %v1916_v32 = vadd.f32 %v6589_v27, %v6456_v34  ;;  %v2133_v59 = vmul.f32 %v2132_v52, %v6366_v11  ;;  %s6860_s22 = sld [smem:[#allocation3 + $0x99]] }
 0x326   : > { %v6599_v33 = vadd.f32 %v1901_v14, %v1853_v0  ;;  %v2525_v14 = vmul.f32 %v2524_v28, %v6618_v17 }
 0x327   : > { %v6601_v42 = vpop.permute.xlu1 %1912  ;;  %v6603_v44 = vpop.permute.xlu0 %1924 }
 0x328   : > { %v1917_v34 = vadd.f32 %v6601_v42, %v6474_v56  ;;  %v1930_v27 = vadd.f32 %v6603_v44, %v6476_v43  ;;  %v2144_v43 = vstv %s6687_s15  ;;  %s6908_s15 = sld [smem:[#allocation3 + $0x299]] }
 0x329   : > { %2369 = vrot.lane.b32.xlu1 %v2364_v5, %s8307_s26  ;;  %2381 = vrot.lane.b32.xlu0 %v2377_v10, %s8307_s26  ;;  %v2538_v10 = vstv %s6669_s23  ;;  %s6873_s23 = sld [smem:[#allocation3 + $0x119]] }
 0x32a   : > { %v2539_v22 = vmul.f32 %v2538_v10, %v6618_v17  ;;  %v2540_v19 = vmul.f32 %v2538_v10, %v6631_v45 }
 0x32b   : > { %v6612_v15 = vpop.permute.xlu1 %1926  ;;  %v6614_v40 = vpop.permute.xlu0 %1938 }
 0x32c   : > { %v1931_v42 = vadd.f32 %v6612_v15, %v6494_v37  ;;  %v1944_v44 = vadd.f32 %v6614_v40, %v6496_v47  ;;  %v2145_v47 = vmul.f32 %v2144_v43, %v6366_v11  ;;  %v2150_v40 = vstv %s6702_s1  ;;  %s6921_s1 = sld [smem:[#allocation3 + $0x319]] }
 0x32d   : > { %2383 = vrot.lane.b32.xlu1 %v2378_v1, %s8307_s26  ;;  %2395 = vrot.lane.b32.xlu0 %v2391_v48, %s8307_s26  ;;  %v2138_v1 = vstv %s6673_s7  ;;  %s6886_s7 = sld [smem:[#allocation3 + $0x199]] }
 0x32e   : > { %v2139_v56 = vmul.f32 %v2138_v1, %v6366_v11  ;;  %v2140_v15 = vmul.f32 %v2138_v1, %v6379_v50  ;;  %v2580_v1 = vstv %s6713_s8  ;;  %s6925_s8 = sld [smem:[#allocation3 + $0x95]] }
 0x32f   : > { %v6625_v54 = vpop.permute.xlu1 %1940  ;;  %v6627_v24 = vpop.permute.xlu0 %1952 }
 0x331   : > { %2397 = vrot.lane.b32.xlu1 %v2392_v2, %s8307_s26  ;;  %2459 = vrot.lane.b32.xlu0 %v2455_v51, %s8306_s0  ;;  %v2526_v51 = vmul.f32 %v2524_v28, %v6631_v45 }
 0x333   : > { %v6638_v60 = vpop.permute.xlu1 %1954  ;;  %v6640_v63 = vpop.permute.xlu0 %1966 }
 0x335   : > { %2461 = vrot.lane.b32.xlu1 %v2456_v29, %s8306_s0  ;;  %2473 = vrot.lane.b32.xlu0 %v2469_v58, %s8306_s0  ;;  %v2552_v29 = vstv %s6681_s17  ;;  %s6897_s17 = sld [smem:[#allocation3 + $0x219]] }
 0x336   : > { %v2554_v10 = vmul.f32 %v2552_v29, %v6631_v45 }
 0x337   : > { %v6649_v30 = vpop.permute.xlu1 %1968  ;;  %v6651_v4 = vpop.permute.xlu0 %1980 }
 0x339   : > { %2475 = vrot.lane.b32.xlu1 %v2470_v35, %s8306_s0  ;;  %2487 = vrot.lane.b32.xlu0 %v2483_v7, %s8306_s0  ;;  %v2134_v35 = vmul.f32 %v2132_v52, %v6379_v50  ;;  %v1945_v52 = vadd.f32 %v6625_v54, %v6514_v53  ;;  %v2146_v54 = vmul.f32 %v2144_v43, %v6379_v50 }
 0x33a   : > { %v1973_v43 = vadd.f32 %v6649_v30, %v6552_v9 }
 0x33b   : > { %v6662_v6 = vpop.permute.xlu1 %1982  ;;  %v6664_v55 = vpop.permute.xlu0 %1994 }
 0x33d   : > { %2489 = vrot.lane.b32.xlu1 %v2484_v36, %s8306_s0  ;;  %2501 = vrot.lane.b32.xlu0 %v2497_v38, %s8306_s0 }
 0x33f   : > { %v6675_v49 = vpop.permute.xlu1 %1996  ;;  %v6677_v62 = vpop.permute.xlu0 %2008 }
 0x341   : > { %2503 = vrot.lane.b32.xlu1 %v2498_v61, %s8306_s0  ;;  %2515 = vrot.lane.b32.xlu0 %v2511_v13, %s8306_s0  ;;  %v2553_v61 = vmul.f32 %v2552_v29, %v6618_v17  ;;  %v2566_v13 = vstv %s6695_s29  ;;  %s6912_s29 = sld [smem:[#allocation3 + $0x15]] }
 0x343   : > { %v6691_v18 = vpop.permute.xlu1 %2010  ;;  %v2023_v0 = vpop.permute.xlu0 %2022 }
 0x344   : > { %v2028_v5 = vadd.f32 %v2023_v0, %v1916_v32  ;;  %v1958_v32 = vadd.f32 %v6627_v24, %v6516_v3  ;;  %v2151_v3 = vmul.f32 %v2150_v40, %v6366_v11  ;;  %v2156_v24 = vstv %s6720_s11  ;;  %s6933_s11 = sld [smem:[#allocation3 + $0x399]] }
 0x345   : > { %2517 = vrot.lane.b32.xlu1 %v2512_v16, %s8306_s0  ;;  %2529 = vrot.lane.b32.xlu0 %v2525_v14, %s8306_s0  ;;  %v2158_v30 = vmul.f32 %v2156_v24, %v6379_v50 }
 0x346   : > { %v6708_v48 = vadd.f32 %v2133_v59, %v2028_v5  ;;  %v2567_v59 = vmul.f32 %v2566_v13, %v6618_v17 }
 0x347   : > { %v2025_v23 = vpop.permute.xlu1 %2024  ;;  %v2037_v2 = vpop.permute.xlu0 %2036 }
 0x348   : > { %v2029_v58 = vadd.f32 %v2025_v23, %v1917_v34  ;;  %v2042_v57 = vadd.f32 %v2037_v2, %v1930_v27  ;;  %v1959_v27 = vadd.f32 %v6638_v60, %v6534_v8  ;;  %v1972_v23 = vadd.f32 %v6640_v63, %v6536_v21 }
 0x349   : > { %2531 = vrot.lane.b32.xlu1 %v2526_v51, %s8306_s0  ;;  %2543 = vrot.lane.b32.xlu0 %v2539_v22, %s8306_s0  ;;  %v2152_v60 = vmul.f32 %v2150_v40, %v6379_v50  ;;  %v2157_v21 = vmul.f32 %v2156_v24, %v6366_v11  ;;  %v2162_v63 = vstv %s6740_s27  ;;  %s6947_s27 = sld [smem:[#allocation3 + $0x1a]] }
 0x34a   : > { %v6726_v7 = vadd.f32 %v2134_v35, %v2029_v58  ;;  %v6728_v41 = vadd.f32 %v2139_v56, %v2042_v57  ;;  %v2568_v58 = vmul.f32 %v2566_v13, %v6631_v45  ;;  %v2581_v57 = vmul.f32 %v2580_v1, %v6618_v17 }
 0x34b   : > { %v2039_v36 = vpop.permute.xlu1 %2038  ;;  %v2051_v38 = vpop.permute.xlu0 %2050  ;;  %v2594_v35 = vstv %s6733_s2  ;;  %s6939_s2 = sld [smem:[#allocation3 + $0x115]] }
 0x34c   : > { %v2043_v28 = vadd.f32 %v2039_v36, %v1931_v42  ;;  %v2056_v37 = vadd.f32 %v2051_v38, %v1944_v44  ;;  %v1986_v42 = vadd.f32 %v6651_v4, %v6554_v46  ;;  %v2595_v13 = vmul.f32 %v2594_v35, %v6618_v17 }
 0x34d   : > { %2545 = vrot.lane.b32.xlu1 %v2540_v19, %s8306_s0  ;;  %2557 = vrot.lane.b32.xlu0 %v2553_v61, %s8306_s0  ;;  %v2582_v61 = vmul.f32 %v2580_v1, %v6631_v45  ;;  %v2163_v46 = vmul.f32 %v2162_v63, %v6366_v11  ;;  %v2168_v4 = vstv %s6760_s30  ;;  %s6965_s30 = sld [smem:[#allocation3 + $0x9a]] }
 0x34e   : > { %v6746_v0 = vadd.f32 %v2140_v15, %v2043_v28  ;;  %v6748_v16 = vadd.f32 %v2145_v47, %v2056_v37  ;;  %v2608_v28 = vstv %s6753_s3  ;;  %v1987_v15 = vadd.f32 %v6662_v6, %v6570_v25  ;;  %s6954_s3 = sld [smem:[#allocation3 + $0x195]] }
 0x34f   : > { %v2053_v14 = vpop.permute.xlu1 %2052  ;;  %v2065_v5 = vpop.permute.xlu0 %2064  ;;  %v2000_v47 = vadd.f32 %v6664_v55, %v6572_v39  ;;  %v2164_v25 = vmul.f32 %v2162_v63, %v6379_v50  ;;  %v2169_v39 = vmul.f32 %v2168_v4, %v6366_v11  ;;  %v2174_v6 = vstv %s6780_s12  ;;  %s6985_s12 = sld [smem:[#allocation3 + $0x11a]] }
 0x350   : > { %v2057_v34 = vadd.f32 %v2053_v14, %v1945_v52  ;;  %v2070_v53 = vadd.f32 %v2065_v5, %v1958_v32  ;;  %v2596_v5 = vmul.f32 %v2594_v35, %v6631_v45  ;;  %v2001_v55 = vadd.f32 %v6675_v49, %v6585_v12 }
 0x351   : > { %2559 = vrot.lane.b32.xlu1 %v2554_v10, %s8306_s0  ;;  %2571 = vrot.lane.b32.xlu0 %v2567_v59, %s8307_s26  ;;  %v2609_v10 = vmul.f32 %v2608_v28, %v6618_v17  ;;  %v2622_v59 = vstv %s6773_s16  ;;  %v2170_v12 = vmul.f32 %v2168_v4, %v6379_v50  ;;  %v2015_v49 = vadd.f32 %v6691_v18, %v6599_v33  ;;  %s6972_s16 = sld [smem:[#allocation3 + $0x215]] }
 0x352   : > { %v6766_v2 = vadd.f32 %v2146_v54, %v2057_v34  ;;  %v6768_v51 = vadd.f32 %v2151_v3, %v2070_v53  ;;  %v2014_v53 = vadd.f32 %v6677_v62, %v6587_v20  ;;  %v2175_v20 = vmul.f32 %v2174_v6, %v6366_v11 }
 0x353   : > { %v2067_v22 = vpop.permute.xlu1 %2066  ;;  %v2079_v29 = vpop.permute.xlu0 %2078  ;;  %v2650_v63 = vstv %s6811_s20  ;;  %s7005_s20 = sld [smem:[#allocation3 + $0x19a]] }
 0x354   : > { %v2071_v56 = vadd.f32 %v2067_v22, %v1959_v27  ;;  %v2084_v8 = vadd.f32 %v2079_v29, %v1972_v23  ;;  %v2610_v23 = vmul.f32 %v2608_v28, %v6631_v45  ;;  %v2623_v22 = vmul.f32 %v2622_v59, %v6618_v17 }
 0x355   : > { %2573 = vrot.lane.b32.xlu1 %v2568_v58, %s8307_s26  ;;  %2585 = vrot.lane.b32.xlu0 %v2581_v57, %s8307_s26  ;;  %v2636_v29 = vstv %s6793_s19  ;;  %v2652_v28 = vmul.f32 %v2650_v63, %v6631_v45  ;;  %s6992_s19 = sld [smem:[#allocation3 + $0x295]] }
 0x356   : > { %v6786_v44 = vadd.f32 %v2152_v60, %v2071_v56  ;;  %v6788_v36 = vadd.f32 %v2157_v21, %v2084_v8  ;;  %v2624_v60 = vmul.f32 %v2622_v59, %v6631_v45  ;;  %v2637_v21 = vmul.f32 %v2636_v29, %v6618_v17 }
 0x357   : > { %v2081_v38 = vpop.permute.xlu1 %2080  ;;  %v2093_v19 = vpop.permute.xlu0 %2092 }
 0x358   : > { %v2085_v37 = vadd.f32 %v2081_v38, %v1973_v43  ;;  %v2098_v9 = vadd.f32 %v2093_v19, %v1986_v42  ;;  %v2176_v43 = vmul.f32 %v2174_v6, %v6379_v50  ;;  %v2638_v38 = vmul.f32 %v2636_v29, %v6631_v45 }
 0x359   : > { %2587 = vrot.lane.b32.xlu1 %v2582_v61, %s8307_s26  ;;  %2599 = vrot.lane.b32.xlu0 %v2595_v13, %s8307_s26  ;;  %v2651_v19 = vmul.f32 %v2650_v63, %v6618_v17  ;;  %v2664_v61 = vstv %s6829_s13  ;;  %v2784_v29 = vstv %s6897_s17  ;;  %s7012_s13 = sld [smem:[#allocation3 + $0x315]] }
 0x35a   : > { %v6804_v40 = vadd.f32 %v2158_v30, %v2085_v37  ;;  %v6806_v52 = vadd.f32 %v2163_v46, %v2098_v9  ;;  %v2665_v37 = vmul.f32 %v2664_v61, %v6618_v17  ;;  %v6870_v9 = vld [vmem:[#allocation2 + $0x32] sm:$0xff]  ;;  %v2728_v30 = vstv %s6846_s28  ;;  %s7025_s28 = sld [smem:[#allocation3 + $0x21a]] }
 0x35b   : > { %v2095_v32 = vpop.permute.xlu1 %2094  ;;  %v2107_v14 = vpop.permute.xlu0 %2106  ;;  %s7081_s17 = sld [smem:[#allocation3 + $0x39a]] }
 0x35c   : > { %v2099_v1 = vadd.f32 %v2095_v32, %v1987_v15  ;;  %v2112_v34 = vadd.f32 %v2107_v14, %v2000_v47  ;;  %v2666_v15 = vmul.f32 %v2664_v61, %v6631_v45  ;;  %v2729_v47 = vmul.f32 %v2728_v30, %v6870_v9  ;;  %v6883_v32 = vld [vmem:[#allocation2 + $0x3a] sm:$0xff] }
 0x35d   : > { %2601 = vrot.lane.b32.xlu1 %v2596_v5, %s8307_s26  ;;  %2613 = vrot.lane.b32.xlu0 %v2609_v10, %s8307_s26  ;;  %v2742_v14 = vstv %s6860_s22  ;;  %v2730_v59 = vmul.f32 %v2728_v30, %v6883_v32  ;;  %v2786_v63 = vmul.f32 %v2784_v29, %v6883_v32  ;;  %s7032_s22 = sld [smem:[#allocation3 + $0x395]] }
 0x35e   : > { %v6822_v54 = vadd.f32 %v2164_v25, %v2099_v1  ;;  %v6824_v3 = vadd.f32 %v2169_v39, %v2112_v34  ;;  %v2743_v1 = vmul.f32 %v2742_v14, %v6870_v9  ;;  %v2756_v34 = vstv %s6873_s23  ;;  %s7045_s23 = sld [smem:[#allocation3 + $0x29a]] }
 0x35f   : > { %v2109_v24 = vpop.permute.xlu1 %2108  ;;  %v2121_v27 = vpop.permute.xlu0 %2120  ;;  %v2744_v6 = vmul.f32 %v2742_v14, %v6883_v32 }
 0x360   : > { %v2113_v58 = vadd.f32 %v2109_v24, %v2001_v55  ;;  %v2126_v57 = vadd.f32 %v2121_v27, %v2014_v53  ;;  %v2757_v55 = vmul.f32 %v2756_v34, %v6870_v9  ;;  %v2770_v53 = vstv %s6886_s7  ;;  %s7063_s7 = sld [smem:[#allocation3 + $0x31a]] }
 0x361   : > { %2615 = vrot.lane.b32.xlu1 %v2610_v23, %s8307_s26  ;;  %2627 = vrot.lane.b32.xlu0 %v2623_v22, %s8307_s26  ;;  %v2758_v23 = vmul.f32 %v2756_v34, %v6883_v32  ;;  %v2771_v22 = vmul.f32 %v2770_v53, %v6870_v9 }
 0x362   : > { %v6837_v62 = vadd.f32 %v2170_v12, %v2113_v58  ;;  %v6839_v35 = vadd.f32 %v2175_v20, %v2126_v57  ;;  %v2772_v12 = vmul.f32 %v2770_v53, %v6883_v32  ;;  %v2785_v20 = vmul.f32 %v2784_v29, %v6870_v9 }
 0x363   : > { %v2123_v56 = vpop.permute.xlu1 %2122  ;;  %v6841_v8 = vpop.permute.xlu0 %2185 }
 0x364   : > { %v2127_v11 = vadd.f32 %v2123_v56, %v2015_v49  ;;  %v2798_v49 = vstv %s6908_s15  ;;  %v2406_v56 = vstv %s6912_s29  ;;  %s7098_s15 = sld [smem:[#allocation3 + $0x1c]] }
 0x365   : > { %2629 = vrot.lane.b32.xlu1 %v2624_v60, %s8307_s26  ;;  %2641 = vrot.lane.b32.xlu0 %v2637_v21, %s8307_s26  ;;  %v2191_v60 = vadd.f32 %v6841_v8, %v6708_v48  ;;  %v2407_v61 = vmul.f32 %v2406_v56, %v6618_v17  ;;  %s7112_s29 = sld [smem:[#allocation3 + $0x9c]] }
 0x366   : > { %v6851_v33 = vadd.f32 %v2176_v43, %v2127_v11  ;;  %v2799_v43 = vmul.f32 %v2798_v49, %v6870_v9 }
 0x367   : > { %v6853_v18 = vpop.permute.xlu1 %2187  ;;  %v6855_v42 = vpop.permute.xlu0 %2199 }
 0x368   : > { %v2192_v48 = vadd.f32 %v6853_v18, %v6726_v7  ;;  %v2205_v8 = vadd.f32 %v6855_v42, %v6728_v41  ;;  %v2418_v41 = vstv %s6939_s2  ;;  %s7160_s2 = sld [smem:[#allocation3 + $0x29c]] }
 0x369   : > { %2643 = vrot.lane.b32.xlu1 %v2638_v38, %s8307_s26  ;;  %2655 = vrot.lane.b32.xlu0 %v2651_v19, %s8307_s26  ;;  %v2812_v19 = vstv %s6921_s1  ;;  %s7125_s1 = sld [smem:[#allocation3 + $0x11c]] }
 0x36a   : > { %v2813_v14 = vmul.f32 %v2812_v19, %v6870_v9  ;;  %v2814_v29 = vmul.f32 %v2812_v19, %v6883_v32 }
 0x36b   : > { %v6864_v50 = vpop.permute.xlu1 %2201  ;;  %v6866_v13 = vpop.permute.xlu0 %2213 }
 0x36c   : > { %v2206_v18 = vadd.f32 %v6864_v50, %v6746_v0  ;;  %v2219_v42 = vadd.f32 %v6866_v13, %v6748_v16  ;;  %v2419_v16 = vmul.f32 %v2418_v41, %v6618_v17  ;;  %v2424_v13 = vstv %s6954_s3  ;;  %s7173_s3 = sld [smem:[#allocation3 + $0x31c]] }
 0x36d   : > { %2657 = vrot.lane.b32.xlu1 %v2652_v28, %s8307_s26  ;;  %2669 = vrot.lane.b32.xlu0 %v2665_v37, %s8307_s26  ;;  %v2412_v28 = vstv %s6925_s8  ;;  %s7138_s8 = sld [smem:[#allocation3 + $0x19c]] }
 0x36e   : > { %v2413_v7 = vmul.f32 %v2412_v28, %v6618_v17  ;;  %v2414_v50 = vmul.f32 %v2412_v28, %v6631_v45  ;;  %v2854_v28 = vstv %s6965_s30  ;;  %s7177_s30 = sld [smem:[#allocation3 + $0x98]] }
 0x36f   : > { %v6877_v46 = vpop.permute.xlu1 %2215  ;;  %v6879_v4 = vpop.permute.xlu0 %2227 }
 0x371   : > { %2671 = vrot.lane.b32.xlu1 %v2666_v15, %s8307_s26  ;;  %2733 = vrot.lane.b32.xlu0 %v2729_v47, %s8306_s0  ;;  %v2800_v47 = vmul.f32 %v2798_v49, %v6883_v32 }
 0x373   : > { %v6890_v5 = vpop.permute.xlu1 %2229  ;;  %v6892_v10 = vpop.permute.xlu0 %2241 }
 0x375   : > { %2735 = vrot.lane.b32.xlu1 %v2730_v59, %s8306_s0  ;;  %2747 = vrot.lane.b32.xlu0 %v2743_v1, %s8306_s0  ;;  %v2826_v59 = vstv %s6933_s11  ;;  %s7149_s11 = sld [smem:[#allocation3 + $0x21c]] }
 0x376   : > { %v2828_v19 = vmul.f32 %v2826_v59, %v6883_v32 }
 0x377   : > { %v6901_v25 = vpop.permute.xlu1 %2243  ;;  %v6903_v39 = vpop.permute.xlu0 %2255 }
 0x379   : > { %2749 = vrot.lane.b32.xlu1 %v2744_v6, %s8306_s0  ;;  %2761 = vrot.lane.b32.xlu0 %v2757_v55, %s8306_s0  ;;  %v2408_v6 = vmul.f32 %v2406_v56, %v6631_v45  ;;  %v2220_v56 = vadd.f32 %v6877_v46, %v6766_v2  ;;  %v2420_v46 = vmul.f32 %v2418_v41, %v6631_v45 }
 0x37a   : > { %v2248_v41 = vadd.f32 %v6901_v25, %v6804_v40 }
 0x37b   : > { %v6914_v24 = vpop.permute.xlu1 %2257  ;;  %v6916_v27 = vpop.permute.xlu0 %2269 }
 0x37d   : > { %2763 = vrot.lane.b32.xlu1 %v2758_v23, %s8306_s0  ;;  %2775 = vrot.lane.b32.xlu0 %v2771_v22, %s8306_s0 }
 0x37f   : > { %v6927_v58 = vpop.permute.xlu1 %2271  ;;  %v6929_v57 = vpop.permute.xlu0 %2283 }
 0x381   : > { %2777 = vrot.lane.b32.xlu1 %v2772_v12, %s8306_s0  ;;  %2789 = vrot.lane.b32.xlu0 %v2785_v20, %s8306_s0  ;;  %v2827_v12 = vmul.f32 %v2826_v59, %v6870_v9  ;;  %v2840_v20 = vstv %s6947_s27  ;;  %s7164_s27 = sld [smem:[#allocation3 + $0x18]] }
 0x383   : > { %v6943_v21 = vpop.permute.xlu1 %2285  ;;  %v2298_v11 = vpop.permute.xlu0 %2297 }
 0x384   : > { %v2303_v38 = vadd.f32 %v2298_v11, %v2191_v60  ;;  %v2233_v60 = vadd.f32 %v6879_v4, %v6768_v51  ;;  %v2425_v51 = vmul.f32 %v2424_v13, %v6618_v17  ;;  %v2430_v4 = vstv %s6972_s16  ;;  %s7185_s16 = sld [smem:[#allocation3 + $0x39c]] }
 0x385   : > { %2791 = vrot.lane.b32.xlu1 %v2786_v63, %s8306_s0  ;;  %2803 = vrot.lane.b32.xlu0 %v2799_v43, %s8306_s0  ;;  %v2432_v25 = vmul.f32 %v2430_v4, %v6631_v45 }
 0x386   : > { %v6960_v37 = vadd.f32 %v2407_v61, %v2303_v38  ;;  %v2841_v61 = vmul.f32 %v2840_v20, %v6870_v9 }
 0x387   : > { %v2300_v30 = vpop.permute.xlu1 %2299  ;;  %v2312_v15 = vpop.permute.xlu0 %2311 }
 0x388   : > { %v2304_v1 = vadd.f32 %v2300_v30, %v2192_v48  ;;  %v2317_v34 = vadd.f32 %v2312_v15, %v2205_v8  ;;  %v2234_v8 = vadd.f32 %v6890_v5, %v6786_v44  ;;  %v2247_v30 = vadd.f32 %v6892_v10, %v6788_v36 }
 0x389   : > { %2805 = vrot.lane.b32.xlu1 %v2800_v47, %s8306_s0  ;;  %2817 = vrot.lane.b32.xlu0 %v2813_v14, %s8306_s0  ;;  %v2426_v5 = vmul.f32 %v2424_v13, %v6631_v45  ;;  %v2431_v36 = vmul.f32 %v2430_v4, %v6618_v17  ;;  %v2436_v10 = vstv %s6992_s19  ;;  %s7199_s19 = sld [smem:[#allocation3 + $0x1d]] }
 0x38a   : > { %v6978_v55 = vadd.f32 %v2408_v6, %v2304_v1  ;;  %v6980_v53 = vadd.f32 %v2413_v7, %v2317_v34  ;;  %v2842_v1 = vmul.f32 %v2840_v20, %v6883_v32  ;;  %v2855_v34 = vmul.f32 %v2854_v28, %v6870_v9 }
 0x38b   : > { %v2314_v23 = vpop.permute.xlu1 %2313  ;;  %v2326_v22 = vpop.permute.xlu0 %2325  ;;  %v2868_v6 = vstv %s6985_s12  ;;  %s7191_s12 = sld [smem:[#allocation3 + $0x118]] }
 0x38c   : > { %v2318_v49 = vadd.f32 %v2314_v23, %v2206_v18  ;;  %v2331_v0 = vadd.f32 %v2326_v22, %v2219_v42  ;;  %v2261_v18 = vadd.f32 %v6903_v39, %v6806_v52  ;;  %v2869_v20 = vmul.f32 %v2868_v6, %v6870_v9 }
 0x38d   : > { %2819 = vrot.lane.b32.xlu1 %v2814_v29, %s8306_s0  ;;  %2831 = vrot.lane.b32.xlu0 %v2827_v12, %s8306_s0  ;;  %v2856_v12 = vmul.f32 %v2854_v28, %v6883_v32  ;;  %v2437_v52 = vmul.f32 %v2436_v10, %v6618_v17  ;;  %v2442_v39 = vstv %s7012_s13  ;;  %s7217_s13 = sld [smem:[#allocation3 + $0x9d]] }
 0x38e   : > { %v6998_v11 = vadd.f32 %v2414_v50, %v2318_v49  ;;  %v7000_v63 = vadd.f32 %v2419_v16, %v2331_v0  ;;  %v2882_v49 = vstv %s7005_s20  ;;  %v2262_v50 = vadd.f32 %v6914_v24, %v6822_v54  ;;  %s7206_s20 = sld [smem:[#allocation3 + $0x198]] }
 0x38f   : > { %v2328_v43 = vpop.permute.xlu1 %2327  ;;  %v2340_v38 = vpop.permute.xlu0 %2339  ;;  %v2275_v16 = vadd.f32 %v6916_v27, %v6824_v3  ;;  %v2438_v54 = vmul.f32 %v2436_v10, %v6631_v45  ;;  %v2443_v3 = vmul.f32 %v2442_v39, %v6618_v17  ;;  %v2448_v24 = vstv %s7032_s22  ;;  %s7237_s22 = sld [smem:[#allocation3 + $0x11d]] }
 0x390   : > { %v2332_v48 = vadd.f32 %v2328_v43, %v2220_v56  ;;  %v2345_v2 = vadd.f32 %v2340_v38, %v2233_v60  ;;  %v2870_v38 = vmul.f32 %v2868_v6, %v6883_v32  ;;  %v2276_v27 = vadd.f32 %v6927_v58, %v6837_v62 }
 0x391   : > { %2833 = vrot.lane.b32.xlu1 %v2828_v19, %s8306_s0  ;;  %2845 = vrot.lane.b32.xlu0 %v2841_v61, %s8307_s26  ;;  %v2883_v19 = vmul.f32 %v2882_v49, %v6870_v9  ;;  %v2896_v61 = vstv %s7025_s28  ;;  %v2444_v62 = vmul.f32 %v2442_v39, %v6631_v45  ;;  %v2290_v58 = vadd.f32 %v6943_v21, %v6851_v33  ;;  %s7224_s28 = sld [smem:[#allocation3 + $0x218]] }
 0x392   : > { %v7018_v15 = vadd.f32 %v2420_v46, %v2332_v48  ;;  %v7020_v47 = vadd.f32 %v2425_v51, %v2345_v2  ;;  %v2289_v2 = vadd.f32 %v6929_v57, %v6839_v35  ;;  %v2449_v35 = vmul.f32 %v2448_v24, %v6618_v17 }
 0x393   : > { %v2342_v14 = vpop.permute.xlu1 %2341  ;;  %v2354_v59 = vpop.permute.xlu0 %2353  ;;  %v2924_v10 = vstv %s7063_s7  ;;  %s7257_s7 = sld [smem:[#allocation3 + $0x19d]] }
 0x394   : > { %v2346_v7 = vadd.f32 %v2342_v14, %v2234_v8  ;;  %v2359_v44 = vadd.f32 %v2354_v59, %v2247_v30  ;;  %v2884_v30 = vmul.f32 %v2882_v49, %v6883_v32  ;;  %v2897_v14 = vmul.f32 %v2896_v61, %v6870_v9 }
 0x395   : > { %2847 = vrot.lane.b32.xlu1 %v2842_v1, %s8307_s26  ;;  %2859 = vrot.lane.b32.xlu0 %v2855_v34, %s8307_s26  ;;  %v2910_v59 = vstv %s7045_s23  ;;  %v2926_v49 = vmul.f32 %v2924_v10, %v6883_v32  ;;  %s7244_s23 = sld [smem:[#allocation3 + $0x298]] }
 0x396   : > { %v7038_v42 = vadd.f32 %v2426_v5, %v2346_v7  ;;  %v7040_v23 = vadd.f32 %v2431_v36, %v2359_v44  ;;  %v2898_v5 = vmul.f32 %v2896_v61, %v6883_v32  ;;  %v2911_v36 = vmul.f32 %v2910_v59, %v6870_v9 }
 0x397   : > { %v2356_v22 = vpop.permute.xlu1 %2355  ;;  %v2368_v29 = vpop.permute.xlu0 %2367 }
 0x398   : > { %v2360_v0 = vadd.f32 %v2356_v22, %v2248_v41  ;;  %v2373_v40 = vadd.f32 %v2368_v29, %v2261_v18  ;;  %v2450_v41 = vmul.f32 %v2448_v24, %v6631_v45  ;;  %v2912_v22 = vmul.f32 %v2910_v59, %v6883_v32 }
 0x399   : > { %2861 = vrot.lane.b32.xlu1 %v2856_v12, %s8307_s26  ;;  %2873 = vrot.lane.b32.xlu0 %v2869_v20, %s8307_s26  ;;  %v2925_v29 = vmul.f32 %v2924_v10, %v6870_v9  ;;  %v2938_v12 = vstv %s7081_s17  ;;  %v3059_v59 = vstv %s7149_s11  ;;  %s7264_s17 = sld [smem:[#allocation3 + $0x318]] }
 0x39a   : > { %v7056_v13 = vadd.f32 %v2432_v25, %v2360_v0  ;;  %v7058_v56 = vadd.f32 %v2437_v52, %v2373_v40  ;;  %v2939_v0 = vmul.f32 %v2938_v12, %v6870_v9  ;;  %v7122_v40 = vld [vmem:[#allocation2 + $0x48] sm:$0xff]  ;;  %v3003_v25 = vstv %s7098_s15  ;;  %s7277_s15 = sld [smem:[#allocation3 + $0x21d]] }
 0x39b   : > { %v2370_v60 = vpop.permute.xlu1 %2369  ;;  %v2382_v43 = vpop.permute.xlu0 %2381  ;;  %s7333_s11 = sld [smem:[#allocation3 + $0x39d]] }
 0x39c   : > { %v2374_v28 = vadd.f32 %v2370_v60, %v2262_v50  ;;  %v2387_v48 = vadd.f32 %v2382_v43, %v2275_v16  ;;  %v2940_v50 = vmul.f32 %v2938_v12, %v6883_v32  ;;  %v3004_v16 = vmul.f32 %v3003_v25, %v7122_v40  ;;  %v7135_v60 = vld [vmem:[#allocation2 + $0x50] sm:$0xff] }
 0x39d   : > { %2875 = vrot.lane.b32.xlu1 %v2870_v38, %s8307_s26  ;;  %2887 = vrot.lane.b32.xlu0 %v2883_v19, %s8307_s26  ;;  %v3017_v43 = vstv %s7112_s29  ;;  %v3005_v61 = vmul.f32 %v3003_v25, %v7135_v60  ;;  %v3061_v10 = vmul.f32 %v3059_v59, %v7135_v60  ;;  %s7284_s29 = sld [smem:[#allocation3 + $0x398]] }
 0x39e   : > { %v7074_v46 = vadd.f32 %v2438_v54, %v2374_v28  ;;  %v7076_v51 = vadd.f32 %v2443_v3, %v2387_v48  ;;  %v3018_v28 = vmul.f32 %v3017_v43, %v7122_v40  ;;  %v3031_v48 = vstv %s7125_s1  ;;  %s7297_s1 = sld [smem:[#allocation3 + $0x29d]] }
 0x39f   : > { %v2384_v4 = vpop.permute.xlu1 %2383  ;;  %v2396_v8 = vpop.permute.xlu0 %2395  ;;  %v3019_v24 = vmul.f32 %v3017_v43, %v7135_v60 }
 0x3a0   : > { %v2388_v1 = vadd.f32 %v2384_v4, %v2276_v27  ;;  %v2401_v34 = vadd.f32 %v2396_v8, %v2289_v2  ;;  %v3032_v27 = vmul.f32 %v3031_v48, %v7122_v40  ;;  %v3045_v2 = vstv %s7138_s8  ;;  %s7315_s8 = sld [smem:[#allocation3 + $0x31d]] }
 0x3a1   : > { %2889 = vrot.lane.b32.xlu1 %v2884_v30, %s8307_s26  ;;  %2901 = vrot.lane.b32.xlu0 %v2897_v14, %s8307_s26  ;;  %v3033_v30 = vmul.f32 %v3031_v48, %v7135_v60  ;;  %v3046_v14 = vmul.f32 %v3045_v2, %v7122_v40 }
 0x3a2   : > { %v7089_v57 = vadd.f32 %v2444_v62, %v2388_v1  ;;  %v7091_v6 = vadd.f32 %v2449_v35, %v2401_v34  ;;  %v3047_v62 = vmul.f32 %v3045_v2, %v7135_v60  ;;  %v3060_v35 = vmul.f32 %v3059_v59, %v7122_v40 }
 0x3a3   : > { %v2398_v7 = vpop.permute.xlu1 %2397  ;;  %v7093_v44 = vpop.permute.xlu0 %2459 }
 0x3a4   : > { %v2402_v17 = vadd.f32 %v2398_v7, %v2290_v58  ;;  %v3073_v58 = vstv %s7160_s2  ;;  %v2680_v7 = vstv %s7164_s27  ;;  %s7350_s2 = sld [smem:[#allocation3 + $0x1f]] }
 0x3a5   : > { %2903 = vrot.lane.b32.xlu1 %v2898_v5, %s8307_s26  ;;  %2915 = vrot.lane.b32.xlu0 %v2911_v36, %s8307_s26  ;;  %v2465_v5 = vadd.f32 %v7093_v44, %v6960_v37  ;;  %v2681_v12 = vmul.f32 %v2680_v7, %v6870_v9  ;;  %s7364_s27 = sld [smem:[#allocation3 + $0x9f]] }
 0x3a6   : > { %v7103_v33 = vadd.f32 %v2450_v41, %v2402_v17  ;;  %v3074_v41 = vmul.f32 %v3073_v58, %v7122_v40 }
 0x3a7   : > { %v7105_v21 = vpop.permute.xlu1 %2461  ;;  %v7107_v18 = vpop.permute.xlu0 %2473 }
 0x3a8   : > { %v2466_v37 = vadd.f32 %v7105_v21, %v6978_v55  ;;  %v2479_v44 = vadd.f32 %v7107_v18, %v6980_v53  ;;  %v2692_v53 = vstv %s7191_s12  ;;  %s7412_s12 = sld [smem:[#allocation3 + $0x29f]] }
 0x3a9   : > { %2917 = vrot.lane.b32.xlu1 %v2912_v22, %s8307_s26  ;;  %2929 = vrot.lane.b32.xlu0 %v2925_v29, %s8307_s26  ;;  %v3087_v29 = vstv %s7173_s3  ;;  %s7377_s3 = sld [smem:[#allocation3 + $0x11f]] }
 0x3aa   : > { %v3088_v43 = vmul.f32 %v3087_v29, %v7122_v40  ;;  %v3089_v59 = vmul.f32 %v3087_v29, %v7135_v60 }
 0x3ab   : > { %v7116_v45 = vpop.permute.xlu1 %2475  ;;  %v7118_v20 = vpop.permute.xlu0 %2487 }
 0x3ac   : > { %v2480_v21 = vadd.f32 %v7116_v45, %v6998_v11  ;;  %v2493_v18 = vadd.f32 %v7118_v20, %v7000_v63  ;;  %v2693_v63 = vmul.f32 %v2692_v53, %v6870_v9  ;;  %v2698_v20 = vstv %s7206_s20  ;;  %s7425_s20 = sld [smem:[#allocation3 + $0x31f]] }
 0x3ad   : > { %2931 = vrot.lane.b32.xlu1 %v2926_v49, %s8307_s26  ;;  %2943 = vrot.lane.b32.xlu0 %v2939_v0, %s8307_s26  ;;  %v2686_v49 = vstv %s7177_s30  ;;  %s7390_s30 = sld [smem:[#allocation3 + $0x19f]] }
 0x3ae   : > { %v2687_v55 = vmul.f32 %v2686_v49, %v6870_v9  ;;  %v2688_v45 = vmul.f32 %v2686_v49, %v6883_v32  ;;  %v3129_v49 = vstv %s7217_s13  ;;  %s7429_s13 = sld [smem:[#allocation3 + $0x9b]] }
 0x3af   : > { %v7129_v52 = vpop.permute.xlu1 %2489  ;;  %v7131_v39 = vpop.permute.xlu0 %2501 }
 0x3b1   : > { %2945 = vrot.lane.b32.xlu1 %v2940_v50, %s8307_s26  ;;  %3008 = vrot.lane.b32.xlu0 %v3004_v16, %s8306_s0  ;;  %v3075_v16 = vmul.f32 %v3073_v58, %v7135_v60 }
 0x3b3   : > { %v7142_v38 = vpop.permute.xlu1 %2503  ;;  %v7144_v19 = vpop.permute.xlu0 %2515 }
 0x3b5   : > { %3010 = vrot.lane.b32.xlu1 %v3005_v61, %s8306_s0  ;;  %3022 = vrot.lane.b32.xlu0 %v3018_v28, %s8306_s0  ;;  %v3101_v61 = vstv %s7185_s16  ;;  %s7401_s16 = sld [smem:[#allocation3 + $0x21f]] }
 0x3b6   : > { %v3103_v29 = vmul.f32 %v3101_v61, %v7135_v60 }
 0x3b7   : > { %v7153_v54 = vpop.permute.xlu1 %2517  ;;  %v7155_v3 = vpop.permute.xlu0 %2529 }
 0x3b9   : > { %3024 = vrot.lane.b32.xlu1 %v3019_v24, %s8306_s0  ;;  %3036 = vrot.lane.b32.xlu0 %v3032_v27, %s8306_s0  ;;  %v2682_v24 = vmul.f32 %v2680_v7, %v6883_v32  ;;  %v2494_v7 = vadd.f32 %v7129_v52, %v7018_v15  ;;  %v2694_v52 = vmul.f32 %v2692_v53, %v6883_v32 }
 0x3ba   : > { %v2522_v53 = vadd.f32 %v7153_v54, %v7056_v13 }
 0x3bb   : > { %v7166_v4 = vpop.permute.xlu1 %2531  ;;  %v7168_v8 = vpop.permute.xlu0 %2543 }
 0x3bd   : > { %3038 = vrot.lane.b32.xlu1 %v3033_v30, %s8306_s0  ;;  %3050 = vrot.lane.b32.xlu0 %v3046_v14, %s8306_s0 }
 0x3bf   : > { %v7179_v1 = vpop.permute.xlu1 %2545  ;;  %v7181_v34 = vpop.permute.xlu0 %2557 }
 0x3c1   : > { %3052 = vrot.lane.b32.xlu1 %v3047_v62, %s8306_s0  ;;  %3064 = vrot.lane.b32.xlu0 %v3060_v35, %s8306_s0  ;;  %v3102_v62 = vmul.f32 %v3101_v61, %v7122_v40  ;;  %v3115_v35 = vstv %s7199_s19  ;;  %s7416_s19 = sld [smem:[#allocation3 + $0x1b]] }
 0x3c3   : > { %v7195_v36 = vpop.permute.xlu1 %2559  ;;  %v2572_v17 = vpop.permute.xlu0 %2571 }
 0x3c4   : > { %v2577_v22 = vadd.f32 %v2572_v17, %v2465_v5  ;;  %v2507_v5 = vadd.f32 %v7131_v39, %v7020_v47  ;;  %v2699_v47 = vmul.f32 %v2698_v20, %v6870_v9  ;;  %v2704_v39 = vstv %s7224_s28  ;;  %s7437_s28 = sld [smem:[#allocation3 + $0x39f]] }
 0x3c5   : > { %3066 = vrot.lane.b32.xlu1 %v3061_v10, %s8306_s0  ;;  %3078 = vrot.lane.b32.xlu0 %v3074_v41, %s8306_s0  ;;  %v2706_v54 = vmul.f32 %v2704_v39, %v6883_v32 }
 0x3c6   : > { %v7212_v0 = vadd.f32 %v2681_v12, %v2577_v22  ;;  %v3116_v12 = vmul.f32 %v3115_v35, %v7122_v40 }
 0x3c7   : > { %v2574_v25 = vpop.permute.xlu1 %2573  ;;  %v2586_v50 = vpop.permute.xlu0 %2585 }
 0x3c8   : > { %v2578_v28 = vadd.f32 %v2574_v25, %v2466_v37  ;;  %v2591_v48 = vadd.f32 %v2586_v50, %v2479_v44  ;;  %v2508_v44 = vadd.f32 %v7142_v38, %v7038_v42  ;;  %v2521_v25 = vadd.f32 %v7144_v19, %v7040_v23 }
 0x3c9   : > { %3080 = vrot.lane.b32.xlu1 %v3075_v16, %s8306_s0  ;;  %3092 = vrot.lane.b32.xlu0 %v3088_v43, %s8306_s0  ;;  %v2700_v38 = vmul.f32 %v2698_v20, %v6883_v32  ;;  %v2705_v23 = vmul.f32 %v2704_v39, %v6870_v9  ;;  %v2710_v19 = vstv %s7244_s23  ;;  %s7451_s23 = sld [smem:[#allocation3 + $0x20]] }
 0x3ca   : > { %v7230_v27 = vadd.f32 %v2682_v24, %v2578_v28  ;;  %v7232_v2 = vadd.f32 %v2687_v55, %v2591_v48  ;;  %v3117_v28 = vmul.f32 %v3115_v35, %v7135_v60  ;;  %v3130_v48 = vmul.f32 %v3129_v49, %v7122_v40 }
 0x3cb   : > { %v2588_v30 = vpop.permute.xlu1 %2587  ;;  %v2600_v14 = vpop.permute.xlu0 %2599  ;;  %v3143_v24 = vstv %s7237_s22  ;;  %s7443_s22 = sld [smem:[#allocation3 + $0x11b]] }
 0x3cc   : > { %v2592_v58 = vadd.f32 %v2588_v30, %v2480_v21  ;;  %v2605_v11 = vadd.f32 %v2600_v14, %v2493_v18  ;;  %v2535_v21 = vadd.f32 %v7155_v3, %v7058_v56  ;;  %v3144_v35 = vmul.f32 %v3143_v24, %v7122_v40 }
 0x3cd   : > { %3094 = vrot.lane.b32.xlu1 %v3089_v59, %s8306_s0  ;;  %3106 = vrot.lane.b32.xlu0 %v3102_v62, %s8306_s0  ;;  %v3131_v62 = vmul.f32 %v3129_v49, %v7135_v60  ;;  %v2711_v56 = vmul.f32 %v2710_v19, %v6870_v9  ;;  %v2716_v3 = vstv %s7264_s17  ;;  %s7469_s17 = sld [smem:[#allocation3 + $0xa0]] }
 0x3ce   : > { %v7250_v17 = vadd.f32 %v2688_v45, %v2592_v58  ;;  %v7252_v10 = vadd.f32 %v2693_v63, %v2605_v11  ;;  %v3157_v58 = vstv %s7257_s7  ;;  %v2536_v45 = vadd.f32 %v7166_v4, %v7074_v46  ;;  %s7458_s7 = sld [smem:[#allocation3 + $0x19b]] }
 0x3cf   : > { %v2602_v41 = vpop.permute.xlu1 %2601  ;;  %v2614_v22 = vpop.permute.xlu0 %2613  ;;  %v2549_v63 = vadd.f32 %v7168_v8, %v7076_v51  ;;  %v2712_v46 = vmul.f32 %v2710_v19, %v6883_v32  ;;  %v2717_v51 = vmul.f32 %v2716_v3, %v6870_v9  ;;  %v2722_v4 = vstv %s7284_s29  ;;  %s7489_s29 = sld [smem:[#allocation3 + $0x120]] }
 0x3d0   : > { %v2606_v37 = vadd.f32 %v2602_v41, %v2494_v7  ;;  %v2619_v15 = vadd.f32 %v2614_v22, %v2507_v5  ;;  %v3145_v22 = vmul.f32 %v3143_v24, %v7135_v60  ;;  %v2550_v8 = vadd.f32 %v7179_v1, %v7089_v57 }
 0x3d1   : > { %3108 = vrot.lane.b32.xlu1 %v3103_v29, %s8306_s0  ;;  %3120 = vrot.lane.b32.xlu0 %v3116_v12, %s8307_s26  ;;  %v3158_v29 = vmul.f32 %v3157_v58, %v7122_v40  ;;  %v3171_v12 = vstv %s7277_s15  ;;  %v2718_v57 = vmul.f32 %v2716_v3, %v6883_v32  ;;  %v2564_v1 = vadd.f32 %v7195_v36, %v7103_v33  ;;  %s7476_s15 = sld [smem:[#allocation3 + $0x21b]] }
 0x3d2   : > { %v7270_v50 = vadd.f32 %v2694_v52, %v2606_v37  ;;  %v7272_v16 = vadd.f32 %v2699_v47, %v2619_v15  ;;  %v2563_v15 = vadd.f32 %v7181_v34, %v7091_v6  ;;  %v2723_v6 = vmul.f32 %v2722_v4, %v6870_v9 }
 0x3d3   : > { %v2616_v43 = vpop.permute.xlu1 %2615  ;;  %v2628_v61 = vpop.permute.xlu0 %2627  ;;  %v3199_v19 = vstv %s7315_s8  ;;  %s7509_s8 = sld [smem:[#allocation3 + $0x1a0]] }
 0x3d4   : > { %v2620_v55 = vadd.f32 %v2616_v43, %v2508_v44  ;;  %v2633_v42 = vadd.f32 %v2628_v61, %v2521_v25  ;;  %v3159_v25 = vmul.f32 %v3157_v58, %v7135_v60  ;;  %v3172_v43 = vmul.f32 %v3171_v12, %v7122_v40 }
 0x3d5   : > { %3122 = vrot.lane.b32.xlu1 %v3117_v28, %s8307_s26  ;;  %3134 = vrot.lane.b32.xlu0 %v3130_v48, %s8307_s26  ;;  %v3185_v61 = vstv %s7297_s1  ;;  %v3201_v58 = vmul.f32 %v3199_v19, %v7135_v60  ;;  %s7496_s1 = sld [smem:[#allocation3 + $0x29b]] }
 0x3d6   : > { %v7290_v18 = vadd.f32 %v2700_v38, %v2620_v55  ;;  %v7292_v30 = vadd.f32 %v2705_v23, %v2633_v42  ;;  %v3173_v38 = vmul.f32 %v3171_v12, %v7135_v60  ;;  %v3186_v23 = vmul.f32 %v3185_v61, %v7122_v40 }
 0x3d7   : > { %v2630_v14 = vpop.permute.xlu1 %2629  ;;  %v2642_v59 = vpop.permute.xlu0 %2641 }
 0x3d8   : > { %v2634_v11 = vadd.f32 %v2630_v14, %v2522_v53  ;;  %v2647_v13 = vadd.f32 %v2642_v59, %v2535_v21  ;;  %v2724_v53 = vmul.f32 %v2722_v4, %v6883_v32  ;;  %v3187_v14 = vmul.f32 %v3185_v61, %v7135_v60 }
 0x3d9   : > { %3136 = vrot.lane.b32.xlu1 %v3131_v62, %s8307_s26  ;;  %3148 = vrot.lane.b32.xlu0 %v3144_v35, %s8307_s26  ;;  %v3200_v59 = vmul.f32 %v3199_v19, %v7122_v40  ;;  %v3213_v62 = vstv %s7333_s11  ;;  %v3333_v61 = vstv %s7401_s16  ;;  %s7516_s11 = sld [smem:[#allocation3 + $0x31b]] }
 0x3da   : > { %v7308_v20 = vadd.f32 %v2706_v54, %v2634_v11  ;;  %v7310_v7 = vadd.f32 %v2711_v56, %v2647_v13  ;;  %v3214_v11 = vmul.f32 %v3213_v62, %v7122_v40  ;;  %v7374_v13 = vld [vmem:[#allocation2 + $0x49] sm:$0xff]  ;;  %v3277_v54 = vstv %s7350_s2  ;;  %s7529_s2 = sld [smem:[#allocation3 + $0x220]] }
 0x3db   : > { %v2644_v5 = vpop.permute.xlu1 %2643  ;;  %v2656_v41 = vpop.permute.xlu0 %2655  ;;  %s7585_s16 = sld [smem:[#allocation3 + $0x3a0]] }
 0x3dc   : > { %v2648_v49 = vadd.f32 %v2644_v5, %v2536_v45  ;;  %v2661_v37 = vadd.f32 %v2656_v41, %v2549_v63  ;;  %v3215_v45 = vmul.f32 %v3213_v62, %v7135_v60  ;;  %v3278_v63 = vmul.f32 %v3277_v54, %v7374_v13  ;;  %v7387_v5 = vld [vmem:[#allocation2 + $0x51] sm:$0xff] }
 0x3dd   : > { %3150 = vrot.lane.b32.xlu1 %v3145_v22, %s8307_s26  ;;  %3162 = vrot.lane.b32.xlu0 %v3158_v29, %s8307_s26  ;;  %v3291_v41 = vstv %s7364_s27  ;;  %v3279_v12 = vmul.f32 %v3277_v54, %v7387_v5  ;;  %v3335_v19 = vmul.f32 %v3333_v61, %v7387_v5  ;;  %s7536_s27 = sld [smem:[#allocation3 + $0x39b]] }
 0x3de   : > { %v7326_v52 = vadd.f32 %v2712_v46, %v2648_v49  ;;  %v7328_v47 = vadd.f32 %v2717_v51, %v2661_v37  ;;  %v3292_v49 = vmul.f32 %v3291_v41, %v7374_v13  ;;  %v3305_v37 = vstv %s7377_s3  ;;  %s7549_s3 = sld [smem:[#allocation3 + $0x2a0]] }
 0x3df   : > { %v2658_v39 = vpop.permute.xlu1 %2657  ;;  %v2670_v44 = vpop.permute.xlu0 %2669  ;;  %v3293_v4 = vmul.f32 %v3291_v41, %v7387_v5 }
 0x3e0   : > { %v2662_v28 = vadd.f32 %v2658_v39, %v2550_v8  ;;  %v2675_v48 = vadd.f32 %v2670_v44, %v2563_v15  ;;  %v3306_v8 = vmul.f32 %v3305_v37, %v7374_v13  ;;  %v3319_v15 = vstv %s7390_s30  ;;  %s7567_s30 = sld [smem:[#allocation3 + $0x320]] }
 0x3e1   : > { %3164 = vrot.lane.b32.xlu1 %v3159_v25, %s8307_s26  ;;  %3176 = vrot.lane.b32.xlu0 %v3172_v43, %s8307_s26  ;;  %v3307_v25 = vmul.f32 %v3305_v37, %v7387_v5  ;;  %v3320_v43 = vmul.f32 %v3319_v15, %v7374_v13 }
 0x3e2   : > { %v7341_v34 = vadd.f32 %v2718_v57, %v2662_v28  ;;  %v7343_v24 = vadd.f32 %v2723_v6, %v2675_v48  ;;  %v3321_v57 = vmul.f32 %v3319_v15, %v7387_v5  ;;  %v3334_v6 = vmul.f32 %v3333_v61, %v7374_v13 }
 0x3e3   : > { %v2672_v55 = vpop.permute.xlu1 %2671  ;;  %v7345_v42 = vpop.permute.xlu0 %2733 }
 0x3e4   : > { %v2676_v9 = vadd.f32 %v2672_v55, %v2564_v1  ;;  %v3347_v1 = vstv %s7412_s12  ;;  %v2955_v55 = vstv %s7416_s19  ;;  %s7603_s12 = sld [smem:[#allocation3 + $0x22]] }
 0x3e5   : > { %3178 = vrot.lane.b32.xlu1 %v3173_v38, %s8307_s26  ;;  %3190 = vrot.lane.b32.xlu0 %v3186_v23, %s8307_s26  ;;  %v2739_v38 = vadd.f32 %v7345_v42, %v7212_v0  ;;  %v2956_v62 = vmul.f32 %v2955_v55, %v7122_v40  ;;  %s7619_s19 = sld [smem:[#allocation3 + $0xa2]] }
 0x3e6   : > { %v7355_v33 = vadd.f32 %v2724_v53, %v2676_v9  ;;  %v3348_v53 = vmul.f32 %v3347_v1, %v7374_v13 }
 0x3e7   : > { %v7357_v36 = vpop.permute.xlu1 %2735  ;;  %v7359_v21 = vpop.permute.xlu0 %2747 }
 0x3e8   : > { %v2740_v0 = vadd.f32 %v7357_v36, %v7230_v27  ;;  %v2753_v42 = vadd.f32 %v7359_v21, %v7232_v2  ;;  %v2967_v2 = vstv %s7443_s22  ;;  %s7675_s22 = sld [smem:[#allocation3 + $0x2a2]] }
 0x3e9   : > { %3192 = vrot.lane.b32.xlu1 %v3187_v14, %s8307_s26  ;;  %3204 = vrot.lane.b32.xlu0 %v3200_v59, %s8307_s26  ;;  %v3361_v59 = vstv %s7425_s20  ;;  %s7634_s20 = sld [smem:[#allocation3 + $0x122]] }
 0x3ea   : > { %v3362_v41 = vmul.f32 %v3361_v59, %v7374_v13  ;;  %v3363_v61 = vmul.f32 %v3361_v59, %v7387_v5 }
 0x3eb   : > { %v7368_v32 = vpop.permute.xlu1 %2749  ;;  %v7370_v35 = vpop.permute.xlu0 %2761 }
 0x3ec   : > { %v2754_v36 = vadd.f32 %v7368_v32, %v7250_v17  ;;  %v2767_v21 = vadd.f32 %v7370_v35, %v7252_v10  ;;  %v2968_v10 = vmul.f32 %v2967_v2, %v7122_v40  ;;  %v2973_v35 = vstv %s7458_s7  ;;  %s7690_s7 = sld [smem:[#allocation3 + $0x322]] }
 0x3ed   : > { %3206 = vrot.lane.b32.xlu1 %v3201_v58, %s8307_s26  ;;  %3218 = vrot.lane.b32.xlu0 %v3214_v11, %s8307_s26  ;;  %v2961_v58 = vstv %s7429_s13  ;;  %s7649_s13 = sld [smem:[#allocation3 + $0x1a2]] }
 0x3ee   : > { %v2962_v27 = vmul.f32 %v2961_v58, %v7122_v40  ;;  %v2963_v32 = vmul.f32 %v2961_v58, %v7135_v60  ;;  %v3403_v58 = vstv %s7469_s17  ;;  %s7694_s17 = sld [smem:[#allocation3 + $0x9e]] }
 0x3ef   : > { %v7381_v56 = vpop.permute.xlu1 %2763  ;;  %v7383_v3 = vpop.permute.xlu0 %2775 }
 0x3f1   : > { %3220 = vrot.lane.b32.xlu1 %v3215_v45, %s8307_s26  ;;  %3282 = vrot.lane.b32.xlu0 %v3278_v63, %s8306_s0  ;;  %v3349_v63 = vmul.f32 %v3347_v1, %v7387_v5 }
 0x3f3   : > { %v7394_v22 = vpop.permute.xlu1 %2777  ;;  %v7396_v29 = vpop.permute.xlu0 %2789 }
 0x3f5   : > { %3284 = vrot.lane.b32.xlu1 %v3279_v12, %s8306_s0  ;;  %3296 = vrot.lane.b32.xlu0 %v3292_v49, %s8306_s0  ;;  %v3375_v12 = vstv %s7437_s28  ;;  %s7662_s28 = sld [smem:[#allocation3 + $0x222]] }
 0x3f6   : > { %v3377_v59 = vmul.f32 %v3375_v12, %v7387_v5 }
 0x3f7   : > { %v7405_v46 = vpop.permute.xlu1 %2791  ;;  %v7407_v51 = vpop.permute.xlu0 %2803 }
 0x3f9   : > { %3298 = vrot.lane.b32.xlu1 %v3293_v4, %s8306_s0  ;;  %3310 = vrot.lane.b32.xlu0 %v3306_v8, %s8306_s0  ;;  %v2957_v4 = vmul.f32 %v2955_v55, %v7135_v60  ;;  %v2768_v55 = vadd.f32 %v7381_v56, %v7270_v50  ;;  %v2969_v56 = vmul.f32 %v2967_v2, %v7135_v60 }
 0x3fa   : > { %v2796_v2 = vadd.f32 %v7405_v46, %v7308_v20 }
 0x3fb   : > { %v7418_v39 = vpop.permute.xlu1 %2805  ;;  %v7420_v44 = vpop.permute.xlu0 %2817 }
 0x3fd   : > { %3312 = vrot.lane.b32.xlu1 %v3307_v25, %s8306_s0  ;;  %3324 = vrot.lane.b32.xlu0 %v3320_v43, %s8306_s0 }
 0x3ff   : > { %v7431_v28 = vpop.permute.xlu1 %2819  ;;  %v7433_v48 = vpop.permute.xlu0 %2831 }
 0x401   : > { %3326 = vrot.lane.b32.xlu1 %v3321_v57, %s8306_s0  ;;  %3338 = vrot.lane.b32.xlu0 %v3334_v6, %s8306_s0  ;;  %v3376_v57 = vmul.f32 %v3375_v12, %v7374_v13  ;;  %v3389_v6 = vstv %s7451_s23  ;;  %s7679_s23 = sld [smem:[#allocation3 + $0x1e]] }
 0x403   : > { %v7447_v23 = vpop.permute.xlu1 %2833  ;;  %v2846_v9 = vpop.permute.xlu0 %2845 }
 0x404   : > { %v2851_v14 = vadd.f32 %v2846_v9, %v2739_v38  ;;  %v2781_v38 = vadd.f32 %v7383_v3, %v7272_v16  ;;  %v2974_v16 = vmul.f32 %v2973_v35, %v7122_v40  ;;  %v2979_v3 = vstv %s7476_s15  ;;  %s7698_s15 = sld [smem:[#allocation3 + $0x3a2]] }
 0x405   : > { %3340 = vrot.lane.b32.xlu1 %v3335_v19, %s8306_s0  ;;  %3352 = vrot.lane.b32.xlu0 %v3348_v53, %s8306_s0  ;;  %v2981_v46 = vmul.f32 %v2979_v3, %v7135_v60 }
 0x406   : > { %v7464_v11 = vadd.f32 %v2956_v62, %v2851_v14  ;;  %v3390_v62 = vmul.f32 %v3389_v6, %v7374_v13 }
 0x407   : > { %v2848_v54 = vpop.permute.xlu1 %2847  ;;  %v2860_v45 = vpop.permute.xlu0 %2859 }
 0x408   : > { %v2852_v49 = vadd.f32 %v2848_v54, %v2740_v0  ;;  %v2865_v37 = vadd.f32 %v2860_v45, %v2753_v42  ;;  %v2782_v42 = vadd.f32 %v7394_v22, %v7290_v18  ;;  %v2795_v54 = vadd.f32 %v7396_v29, %v7292_v30 }
 0x409   : > { %3354 = vrot.lane.b32.xlu1 %v3349_v63, %s8306_s0  ;;  %3366 = vrot.lane.b32.xlu0 %v3362_v41, %s8306_s0  ;;  %v2975_v22 = vmul.f32 %v2973_v35, %v7135_v60  ;;  %v2980_v30 = vmul.f32 %v2979_v3, %v7122_v40  ;;  %v2985_v29 = vstv %s7496_s1  ;;  %s7714_s1 = sld [smem:[#allocation3 + $0x23]] }
 0x40a   : > { %v7482_v8 = vadd.f32 %v2957_v4, %v2852_v49  ;;  %v7484_v15 = vadd.f32 %v2962_v27, %v2865_v37  ;;  %v3391_v49 = vmul.f32 %v3389_v6, %v7387_v5  ;;  %v3404_v37 = vmul.f32 %v3403_v58, %v7374_v13 }
 0x40b   : > { %v2862_v25 = vpop.permute.xlu1 %2861  ;;  %v2874_v43 = vpop.permute.xlu0 %2873  ;;  %v3417_v4 = vstv %s7489_s29  ;;  %s7710_s29 = sld [smem:[#allocation3 + $0x11e]] }
 0x40c   : > { %v2866_v1 = vadd.f32 %v2862_v25, %v2754_v36  ;;  %v2879_v17 = vadd.f32 %v2874_v43, %v2767_v21  ;;  %v2809_v36 = vadd.f32 %v7407_v51, %v7310_v7  ;;  %v3418_v6 = vmul.f32 %v3417_v4, %v7374_v13 }
 0x40d   : > { %3368 = vrot.lane.b32.xlu1 %v3363_v61, %s8306_s0  ;;  %3380 = vrot.lane.b32.xlu0 %v3376_v57, %s8306_s0  ;;  %v3405_v57 = vmul.f32 %v3403_v58, %v7387_v5  ;;  %v2986_v7 = vmul.f32 %v2985_v29, %v7122_v40  ;;  %v2991_v51 = vstv %s7516_s11  ;;  %s7732_s11 = sld [smem:[#allocation3 + $0xa3]] }
 0x40e   : > { %v7502_v9 = vadd.f32 %v2963_v32, %v2866_v1  ;;  %v7504_v19 = vadd.f32 %v2968_v10, %v2879_v17  ;;  %v3431_v1 = vstv %s7509_s8  ;;  %v2810_v32 = vadd.f32 %v7418_v39, %v7326_v52  ;;  %s7725_s8 = sld [smem:[#allocation3 + $0x19e]] }
 0x40f   : > { %v2876_v53 = vpop.permute.xlu1 %2875  ;;  %v2888_v14 = vpop.permute.xlu0 %2887  ;;  %v2823_v10 = vadd.f32 %v7420_v44, %v7328_v47  ;;  %v2987_v52 = vmul.f32 %v2985_v29, %v7135_v60  ;;  %v2992_v47 = vmul.f32 %v2991_v51, %v7122_v40  ;;  %v2997_v39 = vstv %s7536_s27  ;;  %s7750_s27 = sld [smem:[#allocation3 + $0x123]] }
 0x410   : > { %v2880_v0 = vadd.f32 %v2876_v53, %v2768_v55  ;;  %v2893_v50 = vadd.f32 %v2888_v14, %v2781_v38  ;;  %v3419_v14 = vmul.f32 %v3417_v4, %v7387_v5  ;;  %v2824_v44 = vadd.f32 %v7431_v28, %v7341_v34 }
 0x411   : > { %3382 = vrot.lane.b32.xlu1 %v3377_v59, %s8306_s0  ;;  %3394 = vrot.lane.b32.xlu0 %v3390_v62, %s8307_s26  ;;  %v3432_v59 = vmul.f32 %v3431_v1, %v7374_v13  ;;  %v3445_v62 = vstv %s7529_s2  ;;  %v2993_v34 = vmul.f32 %v2991_v51, %v7135_v60  ;;  %v2838_v28 = vadd.f32 %v7447_v23, %v7355_v33  ;;  %s7741_s2 = sld [smem:[#allocation3 + $0x21e]] }
 0x412   : > { %v7522_v45 = vadd.f32 %v2969_v56, %v2880_v0  ;;  %v7524_v63 = vadd.f32 %v2974_v16, %v2893_v50  ;;  %v2837_v50 = vadd.f32 %v7433_v48, %v7343_v24  ;;  %v2998_v24 = vmul.f32 %v2997_v39, %v7122_v40 }
 0x413   : > { %v2890_v41 = vpop.permute.xlu1 %2889  ;;  %v2902_v12 = vpop.permute.xlu0 %2901  ;;  %v2999_v33 = vmul.f32 %v2997_v39, %v7135_v60  ;;  %v3487_v60 = vstv %s7585_s16  ;;  %v3551_v51 = vstv %s7603_s12  ;;  %s7777_s16 = sld [smem:[#allocation3 + $0x31e]] }
 0x414   : > { %v2894_v27 = vadd.f32 %v2890_v41, %v2782_v42  ;;  %v2907_v18 = vadd.f32 %v2902_v12, %v2795_v54  ;;  %v3433_v54 = vmul.f32 %v3431_v1, %v7387_v5  ;;  %v3446_v41 = vmul.f32 %v3445_v62, %v7374_v13  ;;  %s7786_s12 = sld [smem:[#allocation3 + $0x223]] }
 0x415   : > { %3396 = vrot.lane.b32.xlu1 %v3391_v49, %s8307_s26  ;;  %3408 = vrot.lane.b32.xlu0 %v3404_v37, %s8307_s26  ;;  %v3459_v12 = vstv %s7549_s3  ;;  %s7759_s3 = sld [smem:[#allocation3 + $0x29e]] }
 0x416   : > { %v7542_v21 = vadd.f32 %v2975_v22, %v2894_v27  ;;  %v7544_v25 = vadd.f32 %v2980_v30, %v2907_v18  ;;  %v3447_v22 = vmul.f32 %v3445_v62, %v7387_v5  ;;  %v3460_v30 = vmul.f32 %v3459_v12, %v7374_v13 }
 0x417   : > { %v2904_v43 = vpop.permute.xlu1 %2903  ;;  %v2916_v61 = vpop.permute.xlu0 %2915 }
 0x418   : > { %v2908_v17 = vadd.f32 %v2904_v43, %v2796_v2  ;;  %v2921_v20 = vadd.f32 %v2916_v61, %v2809_v36  ;;  %v3473_v2 = vstv %s7567_s30  ;;  %v3461_v61 = vmul.f32 %v3459_v12, %v7387_v5  ;;  %s7768_s30 = sld [smem:[#allocation3 + $0x1a3]] }
 0x419   : > { %3410 = vrot.lane.b32.xlu1 %v3405_v57, %s8307_s26  ;;  %3422 = vrot.lane.b32.xlu0 %v3418_v6, %s8307_s26  ;;  %v3474_v57 = vmul.f32 %v3473_v2, %v7374_v13 }
 0x41a   : > { %v7560_v35 = vadd.f32 %v2981_v46, %v2908_v17  ;;  %v7562_v55 = vadd.f32 %v2986_v7, %v2921_v20  ;;  %v3475_v20 = vmul.f32 %v3473_v2, %v7387_v5  ;;  %v3488_v46 = vmul.f32 %v3487_v60, %v7374_v13  ;;  %v7625_v7 = vld [vmem:[#allocation2 + $0x4a] sm:$0xff] }
 0x41b   : > { %v2918_v38 = vpop.permute.xlu1 %2917  ;;  %v2930_v53 = vpop.permute.xlu0 %2929 }
 0x41c   : > { %v2922_v58 = vadd.f32 %v2918_v38, %v2810_v32  ;;  %v2935_v0 = vadd.f32 %v2930_v53, %v2823_v10  ;;  %v3489_v38 = vmul.f32 %v3487_v60, %v7387_v5  ;;  %v3552_v53 = vmul.f32 %v3551_v51, %v7625_v7 }
 0x41d   : > { %3424 = vrot.lane.b32.xlu1 %v3419_v14, %s8307_s26  ;;  %3436 = vrot.lane.b32.xlu0 %v3432_v59, %s8307_s26  ;;  %v7640_v14 = vld [vmem:[#allocation2 + $0x52] sm:$0xff]  ;;  %v3565_v59 = vstv %s7619_s19  ;;  %s7804_s19 = sld [smem:[#allocation3 + $0x2a3]] }
 0x41e   : > { %v7578_v56 = vadd.f32 %v2987_v52, %v2922_v58  ;;  %v7580_v16 = vadd.f32 %v2992_v47, %v2935_v0  ;;  %v3553_v0 = vmul.f32 %v3551_v51, %v7640_v14  ;;  %v3566_v52 = vmul.f32 %v3565_v59, %v7625_v7 }
 0x41f   : > { %v2932_v3 = vpop.permute.xlu1 %2931  ;;  %v2944_v42 = vpop.permute.xlu0 %2943  ;;  %v3579_v47 = vstv %s7634_s20  ;;  %s7822_s20 = sld [smem:[#allocation3 + $0x323]] }
 0x420   : > { %v2936_v49 = vadd.f32 %v2932_v3, %v2824_v44  ;;  %v2949_v37 = vadd.f32 %v2944_v42, %v2837_v50  ;;  %v3567_v50 = vmul.f32 %v3565_v59, %v7640_v14  ;;  %v3580_v3 = vmul.f32 %v3579_v47, %v7625_v7 }
 0x421   : > { %3438 = vrot.lane.b32.xlu1 %v3433_v54, %s8307_s26  ;;  %3450 = vrot.lane.b32.xlu0 %v3446_v41, %s8307_s26  ;;  %v3593_v42 = vstv %s7649_s13  ;;  %v3581_v12 = vmul.f32 %v3579_v47, %v7640_v14  ;;  %s7834_s13 = sld [smem:[#allocation3 + $0x3a3]] }
 0x422   : > { %v7593_v48 = vadd.f32 %v2993_v34, %v2936_v49  ;;  %v7595_v4 = vadd.f32 %v2998_v24, %v2949_v37  ;;  %v3607_v37 = vstv %s7662_s28  ;;  %s4533_s28 = sld [smem:[#allocation3 + $0x21]] }
 0x423   : > { %v2946_v27 = vpop.permute.xlu1 %2945  ;;  %v3009_v18 = vpop.permute.xlu0 %3008  ;;  %v3609_v2 = vmul.f32 %v3607_v37, %v7640_v14 }
 0x424   : > { %v2950_v29 = vadd.f32 %v2946_v27, %v2838_v28  ;;  %v7600_v40 = vadd.f32 %v3009_v18, %v7464_v11  ;;  %v3595_v28 = vmul.f32 %v3593_v42, %v7640_v14  ;;  %v3621_v18 = vstv %s7675_s22  ;;  %s4063_s22 = sshll.u32 %s5085_s18, 4  ;;  %s4028_s18 = sand.u32 1, %s4942_s25   ;;  %s7898_s22 = int_to_ptr.vmem [resolvable:$true] %s4063_s22 }
 0x425   : > { %3452 = vrot.lane.b32.xlu1 %v3447_v22, %s8307_s26  ;;  %3464 = vrot.lane.b32.xlu0 %v3460_v30, %s8307_s26  ;;  %v3229_v22 = vstv %s7679_s23  ;;  %s7896_s23 = sld [smem:[#allocation3 + $0x121]] }
 0x426   : > { %v7608_v23 = vadd.f32 %v2999_v33, %v2950_v29  ;;  %v3231_v51 = vmul.f32 %v3229_v22, %v7387_v5 }
 0x427   : > { %v3011_v36 = vpop.permute.xlu1 %3010  ;;  %v3023_v43 = vpop.permute.xlu0 %3022 }
 0x428   : > { %v7613_v11 = vadd.f32 %v3011_v36, %v7482_v8  ;;  %v7616_v6 = vadd.f32 %v3023_v43, %v7484_v15  ;;  %v3635_v36 = vstv %s7690_s7  ;;  %v3230_v43 = vmul.f32 %v3229_v22, %v7374_v13  ;;  %s7900_s7 = sld [smem:[#allocation3 + $0x1a1]] }
 0x429   : > { %3466 = vrot.lane.b32.xlu1 %v3461_v61, %s8307_s26  ;;  %3478 = vrot.lane.b32.xlu0 %v3474_v57, %s8307_s26  ;;  %v3235_v61 = vstv %s7694_s17  ;;  %s4592_s17 = sshll.u32 %s4942_s25, 8 }
 0x42a   : > { %v3237_v47 = vmul.f32 %v3235_v61, %v7387_v5 }
 0x42b   : > { %v3025_v1 = vpop.permute.xlu1 %3024  ;;  %v3037_v17 = vpop.permute.xlu0 %3036 }
 0x42c   : > { %v7628_v8 = vadd.f32 %v3025_v1, %v7502_v9  ;;  %v7631_v15 = vadd.f32 %v3037_v17, %v7504_v19  ;;  %v3636_v17 = vmul.f32 %v3635_v36, %v7625_v7 }
 0x42d   : > { %3480 = vrot.lane.b32.xlu1 %v3475_v20, %s8307_s26  ;;  %3492 = vrot.lane.b32.xlu0 %v3488_v46, %s8307_s26 }
 0x42f   : > { %v3039_v32 = vpop.permute.xlu1 %3038  ;;  %v3051_v10 = vpop.permute.xlu0 %3050 }
 0x430   : > { %v7643_v9 = vadd.f32 %v3039_v32, %v7522_v45  ;;  %v7646_v19 = vadd.f32 %v3051_v10, %v7524_v63  ;;  %v3236_v32 = vmul.f32 %v3235_v61, %v7374_v13  ;;  %v3241_v10 = vstv %s7710_s29 }
 0x431   : > { %3494 = vrot.lane.b32.xlu1 %v3489_v38, %s8307_s26  ;;  %3556 = vrot.lane.b32.xlu0 %v3552_v53, %s8306_s0 }
 0x433   : > { %v3053_v62 = vpop.permute.xlu1 %3052  ;;  %v3065_v58 = vpop.permute.xlu0 %3064 }
 0x434   : > { %v7656_v45 = vadd.f32 %v3053_v62, %v7542_v21  ;;  %v7659_v63 = vadd.f32 %v3065_v58, %v7544_v25  ;;  %v3663_v58 = vstv %s7714_s1  ;;  %s7915_s1 = scalar_lea.hbm %s8263_s5, %s4592_s17 }
 0x435   : > { %3558 = vrot.lane.b32.xlu1 %v3553_v0, %s8306_s0  ;;  %3570 = vrot.lane.b32.xlu0 %v3566_v52, %s8306_s0 }
 0x437   : > { %v3067_v39 = vpop.permute.xlu1 %3066  ;;  %v3079_v44 = vpop.permute.xlu0 %3078 }
 0x438   : > { %v7669_v21 = vadd.f32 %v3067_v39, %v7560_v35  ;;  %v7672_v25 = vadd.f32 %v3079_v44, %v7562_v55  ;;  %v3594_v35 = vmul.f32 %v3593_v42, %v7625_v7  ;;  %v3242_v39 = vmul.f32 %v3241_v10, %v7374_v13 }
 0x439   : > { %3572 = vrot.lane.b32.xlu1 %v3567_v50, %s8306_s0  ;;  %3584 = vrot.lane.b32.xlu0 %v3580_v3, %s8306_s0  ;;  %v3247_v44 = vstv %s7725_s8  ;;  %s7919_s8 = scalar_lea.sflag [#allocation12], %s4028_s18 }
 0x43b   : > { %v3081_v54 = vpop.permute.xlu1 %3080  ;;  %v3093_v41 = vpop.permute.xlu0 %3092 }
 0x43c   : > { %v7684_v49 = vadd.f32 %v3081_v54, %v7578_v56  ;;  %v7687_v55 = vadd.f32 %v3093_v41, %v7580_v16  ;;  %v3608_v56 = vmul.f32 %v3607_v37, %v7625_v7  ;;  %v3664_v54 = vmul.f32 %v3663_v58, %v7625_v7 }
 0x43d   : > { %3586 = vrot.lane.b32.xlu1 %v3581_v12, %s8306_s0  ;;  %3598 = vrot.lane.b32.xlu0 %v3594_v35, %s8306_s0  ;;  %v3677_v41 = vstv %s7732_s11  ;;  %v3243_v37 = vmul.f32 %v3241_v10, %v7387_v5  ;;  %s4742_s11 = scalar_lea.vmem %s7898_s22, 256 }
 0x43e   : > { %v3678_v22 = vmul.f32 %v3677_v41, %v7625_v7  ;;  %p4743_p1 = scmp.ne.s32.totalorder %s7898_s22, %s4742_s11 }
 0x43f   : > { %v3095_v34 = vpop.permute.xlu1 %3094  ;;  %v3107_v24 = vpop.permute.xlu0 %3106 }
 0x440   : > { %v7701_v16 = vadd.f32 %v3095_v34, %v7593_v48  ;;  %v7704_v27 = vadd.f32 %v3107_v24, %v7595_v4  ;;  %v3622_v48 = vmul.f32 %v3621_v18, %v7625_v7  ;;  %v3248_v34 = vmul.f32 %v3247_v44, %v7374_v13  ;;  %p4744_p2 = pnand %p4743_p1, %p8308_p5 }
 0x441   : > { %3600 = vrot.lane.b32.xlu1 %v3595_v28, %s8306_s0  ;;  %3612 = vrot.lane.b32.xlu0 %v3608_v56, %s8306_s0  ;;  %v3253_v24 = vstv %s7741_s2  ;;  %s4881_s2 = smov [#allocation11]  }
 0x442   : > { %p4745_p8 = pneg %p4744_p2 }
 0x443   : > { %v3109_v30 = vpop.permute.xlu1 %3108  ;;  %v3121_v29 = vpop.permute.xlu0 %3120 }
 0x444   : > { %v7717_v4 = vadd.f32 %v3109_v30, %v7608_v23  ;;  %v3126_v33 = vadd.f32 %v3121_v29, %v7600_v40  ;;  %v3623_v23 = vmul.f32 %v3621_v18, %v7640_v14  ;;  %v3649_v40 = vstv %s7698_s15 }
 0x445   : > { %3614 = vrot.lane.b32.xlu1 %v3609_v2, %s8306_s0  ;;  %3626 = vrot.lane.b32.xlu0 %v3622_v48, %s8306_s0  ;;  %v3650_v62 = vmul.f32 %v3649_v40, %v7625_v7  ;;  %v3691_v30 = vstv %s7750_s27  ;;  %v3249_v48 = vmul.f32 %v3247_v44, %v7387_v5  ;;  %s4746_s27 = sshll.u32 %s4881_s2, 4  ;;  %s4747_s27 = int_to_ptr.vmem [resolvable:$false] %s4746_s27 }
 0x446   : > { %v7727_v57 = vadd.f32 %v3230_v43, %v3126_v33  ;;  %v3254_v33 = vmul.f32 %v3253_v24, %v7374_v13  ;;  %p4749_p10 = scmp.lt.s32.totalorder %s7898_s22, %s4747_s27 }
 0x447   : > { %v3123_v60 = vpop.permute.xlu1 %3122  ;;  %v3135_v1 = vpop.permute.xlu0 %3134 }
 0x448   : > { %v3127_v20 = vadd.f32 %v3123_v60, %v7613_v11  ;;  %v3140_v46 = vadd.f32 %v3135_v1, %v7616_v6  ;;  %v3637_v6 = vmul.f32 %v3635_v36, %v7640_v14  ;;  %v3259_v36 = vstv %s7759_s3  ;;  %s4748_s3 = scalar_lea.vmem %s4747_s27, 512 }
 0x449   : > { %3628 = vrot.lane.b32.xlu1 %v3623_v23, %s8306_s0  ;;  %3640 = vrot.lane.b32.xlu0 %v3636_v17, %s8306_s0  ;;  %v3692_v1 = vmul.f32 %v3691_v30, %v7625_v7  ;;  %v3705_v23 = vstv %s7768_s30  ;;  %p4750_p4 = scmp.lt.s32.totalorder %s4748_s3, %s4742_s11 }
 0x44a   : > { %v7743_v38 = vadd.f32 %v3231_v51, %v3127_v20  ;;  %v7745_v53 = vadd.f32 %v3236_v32, %v3140_v46  ;;  %v3255_v20 = vmul.f32 %v3253_v24, %v7387_v5  ;;  %v3260_v46 = vmul.f32 %v3259_v36, %v7374_v13 }
 0x44b   : > { %v3137_v59 = vpop.permute.xlu1 %3136  ;;  %v3149_v11 = vpop.permute.xlu0 %3148  ;;  %v3265_v51 = vstv %s7777_s16  ;;  %p4751_p12 = por %p4750_p4, %p4749_p10 }
 0x44c   : > { %v3141_v0 = vadd.f32 %v3137_v59, %v7628_v8  ;;  %v3154_v52 = vadd.f32 %v3149_v11, %v7631_v15  ;;  %v3651_v15 = vmul.f32 %v3649_v40, %v7640_v14 }
 0x44d   : > { %3642 = vrot.lane.b32.xlu1 %v3637_v6, %s8306_s0  ;;  %3654 = vrot.lane.b32.xlu0 %v3650_v62, %s8306_s0  ;;  %v3719_v6 = vstv %s7786_s12  ;;  %p4752_p11 = pnand %p4751_p12, %p4745_p8 }
 0x44e   : > { %v7761_v50 = vadd.f32 %v3237_v47, %v3141_v0  ;;  %v7763_v3 = vadd.f32 %v3242_v39, %v3154_v52  ;;  %v3261_v0 = vmul.f32 %v3259_v36, %v7387_v5  ;;  %v3266_v52 = vmul.f32 %v3265_v51, %v7374_v13 }
 0x44f   : > { %v3151_v42 = vpop.permute.xlu1 %3150  ;;  %v3163_v8 = vpop.permute.xlu0 %3162 }
 0x450   : > { %v3155_v12 = vadd.f32 %v3151_v42, %v7643_v9  ;;  %v3168_v35 = vadd.f32 %v3163_v8, %v7646_v19  ;;  %v3665_v19 = vmul.f32 %v3663_v58, %v7640_v14 }
 0x451   : > { %3656 = vrot.lane.b32.xlu1 %v3651_v15, %s8306_s0  ;;  %3668 = vrot.lane.b32.xlu0 %v3664_v54, %s8307_s26  ;;  %s7795_s0 = sld [smem:[#allocation3 + $0x39e]]  ;;  %v3707_v15 = vmul.f32 %v3705_v23, %v7640_v14 }
 0x452   : > { %v7779_v28 = vadd.f32 %v3243_v37, %v3155_v12  ;;  %v7781_v56 = vadd.f32 %v3248_v34, %v3168_v35  ;;  %v3267_v12 = vmul.f32 %v3265_v51, %v7387_v5 }
 0x453   : > { %v3165_v18 = vpop.permute.xlu1 %3164  ;;  %v3177_v9 = vpop.permute.xlu0 %3176 }
 0x454   : > { %v3169_v29 = vadd.f32 %v3165_v18, %v7656_v45  ;;  %v3182_v2 = vadd.f32 %v3177_v9, %v7659_v63  ;;  %v3679_v63 = vmul.f32 %v3677_v41, %v7640_v14  ;;  %v3721_v9 = vmul.f32 %v3719_v6, %v7640_v14 }
 0x455   : > { %3670 = vrot.lane.b32.xlu1 %v3665_v19, %s8307_s26  ;;  %3682 = vrot.lane.b32.xlu0 %v3678_v22, %s8307_s26  ;;  %v3747_v22 = vstv %s7822_s20 }
 0x456   : > { %v7797_v43 = vadd.f32 %v3249_v48, %v3169_v29  ;;  %v7799_v61 = vadd.f32 %v3254_v33, %v3182_v2  ;;  %v3748_v33 = vmul.f32 %v3747_v22, %v7625_v7 }
 0x457   : > { %v3179_v60 = vpop.permute.xlu1 %3178  ;;  %v3191_v45 = vpop.permute.xlu0 %3190  ;;  %v3271_v47 = vstv %s7795_s0 }
 0x458   : > { %v3183_v17 = vadd.f32 %v3179_v60, %v7669_v21  ;;  %v3196_v40 = vadd.f32 %v3191_v45, %v7672_v25  ;;  %v3693_v21 = vmul.f32 %v3691_v30, %v7640_v14  ;;  %v3706_v25 = vmul.f32 %v3705_v23, %v7625_v7 }
 0x459   : > { %3684 = vrot.lane.b32.xlu1 %v3679_v63, %s8307_s26  ;;  %3696 = vrot.lane.b32.xlu0 %v3692_v1, %s8307_s26  ;;  %v3272_v35 = vmul.f32 %v3271_v47, %v7374_v13  ;;  %v3273_v13 = vmul.f32 %v3271_v47, %v7387_v5  ;;  %v3761_v60 = vstv %s7834_s13  ;;  %v3749_v45 = vmul.f32 %v3747_v22, %v7640_v14 }
 0x45a   : > { %v7813_v32 = vadd.f32 %v3255_v20, %v3183_v17  ;;  %v7815_v10 = vadd.f32 %v3260_v46, %v3196_v40  ;;  %v3762_v63 = vmul.f32 %v3761_v60, %v7625_v7  ;;  %v3763_v17 = vmul.f32 %v3761_v60, %v7640_v14 }
 0x45b   : > { %v3193_v59 = vpop.permute.xlu1 %3192  ;;  %v3205_v11 = vpop.permute.xlu0 %3204 }
 0x45c   : > { %v3197_v62 = vadd.f32 %v3193_v59, %v7684_v49  ;;  %v3210_v58 = vadd.f32 %v3205_v11, %v7687_v55  ;;  %v3720_v49 = vmul.f32 %v3719_v6, %v7625_v7  ;;  %v3733_v55 = vstv %s7804_s19 }
 0x45d   : > { %3698 = vrot.lane.b32.xlu1 %v3693_v21, %s8307_s26  ;;  %3710 = vrot.lane.b32.xlu0 %v3706_v25, %s8307_s26  ;;  %v3735_v48 = vmul.f32 %v3733_v55, %v7640_v14 }
 0x45e   : > { %v3263_v39 = vadd.f32 %v3261_v0, %v3197_v62  ;;  %v3268_v44 = vadd.f32 %v3266_v52, %v3210_v58 }
 0x45f   : > { %v3207_v42 = vpop.permute.xlu1 %3206  ;;  %v3219_v8 = vpop.permute.xlu0 %3218 }
 0x460   : > { %v3211_v54 = vadd.f32 %v3207_v42, %v7701_v16  ;;  %v3224_v41 = vadd.f32 %v3219_v8, %v7704_v27  ;;  %v3734_v16 = vmul.f32 %v3733_v55, %v7625_v7 }
 0x461   : > { %3712 = vrot.lane.b32.xlu1 %v3707_v15, %s8307_s26  ;;  %3724 = vrot.lane.b32.xlu0 %v3720_v49, %s8307_s26 }
 0x462   : > { %v3269_v37 = vadd.f32 %v3267_v12, %v3211_v54  ;;  %v3274_v34 = vadd.f32 %v3272_v35, %v3224_v41 }
 0x463   : > { %v3221_v24 = vpop.permute.xlu1 %3220  ;;  %v3283_v18 = vpop.permute.xlu0 %3282 }
 0x464   : > { %v3225_v27 = vadd.f32 %v3221_v24, %v7717_v4  ;;  %v3288_v19 = vadd.f32 %v3283_v18, %v7727_v57 }
 0x465   : > { %3726 = vrot.lane.b32.xlu1 %v3721_v9, %s8307_s26  ;;  %3738 = vrot.lane.b32.xlu0 %v3734_v16, %s8307_s26 }
 0x466   : > { %v3275_v30 = vadd.f32 %v3273_v13, %v3225_v27 }
 0x467   : > { %v3285_v29 = vpop.permute.xlu1 %3284  ;;  %v3297_v2 = vpop.permute.xlu0 %3296 }
 0x468   : > { %v3289_v36 = vadd.f32 %v3285_v29, %v7743_v38  ;;  %v3302_v4 = vadd.f32 %v3297_v2, %v7745_v53 }
 0x469   : > { %3740 = vrot.lane.b32.xlu1 %v3735_v48, %s8307_s26  ;;  %3752 = vrot.lane.b32.xlu0 %v3748_v33, %s8307_s26 }
 0x46b   : > { %v3299_v5 = vpop.permute.xlu1 %3298  ;;  %v3311_v57 = vpop.permute.xlu0 %3310 }
 0x46c   : > { %v7858_v1 = vadd.f32 %v3299_v5, %v7761_v50  ;;  %v7861_v23 = vadd.f32 %v3311_v57, %v7763_v3 }
 0x46d   : > { %3754 = vrot.lane.b32.xlu1 %v3749_v45, %s8307_s26  ;;  %3766 = vrot.lane.b32.xlu0 %v3762_v63, %s8307_s26 }
 0x46f   : > { %v3313_v38 = vpop.permute.xlu1 %3312  ;;  %v3325_v53 = vpop.permute.xlu0 %3324 }
 0x470   : > { %v7867_v40 = vadd.f32 %v3313_v38, %v7779_v28  ;;  %v7870_v20 = vadd.f32 %v3325_v53, %v7781_v56 }
 0x471   : > { %3768 = vrot.lane.b32.xlu1 %v3763_v17, %s8307_s26  ;;  %s7889_s26 = sld [smem:[#allocation3 + $0xa1]] }
 0x473   : > { %v3327_v50 = vpop.permute.xlu1 %3326  ;;  %v3339_v3 = vpop.permute.xlu0 %3338 }
 0x474   : > { %v7874_v46 = vadd.f32 %v3327_v50, %v7797_v43  ;;  %v7877_v51 = vadd.f32 %v3339_v3, %v7799_v61 }
 0x477   : > { %v3341_v59 = vpop.permute.xlu1 %3340  ;;  %v3353_v11 = vpop.permute.xlu0 %3352  ;;  %v3509_v42 = vstv %s7889_s26 }
 0x478   : > { %v7880_v21 = vadd.f32 %v3341_v59, %v7813_v32  ;;  %v7883_v28 = vadd.f32 %v3353_v11, %v7815_v10  ;;  %v3503_v10 = vstv %s4533_s28  ;;  %v3510_v12 = vmul.f32 %v3509_v42, %v7625_v7 }
 0x479   : > { %v3505_v41 = vmul.f32 %v3503_v10, %v7640_v14 }
 0x47b   : > { %v3355_v56 = vpop.permute.xlu1 %3354  ;;  %v3367_v25 = vpop.permute.xlu0 %3366 }
 0x47c   : > { %v7885_v6 = vadd.f32 %v3355_v56, %v3263_v39  ;;  %v7887_v62 = vadd.f32 %v3367_v25, %v3268_v44  ;;  %v3504_v44 = vmul.f32 %v3503_v10, %v7625_v7 }
 0x47f   : > { %v3369_v43 = vpop.permute.xlu1 %3368  ;;  %v3381_v61 = vpop.permute.xlu0 %3380 }
 0x480   : > { %v7892_v32 = vadd.f32 %v3369_v43, %v3269_v37  ;;  %v7894_v58 = vadd.f32 %v3381_v61, %v3274_v34 }
 0x483   : > { %v3383_v0 = vpop.permute.xlu1 %3382  ;;  %v3395_v52 = vpop.permute.xlu0 %3394 }
 0x484   : > { %v7902_v47 = vadd.f32 %v3383_v0, %v3275_v30  ;;  %v3400_v39 = vadd.f32 %v3395_v52, %v3288_v19 }
 0x486   : > { %v7907_v8 = vadd.f32 %v3504_v44, %v3400_v39 }
 0x487   : > { %v3397_v15 = vpop.permute.xlu1 %3396  ;;  %v3409_v49 = vpop.permute.xlu0 %3408 }
 0x488   : > { %v3401_v55 = vadd.f32 %v3397_v15, %v3289_v36  ;;  %v3414_v54 = vadd.f32 %v3409_v49, %v3302_v4 }
 0x489   : > { %4755 = shalt.err (!%p4752_p11)
}
 0x48a   : > { %s4756_s30 = scalar_lea.hbm %s7915_s1, 256  ;;  %s4760_s0 = scalar_lea.hbm %s8263_s5, 512 }
 0x48b   : > { %p4757_p13 = scmp.ne.s32.totalorder %s7915_s1, %s4756_s30  ;;  %p4761_p3 = scmp.lt.s32.totalorder %s7915_s1, %s8263_s5 }
 0x48c   : > { %p4762_p6 = scmp.lt.s32.totalorder %s4760_s0, %s4756_s30 }
 0x48d   : > { %p4758_p0 = pnand %p4757_p13, %p8308_p5 }
 0x48e   : > { %p4763_p9 = por %p4762_p6, %p4761_p3 }
 0x48f   : > { %p4759_p7 = pneg %p4758_p0 }
 0x491   : > { %p4764_p1 = pnand %p4763_p9, %p4759_p7 }
 0x493   : > { %4767 = shalt.err (!%p4764_p1)
}
 0x494   : > { %s4882_s13 = smov 128   ;;  %s4883_s28 = smov 8   ;;  %v3515_v35 = vstv %s7896_s23  ;;  %v7948_v37 = vadd.f32 %v3505_v41, %v3401_v55  ;;  %v7950_v34 = vadd.f32 %v3510_v12, %v3414_v54  ;;  %v3411_v24 = vpop.permute.xlu1 %3410  ;;  %v3423_v18 = vpop.permute.xlu0 %3422  ;;  %v3511_v27 = vmul.f32 %v3509_v42, %v7640_v14 }
 0x495   : > { %4606 = dma.vmem_to_hbm [thread:$0]  (%p8308_p5), %s7898_s22, 256, %s7915_s1, %s7919_s8, %s4882_s13, %s4882_s13, %s4883_s28   ;;  %v3415_v9 = vadd.f32 %v3411_v24, %v7858_v1  ;;  %v3428_v16 = vadd.f32 %v3423_v18, %v7861_v23  ;;  %v3516_v19 = vmul.f32 %v3515_v35, %v7625_v7  ;;  %v3517_v36 = vmul.f32 %v3515_v35, %v7640_v14 }
 0x496   : > { %s7946_s26 = sld [smem:[#allocation3 + $0x221]]  ;;  %v3521_v22 = vstv %s7900_s7  ;;  %4680 = vrcp.f32 %v5089_v26  ;;  %s4259_s18 = sshll.u32 %s5062_s14, 7  ;;  %vm3802_vm8 = vcmask 122880  }
 0x497   : > { %s7957_s22 = sld [smem:[#allocation3 + $0x2a1]]  ;;  %v7959_v13 = vadd.f32 %v3511_v27, %v3415_v9  ;;  %v7961_v30 = vadd.f32 %v3516_v19, %v3428_v16  ;;  %v3522_v4 = vmul.f32 %v3521_v22, %v7625_v7  ;;  %v3523_v38 = vmul.f32 %v3521_v22, %v7640_v14  ;;  %s8017_s15 = scalar_lea.vmem [#allocation10], %s4259_s18 }
 0x498   : > { %v3425_v29 = vpop.permute.xlu1 %3424  ;;  %v3437_v2 = vpop.permute.xlu0 %3436  ;;  %s7968_s23 = sld [smem:[#allocation3 + $0x321]]  ;;  %4682 = vrcp.f32 %v5096_v31  ;;  %s8309_s29 = sshll.u32 %s5062_s14, 4 }
 0x499   : > { %v3429_v48 = vadd.f32 %v3425_v29, %v7867_v40  ;;  %v3442_v33 = vadd.f32 %v3437_v2, %v7870_v20  ;;  %s7979_s7 = sld [smem:[#allocation3 + $0x3a1]]  ;;  %s8085_s1 = scalar_lea.vmem [#allocation13], %s8309_s29 }
 0x49a   : > { %s4591_s11 = sshll.u32 %s4942_s25, 11  ;;  %s4047_s2 = sshll.u32 %s8017_s15, 4  ;;  %s8156_s2 = int_to_ptr.vmem [resolvable:$true] %s4047_s2 }
 0x49b   : > { %v7970_v5 = vadd.f32 %v3517_v36, %v3429_v48  ;;  %v7972_v57 = vadd.f32 %v3522_v4, %v3442_v33  ;;  %s8154_s30 = scalar_lea.hbm %s8262_s4, %s4591_s11  ;;  %s4024_s16 = scalar_lea.sflag [#allocation5], %s5062_s14 }
 0x49c   : > { %v3527_v60 = vstv %s7946_s26  ;;  %v3439_v45 = vpop.permute.xlu1 %3438  ;;  %v3451_v63 = vpop.permute.xlu0 %3450  ;;  %s4768_s12 = scalar_lea.vmem %s8156_s2, 2048  ;;  %s4884_s0 = smov [#allocation10]  }
 0x49d   : > { %v3443_v1 = vadd.f32 %v3439_v45, %v7874_v46  ;;  %v3456_v23 = vadd.f32 %v3451_v63, %v7877_v51  ;;  %v3528_v53 = vmul.f32 %v3527_v60, %v7625_v7  ;;  %v3533_v17 = vstv %s7957_s22  ;;  %p4769_p2 = scmp.ne.s32.totalorder %s8156_s2, %s4768_s12  ;;  %s4772_s19 = sshll.u32 %s4884_s0, 4  ;;  %s4773_s19 = int_to_ptr.vmem [resolvable:$false] %s4772_s19 }
 0x49e   : > { %v3529_v51 = vmul.f32 %v3527_v60, %v7640_v14  ;;  %v3534_v11 = vmul.f32 %v3533_v17, %v7625_v7  ;;  %v3539_v56 = vstv %s7968_s23  ;;  %v3535_v39 = vmul.f32 %v3533_v17, %v7640_v14  ;;  %s4774_s20 = scalar_lea.vmem %s4773_s19, 4096  ;;  %p4775_p4 = scmp.lt.s32.totalorder %s8156_s2, %s4773_s19 }
 0x49f   : > { %v7981_v40 = vadd.f32 %v3523_v38, %v3443_v1  ;;  %v7983_v20 = vadd.f32 %v3528_v53, %v3456_v23  ;;  %v3541_v41 = vmul.f32 %v3539_v56, %v7640_v14  ;;  %p4770_p8 = pnand %p4769_p2, %p8308_p5  ;;  %p4776_p12 = scmp.lt.s32.totalorder %s4774_s20, %s4768_s12 }
 0x4a0   : > { %v3453_v50 = vpop.permute.xlu1 %3452  ;;  %v3465_v3 = vpop.permute.xlu0 %3464 }
 0x4a1   : > { %v3457_v59 = vadd.f32 %v3453_v50, %v7880_v21  ;;  %v3470_v46 = vadd.f32 %v3465_v3, %v7883_v28  ;;  %v3540_v21 = vmul.f32 %v3539_v56, %v7625_v7  ;;  %v3545_v28 = vstv %s7979_s7  ;;  %p4771_p10 = pneg %p4770_p8  ;;  %p4777_p11 = por %p4776_p12, %p4775_p4 }
 0x4a2   : > { %v3546_v12 = vmul.f32 %v3545_v28, %v7625_v7  ;;  %v3547_v9 = vmul.f32 %v3545_v28, %v7640_v14 }
 0x4a3   : > { %v7990_v25 = vadd.f32 %v3529_v51, %v3457_v59  ;;  %v7992_v43 = vadd.f32 %v3534_v11, %v3470_v46  ;;  %v8011_v23 = vpop.eup %4680  ;;  %p4778_p13 = pnand %p4777_p11, %p4771_p10 }
 0x4a4   : > { %v3467_v61 = vpop.permute.xlu1 %3466  ;;  %v3479_v10 = vpop.permute.xlu0 %3478 }
 0x4a5   : > { %v3471_v0 = vadd.f32 %v3467_v61, %v7885_v6  ;;  %v3484_v52 = vadd.f32 %v3479_v10, %v7887_v62  ;;  %v8021_v59 = vpop.eup %4682 }
 0x4a7   : > { %v3537_v44 = vadd.f32 %v3535_v39, %v3471_v0  ;;  %v3542_v42 = vadd.f32 %v3540_v21, %v3484_v52 }
 0x4a8   : > { %v3481_v15 = vpop.permute.xlu1 %3480  ;;  %v3493_v49 = vpop.permute.xlu0 %3492 }
 0x4a9   : > { %v3485_v55 = vadd.f32 %v3481_v15, %v7892_v32  ;;  %v3498_v54 = vadd.f32 %v3493_v49, %v7894_v58 }
 0x4ab   : > { %v3543_v6 = vadd.f32 %v3541_v41, %v3485_v55  ;;  %v8003_v35 = vadd.f32 %v3546_v12, %v3498_v54 }
 0x4ac   : > { %v3495_v62 = vpop.permute.xlu1 %3494  ;;  %v3557_v24 = vpop.permute.xlu0 %3556 }
 0x4ad   : > { %v3499_v18 = vadd.f32 %v3495_v62, %v7902_v47  ;;  %v3562_v60 = vadd.f32 %v3557_v24, %v7907_v8 }
 0x4af   : > { %v3549_v16 = vadd.f32 %v3547_v9, %v3499_v18 }
 0x4b0   : > { %v3559_v27 = vpop.permute.xlu1 %3558  ;;  %v3571_v19 = vpop.permute.xlu0 %3570 }
 0x4b1   : > { %v3563_v38 = vadd.f32 %v3559_v27, %v7948_v37  ;;  %v3576_v53 = vadd.f32 %v3571_v19, %v7950_v34 }
 0x4b4   : > { %v3573_v32 = vpop.permute.xlu1 %3572  ;;  %v3585_v22 = vpop.permute.xlu0 %3584 }
 0x4b5   : > { %v3577_v31 = vadd.f32 %v3573_v32, %v7959_v13  ;;  %v3590_v37 = vadd.f32 %v3585_v22, %v7961_v30 }
 0x4b8   : > { %v3587_v58 = vpop.permute.xlu1 %3586  ;;  %v3599_v29 = vpop.permute.xlu0 %3598 }
 0x4b9   : > { %v3591_v34 = vadd.f32 %v3587_v58, %v7970_v5  ;;  %v3604_v46 = vadd.f32 %v3599_v29, %v7972_v57 }
 0x4bc   : > { %v3601_v2 = vpop.permute.xlu1 %3600  ;;  %v3613_v48 = vpop.permute.xlu0 %3612 }
 0x4bd   : > { %v8027_v51 = vadd.f32 %v3601_v2, %v7981_v40  ;;  %v8030_v13 = vadd.f32 %v3613_v48, %v7983_v20 }
 0x4c0   : > { %v3615_v7 = vpop.permute.xlu1 %3614  ;;  %v3627_v33 = vpop.permute.xlu0 %3626 }
 0x4c1   : > { %v8035_v10 = vadd.f32 %v3615_v7, %v7990_v25  ;;  %v8038_v30 = vadd.f32 %v3627_v33, %v7992_v43 }
 0x4c4   : > { %v3629_v36 = vpop.permute.xlu1 %3628  ;;  %v3641_v4 = vpop.permute.xlu0 %3640 }
 0x4c5   : > { %v8040_v5 = vadd.f32 %v3629_v36, %v3537_v44  ;;  %v8042_v57 = vadd.f32 %v3641_v4, %v3542_v42 }
 0x4c8   : > { %v3643_v47 = vpop.permute.xlu1 %3642  ;;  %v3655_v14 = vpop.permute.xlu0 %3654 }
 0x4c9   : > { %v8050_v21 = vadd.f32 %v3643_v47, %v3543_v6  ;;  %v8053_v42 = vadd.f32 %v3655_v14, %v8003_v35 }
 0x4cc   : > { %v3657_v45 = vpop.permute.xlu1 %3656  ;;  %v3669_v63 = vpop.permute.xlu0 %3668 }
 0x4cd   : > { %v3674_v1 = vadd.f32 %v3669_v63, %v3562_v60  ;;  %v8055_v15 = vadd.f32 %v3657_v45, %v3549_v16 }
 0x4cf   : > { %v3774_v26 = vmul.f32 %v8011_v23, %v3674_v1 }
 0x4d0   : > { %v3671_v17 = vpop.permute.xlu1 %3670  ;;  %v3683_v50 = vpop.permute.xlu0 %3682 }
 0x4d1   : > { %3776 = vst.msk [vmem:[%s8017_s15] sm:$0xff] %vm379_vm4, %v3774_v26  ;;  %v3675_v8 = vadd.f32 %v3671_v17, %v3563_v38  ;;  %v3688_v3 = vadd.f32 %v3683_v50, %v3576_v53  ;;  %v3789_v11 = vmul.f32 %v3774_v26, %v3774_v26  ;;  %v3780_v20 = vsel %vm379_vm4, %v3774_v26, 0.0 }
 0x4d3   : > { %v3775_v56 = vmul.f32 %v8021_v59, %v3675_v8  ;;  %v3806_v61 = vmul.f32 %v8011_v23, %v3688_v3  ;;  %v3793_v49 = vsel %vm379_vm4, %v3789_v11, 0.0 }
 0x4d4   : > { %v3685_v40 = vpop.permute.xlu1 %3684  ;;  %v3697_v0 = vpop.permute.xlu0 %3696 }
 0x4d5   : > { %3777 = vst.msk [vmem:[%s8017_s15 + $0x8] sm:$0xff] %vm379_vm4, %v3775_v56  ;;  %v3781_v52 = vsel %vm379_vm4, %v3775_v56, 0.0  ;;  %v3790_v39 = vmul.f32 %v3775_v56, %v3775_v56  ;;  %4558 = vst.msk [vmem:[%s8017_s15 + $0x10] sm:$0xff] %vm379_vm4, %v3806_v61  ;;  %v3822_v25 = vmul.f32 %v3806_v61, %v3806_v61  ;;  %v3689_v28 = vadd.f32 %v3685_v40, %v3577_v31 }
 0x4d6   : > { %v3782_v43 = vadd.f32 %v3781_v52, %v3780_v20  ;;  %v3702_v44 = vadd.f32 %v3697_v0, %v3590_v37  ;;  %v3813_v35 = vsel %vm379_vm4, %v3806_v61, 0.0 }
 0x4d7   : > { %v3794_v55 = vsel %vm379_vm4, %v3790_v39, 0.0  ;;  %v3807_v12 = vmul.f32 %v8021_v59, %v3689_v28  ;;  %v3826_v18 = vsel %vm379_vm4, %v3822_v25, 0.0 }
 0x4d8   : > { %v3783_v54 = vrot.slane %v3782_v43, 4  ;;  %v3795_v41 = vadd.f32 %v3794_v55, %v3793_v49  ;;  %v3837_v6 = vmul.f32 %v8011_v23, %v3702_v44  ;;  %v3699_v62 = vpop.permute.xlu1 %3698  ;;  %v3711_v24 = vpop.permute.xlu0 %3710 }
 0x4d9   : > { %v3703_v9 = vadd.f32 %v3699_v62, %v3591_v34  ;;  %v3716_v16 = vadd.f32 %v3711_v24, %v3604_v46  ;;  %4559 = vst.msk [vmem:[%s8017_s15 + $0x18] sm:$0xff] %vm379_vm4, %v3807_v12  ;;  %v3814_v32 = vsel %vm379_vm4, %v3807_v12, 0.0  ;;  %v3823_v22 = vmul.f32 %v3807_v12, %v3807_v12 }
 0x4da   : > { %v3784_v27 = vadd.f32 %v3783_v54, %v3782_v43  ;;  %v3796_v19 = vrot.slane %v3795_v41, 4  ;;  %4561 = vst.msk [vmem:[%s8017_s15 + $0x20] sm:$0xff] %vm379_vm4, %v3837_v6  ;;  %v3815_v58 = vadd.f32 %v3814_v32, %v3813_v35  ;;  %v3844_v29 = vsel %vm379_vm4, %v3837_v6, 0.0 }
 0x4db   : > { %v3853_v2 = vmul.f32 %v3837_v6, %v3837_v6  ;;  %v3838_v48 = vmul.f32 %v8021_v59, %v3703_v9  ;;  %v3827_v36 = vsel %vm379_vm4, %v3823_v22, 0.0  ;;  %v3868_v4 = vmul.f32 %v8011_v23, %v3716_v16 }
 0x4dc   : > { %v3785_v7 = vrot.slane %v3784_v27, 2  ;;  %v3797_v33 = vadd.f32 %v3796_v19, %v3795_v41  ;;  %v3713_v47 = vpop.permute.xlu1 %3712  ;;  %v3816_v14 = vrot.slane %v3815_v58, 4  ;;  %v3828_v60 = vadd.f32 %v3827_v36, %v3826_v18  ;;  %v3725_v1 = vpop.permute.xlu0 %3724 }
 0x4dd   : > { %v3857_v45 = vsel %vm379_vm4, %v3853_v2, 0.0  ;;  %4562 = vst.msk [vmem:[%s8017_s15 + $0x28] sm:$0xff] %vm379_vm4, %v3838_v48  ;;  %v3845_v63 = vsel %vm379_vm4, %v3838_v48, 0.0  ;;  %v3854_v17 = vmul.f32 %v3838_v48, %v3838_v48  ;;  %4564 = vst.msk [vmem:[%s8017_s15 + $0x30] sm:$0xff] %vm379_vm4, %v3868_v4  ;;  %v3875_v8 = vsel %vm379_vm4, %v3868_v4, 0.0 }
 0x4de   : > { %v3786_v38 = vadd.f32 %v3785_v7, %v3784_v27  ;;  %v3798_v53 = vrot.slane %v3797_v33, 2  ;;  %v3846_v26 = vadd.f32 %v3845_v63, %v3844_v29  ;;  %v3817_v50 = vadd.f32 %v3816_v14, %v3815_v58 }
 0x4df   : > { %v3829_v31 = vrot.slane %v3828_v60, 4  ;;  %v3884_v3 = vmul.f32 %v3868_v4, %v3868_v4  ;;  %v3858_v11 = vsel %vm379_vm4, %v3854_v17, 0.0  ;;  %v3717_v43 = vadd.f32 %v3713_v47, %v8027_v51 }
 0x4e0   : > { %v3787_v37 = vrot.slane %v3786_v38, 1  ;;  %v3799_v34 = vadd.f32 %v3798_v53, %v3797_v33  ;;  %v3847_v46 = vrot.slane %v3846_v26, 4  ;;  %v3727_v56 = vpop.permute.xlu1 %3726  ;;  %v3818_v61 = vrot.slane %v3817_v50, 2  ;;  %v3739_v54 = vpop.permute.xlu0 %3738 }
 0x4e1   : > { %v3830_v40 = vadd.f32 %v3829_v31, %v3828_v60  ;;  %v3859_v0 = vadd.f32 %v3858_v11, %v3857_v45  ;;  %v3888_v20 = vsel %vm379_vm4, %v3884_v3, 0.0  ;;  %v3730_v55 = vadd.f32 %v3725_v1, %v8030_v13 }
 0x4e2   : > { %v3788_v52 = vadd.f32 %v3787_v37, %v3786_v38  ;;  %v3800_v39 = vrot.slane %v3799_v34, 1  ;;  %v3848_v25 = vadd.f32 %v3847_v46, %v3846_v26  ;;  %v3819_v28 = vadd.f32 %v3818_v61, %v3817_v50 }
 0x4e3   : > { %v3831_v44 = vrot.slane %v3830_v40, 2  ;;  %v3860_v49 = vrot.slane %v3859_v0, 4  ;;  %v3869_v6 = vmul.f32 %v8021_v59, %v3717_v43  ;;  %v3731_v51 = vadd.f32 %v3727_v56, %v8035_v10 }
 0x4e4   : > { %v3801_v41 = vadd.f32 %v3800_v39, %v3799_v34  ;;  %3803 = vst.msk [vmem:[%s8085_s1] sm:$0x1] %vm3802_vm8, %v3788_v52  ;;  %v3849_v12 = vrot.slane %v3848_v25, 2  ;;  %v3820_v62 = vrot.slane %v3819_v28, 1  ;;  %v3899_v13 = vmul.f32 %v8011_v23, %v3730_v55  ;;  %v3741_v19 = vpop.permute.xlu1 %3740  ;;  %v3753_v14 = vpop.permute.xlu0 %3752 }
 0x4e5   : > { %v3832_v24 = vadd.f32 %v3831_v44, %v3830_v40  ;;  %v3861_v35 = vadd.f32 %v3860_v49, %v3859_v0  ;;  %4565 = vst.msk [vmem:[%s8017_s15 + $0x38] sm:$0xff] %vm379_vm4, %v3869_v6  ;;  %v3876_v9 = vsel %vm379_vm4, %v3869_v6, 0.0  ;;  %v3885_v16 = vmul.f32 %v3869_v6, %v3869_v6 }
 0x4e6   : > { %4557 = vst.msk [vmem:[%s8085_s1 + $0x8] sm:$0x1] %vm3802_vm8, %v3801_v41  ;;  %v3850_v18 = vadd.f32 %v3849_v12, %v3848_v25  ;;  %v3900_v27 = vmul.f32 %v8021_v59, %v3731_v51  ;;  %v3821_v10 = vadd.f32 %v3820_v62, %v3819_v28  ;;  %v3877_v58 = vadd.f32 %v3876_v9, %v3875_v8 }
 0x4e7   : > { %v3833_v32 = vrot.slane %v3832_v24, 1  ;;  %v3862_v22 = vrot.slane %v3861_v35, 2  ;;  %4567 = vst.msk [vmem:[%s8017_s15 + $0x40] sm:$0xff] %vm379_vm4, %v3899_v13  ;;  %v3889_v2 = vsel %vm379_vm4, %v3885_v16, 0.0  ;;  %v3906_v48 = vsel %vm379_vm4, %v3899_v13, 0.0 }
 0x4e8   : > { %v3851_v29 = vrot.slane %v3850_v18, 1  ;;  %v3915_v7 = vmul.f32 %v3899_v13, %v3899_v13  ;;  %4568 = vst.msk [vmem:[%s8017_s15 + $0x48] sm:$0xff] %vm379_vm4, %v3900_v27  ;;  %v3878_v4 = vrot.slane %v3877_v58, 4  ;;  %v3890_v47 = vadd.f32 %v3889_v2, %v3888_v20  ;;  %v3755_v37 = vpop.permute.xlu1 %3754 }
 0x4e9   : > { %v3834_v33 = vadd.f32 %v3833_v32, %v3832_v24  ;;  %3835 = vst.msk [vmem:[%s8085_s1 + $0x1] sm:$0x1] %vm3802_vm8, %v3821_v10  ;;  %v3863_v36 = vadd.f32 %v3862_v22, %v3861_v35  ;;  %v3907_v63 = vsel %vm379_vm4, %v3900_v27, 0.0  ;;  %v3916_v1 = vmul.f32 %v3900_v27, %v3900_v27  ;;  %v3767_v22 = vpop.permute.xlu0 %3766 }
 0x4ea   : > { %v3852_v60 = vadd.f32 %v3851_v29, %v3850_v18  ;;  %v3919_v45 = vsel %vm379_vm4, %v3915_v7, 0.0  ;;  %v3879_v53 = vadd.f32 %v3878_v4, %v3877_v58  ;;  %v3891_v26 = vrot.slane %v3890_v47, 4 }
 0x4eb   : > { %4560 = vst.msk [vmem:[%s8085_s1 + $0x9] sm:$0x1] %vm3802_vm8, %v3834_v33  ;;  %v3864_v38 = vrot.slane %v3863_v36, 1  ;;  %v3908_v17 = vadd.f32 %v3907_v63, %v3906_v48  ;;  %v3920_v50 = vsel %vm379_vm4, %v3916_v1, 0.0  ;;  %v3744_v31 = vadd.f32 %v3739_v54, %v8038_v30 }
 0x4ec   : > { %3866 = vst.msk [vmem:[%s8085_s1 + $0x2] sm:$0x1] %vm3802_vm8, %v3852_v60  ;;  %v3745_v8 = vadd.f32 %v3741_v19, %v8040_v5  ;;  %v3758_v3 = vadd.f32 %v3753_v14, %v8042_v57  ;;  %v3880_v46 = vrot.slane %v3879_v53, 2  ;;  %v3892_v11 = vadd.f32 %v3891_v26, %v3890_v47  ;;  %v3769_v58 = vpop.permute.xlu1 %3768 }
 0x4ed   : > { %v3865_v34 = vadd.f32 %v3864_v38, %v3863_v36  ;;  %v3909_v56 = vrot.slane %v3908_v17, 4  ;;  %v3921_v61 = vadd.f32 %v3920_v50, %v3919_v45  ;;  %v3930_v40 = vmul.f32 %v8011_v23, %v3744_v31 }
 0x4ee   : > { %v3931_v0 = vmul.f32 %v8021_v59, %v3745_v8  ;;  %v3961_v20 = vmul.f32 %v8011_v23, %v3758_v3  ;;  %v3881_v30 = vadd.f32 %v3880_v46, %v3879_v53  ;;  %v3893_v5 = vrot.slane %v3892_v11, 2 }
 0x4ef   : > { %4563 = vst.msk [vmem:[%s8085_s1 + $0xa] sm:$0x1] %vm3802_vm8, %v3865_v34  ;;  %v3910_v57 = vadd.f32 %v3909_v56, %v3908_v17  ;;  %v3759_v52 = vadd.f32 %v3755_v37, %v8050_v21  ;;  %v3922_v39 = vrot.slane %v3921_v61, 4  ;;  %v3937_v25 = vsel %vm379_vm4, %v3930_v40, 0.0 }
 0x4f0   : > { %4570 = vst.msk [vmem:[%s8017_s15 + $0x50] sm:$0xff] %vm379_vm4, %v3930_v40  ;;  %v3946_v43 = vmul.f32 %v3930_v40, %v3930_v40  ;;  %4571 = vst.msk [vmem:[%s8017_s15 + $0x58] sm:$0xff] %vm379_vm4, %v3931_v0  ;;  %v3938_v28 = vsel %vm379_vm4, %v3931_v0, 0.0  ;;  %v3882_v44 = vrot.slane %v3881_v30, 1  ;;  %v3894_v49 = vadd.f32 %v3893_v5, %v3892_v11 }
 0x4f1   : > { %4573 = vst.msk [vmem:[%s8017_s15 + $0x60] sm:$0xff] %vm379_vm4, %v3961_v20  ;;  %v3911_v55 = vrot.slane %v3910_v57, 2  ;;  %v3939_v54 = vadd.f32 %v3938_v28, %v3937_v25  ;;  %v3923_v41 = vadd.f32 %v3922_v39, %v3921_v61  ;;  %v3947_v12 = vmul.f32 %v3931_v0, %v3931_v0 }
 0x4f2   : > { %v3950_v21 = vsel %vm379_vm4, %v3946_v43, 0.0  ;;  %v3968_v6 = vsel %vm379_vm4, %v3961_v20, 0.0  ;;  %v3883_v51 = vadd.f32 %v3882_v44, %v3881_v30  ;;  %v3895_v62 = vrot.slane %v3894_v49, 1 }
 0x4f3   : > { %v3912_v24 = vadd.f32 %v3911_v55, %v3910_v57  ;;  %v3940_v35 = vrot.slane %v3939_v54, 4  ;;  %v3924_v13 = vrot.slane %v3923_v41, 2  ;;  %v3951_v18 = vsel %vm379_vm4, %v3947_v12, 0.0 }
 0x4f4   : > { %v3977_v9 = vmul.f32 %v3961_v20, %v3961_v20  ;;  %v3962_v16 = vmul.f32 %v8021_v59, %v3759_v52  ;;  %v3896_v27 = vadd.f32 %v3895_v62, %v3894_v49  ;;  %3897 = vst.msk [vmem:[%s8085_s1 + $0x3] sm:$0x1] %vm3802_vm8, %v3883_v51  ;;  %v3952_v32 = vadd.f32 %v3951_v18, %v3950_v21 }
 0x4f5   : > { %v3913_v19 = vrot.slane %v3912_v24, 1  ;;  %v3941_v10 = vadd.f32 %v3940_v35, %v3939_v54  ;;  %v3925_v29 = vadd.f32 %v3924_v13, %v3923_v41  ;;  %v3772_v45 = vadd.f32 %v3767_v22, %v8053_v42 }
 0x4f6   : > { %v3981_v2 = vsel %vm379_vm4, %v3977_v9, 0.0  ;;  %4574 = vst.msk [vmem:[%s8017_s15 + $0x68] sm:$0xff] %vm379_vm4, %v3962_v16  ;;  %v3969_v48 = vsel %vm379_vm4, %v3962_v16, 0.0  ;;  %v3978_v7 = vmul.f32 %v3962_v16, %v3962_v16  ;;  %v3953_v4 = vrot.slane %v3952_v32, 4 }
 0x4f7   : > { %4566 = vst.msk [vmem:[%s8085_s1 + $0xb] sm:$0x1] %vm3802_vm8, %v3896_v27  ;;  %v3914_v33 = vadd.f32 %v3913_v19, %v3912_v24  ;;  %v3942_v36 = vrot.slane %v3941_v10, 2  ;;  %v3970_v47 = vadd.f32 %v3969_v48, %v3968_v6  ;;  %v3926_v14 = vrot.slane %v3925_v29, 1 }
 0x4f8   : > { %v3982_v60 = vsel %vm379_vm4, %v3978_v7, 0.0  ;;  %v3773_v63 = vadd.f32 %v3769_v58, %v8055_v15  ;;  %v3954_v38 = vadd.f32 %v3953_v4, %v3952_v32  ;;  %v3992_v50 = vmul.f32 %v8011_v23, %v3772_v45 }
 0x4f9   : > { %3928 = vst.msk [vmem:[%s8085_s1 + $0x4] sm:$0x1] %vm3802_vm8, %v3914_v33  ;;  %v3943_v1 = vadd.f32 %v3942_v36, %v3941_v10  ;;  %v3971_v53 = vrot.slane %v3970_v47, 4  ;;  %v3983_v26 = vadd.f32 %v3982_v60, %v3981_v2  ;;  %v3927_v17 = vadd.f32 %v3926_v14, %v3925_v29 }
 0x4fa   : > { %v3993_v31 = vmul.f32 %v8021_v59, %v3773_v63  ;;  %v3955_v15 = vrot.slane %v3954_v38, 2  ;;  %4576 = vst.msk [vmem:[%s8017_s15 + $0x70] sm:$0xff] %vm379_vm4, %v3992_v50  ;;  %v3999_v23 = vsel %vm379_vm4, %v3992_v50, 0.0  ;;  %v4008_v59 = vmul.f32 %v3992_v50, %v3992_v50 }
 0x4fb   : > { %v3944_v42 = vrot.slane %v3943_v1, 1  ;;  %v3972_v8 = vadd.f32 %v3971_v53, %v3970_v47  ;;  %v3984_v3 = vrot.slane %v3983_v26, 4  ;;  %4569 = vst.msk [vmem:[%s8085_s1 + $0xc] sm:$0x1] %vm3802_vm8, %v3927_v17 }
 0x4fc   : > { %4577 = vst.msk [vmem:[%s8017_s15 + $0x78] sm:$0xff] %vm379_vm4, %v3993_v31  ;;  %v4000_v37 = vsel %vm379_vm4, %v3993_v31, 0.0  ;;  %v4009_v34 = vmul.f32 %v3993_v31, %v3993_v31  ;;  %v3956_v11 = vadd.f32 %v3955_v15, %v3954_v38 }
 0x4fd   : > { %v3945_v46 = vadd.f32 %v3944_v42, %v3943_v1  ;;  %v3973_v56 = vrot.slane %v3972_v8, 2  ;;  %v3985_v61 = vadd.f32 %v3984_v3, %v3983_v26 }
 0x4fe   : > { %4781 = shalt.err (!%p4778_p13)
}
 0x4ff   : > { %s4782_s26 = scalar_lea.hbm %s8154_s30, 2048  ;;  %s4786_s23 = scalar_lea.hbm %s8262_s4, 4096 }
 0x500   : > { %p4783_p0 = scmp.ne.s32.totalorder %s8154_s30, %s4782_s26  ;;  %p4787_p6 = scmp.lt.s32.totalorder %s8154_s30, %s8262_s4 }
 0x501   : > { %p4788_p9 = scmp.lt.s32.totalorder %s4786_s23, %s4782_s26 }
 0x502   : > { %p4784_p7 = pnand %p4783_p0, %p8308_p5 }
 0x503   : > { %p4789_p1 = por %p4788_p9, %p4787_p6 }
 0x504   : > { %p4785_p3 = pneg %p4784_p7 }
 0x506   : > { %p4790_p2 = pnand %p4789_p1, %p4785_p3 }
 0x508   : > { %4793 = shalt.err (!%p4790_p2)
}
 0x509   : > { %4605 = dma.vmem_to_hbm [thread:$0]  (%p8308_p5), %s8156_s2, 2048, %s8154_s30, %s4024_s16, %s4882_s13, %s4882_s13, %s4883_s28   ;;  %v4012_v40 = vsel %vm379_vm4, %v4008_v59, 0.0  ;;  %v4001_v0 = vadd.f32 %v4000_v37, %v3999_v23  ;;  %v4013_v20 = vsel %vm379_vm4, %v4009_v34, 0.0  ;;  %v3957_v30 = vrot.slane %v3956_v11, 1 }
 0x50a   : > { %3959 = vst.msk [vmem:[%s8085_s1 + $0x5] sm:$0x1] %vm3802_vm8, %v3945_v46  ;;  %v3974_v5 = vadd.f32 %v3973_v56, %v3972_v8  ;;  %v3986_v57 = vrot.slane %v3985_v61, 2  ;;  %v4014_v52 = vadd.f32 %v4013_v20, %v4012_v40  ;;  %s4079_s15 = sshll.u32 %s8085_s1, 4  ;;  %s8208_s2 = scalar_lea.hbm %s8264_s6, %s4592_s17  ;;  %s8201_s15 = int_to_ptr.vmem [resolvable:$true] %s4079_s15 }
 0x50b   : > { %v4002_v39 = vrot.slane %v4001_v0, 4  ;;  %v3958_v25 = vadd.f32 %v3957_v30, %v3956_v11  ;;  %s4794_s27 = scalar_lea.vmem %s8201_s15, 256  ;;  %s4885_s3 = smov [#allocation13]  }
 0x50c   : > { %v3975_v43 = vrot.slane %v3974_v5, 1  ;;  %v3987_v28 = vadd.f32 %v3986_v57, %v3985_v61  ;;  %v4015_v44 = vrot.slane %v4014_v52, 4  ;;  %p4795_p8 = scmp.ne.s32.totalorder %s8201_s15, %s4794_s27  ;;  %s4798_s30 = sshll.u32 %s4885_s3, 4  ;;  %s4799_s30 = int_to_ptr.vmem [resolvable:$false] %s4798_s30 }
 0x50d   : > { %v4003_v49 = vadd.f32 %v4002_v39, %v4001_v0  ;;  %4572 = vst.msk [vmem:[%s8085_s1 + $0xd] sm:$0x1] %vm3802_vm8, %v3958_v25  ;;  %s4800_s16 = scalar_lea.vmem %s4799_s30, 512  ;;  %p4801_p12 = scmp.lt.s32.totalorder %s8201_s15, %s4799_s30 }
 0x50e   : > { %v3976_v55 = vadd.f32 %v3975_v43, %v3974_v5  ;;  %v3988_v54 = vrot.slane %v3987_v28, 1  ;;  %v4016_v41 = vadd.f32 %v4015_v44, %v4014_v52  ;;  %p4796_p10 = pnand %p4795_p8, %p8308_p5  ;;  %p4802_p11 = scmp.lt.s32.totalorder %s4800_s16, %s4794_s27 }
 0x50f   : > { %v4004_v21 = vrot.slane %v4003_v49, 2 }
 0x510   : > { %v3989_v12 = vadd.f32 %v3988_v54, %v3987_v28  ;;  %3990 = vst.msk [vmem:[%s8085_s1 + $0x6] sm:$0x1] %vm3802_vm8, %v3976_v55  ;;  %v4017_v6 = vrot.slane %v4016_v41, 2  ;;  %p4797_p4 = pneg %p4796_p10  ;;  %p4803_p13 = por %p4802_p11, %p4801_p12 }
 0x511   : > { %v4005_v51 = vadd.f32 %v4004_v21, %v4003_v49 }
 0x512   : > { %4575 = vst.msk [vmem:[%s8085_s1 + $0xe] sm:$0x1] %vm3802_vm8, %v3989_v12  ;;  %v4018_v62 = vadd.f32 %v4017_v6, %v4016_v41  ;;  %p4804_p0 = pnand %p4803_p13, %p4797_p4 }
 0x513   : > { %v4006_v24 = vrot.slane %v4005_v51, 1 }
 0x514   : > { %v4019_v35 = vrot.slane %v4018_v62, 1 }
 0x515   : > { %v4007_v13 = vadd.f32 %v4006_v24, %v4005_v51 }
 0x516   : > { %v4020_v18 = vadd.f32 %v4019_v35, %v4018_v62 }
 0x517   : > { %4021 = vst.msk [vmem:[%s8085_s1 + $0x7] sm:$0x1] %vm3802_vm8, %v4007_v13 }
 0x518   : > { %4578 = vst.msk [vmem:[%s8085_s1 + $0xf] sm:$0x1] %vm3802_vm8, %v4020_v18 }
 0x519   : > { %4807 = shalt.err (!%p4804_p0)
}
 0x51a   : > { %s4808_s25 = scalar_lea.hbm %s8208_s2, 256  ;;  %s4812_s12 = scalar_lea.hbm %s8264_s6, 512 }
 0x51b   : > { %p4809_p7 = scmp.ne.s32.totalorder %s8208_s2, %s4808_s25  ;;  %p4813_p9 = scmp.lt.s32.totalorder %s8208_s2, %s8264_s6 }
 0x51c   : > { %p4814_p1 = scmp.lt.s32.totalorder %s4812_s12, %s4808_s25 }
 0x51d   : > { %p4810_p3 = pnand %p4809_p7, %p8308_p5 }
 0x51e   : > { %p4815_p2 = por %p4814_p1, %p4813_p9 }
 0x51f   : > { %p4811_p6 = pneg %p4810_p3 }
 0x521   : > { %p4816_p8 = pnand %p4815_p2, %p4811_p6 }
 0x523   : > { %4819 = shalt.err (!%p4816_p8)
}
 0x524   : > { %4607 = dma.vmem_to_hbm [thread:$0]  (%p8308_p5), %s8201_s15, 256, %s8208_s2, %s7919_s8, %s4882_s13, %s4882_s13, %s4883_s28  }
 0x525 PF: > { %s4094_s20 = sand.u32 1, %s4858_s21   ;;  %p8310_p10 = scmp.ne.s32.totalorder %s8291_s10, 0 }
 0x526   : > { %p8311_p4 = scmp.ge.s32.totalorder %s4870_s24, 2  ;;  %s4095_s26 = scalar_lea.sflag [#allocation5], %s4094_s20 }
 0x528   : > { %p4623_p12 = pnand %p8311_p4, %p8310_p10 }
 0x52a   : > { %p4624_p11 = pneg %p4623_p12 }
 0x52c   : > { %4849 = dma.done.wait (%p4624_p11), %s4095_s26, 2048  }
 0x52d   : > { %4851 = vsyncadd (%p4624_p11), %s4095_s26, 4294965248  ;;  %s8312_s9 = sadd.s32 4294967294, %s4870_s24  }
 0x52e   : > { %s4103_s14 = sand.u32 1, %s8312_s9  }
 0x52f   : > { %s4104_s22 = scalar_lea.sflag [#allocation12], %s4103_s14 }
 0x530   : > { %4853 = dma.done.wait (%p4624_p11), %s4104_s22, 512  }
 0x531   : > { %4855 = vsyncadd (%p4624_p11), %s4104_s22, 4294966784  ;;  %s8313_s24 = sld [smem:[#allocation21_spill]] }
 0x532   : > { %s8314_s21 = sld [smem:[#allocation19_spill]] }
 0x533   : > { %s8315_s22 = sld [smem:[#allocation20_spill]] }
 0x534   : > { %s8316_s23 = sld [smem:[#allocation22_spill]] }
 0x537   : > { %p25_p5 = scmp.ge.s32.totalorder %s8313_s24, 4  }
 0x539   :  { %27 = sbr.rel (!%p25_p5) target bundleno = 14 (0xe), region = 136 }
 0x53e   :  { %4118 = vsyncpa [#allocation4], 1 }
 0x53f   :  { %4120 = vsyncpa [#allocation4 + $0x1], 1 }
 0x540   :  { %4121 = vsyncpa [#allocation5], 1 }
 0x541   :  { %4123 = vsyncpa [#allocation5 + $0x1], 1 }
 0x542   :  { %4124 = vsyncpa [#allocation12], 1 }
 0x543   :  { %4126 = vsyncpa [#allocation12 + $0x1], 1 }
 0x544   :  { %4127 = vsyncpa [#allocation6], 1 }
 0x545   :  { %4129 = vsyncpa [#allocation6 + $0x1], 1 }
 0x546   :  { %4130 = vsyncpa [#allocation8], 1 }

</bundles_post_ra>
